<compile_context>
chip_gen: v6e
topology: v6e:2x2x1
jax: 0.10.0
libtpu: 0.0.40
codegen_flags: <defaults>
</compile_context>

<pallas_src>
import numpy as np
import jax
import jax.numpy as jnp
from jax.experimental import pallas as pl
from jax.experimental.pallas import tpu as pltpu

N_WIRES = 3606           # fixed in the reference module
ENCODED_DIM = 32         # module constructor arg


def ae_ncw_kernel(x_ref, w1_ref, b1_ref, w2_ref, b2_ref, w3_ref, b3_ref,
                  w4a_ref, o_ref):
    """One (batch, seq-tile) block of the fused 4-layer MLP, NCW layout.

    x_ref/o_ref: (1, n_wires, TILE_S). Weights in PyTorch (out, in) layout;
    b1..b3 are (out, 1) f32 columns broadcasting over the lane (seq) axis;
    w4a is w4 with b4 folded in as an extra (last) input column.
    """
    x = x_ref[0].astype(jnp.bfloat16)                                   # (NW, TS)

    # enc: Linear(NW -> 2E) + Tanh
    h1 = jnp.tanh(jnp.dot(w1_ref[...], x,
                          preferred_element_type=jnp.float32) + b1_ref[...])   # (2E, TS)
    # enc: Linear(2E -> E) + Tanh
    h2 = jnp.tanh(jnp.dot(w2_ref[...], h1.astype(jnp.bfloat16),
                          preferred_element_type=jnp.float32) + b2_ref[...])   # (E, TS)
    # dec: Linear(E -> 2E) + ReLU
    h3 = jnp.maximum(jnp.dot(w3_ref[...], h2.astype(jnp.bfloat16),
                             preferred_element_type=jnp.float32) + b3_ref[...],
                     0.0)                                                       # (2E, TS)

    # dec: Linear(2E -> NW) with the bias folded into w4a (ones-row trick).
    # The concat seam sits on a full bf16 sublane-tile boundary (64 rows).
    ones = jnp.ones((1, h3.shape[1]), jnp.bfloat16)
    h3a = jnp.concatenate([h3.astype(jnp.bfloat16), ones], axis=0)              # (2E+1, TS)
    y = jnp.dot(w4a_ref[...], h3a, preferred_element_type=jnp.float32)          # (NW, TS)
    # TODO(synk): on v7x, chunk this final matmul + store over NW to avoid the
    # full (NW, TILE_S) f32 scratch and start the output DMA earlier.

    o_ref[0] = y.astype(o_ref.dtype)


def _vmem_capacity_bytes():
    """Best-effort VMEM capacity query; conservative (v7x-class) fallback."""
    try:
        info = pltpu.get_tpu_info()
        for name in ("vmem_capacity_bytes", "vmem_size_bytes", "vmem_bytes"):
            v = getattr(info, name, None)
            if v:
                return int(v)
    except Exception:
        pass
    try:
        kind = jax.devices()[0].device_kind.lower()
        if ("v4" in kind) or ("v5" in kind) or ("v6" in kind):
            return 128 << 20
    except Exception:
        pass
    return 64 << 20   # conservative: assume v7x-class VMEM


def _pick_tile_s(s_pad, cap, batch):
    """Largest multiple-of-128 tile <= cap that divides the padded S, preferring
    one that leaves >= 2 total grid steps so both v7x TensorCores get work."""
    cands = [t for t in range(cap, 0, -128) if s_pad % t == 0]
    for t in cands:
        if batch * (s_pad // t) >= 2:
            return t
    return cands[0]


def ae_forward(x, params, out_dtype=jnp.float32):
    """x: (B, n_wires, S)  ->  y: (B, n_wires, S) of `out_dtype`.

    Pass out_dtype=jnp.bfloat16 (and/or a bf16 x) only if the surrounding
    graph accepts the reduced-precision boundary; default matches the f32
    PyTorch module.
    """
    w1, b1, w2, b2, w3, b3, w4, b4 = params
    B, NW, S = x.shape
    assert NW == N_WIRES

    vmem = _vmem_capacity_bytes()
    big_vmem = vmem >= (100 << 20)                 # v5e / v6e class (128 MiB)
    tile_cap = 512 if big_vmem else 256            # v7x: keep tiles inside 64 MiB
    vmem_limit = (96 << 20) if big_vmem else (48 << 20)

    # Lane-dense tiling: pad S up to a multiple of 128 so every x / y block's
    # last (lane) dim is a dense multiple of 128. No-op when S is aligned.
    S_pad = ((S + 127) // 128) * 128
    x_p = x if S_pad == S else jnp.pad(x, ((0, 0), (0, 0), (0, S_pad - S)))

    TILE_S = _pick_tile_s(S_pad, tile_cap, B)
    grid = (B, S_pad // TILE_S)

    # Params: bf16 weights (MXU, f32 accumulation); tiny f32 bias columns for
    # layers 1-3; b4 folded into w4 as an extra input column.
    w1b, w2b, w3b = (w.astype(jnp.bfloat16) for w in (w1, w2, w3))
    b1c, b2c, b3c = (b.reshape(-1, 1).astype(jnp.float32) for b in (b1, b2, b3))
    w4a = jnp.concatenate([w4, b4.reshape(-1, 1)], axis=1).astype(jnp.bfloat16)

    x_map = lambda b, s: (b, 0, s)        # stream (1, NW, TILE_S) blocks
    p_map = lambda b, s: (0, 0)           # params: constant -> VMEM-resident

    # Advisory cost hint (memory-bound custom call).
    E2 = int(w1.shape[0])                 # 2 * encoded_dim
    flops = int(B) * int(S_pad) * 4 * E2 * (NW + E2 // 2)
    trans = int(B) * int(S_pad) * (E2 + E2 // 2)
    bytes_io = int(B) * NW * int(S_pad) * (x_p.dtype.itemsize
                                           + jnp.dtype(out_dtype).itemsize)

    def build(param_mode):
        if param_mode is None:
            full = lambda a: pl.BlockSpec(a.shape, p_map)
        else:
            full = lambda a: pl.BlockSpec(a.shape, p_map, pipeline_mode=param_mode)
        return pl.pallas_call(
            ae_ncw_kernel,
            out_shape=jax.ShapeDtypeStruct((B, NW, S_pad), out_dtype),
            grid=grid,
            in_specs=[
                pl.BlockSpec((1, NW, TILE_S), x_map),
                full(w1b), full(b1c),
                full(w2b), full(b2c),
                full(w3b), full(b3c),
                full(w4a),
            ],
            out_specs=pl.BlockSpec((1, NW, TILE_S), x_map),
            compiler_params=pltpu.CompilerParams(
                dimension_semantics=("parallel", "parallel"),
                vmem_limit_bytes=vmem_limit,
            ),
            cost_estimate=pl.CostEstimate(flops=flops, transcendentals=trans,
                                          bytes_accessed=bytes_io),
        )

    args = (x_p, w1b, b1c, w2b, b2c, w3b, b3c, w4a)
    try:
        # Constant-index params never change block -> one buffer is enough
        # (saves a few MiB of VMEM vs default double-buffering; matters on v7x).
        y = build(pl.Buffered(buffer_count=1))(*args)
    except Exception:
        # TODO(synk): pipeline_mode=pl.Buffered(1) not supported in this JAX
        # build; fall back to default double-buffered parameter blocks.
        y = build(None)(*args)

    if S_pad != S:
        y = y[:, :, :S]
    return y


def init_params(key, encoded_dim):
    """PyTorch nn.Linear-style init, PyTorch (out_features, in_features) layout."""
    e2 = encoded_dim * 2
    dims = [
        (N_WIRES, e2),       # enc layer 1
        (e2, encoded_dim),   # enc layer 2
        (encoded_dim, e2),   # dec layer 1
        (e2, N_WIRES),       # dec layer 2
    ]
    params = []
    for fan_in, fan_out in dims:
        key, kw, kb = jax.random.split(key, 3)
        bound = 1.0 / np.sqrt(fan_in)
        w = jax.random.uniform(kw, (fan_out, fan_in), jnp.float32, -bound, bound)
        b = jax.random.uniform(kb, (fan_out,), jnp.float32, -bound, bound)
        params += [w, b]
    return tuple(params)


def ae_forward_ref(x, params, mirror_bf16=True):
    """Pure-JAX reference of the module's forward pass.

    mirror_bf16=True applies the same bf16 weight/activation rounding the
    kernel uses (incl. b4, which the kernel folds into bf16 w4) for a tight
    check; False is the plain f32 module (loose check).
    """
    w1, b1, w2, b2, w3, b3, w4, b4 = params
    q = (lambda a: a.astype(jnp.bfloat16).astype(jnp.float32)) if mirror_bf16 \
        else (lambda a: a)
    xt = jnp.transpose(x, (0, 2, 1))                      # (B, S, NW)
    h1 = jnp.tanh(q(xt) @ q(w1).T + b1)
    h2 = jnp.tanh(q(h1) @ q(w2).T + b2)
    h3 = jnp.maximum(q(h2) @ q(w3).T + b3, 0.0)
    y = q(h3) @ q(w4).T + q(b4)
    return jnp.transpose(y, (0, 2, 1))


if __name__ == "__main__":
    key = jax.random.PRNGKey(0)
    key, kx = jax.random.split(key)

    B, S = 2, 8                                           # small batch / seq
    x = jax.random.normal(kx, (B, N_WIRES, S), jnp.float32)
    params = init_params(key, ENCODED_DIM)

    y = jax.block_until_ready(ae_forward(x, params))
    assert y.shape == (B, N_WIRES, S)
    assert y.dtype == jnp.float32

    # Tight check vs a reference with identical bf16 quantization.
    y_ref_q = jax.block_until_ready(ae_forward_ref(x, params, mirror_bf16=True))
    np.testing.assert_allclose(np.asarray(y), np.asarray(y_ref_q),
                               rtol=1e-2, atol=1e-2)

    # Loose check vs the full-f32 module semantics (bf16 rounding only).
    y_ref = jax.block_until_ready(ae_forward_ref(x, params, mirror_bf16=False))
    np.testing.assert_allclose(np.asarray(y), np.asarray(y_ref),
                               rtol=1e-1, atol=3e-2)

    print("KERNEL_OK")
</pallas_src>

<mosaic_0001>
module attributes {stable_mosaic.version = 11 : i64} {
  func.func @ae_ncw_kernel(%arg0: i32, %arg1: i32, %arg2: memref<1x3606x128xf32, #tpu.memory_space<vmem>>, %arg3: memref<64x3606xbf16, #tpu.memory_space<vmem>>, %arg4: memref<64x1xf32, #tpu.memory_space<vmem>>, %arg5: memref<32x64xbf16, #tpu.memory_space<vmem>>, %arg6: memref<32x1xf32, #tpu.memory_space<vmem>>, %arg7: memref<64x32xbf16, #tpu.memory_space<vmem>>, %arg8: memref<64x1xf32, #tpu.memory_space<vmem>>, %arg9: memref<3606x65xbf16, #tpu.memory_space<vmem>>, %arg10: memref<1x3606x128xf32, #tpu.memory_space<vmem>>) attributes {dimension_semantics = [#tpu.dimension_semantics<parallel>, #tpu.dimension_semantics<parallel>], iteration_bounds = array<i64: 2, 1>, scalar_prefetch = 0 : i64, scratch_operands = 0 : i64, tpu.core_type = #tpu.core_type<tc>, window_params = [{transform_indices = @transform_0, window_bounds = array<i64: 1, 3606, 128>}, {pipeline_mode = #tpu.pipeline_mode<synchronous>, transform_indices = @transform_1, window_bounds = array<i64: 64, 3606>}, {pipeline_mode = #tpu.pipeline_mode<synchronous>, transform_indices = @transform_2, window_bounds = array<i64: 64, 1>}, {pipeline_mode = #tpu.pipeline_mode<synchronous>, transform_indices = @transform_3, window_bounds = array<i64: 32, 64>}, {pipeline_mode = #tpu.pipeline_mode<synchronous>, transform_indices = @transform_4, window_bounds = array<i64: 32, 1>}, {pipeline_mode = #tpu.pipeline_mode<synchronous>, transform_indices = @transform_5, window_bounds = array<i64: 64, 32>}, {pipeline_mode = #tpu.pipeline_mode<synchronous>, transform_indices = @transform_6, window_bounds = array<i64: 64, 1>}, {pipeline_mode = #tpu.pipeline_mode<synchronous>, transform_indices = @transform_7, window_bounds = array<i64: 3606, 65>}, {transform_indices = @transform_8, window_bounds = array<i64: 1, 3606, 128>}]} {
    %c0 = arith.constant 0 : index
    %c0_0 = arith.constant 0 : index
    %c0_1 = arith.constant 0 : index
    %0 = vector.load %arg2[%c0, %c0_0, %c0_1] : memref<1x3606x128xf32, #tpu.memory_space<vmem>>, vector<1x3606x128xf32>
    %1 = vector.shape_cast %0 : vector<1x3606x128xf32> to vector<3606x128xf32>
    %2 = arith.truncf %1 : vector<3606x128xf32> to vector<3606x128xbf16>
    %c0_2 = arith.constant 0 : index
    %c0_3 = arith.constant 0 : index
    %3 = vector.load %arg3[%c0_2, %c0_3] : memref<64x3606xbf16, #tpu.memory_space<vmem>>, vector<64x3606xbf16>
    %cst = arith.constant dense<0.000000e+00> : vector<64x128xf32>
    %4 = tpu.matmul %3, %2, %cst {dimension_numbers = #tpu.dot_dimension_numbers<[1], [0], [0], [1], [0, 0, 1, 1], [], []>} : vector<64x3606xbf16>, vector<3606x128xbf16>, vector<64x128xf32> -> vector<64x128xf32>
    %c0_4 = arith.constant 0 : index
    %c0_5 = arith.constant 0 : index
    %5 = vector.load %arg4[%c0_4, %c0_5] : memref<64x1xf32, #tpu.memory_space<vmem>>, vector<64x1xf32>
    %6 = vector.broadcast %5 : vector<64x1xf32> to vector<64x128xf32>
    %7 = arith.addf %4, %6 : vector<64x128xf32>
    %8 = math.tanh %7 : vector<64x128xf32>
    %c0_6 = arith.constant 0 : index
    %c0_7 = arith.constant 0 : index
    %9 = vector.load %arg5[%c0_6, %c0_7] : memref<32x64xbf16, #tpu.memory_space<vmem>>, vector<32x64xbf16>
    %10 = arith.truncf %8 : vector<64x128xf32> to vector<64x128xbf16>
    %cst_8 = arith.constant dense<0.000000e+00> : vector<32x128xf32>
    %11 = tpu.matmul %9, %10, %cst_8 {dimension_numbers = #tpu.dot_dimension_numbers<[1], [0], [0], [1], [0, 0, 1, 1], [], []>} : vector<32x64xbf16>, vector<64x128xbf16>, vector<32x128xf32> -> vector<32x128xf32>
    %c0_9 = arith.constant 0 : index
    %c0_10 = arith.constant 0 : index
    %12 = vector.load %arg6[%c0_9, %c0_10] : memref<32x1xf32, #tpu.memory_space<vmem>>, vector<32x1xf32>
    %13 = vector.broadcast %12 : vector<32x1xf32> to vector<32x128xf32>
    %14 = arith.addf %11, %13 : vector<32x128xf32>
    %15 = math.tanh %14 : vector<32x128xf32>
    %c0_11 = arith.constant 0 : index
    %c0_12 = arith.constant 0 : index
    %16 = vector.load %arg7[%c0_11, %c0_12] : memref<64x32xbf16, #tpu.memory_space<vmem>>, vector<64x32xbf16>
    %17 = arith.truncf %15 : vector<32x128xf32> to vector<32x128xbf16>
    %cst_13 = arith.constant dense<0.000000e+00> : vector<64x128xf32>
    %18 = tpu.matmul %16, %17, %cst_13 {dimension_numbers = #tpu.dot_dimension_numbers<[1], [0], [0], [1], [0, 0, 1, 1], [], []>} : vector<64x32xbf16>, vector<32x128xbf16>, vector<64x128xf32> -> vector<64x128xf32>
    %c0_14 = arith.constant 0 : index
    %c0_15 = arith.constant 0 : index
    %19 = vector.load %arg8[%c0_14, %c0_15] : memref<64x1xf32, #tpu.memory_space<vmem>>, vector<64x1xf32>
    %20 = vector.broadcast %19 : vector<64x1xf32> to vector<64x128xf32>
    %21 = arith.addf %18, %20 : vector<64x128xf32>
    %cst_16 = arith.constant 0.000000e+00 : f32
    %22 = vector.broadcast %cst_16 : f32 to vector<64x128xf32>
    %23 = arith.maximumf %21, %22 : vector<64x128xf32>
    %cst_17 = arith.constant 1.000000e+00 : bf16
    %24 = vector.broadcast %cst_17 : bf16 to vector<1x128xbf16>
    %25 = arith.truncf %23 : vector<64x128xf32> to vector<64x128xbf16>
    %26 = tpu.concatenate %25, %24 in 0 : vector<64x128xbf16>, vector<1x128xbf16> -> vector<65x128xbf16>
    %c0_18 = arith.constant 0 : index
    %c0_19 = arith.constant 0 : index
    %27 = vector.load %arg9[%c0_18, %c0_19] : memref<3606x65xbf16, #tpu.memory_space<vmem>>, vector<3606x65xbf16>
    %cst_20 = arith.constant dense<0.000000e+00> : vector<3606x128xf32>
    %28 = tpu.matmul %27, %26, %cst_20 {dimension_numbers = #tpu.dot_dimension_numbers<[1], [0], [0], [1], [0, 0, 1, 1], [], []>} : vector<3606x65xbf16>, vector<65x128xbf16>, vector<3606x128xf32> -> vector<3606x128xf32>
    %c0_21 = arith.constant 0 : index
    %c0_22 = arith.constant 0 : index
    %c0_23 = arith.constant 0 : index
    %29 = vector.load %arg10[%c0_21, %c0_22, %c0_23] : memref<1x3606x128xf32, #tpu.memory_space<vmem>>, vector<1x3606x128xf32>
    %30 = vector.shape_cast %29 : vector<1x3606x128xf32> to vector<3606x128xf32>
    %31 = vector.shape_cast %28 : vector<3606x128xf32> to vector<1x3606x128xf32>
    tpu.vector_store %arg10[%c0_21, %c0_22, %c0_23], %31 {strides = array<i32>} : memref<1x3606x128xf32, #tpu.memory_space<vmem>>, vector<1x3606x128xf32>,
    return
  }
  func.func @transform_0(%arg0: i32, %arg1: i32) -> (i32, i32, i32) {
    %c0_i32 = arith.constant 0 : i32
    %c0_i32_0 = arith.constant 0 : i32
    return %arg0, %c0_i32, %arg1 : i32, i32, i32
  }
  func.func @transform_1(%arg0: i32, %arg1: i32) -> (i32, i32) {
    %c0_i32 = arith.constant 0 : i32
    %c0_i32_0 = arith.constant 0 : i32
    %c0_i32_1 = arith.constant 0 : i32
    return %c0_i32, %c0_i32_0 : i32, i32
  }
  func.func @transform_2(%arg0: i32, %arg1: i32) -> (i32, i32) {
    %c0_i32 = arith.constant 0 : i32
    %c0_i32_0 = arith.constant 0 : i32
    %c0_i32_1 = arith.constant 0 : i32
    return %c0_i32, %c0_i32_0 : i32, i32
  }
  func.func @transform_3(%arg0: i32, %arg1: i32) -> (i32, i32) {
    %c0_i32 = arith.constant 0 : i32
    %c0_i32_0 = arith.constant 0 : i32
    %c0_i32_1 = arith.constant 0 : i32
    return %c0_i32, %c0_i32_0 : i32, i32
  }
  func.func @transform_4(%arg0: i32, %arg1: i32) -> (i32, i32) {
    %c0_i32 = arith.constant 0 : i32
    %c0_i32_0 = arith.constant 0 : i32
    %c0_i32_1 = arith.constant 0 : i32
    return %c0_i32, %c0_i32_0 : i32, i32
  }
  func.func @transform_5(%arg0: i32, %arg1: i32) -> (i32, i32) {
    %c0_i32 = arith.constant 0 : i32
    %c0_i32_0 = arith.constant 0 : i32
    %c0_i32_1 = arith.constant 0 : i32
    return %c0_i32, %c0_i32_0 : i32, i32
  }
  func.func @transform_6(%arg0: i32, %arg1: i32) -> (i32, i32) {
    %c0_i32 = arith.constant 0 : i32
    %c0_i32_0 = arith.constant 0 : i32
    %c0_i32_1 = arith.constant 0 : i32
    return %c0_i32, %c0_i32_0 : i32, i32
  }
  func.func @transform_7(%arg0: i32, %arg1: i32) -> (i32, i32) {
    %c0_i32 = arith.constant 0 : i32
    %c0_i32_0 = arith.constant 0 : i32
    %c0_i32_1 = arith.constant 0 : i32
    return %c0_i32, %c0_i32_0 : i32, i32
  }
  func.func @transform_8(%arg0: i32, %arg1: i32) -> (i32, i32, i32) {
    %c0_i32 = arith.constant 0 : i32
    %c0_i32_0 = arith.constant 0 : i32
    return %arg0, %c0_i32, %arg1 : i32, i32, i32
  }
}

module attributes {stable_mosaic.version = 11 : i64} {
  func.func @ae_ncw_kernel(%arg0: i32, %arg1: i32, %arg2: memref<1x3606x128xf32, #tpu.memory_space<vmem>>, %arg3: memref<64x3606xbf16, #tpu.memory_space<vmem>>, %arg4: memref<64x1xf32, #tpu.memory_space<vmem>>, %arg5: memref<32x64xbf16, #tpu.memory_space<vmem>>, %arg6: memref<32x1xf32, #tpu.memory_space<vmem>>, %arg7: memref<64x32xbf16, #tpu.memory_space<vmem>>, %arg8: memref<64x1xf32, #tpu.memory_space<vmem>>, %arg9: memref<3606x65xbf16, #tpu.memory_space<vmem>>, %arg10: memref<1x3606x128xf32, #tpu.memory_space<vmem>>) attributes {dimension_semantics = [#tpu.dimension_semantics<parallel>, #tpu.dimension_semantics<parallel>], iteration_bounds = array<i64: 2, 1>, scalar_prefetch = 0 : i64, scratch_operands = 0 : i64, tpu.core_type = #tpu.core_type<tc>, window_params = [{transform_indices = @transform_0, window_bounds = array<i64: 1, 3606, 128>}, {pipeline_mode = #tpu.pipeline_mode<synchronous>, transform_indices = @transform_1, window_bounds = array<i64: 64, 3606>}, {pipeline_mode = #tpu.pipeline_mode<synchronous>, transform_indices = @transform_2, window_bounds = array<i64: 64, 1>}, {pipeline_mode = #tpu.pipeline_mode<synchronous>, transform_indices = @transform_3, window_bounds = array<i64: 32, 64>}, {pipeline_mode = #tpu.pipeline_mode<synchronous>, transform_indices = @transform_4, window_bounds = array<i64: 32, 1>}, {pipeline_mode = #tpu.pipeline_mode<synchronous>, transform_indices = @transform_5, window_bounds = array<i64: 64, 32>}, {pipeline_mode = #tpu.pipeline_mode<synchronous>, transform_indices = @transform_6, window_bounds = array<i64: 64, 1>}, {pipeline_mode = #tpu.pipeline_mode<synchronous>, transform_indices = @transform_7, window_bounds = array<i64: 3606, 65>}, {transform_indices = @transform_8, window_bounds = array<i64: 1, 3606, 128>}]} {
    %c0 = arith.constant 0 : index
    %c0_0 = arith.constant 0 : index
    %c0_1 = arith.constant 0 : index
    %0 = vector.load %arg2[%c0, %c0_0, %c0_1] : memref<1x3606x128xf32, #tpu.memory_space<vmem>>, vector<1x3606x128xf32>
    %1 = vector.shape_cast %0 : vector<1x3606x128xf32> to vector<3606x128xf32>
    %2 = arith.truncf %1 : vector<3606x128xf32> to vector<3606x128xbf16>
    %c0_2 = arith.constant 0 : index
    %c0_3 = arith.constant 0 : index
    %3 = vector.load %arg3[%c0_2, %c0_3] : memref<64x3606xbf16, #tpu.memory_space<vmem>>, vector<64x3606xbf16>
    %cst = arith.constant dense<0.000000e+00> : vector<64x128xf32>
    %4 = tpu.matmul %3, %2, %cst {dimension_numbers = #tpu.dot_dimension_numbers<[1], [0], [0], [1], [0, 0, 1, 1], [], []>} : vector<64x3606xbf16>, vector<3606x128xbf16>, vector<64x128xf32> -> vector<64x128xf32>
    %c0_4 = arith.constant 0 : index
    %c0_5 = arith.constant 0 : index
    %5 = vector.load %arg4[%c0_4, %c0_5] : memref<64x1xf32, #tpu.memory_space<vmem>>, vector<64x1xf32>
    %6 = vector.broadcast %5 : vector<64x1xf32> to vector<64x128xf32>
    %7 = arith.addf %4, %6 : vector<64x128xf32>
    %8 = math.tanh %7 : vector<64x128xf32>
    %c0_6 = arith.constant 0 : index
    %c0_7 = arith.constant 0 : index
    %9 = vector.load %arg5[%c0_6, %c0_7] : memref<32x64xbf16, #tpu.memory_space<vmem>>, vector<32x64xbf16>
    %10 = arith.truncf %8 : vector<64x128xf32> to vector<64x128xbf16>
    %cst_8 = arith.constant dense<0.000000e+00> : vector<32x128xf32>
    %11 = tpu.matmul %9, %10, %cst_8 {dimension_numbers = #tpu.dot_dimension_numbers<[1], [0], [0], [1], [0, 0, 1, 1], [], []>} : vector<32x64xbf16>, vector<64x128xbf16>, vector<32x128xf32> -> vector<32x128xf32>
    %c0_9 = arith.constant 0 : index
    %c0_10 = arith.constant 0 : index
    %12 = vector.load %arg6[%c0_9, %c0_10] : memref<32x1xf32, #tpu.memory_space<vmem>>, vector<32x1xf32>
    %13 = vector.broadcast %12 : vector<32x1xf32> to vector<32x128xf32>
    %14 = arith.addf %11, %13 : vector<32x128xf32>
    %15 = math.tanh %14 : vector<32x128xf32>
    %c0_11 = arith.constant 0 : index
    %c0_12 = arith.constant 0 : index
    %16 = vector.load %arg7[%c0_11, %c0_12] : memref<64x32xbf16, #tpu.memory_space<vmem>>, vector<64x32xbf16>
    %17 = arith.truncf %15 : vector<32x128xf32> to vector<32x128xbf16>
    %cst_13 = arith.constant dense<0.000000e+00> : vector<64x128xf32>
    %18 = tpu.matmul %16, %17, %cst_13 {dimension_numbers = #tpu.dot_dimension_numbers<[1], [0], [0], [1], [0, 0, 1, 1], [], []>} : vector<64x32xbf16>, vector<32x128xbf16>, vector<64x128xf32> -> vector<64x128xf32>
    %c0_14 = arith.constant 0 : index
    %c0_15 = arith.constant 0 : index
    %19 = vector.load %arg8[%c0_14, %c0_15] : memref<64x1xf32, #tpu.memory_space<vmem>>, vector<64x1xf32>
    %20 = vector.broadcast %19 : vector<64x1xf32> to vector<64x128xf32>
    %21 = arith.addf %18, %20 : vector<64x128xf32>
    %cst_16 = arith.constant 0.000000e+00 : f32
    %22 = vector.broadcast %cst_16 : f32 to vector<64x128xf32>
    %23 = arith.maximumf %21, %22 : vector<64x128xf32>
    %cst_17 = arith.constant 1.000000e+00 : bf16
    %24 = vector.broadcast %cst_17 : bf16 to vector<1x128xbf16>
    %25 = arith.truncf %23 : vector<64x128xf32> to vector<64x128xbf16>
    %26 = tpu.concatenate %25, %24 in 0 : vector<64x128xbf16>, vector<1x128xbf16> -> vector<65x128xbf16>
    %c0_18 = arith.constant 0 : index
    %c0_19 = arith.constant 0 : index
    %27 = vector.load %arg9[%c0_18, %c0_19] : memref<3606x65xbf16, #tpu.memory_space<vmem>>, vector<3606x65xbf16>
    %cst_20 = arith.constant dense<0.000000e+00> : vector<3606x128xf32>
    %28 = tpu.matmul %27, %26, %cst_20 {dimension_numbers = #tpu.dot_dimension_numbers<[1], [0], [0], [1], [0, 0, 1, 1], [], []>} : vector<3606x65xbf16>, vector<65x128xbf16>, vector<3606x128xf32> -> vector<3606x128xf32>
    %c0_21 = arith.constant 0 : index
    %c0_22 = arith.constant 0 : index
    %c0_23 = arith.constant 0 : index
    %29 = vector.load %arg10[%c0_21, %c0_22, %c0_23] : memref<1x3606x128xf32, #tpu.memory_space<vmem>>, vector<1x3606x128xf32>
    %30 = vector.shape_cast %29 : vector<1x3606x128xf32> to vector<3606x128xf32>
    %31 = vector.shape_cast %28 : vector<3606x128xf32> to vector<1x3606x128xf32>
    tpu.vector_store %arg10[%c0_21, %c0_22, %c0_23], %31 {strides = array<i32>} : memref<1x3606x128xf32, #tpu.memory_space<vmem>>, vector<1x3606x128xf32>,
    return
  }
  func.func @transform_0(%arg0: i32, %arg1: i32) -> (i32, i32, i32) {
    %c0_i32 = arith.constant 0 : i32
    %c0_i32_0 = arith.constant 0 : i32
    return %arg0, %c0_i32, %arg1 : i32, i32, i32
  }
  func.func @transform_1(%arg0: i32, %arg1: i32) -> (i32, i32) {
    %c0_i32 = arith.constant 0 : i32
    %c0_i32_0 = arith.constant 0 : i32
    %c0_i32_1 = arith.constant 0 : i32
    return %c0_i32, %c0_i32_0 : i32, i32
  }
  func.func @transform_2(%arg0: i32, %arg1: i32) -> (i32, i32) {
    %c0_i32 = arith.constant 0 : i32
    %c0_i32_0 = arith.constant 0 : i32
    %c0_i32_1 = arith.constant 0 : i32
    return %c0_i32, %c0_i32_0 : i32, i32
  }
  func.func @transform_3(%arg0: i32, %arg1: i32) -> (i32, i32) {
    %c0_i32 = arith.constant 0 : i32
    %c0_i32_0 = arith.constant 0 : i32
    %c0_i32_1 = arith.constant 0 : i32
    return %c0_i32, %c0_i32_0 : i32, i32
  }
  func.func @transform_4(%arg0: i32, %arg1: i32) -> (i32, i32) {
    %c0_i32 = arith.constant 0 : i32
    %c0_i32_0 = arith.constant 0 : i32
    %c0_i32_1 = arith.constant 0 : i32
    return %c0_i32, %c0_i32_0 : i32, i32
  }
  func.func @transform_5(%arg0: i32, %arg1: i32) -> (i32, i32) {
    %c0_i32 = arith.constant 0 : i32
    %c0_i32_0 = arith.constant 0 : i32
    %c0_i32_1 = arith.constant 0 : i32
    return %c0_i32, %c0_i32_0 : i32, i32
  }
  func.func @transform_6(%arg0: i32, %arg1: i32) -> (i32, i32) {
    %c0_i32 = arith.constant 0 : i32
    %c0_i32_0 = arith.constant 0 : i32
    %c0_i32_1 = arith.constant 0 : i32
    return %c0_i32, %c0_i32_0 : i32, i32
  }
  func.func @transform_7(%arg0: i32, %arg1: i32) -> (i32, i32) {
    %c0_i32 = arith.constant 0 : i32
    %c0_i32_0 = arith.constant 0 : i32
    %c0_i32_1 = arith.constant 0 : i32
    return %c0_i32, %c0_i32_0 : i32, i32
  }
  func.func @transform_8(%arg0: i32, %arg1: i32) -> (i32, i32, i32) {
    %c0_i32 = arith.constant 0 : i32
    %c0_i32_0 = arith.constant 0 : i32
    return %arg0, %c0_i32, %arg1 : i32, i32, i32
  }
}

</mosaic_0001>

<bundles_post_ra>
// kernel: tpu_custom_call.1
= control target key start
LH: loop header
LB: loop body
LE: loop exit
PB: predicated region body
PF: predicated region fallthrough
CT: control target
= control target key end

     0   :  { %s10109_s27 = smov 0   ;;  %s10111_s28 = smov 0   ;;  %s12522_s0 = inlined_call_operand.vmem [shape: f32[2,3606,128], index: 0, kind: input, shape index: {}]   ;;  %s12523_s1 = inlined_call_operand.vmem [shape: bf16[64,3606], index: 1, kind: input, shape index: {}]   ;;  %s12524_s2 = inlined_call_operand.vmem [shape: f32[64,1], index: 2, kind: input, shape index: {}]   ;;  %s12525_s3 = inlined_call_operand.vmem [shape: bf16[32,64], index: 3, kind: input, shape index: {}]   ;;  %s12526_s4 = inlined_call_operand.vmem [shape: f32[32,1], index: 4, kind: input, shape index: {}]   ;;  %s12527_s5 = inlined_call_operand.vmem [shape: bf16[64,32], index: 5, kind: input, shape index: {}]   ;;  %s12528_s6 = inlined_call_operand.vmem [shape: f32[64,1], index: 6, kind: input, shape index: {}]   ;;  %s12529_s7 = inlined_call_operand.vmem [shape: bf16[3606,65], index: 7, kind: input, shape index: {}]   ;;  %s12530_s8 = inlined_call_operand.vmem [shape: f32[2,3606,128], index: 8, kind: output, shape index: {}]  }
   0x1   :  { %s10113_s29 = smov 0  }
   0x2 LB: > { %s30_s30 = sadd.s32 1, %s10057_s28  ;;  %p7676_p0 = scmp.ge.s32.totalorder %s10061_s29, 1  ;;  %s10061_s29 = sphi %s10113_s29, %s18_s29   ;;  %s10057_s28 = sphi %s10111_s28, %s12552_s28   ;;  %s10053_s27 = sphi %s10109_s27, %s12551_s27  }
   0x3   : > { %p32_p1 = scmp.ge.s32.totalorder %s30_s30, 2  ;;  %p281_p2 = scmp.lt.s32.totalorder %s10061_s29, 3 }
   0x5   : > { %s12554_s30 = smov (%p32_p1, %s30_s30), 0  ;;  %p282_p3 = pnand %p7676_p0, %p281_p2 }
   0x7   : > { %285 = sbr.rel (%p282_p3) target bundleno = 1614 (0x64e), region = 52 }
   0xc   : > { %p321_p4 = scmp.lt.s32.totalorder %s10053_s27, 1  ;;  %v9613_v0 = vld [vmem:[%s12523_s1 + $0x4] ss:$116 sps:$4 sm:$0xff]   ;;  %v10063_v1 = vmov 0   ;;  %v9616_v2 = vld [vmem:[%s12523_s1 + $0xc] ss:$116 sps:$4 sm:$0xff]  }
   0xd   : > { %9609 = vset.pattern.permute.xlu0 %v10063_v1  ;;  %9610 = vset.pattern.permute.xlu1 %v10063_v1  ;;  %vm5292_vm0 = vcmask 1040384   ;;  %vm1777_vm1 = vcmask 1042432   ;;  %vm1764_vm2 = vcmask 179200   ;;  %vm2806_vm3 = vcmask 523264  }
   0xe   : > { %s12556_s27 = smov (!%p321_p4, %s10053_s27), 1  ;;  %1813 = vmatprep.mubr.bf16.mxu0 %v9613_v0  ;;  %1878 = vmatprep.mubr.bf16.mxu1 %v9616_v2  ;;  %vm2944_vm4 = vcmask 261120   ;;  %vm4613_vm5 = vcmask 531456  }
   0xf   : > { %s9583_s13 = smul.u32 3608, %s12556_s27 }
  0x11   : > { %s10143_s16 = scalar_lea.vmem %s12522_s0, %s9583_s13  ;;  %s11560_s23 = scalar_lea.vmem %s12530_s8, %s9583_s13 }
  0x12   : > { %v369_v3 = vld [vmem:[%s10143_s16 + $0xf0] sm:$0xff]  ;;  %v370_v4 = vld [vmem:[%s10143_s16 + $0xf8] sm:$0xff]  ;;  %v367_v14 = vld [vmem:[%s10143_s16 + $0xe0] sm:$0xff] }
  0x13   : > { %v353_v5 = vld [vmem:[%s10143_s16 + $0x70] sm:$0xff]  ;;  %v805_v6 = vpack.c.bf16 %v370_v4, %v369_v3  ;;  %v354_v7 = vld [vmem:[%s10143_s16 + $0x78] sm:$0xff]  ;;  %v368_v16 = vld [vmem:[%s10143_s16 + $0xe8] sm:$0xff] }
  0x14   : > { %v401_v8 = vld [vmem:[%s10143_s16 + $0x1f0] sm:$0xff]  ;;  %v402_v9 = vld [vmem:[%s10143_s16 + $0x1f8] sm:$0xff]  ;;  %v797_v10 = vpack.c.bf16 %v354_v7, %v353_v5  ;;  %v351_v17 = vld [vmem:[%s10143_s16 + $0x60] sm:$0xff]  ;;  %v804_v19 = vpack.c.bf16 %v368_v16, %v367_v14 }
  0x15   : > { %v821_v11 = vpack.c.bf16 %v402_v9, %v401_v8  ;;  %v385_v12 = vld [vmem:[%s10143_s16 + $0x170] sm:$0xff]  ;;  %v386_v13 = vld [vmem:[%s10143_s16 + $0x178] sm:$0xff]  ;;  %8265 = vmatprep.subr.bf16.mxu0 %v805_v6  ;;  %v352_v18 = vld [vmem:[%s10143_s16 + $0x68] sm:$0xff] }
  0x16   : > { %v813_v15 = vpack.c.bf16 %v386_v13, %v385_v12  ;;  %8266 = vmatpush3.bf16.msra.mxu0 %v797_v10  ;;  %v796_v20 = vpack.c.bf16 %v352_v18, %v351_v17  ;;  %v399_v21 = vld [vmem:[%s10143_s16 + $0x1e0] sm:$0xff]  ;;  %v400_v22 = vld [vmem:[%s10143_s16 + $0x1e8] sm:$0xff]  ;;  %v365_v26 = vld [vmem:[%s10143_s16 + $0xd0] sm:$0xff] }
  0x17   : > { %8305 = vmatprep.subr.bf16.mxu1 %v821_v11  ;;  %v383_v23 = vld [vmem:[%s10143_s16 + $0x160] sm:$0xff]  ;;  %v820_v24 = vpack.c.bf16 %v400_v22, %v399_v21  ;;  %v384_v25 = vld [vmem:[%s10143_s16 + $0x168] sm:$0xff]  ;;  %v366_v27 = vld [vmem:[%s10143_s16 + $0xd8] sm:$0xff]  ;;  %8267 = vmatprep.subr.bf16.mxu0 %v804_v19 }
  0x18   : > { %8306 = vmatpush3.bf16.msra.mxu1 %v813_v15  ;;  %v812_v28 = vpack.c.bf16 %v384_v25, %v383_v23  ;;  %v803_v29 = vpack.c.bf16 %v366_v27, %v365_v26  ;;  %v349_v30 = vld [vmem:[%s10143_s16 + $0x50] sm:$0xff]  ;;  %v350_v31 = vld [vmem:[%s10143_s16 + $0x58] sm:$0xff]  ;;  %v363_v38 = vld [vmem:[%s10143_s16 + $0xc0] sm:$0xff] }
  0x19   : > { %v397_v32 = vld [vmem:[%s10143_s16 + $0x1d0] sm:$0xff]  ;;  %8307 = vmatprep.subr.bf16.mxu1 %v820_v24  ;;  %v398_v33 = vld [vmem:[%s10143_s16 + $0x1d8] sm:$0xff]  ;;  %v795_v36 = vpack.c.bf16 %v350_v31, %v349_v30  ;;  %v364_v39 = vld [vmem:[%s10143_s16 + $0xc8] sm:$0xff] }
  0x1a   : > { %v381_v34 = vld [vmem:[%s10143_s16 + $0x150] sm:$0xff]  ;;  %v382_v35 = vld [vmem:[%s10143_s16 + $0x158] sm:$0xff]  ;;  %8268 = vmatpush3.bf16.msra.mxu0 %v796_v20  ;;  %v819_v37 = vpack.c.bf16 %v398_v33, %v397_v32  ;;  %v347_v40 = vld [vmem:[%s10143_s16 + $0x40] sm:$0xff]  ;;  %v802_v42 = vpack.c.bf16 %v364_v39, %v363_v38 }
  0x1b   : > { %8269 = vmatprep.subr.bf16.mxu0 %v803_v29  ;;  %v811_v41 = vpack.c.bf16 %v382_v35, %v381_v34  ;;  %v348_v43 = vld [vmem:[%s10143_s16 + $0x48] sm:$0xff]  ;;  %v395_v44 = vld [vmem:[%s10143_s16 + $0x1c0] sm:$0xff]  ;;  %v361_v49 = vld [vmem:[%s10143_s16 + $0xb0] sm:$0xff] }
  0x1c   : > { %8308 = vmatpush3.bf16.msra.mxu1 %v812_v28  ;;  %v396_v45 = vld [vmem:[%s10143_s16 + $0x1c8] sm:$0xff]  ;;  %v379_v47 = vld [vmem:[%s10143_s16 + $0x140] sm:$0xff]  ;;  %v362_v50 = vld [vmem:[%s10143_s16 + $0xb8] sm:$0xff]  ;;  %v794_v51 = vpack.c.bf16 %v348_v43, %v347_v40 }
  0x1d   : > { %8309 = vmatprep.subr.bf16.mxu1 %v819_v37  ;;  %v818_v46 = vpack.c.bf16 %v396_v45, %v395_v44  ;;  %v380_v48 = vld [vmem:[%s10143_s16 + $0x148] sm:$0xff]  ;;  %v393_v52 = vld [vmem:[%s10143_s16 + $0x1b0] sm:$0xff]  ;;  %v394_v53 = vld [vmem:[%s10143_s16 + $0x1b8] sm:$0xff]  ;;  %v801_v55 = vpack.c.bf16 %v362_v50, %v361_v49 }
  0x1e   : > { %8270 = vmatpush3.bf16.msra.mxu0 %v795_v36  ;;  %v810_v54 = vpack.c.bf16 %v380_v48, %v379_v47  ;;  %v345_v56 = vld [vmem:[%s10143_s16 + $0x30] sm:$0xff]  ;;  %v346_v57 = vld [vmem:[%s10143_s16 + $0x38] sm:$0xff]  ;;  %v817_v59 = vpack.c.bf16 %v394_v53, %v393_v52  ;;  %v359_v61 = vld [vmem:[%s10143_s16 + $0xa0] sm:$0xff] }
  0x1f   : > { %8271 = vmatprep.subr.bf16.mxu0 %v802_v42  ;;  %v377_v58 = vld [vmem:[%s10143_s16 + $0x130] sm:$0xff]  ;;  %v378_v60 = vld [vmem:[%s10143_s16 + $0x138] sm:$0xff]  ;;  %v360_v62 = vld [vmem:[%s10143_s16 + $0xa8] sm:$0xff]  ;;  %v793_v2 = vpack.c.bf16 %v346_v57, %v345_v56 }
  0x20   : > { %8310 = vmatpush3.bf16.msra.mxu1 %v811_v41  ;;  %v391_v63 = vld [vmem:[%s10143_s16 + $0x1a0] sm:$0xff]  ;;  %v392_v0 = vld [vmem:[%s10143_s16 + $0x1a8] sm:$0xff]  ;;  %v809_v3 = vpack.c.bf16 %v378_v60, %v377_v58  ;;  %v800_v4 = vpack.c.bf16 %v360_v62, %v359_v61  ;;  %v357_v10 = vld [vmem:[%s10143_s16 + $0x90] sm:$0xff] }
  0x21   : > { %8311 = vmatprep.subr.bf16.mxu1 %v818_v46  ;;  %v343_v5 = vld [vmem:[%s10143_s16 + $0x20] sm:$0xff]  ;;  %v344_v6 = vld [vmem:[%s10143_s16 + $0x28] sm:$0xff]  ;;  %v816_v8 = vpack.c.bf16 %v392_v0, %v391_v63  ;;  %v358_v11 = vld [vmem:[%s10143_s16 + $0x98] sm:$0xff] }
  0x22   : > { %8272 = vmatpush3.bf16.msra.mxu0 %v794_v51  ;;  %v375_v7 = vld [vmem:[%s10143_s16 + $0x120] sm:$0xff]  ;;  %v376_v9 = vld [vmem:[%s10143_s16 + $0x128] sm:$0xff]  ;;  %v389_v12 = vld [vmem:[%s10143_s16 + $0x190] sm:$0xff]  ;;  %v792_v14 = vpack.c.bf16 %v344_v6, %v343_v5  ;;  %v799_v16 = vpack.c.bf16 %v358_v11, %v357_v10 }
  0x23   : > { %8273 = vmatprep.subr.bf16.mxu0 %v801_v55  ;;  %v390_v13 = vld [vmem:[%s10143_s16 + $0x198] sm:$0xff]  ;;  %v808_v15 = vpack.c.bf16 %v376_v9, %v375_v7  ;;  %v341_v17 = vld [vmem:[%s10143_s16 + $0x10] sm:$0xff]  ;;  %v355_v22 = vld [vmem:[%s10143_s16 + $0x80] sm:$0xff] }
  0x24   : > { %8312 = vmatpush3.bf16.msra.mxu1 %v810_v54  ;;  %v342_v18 = vld [vmem:[%s10143_s16 + $0x18] sm:$0xff]  ;;  %v373_v19 = vld [vmem:[%s10143_s16 + $0x110] sm:$0xff]  ;;  %v815_v20 = vpack.c.bf16 %v390_v13, %v389_v12  ;;  %v356_v23 = vld [vmem:[%s10143_s16 + $0x88] sm:$0xff] }
  0x25   : > { %8313 = vmatprep.subr.bf16.mxu1 %v817_v59  ;;  %v374_v21 = vld [vmem:[%s10143_s16 + $0x118] sm:$0xff]  ;;  %v387_v24 = vld [vmem:[%s10143_s16 + $0x180] sm:$0xff]  ;;  %v388_v25 = vld [vmem:[%s10143_s16 + $0x188] sm:$0xff]  ;;  %v791_v26 = vpack.c.bf16 %v342_v18, %v341_v17  ;;  %v798_v28 = vpack.c.bf16 %v356_v23, %v355_v22 }
  0x26   : > { %8274 = vmatpush3.bf16.msra.mxu0 %v793_v2  ;;  %v807_v27 = vpack.c.bf16 %v374_v21, %v373_v19  ;;  %v339_v29 = vld [vmem:[%s10143_s16] sm:$0xff]  ;;  %v340_v30 = vld [vmem:[%s10143_s16 + $0x8] sm:$0xff]  ;;  %v814_v32 = vpack.c.bf16 %v388_v25, %v387_v24  ;;  %v433_v34 = vld [vmem:[%s10143_s16 + $0x2f0] sm:$0xff] }
  0x27   : > { %8275 = vmatprep.subr.bf16.mxu0 %v800_v4  ;;  %v371_v31 = vld [vmem:[%s10143_s16 + $0x100] sm:$0xff]  ;;  %v372_v33 = vld [vmem:[%s10143_s16 + $0x108] sm:$0xff]  ;;  %v434_v35 = vld [vmem:[%s10143_s16 + $0x2f8] sm:$0xff]  ;;  %v790_v38 = vpack.c.bf16 %v340_v30, %v339_v29 }
  0x28   : > { %8314 = vmatpush3.bf16.msra.mxu1 %v809_v3  ;;  %v465_v36 = vld [vmem:[%s10143_s16 + $0x3f0] sm:$0xff]  ;;  %v466_v37 = vld [vmem:[%s10143_s16 + $0x3f8] sm:$0xff]  ;;  %v806_v39 = vpack.c.bf16 %v372_v33, %v371_v31  ;;  %v837_v40 = vpack.c.bf16 %v434_v35, %v433_v34  ;;  %v431_v46 = vld [vmem:[%s10143_s16 + $0x2e0] sm:$0xff] }
  0x29   : > { %8315 = vmatprep.subr.bf16.mxu1 %v816_v8  ;;  %v417_v41 = vld [vmem:[%s10143_s16 + $0x270] sm:$0xff]  ;;  %v418_v42 = vld [vmem:[%s10143_s16 + $0x278] sm:$0xff]  ;;  %v853_v44 = vpack.c.bf16 %v466_v37, %v465_v36  ;;  %v432_v47 = vld [vmem:[%s10143_s16 + $0x2e8] sm:$0xff] }
  0x2a   : > { %8276 = vmatpush3.bf16.msra.mxu0 %v792_v14  ;;  %v449_v43 = vld [vmem:[%s10143_s16 + $0x370] sm:$0xff]  ;;  %v450_v45 = vld [vmem:[%s10143_s16 + $0x378] sm:$0xff]  ;;  %v463_v49 = vld [vmem:[%s10143_s16 + $0x3e0] sm:$0xff]  ;;  %v829_v52 = vpack.c.bf16 %v418_v42, %v417_v41  ;;  %v836_v55 = vpack.c.bf16 %v432_v47, %v431_v46 }
  0x2b   : > { %8277 = vmatprep.subr.bf16.mxu0 %v799_v16  ;;  %v9611_v48 = vld [vmem:[%s12523_s1] ss:$116 sps:$4 sm:$0xff]   ;;  %v464_v50 = vld [vmem:[%s10143_s16 + $0x3e8] sm:$0xff]  ;;  %v845_v54 = vpack.c.bf16 %v450_v45, %v449_v43  ;;  %v430_v62 = vld [vmem:[%s10143_s16 + $0x2d8] sm:$0xff] }
  0x2c   : > { %8316 = vmatpush3.bf16.msra.mxu1 %v808_v15  ;;  %v9614_v51 = vld [vmem:[%s12523_s1 + $0x8] ss:$116 sps:$4 sm:$0xff]   ;;  %v9617_v53 = vld [vmem:[%s12523_s1 + $0xec] ss:$116 sps:$4 sm:$0xff]   ;;  %v852_v59 = vpack.c.bf16 %v464_v50, %v463_v49  ;;  %v429_v61 = vld [vmem:[%s10143_s16 + $0x2d0] sm:$0xff] }
  0x2d   : > { %8317 = vmatprep.subr.bf16.mxu1 %v815_v20  ;;  %v415_v56 = vld [vmem:[%s10143_s16 + $0x260] sm:$0xff]  ;;  %v416_v57 = vld [vmem:[%s10143_s16 + $0x268] sm:$0xff]  ;;  %v461_v0 = vld [vmem:[%s10143_s16 + $0x3d0] sm:$0xff]  ;;  %v835_v8 = vpack.c.bf16 %v430_v62, %v429_v61 }
  0x2e   : > { %8278 = vmatpush3.bf16.msra.mxu0 %v791_v26  ;;  %v447_v58 = vld [vmem:[%s10143_s16 + $0x360] sm:$0xff]  ;;  %v448_v60 = vld [vmem:[%s10143_s16 + $0x368] sm:$0xff]  ;;  %v462_v2 = vld [vmem:[%s10143_s16 + $0x3d8] sm:$0xff]  ;;  %v828_v3 = vpack.c.bf16 %v416_v57, %v415_v56 }
  0x2f   : > { %8279 = vmatprep.subr.bf16.mxu0 %v798_v28  ;;  %v9620_v63 = vld [vmem:[%s12523_s1 + $0xf4] ss:$116 sps:$4 sm:$0xff]   ;;  %v414_v5 = vld [vmem:[%s10143_s16 + $0x258] sm:$0xff]  ;;  %v844_v6 = vpack.c.bf16 %v448_v60, %v447_v58  ;;  %v851_v11 = vpack.c.bf16 %v462_v2, %v461_v0  ;;  %v427_v12 = vld [vmem:[%s10143_s16 + $0x2c0] sm:$0xff] }
  0x30   : > { %8318 = vmatpush3.bf16.msra.mxu1 %v807_v27  ;;  %v413_v4 = vld [vmem:[%s10143_s16 + $0x250] sm:$0xff]  ;;  %v9619_v7 = vld [vmem:[%s12523_s1 + $0xe8] ss:$116 sps:$4 sm:$0xff]   ;;  %v459_v15 = vld [vmem:[%s10143_s16 + $0x3c0] sm:$0xff] }
  0x31   : > { %8319 = vmatprep.subr.bf16.mxu1 %v814_v32  ;;  %v445_v9 = vld [vmem:[%s10143_s16 + $0x350] sm:$0xff]  ;;  %v446_v10 = vld [vmem:[%s10143_s16 + $0x358] sm:$0xff]  ;;  %v428_v13 = vld [vmem:[%s10143_s16 + $0x2c8] sm:$0xff]  ;;  %v827_v17 = vpack.c.bf16 %v414_v5, %v413_v4 }
  0x32   : > { %8280 = vmatpush3.bf16.msra.mxu0 %v790_v38  ;;  %v9622_v14 = vld [vmem:[%s12523_s1 + $0xf0] ss:$116 sps:$4 sm:$0xff]   ;;  %v460_v16 = vld [vmem:[%s10143_s16 + $0x3c8] sm:$0xff]  ;;  %v843_v19 = vpack.c.bf16 %v446_v10, %v445_v9  ;;  %v834_v20 = vpack.c.bf16 %v428_v13, %v427_v12  ;;  %v426_v27 = vld [vmem:[%s10143_s16 + $0x2b8] sm:$0xff] }
  0x33   : > { %8345 = vmatprep.subr.bf16.mxu0 %v837_v40  ;;  %v9623_v18 = vld [vmem:[%s12523_s1 + $0x1d4] ss:$116 sps:$4 sm:$0xff]   ;;  %v411_v21 = vld [vmem:[%s10143_s16 + $0x240] sm:$0xff]  ;;  %v850_v24 = vpack.c.bf16 %v460_v16, %v459_v15  ;;  %v9626_v28 = vld [vmem:[%s12523_s1 + $0x1dc] ss:$116 sps:$4 sm:$0xff]  }
  0x34   : > { %8320 = vmatpush3.bf16.msra.mxu1 %v806_v39  ;;  %v412_v22 = vld [vmem:[%s10143_s16 + $0x248] sm:$0xff]  ;;  %v443_v23 = vld [vmem:[%s10143_s16 + $0x340] sm:$0xff]  ;;  %v425_v26 = vld [vmem:[%s10143_s16 + $0x2b0] sm:$0xff] }
  0x35   : > { %8385 = vmatprep.subr.bf16.mxu1 %v853_v44  ;;  %1814 = vmatmul.mubr.bf16.vlgmr.msra.gmra.mxu0 %v9611_v48  ;;  %v444_v25 = vld [vmem:[%s10143_s16 + $0x348] sm:$0xff]  ;;  %v457_v29 = vld [vmem:[%s10143_s16 + $0x3b0] sm:$0xff]  ;;  %v458_v30 = vld [vmem:[%s10143_s16 + $0x3b8] sm:$0xff]  ;;  %v826_v31 = vpack.c.bf16 %v412_v22, %v411_v21  ;;  %v833_v36 = vpack.c.bf16 %v426_v27, %v425_v26 }
  0x36   : > { %8346 = vmatpush3.bf16.msra.mxu0 %v829_v52  ;;  %1821 = vmatprep.mubr.bf16.mxu0 %v9617_v53  ;;  %v409_v32 = vld [vmem:[%s10143_s16 + $0x230] sm:$0xff]  ;;  %v410_v33 = vld [vmem:[%s10143_s16 + $0x238] sm:$0xff]  ;;  %v842_v34 = vpack.c.bf16 %v444_v25, %v443_v23  ;;  %v849_v39 = vpack.c.bf16 %v458_v30, %v457_v29  ;;  %v423_v40 = vld [vmem:[%s10143_s16 + $0x2a0] sm:$0xff] }
  0x37   : > { %1879 = vmatmul.mubr.bf16.vlgmr.msra.gmra.mxu1 %v9614_v51  ;;  %8347 = vmatprep.subr.bf16.mxu0 %v836_v55  ;;  %v9625_v35 = vld [vmem:[%s12523_s1 + $0x1d0] ss:$116 sps:$4 sm:$0xff]   ;;  %v442_v38 = vld [vmem:[%s10143_s16 + $0x338] sm:$0xff]  ;;  %v424_v41 = vld [vmem:[%s10143_s16 + $0x2a8] sm:$0xff]  ;;  %v825_v45 = vpack.c.bf16 %v410_v33, %v409_v32 }
  0x38   : > { %8386 = vmatpush3.bf16.msra.mxu1 %v845_v54  ;;  %1886 = vmatprep.mubr.bf16.mxu1 %v9620_v63  ;;  %v441_v37 = vld [vmem:[%s10143_s16 + $0x330] sm:$0xff]  ;;  %v9628_v42 = vld [vmem:[%s12523_s1 + $0x1d8] ss:$116 sps:$4 sm:$0xff]   ;;  %v455_v43 = vld [vmem:[%s10143_s16 + $0x3a0] sm:$0xff]  ;;  %v832_v48 = vpack.c.bf16 %v424_v41, %v423_v40 }
  0x39   : > { %8387 = vmatprep.subr.bf16.mxu1 %v852_v59  ;;  %v456_v44 = vld [vmem:[%s10143_s16 + $0x3a8] sm:$0xff]  ;;  %v407_v46 = vld [vmem:[%s10143_s16 + $0x220] sm:$0xff]  ;;  %v841_v47 = vpack.c.bf16 %v442_v38, %v441_v37  ;;  %v9629_v50 = vld [vmem:[%s12523_s1 + $0x2bc] ss:$116 sps:$4 sm:$0xff]  }
  0x3a   : > { %8348 = vmatpush3.bf16.msra.mxu0 %v828_v3  ;;  %v408_v49 = vld [vmem:[%s10143_s16 + $0x228] sm:$0xff]  ;;  %v439_v51 = vld [vmem:[%s10143_s16 + $0x320] sm:$0xff]  ;;  %v848_v52 = vpack.c.bf16 %v456_v44, %v455_v43  ;;  %v421_v54 = vld [vmem:[%s10143_s16 + $0x290] sm:$0xff] }
  0x3b   : > { %8349 = vmatprep.subr.bf16.mxu0 %v835_v8  ;;  %v440_v53 = vld [vmem:[%s10143_s16 + $0x328] sm:$0xff]  ;;  %v422_v55 = vld [vmem:[%s10143_s16 + $0x298] sm:$0xff]  ;;  %v453_v57 = vld [vmem:[%s10143_s16 + $0x390] sm:$0xff]  ;;  %v824_v59 = vpack.c.bf16 %v408_v49, %v407_v46 }
  0x3c   : > { %8388 = vmatpush3.bf16.msra.mxu1 %v844_v6  ;;  %v9632_v56 = vld [vmem:[%s12523_s1 + $0x2c4] ss:$116 sps:$4 sm:$0xff]   ;;  %v405_v60 = vld [vmem:[%s10143_s16 + $0x210] sm:$0xff]  ;;  %v840_v62 = vpack.c.bf16 %v440_v53, %v439_v51  ;;  %v831_v0 = vpack.c.bf16 %v422_v55, %v421_v54  ;;  %v420_v6 = vld [vmem:[%s10143_s16 + $0x288] sm:$0xff] }
  0x3d   : > { %8389 = vmatprep.subr.bf16.mxu1 %v851_v11  ;;  %1822 = vmatmul.mubr.bf16.gmra.mxu0 %v9619_v7  ;;  %v454_v58 = vld [vmem:[%s10143_s16 + $0x398] sm:$0xff]  ;;  %v437_v2 = vld [vmem:[%s10143_s16 + $0x310] sm:$0xff]  ;;  %v419_v5 = vld [vmem:[%s10143_s16 + $0x280] sm:$0xff] }
  0x3e   : > { %8350 = vmatpush3.bf16.msra.mxu0 %v827_v17  ;;  %1829 = vmatprep.mubr.bf16.mxu0 %v9623_v18  ;;  %v406_v61 = vld [vmem:[%s10143_s16 + $0x218] sm:$0xff]  ;;  %v847_v4 = vpack.c.bf16 %v454_v58, %v453_v57  ;;  %v9634_v7 = vld [vmem:[%s12523_s1 + $0x2c0] ss:$116 sps:$4 sm:$0xff]   ;;  %v452_v9 = vld [vmem:[%s10143_s16 + $0x388] sm:$0xff]  ;;  %v830_v13 = vpack.c.bf16 %v420_v6, %v419_v5 }
  0x3f   : > { %1887 = vmatmul.mubr.bf16.gmra.mxu1 %v9622_v14  ;;  %8351 = vmatprep.subr.bf16.mxu0 %v834_v20  ;;  %v9631_v63 = vld [vmem:[%s12523_s1 + $0x2b8] ss:$116 sps:$4 sm:$0xff]   ;;  %v451_v8 = vld [vmem:[%s10143_s16 + $0x380] sm:$0xff]  ;;  %v823_v10 = vpack.c.bf16 %v406_v61, %v405_v60  ;;  %v9637_v15 = vld [vmem:[%s12523_s1 + $0x14] ss:$116 sps:$4 sm:$0xff]  }
  0x40   : > { %8390 = vmatpush3.bf16.msra.mxu1 %v843_v19  ;;  %1894 = vmatprep.mubr.bf16.mxu1 %v9626_v28  ;;  %v438_v3 = vld [vmem:[%s10143_s16 + $0x318] sm:$0xff]  ;;  %v403_v11 = vld [vmem:[%s10143_s16 + $0x200] sm:$0xff]  ;;  %v404_v14 = vld [vmem:[%s10143_s16 + $0x208] sm:$0xff]  ;;  %v846_v17 = vpack.c.bf16 %v452_v9, %v451_v8 }
  0x41   : > { %8391 = vmatprep.subr.bf16.mxu1 %v850_v24  ;;  %v839_v12 = vpack.c.bf16 %v438_v3, %v437_v2  ;;  %v435_v16 = vld [vmem:[%s10143_s16 + $0x300] sm:$0xff]  ;;  %v436_v18 = vld [vmem:[%s10143_s16 + $0x308] sm:$0xff]  ;;  %v497_v19 = vld [vmem:[%s10143_s16 + $0x4f0] sm:$0xff]  ;;  %v822_v24 = vpack.c.bf16 %v404_v14, %v403_v11 }
  0x42   : > { %8352 = vmatpush3.bf16.msra.mxu0 %v826_v31  ;;  %v498_v20 = vld [vmem:[%s10143_s16 + $0x4f8] sm:$0xff]  ;;  %v529_v22 = vld [vmem:[%s10143_s16 + $0x5f0] sm:$0xff]  ;;  %v838_v28 = vpack.c.bf16 %v436_v18, %v435_v16  ;;  %v495_v33 = vld [vmem:[%s10143_s16 + $0x4e0] sm:$0xff] }
  0x43   : > { %8353 = vmatprep.subr.bf16.mxu0 %v833_v36  ;;  %v9640_v21 = vld [vmem:[%s12523_s1 + $0x1c] ss:$116 sps:$4 sm:$0xff]   ;;  %v869_v29 = vpack.c.bf16 %v498_v20, %v497_v19  ;;  %v527_v36 = vld [vmem:[%s10143_s16 + $0x5e0] sm:$0xff]  ;;  %v528_v37 = vld [vmem:[%s10143_s16 + $0x5e8] sm:$0xff] }
  0x44   : > { %8392 = vmatpush3.bf16.msra.mxu1 %v842_v34  ;;  %v530_v23 = vld [vmem:[%s10143_s16 + $0x5f8] sm:$0xff]  ;;  %v481_v25 = vld [vmem:[%s10143_s16 + $0x470] sm:$0xff]  ;;  %v496_v34 = vld [vmem:[%s10143_s16 + $0x4e8] sm:$0xff] }
  0x45   : > { %8393 = vmatprep.subr.bf16.mxu1 %v849_v39  ;;  %1830 = vmatmul.mubr.bf16.gmra.mxu0 %v9625_v35  ;;  %v482_v26 = vld [vmem:[%s10143_s16 + $0x478] sm:$0xff]  ;;  %v9635_v27 = vld [vmem:[%s12523_s1 + $0x10] ss:$116 sps:$4 sm:$0xff]   ;;  %v885_v32 = vpack.c.bf16 %v530_v23, %v529_v22  ;;  %v868_v41 = vpack.c.bf16 %v496_v34, %v495_v33  ;;  %v512_v46 = vld [vmem:[%s10143_s16 + $0x568] sm:$0xff] }
  0x46   : > { %8354 = vmatpush3.bf16.msra.mxu0 %v825_v45  ;;  %1837 = vmatprep.mubr.bf16.mxu0 %v9629_v50  ;;  %v513_v30 = vld [vmem:[%s10143_s16 + $0x570] sm:$0xff]  ;;  %v514_v31 = vld [vmem:[%s10143_s16 + $0x578] sm:$0xff]  ;;  %v861_v38 = vpack.c.bf16 %v482_v26, %v481_v25  ;;  %v479_v39 = vld [vmem:[%s10143_s16 + $0x460] sm:$0xff]  ;;  %v884_v45 = vpack.c.bf16 %v528_v37, %v527_v36 }
  0x47   : > { %1895 = vmatmul.mubr.bf16.gmra.mxu1 %v9628_v42  ;;  %8355 = vmatprep.subr.bf16.mxu0 %v832_v48  ;;  %v9638_v35 = vld [vmem:[%s12523_s1 + $0x18] ss:$116 sps:$4 sm:$0xff]   ;;  %v877_v40 = vpack.c.bf16 %v514_v31, %v513_v30  ;;  %v9641_v43 = vld [vmem:[%s12523_s1 + $0xfc] ss:$116 sps:$4 sm:$0xff]   ;;  %v511_v44 = vld [vmem:[%s10143_s16 + $0x560] sm:$0xff] }
  0x48   : > { %8394 = vmatpush3.bf16.msra.mxu1 %v841_v47  ;;  %1902 = vmatprep.mubr.bf16.mxu1 %v9632_v56  ;;  %v480_v42 = vld [vmem:[%s10143_s16 + $0x468] sm:$0xff]  ;;  %v493_v47 = vld [vmem:[%s10143_s16 + $0x4d0] sm:$0xff]  ;;  %v494_v48 = vld [vmem:[%s10143_s16 + $0x4d8] sm:$0xff]  ;;  %v876_v55 = vpack.c.bf16 %v512_v46, %v511_v44 }
  0x49   : > { %8395 = vmatprep.subr.bf16.mxu1 %v848_v52  ;;  %v9644_v49 = vld [vmem:[%s12523_s1 + $0x104] ss:$116 sps:$4 sm:$0xff]   ;;  %v525_v50 = vld [vmem:[%s10143_s16 + $0x5d0] sm:$0xff]  ;;  %v860_v52 = vpack.c.bf16 %v480_v42, %v479_v39  ;;  %v867_v57 = vpack.c.bf16 %v494_v48, %v493_v47  ;;  %v524_v2 = vld [vmem:[%s10143_s16 + $0x5c8] sm:$0xff] }
  0x4a   : > { %8356 = vmatpush3.bf16.msra.mxu0 %v824_v59  ;;  %v526_v51 = vld [vmem:[%s10143_s16 + $0x5d8] sm:$0xff]  ;;  %v477_v53 = vld [vmem:[%s10143_s16 + $0x450] sm:$0xff]  ;;  %v491_v61 = vld [vmem:[%s10143_s16 + $0x4c0] sm:$0xff] }
  0x4b   : > { %8357 = vmatprep.subr.bf16.mxu0 %v831_v0  ;;  %v478_v54 = vld [vmem:[%s10143_s16 + $0x458] sm:$0xff]  ;;  %v509_v58 = vld [vmem:[%s10143_s16 + $0x550] sm:$0xff]  ;;  %v883_v60 = vpack.c.bf16 %v526_v51, %v525_v50  ;;  %v523_v0 = vld [vmem:[%s10143_s16 + $0x5c0] sm:$0xff] }
  0x4c   : > { %8396 = vmatpush3.bf16.msra.mxu1 %v840_v62  ;;  %v9643_v56 = vld [vmem:[%s12523_s1 + $0xf8] ss:$116 sps:$4 sm:$0xff]   ;;  %v859_v3 = vpack.c.bf16 %v478_v54, %v477_v53  ;;  %v507_v9 = vld [vmem:[%s10143_s16 + $0x540] sm:$0xff]  ;;  %v473_v18 = vld [vmem:[%s10143_s16 + $0x430] sm:$0xff] }
  0x4d   : > { %8397 = vmatprep.subr.bf16.mxu1 %v847_v4  ;;  %1838 = vmatmul.mubr.bf16.gmra.mxu0 %v9631_v63  ;;  %v510_v59 = vld [vmem:[%s10143_s16 + $0x558] sm:$0xff]  ;;  %v492_v62 = vld [vmem:[%s10143_s16 + $0x4c8] sm:$0xff]  ;;  %v9646_v63 = vld [vmem:[%s12523_s1 + $0x100] ss:$116 sps:$4 sm:$0xff]  }
  0x4e   : > { %8358 = vmatpush3.bf16.msra.mxu0 %v823_v10  ;;  %1943 = vmatprep.mubr.bf16.mxu0 %v9637_v15  ;;  %v475_v4 = vld [vmem:[%s10143_s16 + $0x440] sm:$0xff]  ;;  %v875_v5 = vpack.c.bf16 %v510_v59, %v509_v58  ;;  %v866_v6 = vpack.c.bf16 %v492_v62, %v491_v61  ;;  %v882_v10 = vpack.c.bf16 %v524_v2, %v523_v0  ;;  %v508_v11 = vld [vmem:[%s10143_s16 + $0x548] sm:$0xff]  ;;  %v521_v15 = vld [vmem:[%s10143_s16 + $0x5b0] sm:$0xff] }
  0x4f   : > { %1903 = vmatmul.mubr.bf16.gmra.mxu1 %v9634_v7  ;;  %8359 = vmatprep.subr.bf16.mxu0 %v830_v13  ;;  %v476_v7 = vld [vmem:[%s10143_s16 + $0x448] sm:$0xff]  ;;  %v9647_v8 = vld [vmem:[%s12523_s1 + $0x1e4] ss:$116 sps:$4 sm:$0xff]   ;;  %v1142_v20 = vld [vmem:[%s12524_s2 + $0x30] sm:$0xff] }
  0x50   : > { %8398 = vmatpush3.bf16.msra.mxu1 %v839_v12  ;;  %2008 = vmatprep.mubr.bf16.mxu1 %v9640_v21  ;;  %v489_v12 = vld [vmem:[%s10143_s16 + $0x4b0] sm:$0xff]  ;;  %v490_v13 = vld [vmem:[%s10143_s16 + $0x4b8] sm:$0xff]  ;;  %v9650_v14 = vld [vmem:[%s12523_s1 + $0x1ec] ss:$116 sps:$4 sm:$0xff]   ;;  %v874_v21 = vpack.c.bf16 %v508_v11, %v507_v9 }
  0x51   : > { %8399 = vmatprep.subr.bf16.mxu1 %v846_v17  ;;  %v522_v16 = vld [vmem:[%s10143_s16 + $0x5b8] sm:$0xff]  ;;  %v858_v17 = vpack.c.bf16 %v476_v7, %v475_v4  ;;  %v9649_v22 = vld [vmem:[%s12523_s1 + $0x1e0] ss:$116 sps:$4 sm:$0xff]   ;;  %v865_v23 = vpack.c.bf16 %v490_v13, %v489_v12  ;;  %v472_v31 = vld [vmem:[%s10143_s16 + $0x428] sm:$0xff]  ;;  %1176 = vperm.xlu0 %9609, %v1142_v20  }
  0x52   : > { %8360 = vmatpush3.bf16.msra.mxu0 %v822_v24  ;;  %v474_v19 = vld [vmem:[%s10143_s16 + $0x438] sm:$0xff]  ;;  %v505_v24 = vld [vmem:[%s10143_s16 + $0x530] sm:$0xff]  ;;  %v487_v26 = vld [vmem:[%s10143_s16 + $0x4a0] sm:$0xff] }
  0x53   : > { %8425 = vmatprep.subr.bf16.mxu0 %v869_v29  ;;  %v506_v25 = vld [vmem:[%s10143_s16 + $0x538] sm:$0xff]  ;;  %v488_v29 = vld [vmem:[%s10143_s16 + $0x4a8] sm:$0xff]  ;;  %v471_v30 = vld [vmem:[%s10143_s16 + $0x420] sm:$0xff]  ;;  %v857_v34 = vpack.c.bf16 %v474_v19, %v473_v18 }
  0x54   : > { %8400 = vmatpush3.bf16.msra.mxu1 %v838_v28  ;;  %v881_v28 = vpack.c.bf16 %v522_v16, %v521_v15  ;;  %v520_v33 = vld [vmem:[%s10143_s16 + $0x5a8] sm:$0xff]  ;;  %v503_v36 = vld [vmem:[%s10143_s16 + $0x520] sm:$0xff]  ;;  %v1143_v37 = vld [vmem:[%s12524_s2 + $0x38] sm:$0xff]  ;;  %v864_v39 = vpack.c.bf16 %v488_v29, %v487_v26  ;;  %v856_v48 = vpack.c.bf16 %v472_v31, %v471_v30 }
  0x55   : > { %8465 = vmatprep.subr.bf16.mxu1 %v885_v32  ;;  %1944 = vmatmul.mubr.bf16.vlgmr.msra.gmra.mxu0 %v9635_v27  ;;  %v9652_v27 = vld [vmem:[%s12523_s1 + $0x1e8] ss:$116 sps:$4 sm:$0xff]   ;;  %v519_v32 = vld [vmem:[%s10143_s16 + $0x5a0] sm:$0xff]  ;;  %v517_v46 = vld [vmem:[%s10143_s16 + $0x590] sm:$0xff] }
  0x56   : > { %8426 = vmatpush3.bf16.msra.mxu0 %v861_v38  ;;  %1951 = vmatprep.mubr.bf16.mxu0 %v9641_v43  ;;  %v873_v38 = vpack.c.bf16 %v506_v25, %v505_v24  ;;  %v504_v42 = vld [vmem:[%s10143_s16 + $0x528] sm:$0xff]  ;;  %v485_v43 = vld [vmem:[%s10143_s16 + $0x490] sm:$0xff]  ;;  %v486_v44 = vld [vmem:[%s10143_s16 + $0x498] sm:$0xff] }
  0x57   : > { %2009 = vmatmul.mubr.bf16.vlgmr.msra.gmra.mxu1 %v9638_v35  ;;  %8427 = vmatprep.subr.bf16.mxu0 %v868_v41  ;;  %v9653_v35 = vld [vmem:[%s12523_s1 + $0x2cc] ss:$116 sps:$4 sm:$0xff]   ;;  %v880_v41 = vpack.c.bf16 %v520_v33, %v519_v32  ;;  %v518_v47 = vld [vmem:[%s10143_s16 + $0x598] sm:$0xff]  ;;  %v501_v51 = vld [vmem:[%s10143_s16 + $0x510] sm:$0xff]  ;;  %v863_v54 = vpack.c.bf16 %v486_v44, %v485_v43 }
  0x58   : > { %8466 = vmatpush3.bf16.msra.mxu1 %v877_v40  ;;  %2016 = vmatprep.mubr.bf16.mxu1 %v9644_v49  ;;  %v1140_v40 = vld [vmem:[%s12524_s2 + $0x20] sm:$0xff]  ;;  %v469_v49 = vld [vmem:[%s10143_s16 + $0x410] sm:$0xff]  ;;  %v470_v50 = vld [vmem:[%s10143_s16 + $0x418] sm:$0xff]  ;;  %v879_v59 = vpack.c.bf16 %v518_v47, %v517_v46 }
  0x59   : > { %8467 = vmatprep.subr.bf16.mxu1 %v884_v45  ;;  %1166 = vperm.xlu1 %9610, %v1140_v40   ;;  %v9656_v45 = vld [vmem:[%s12523_s1 + $0x2d4] ss:$116 sps:$4 sm:$0xff]   ;;  %v9658_v58 = vld [vmem:[%s12523_s1 + $0x2d0] ss:$116 sps:$4 sm:$0xff]   ;;  %v855_v2 = vpack.c.bf16 %v470_v50, %v469_v49  ;;  %v9664_v12 = vld [vmem:[%s12523_s1 + $0x2c] ss:$116 sps:$4 sm:$0xff]  }
  0x5a   : > { %8428 = vmatpush3.bf16.msra.mxu0 %v860_v52  ;;  %1181 = vperm.xlu0 %9609, %v1143_v37   ;;  %v872_v52 = vpack.c.bf16 %v504_v42, %v503_v36  ;;  %v9655_v53 = vld [vmem:[%s12523_s1 + $0x2c8] ss:$116 sps:$4 sm:$0xff]   ;;  %v515_v62 = vld [vmem:[%s10143_s16 + $0x580] sm:$0xff]  ;;  %v561_v9 = vld [vmem:[%s10143_s16 + $0x6f0] sm:$0xff] }
  0x5b   : > { %8429 = vmatprep.subr.bf16.mxu0 %v867_v57  ;;  %v1138_v57 = vld [vmem:[%s12524_s2 + $0x10] sm:$0xff]  ;;  %v484_v61 = vld [vmem:[%s10143_s16 + $0x488] sm:$0xff]  ;;  %v9661_v4 = vld [vmem:[%s12523_s1 + $0x24] ss:$116 sps:$4 sm:$0xff]  }
  0x5c   : > { %8468 = vmatpush3.bf16.msra.mxu1 %v876_v55  ;;  %v502_v55 = vld [vmem:[%s10143_s16 + $0x518] sm:$0xff]  ;;  %v516_v0 = vld [vmem:[%s10143_s16 + $0x588] sm:$0xff]  ;;  %v1136_v18 = vld [vmem:[%s12524_s2] sm:$0xff] }
  0x5d   : > { %8469 = vmatprep.subr.bf16.mxu1 %v883_v60  ;;  %1952 = vmatmul.mubr.bf16.gmra.mxu0 %v9643_v56  ;;  %v1141_v56 = vld [vmem:[%s12524_s2 + $0x28] sm:$0xff]  ;;  %v483_v60 = vld [vmem:[%s10143_s16 + $0x480] sm:$0xff]  ;;  %v878_v11 = vpack.c.bf16 %v516_v0, %v515_v62  ;;  %v1139_v13 = vld [vmem:[%s12524_s2 + $0x18] sm:$0xff] }
  0x5e   : > { %8430 = vmatpush3.bf16.msra.mxu0 %v859_v3  ;;  %1959 = vmatprep.mubr.bf16.mxu0 %v9647_v8  ;;  %v468_v3 = vld [vmem:[%s10143_s16 + $0x408] sm:$0xff]  ;;  %v862_v7 = vpack.c.bf16 %v484_v61, %v483_v60  ;;  %v594_v15 = vld [vmem:[%s10143_s16 + $0x7f8] sm:$0xff]  ;;  %v9659_v19 = vld [vmem:[%s12523_s1 + $0x20] ss:$116 sps:$4 sm:$0xff]  }
  0x5f   : > { %2017 = vmatmul.mubr.bf16.gmra.mxu1 %v9646_v63  ;;  %8431 = vmatprep.subr.bf16.mxu0 %v866_v6  ;;  %v467_v63 = vld [vmem:[%s10143_s16 + $0x400] sm:$0xff]  ;;  %v871_v6 = vpack.c.bf16 %v502_v55, %v501_v51  ;;  %v500_v8 = vld [vmem:[%s10143_s16 + $0x508] sm:$0xff]  ;;  %v578_v24 = vld [vmem:[%s10143_s16 + $0x778] sm:$0xff] }
  0x60   : > { %8470 = vmatpush3.bf16.msra.mxu1 %v875_v5  ;;  %2024 = vmatprep.mubr.bf16.mxu1 %v9650_v14  ;;  %v499_v5 = vld [vmem:[%s10143_s16 + $0x500] sm:$0xff]  ;;  %v593_v14 = vld [vmem:[%s10143_s16 + $0x7f0] sm:$0xff]  ;;  %v854_v16 = vpack.c.bf16 %v468_v3, %v467_v63  ;;  %v9662_v25 = vld [vmem:[%s12523_s1 + $0x28] ss:$116 sps:$4 sm:$0xff]  }
  0x61   : > { %8471 = vmatprep.subr.bf16.mxu1 %v882_v10  ;;  %1171 = vperm.xlu1 %9610, %v1141_v56   ;;  %v562_v10 = vld [vmem:[%s10143_s16 + $0x6f8] sm:$0xff]  ;;  %v870_v20 = vpack.c.bf16 %v500_v8, %v499_v5  ;;  %v917_v26 = vpack.c.bf16 %v594_v15, %v593_v14  ;;  %v1137_v29 = vld [vmem:[%s12524_s2 + $0x8] sm:$0xff]  ;;  %v543_v30 = vld [vmem:[%s10143_s16 + $0x660] sm:$0xff] }
  0x62   : > { %8432 = vmatpush3.bf16.msra.mxu0 %v858_v17  ;;  %1156 = vperm.xlu0 %9609, %v1138_v57   ;;  %v545_v17 = vld [vmem:[%s10143_s16 + $0x670] sm:$0xff]  ;;  %v544_v31 = vld [vmem:[%s10143_s16 + $0x668] sm:$0xff]  ;;  %v591_v32 = vld [vmem:[%s10143_s16 + $0x7e0] sm:$0xff] }
  0x63   : > { %8433 = vmatprep.subr.bf16.mxu0 %v865_v23  ;;  %v577_v23 = vld [vmem:[%s10143_s16 + $0x770] sm:$0xff]  ;;  %v592_v33 = vld [vmem:[%s10143_s16 + $0x7e8] sm:$0xff]  ;;  %v558_v42 = vld [vmem:[%s10143_s16 + $0x6d8] sm:$0xff]  ;;  %v892_v46 = vpack.c.bf16 %v544_v31, %v543_v30 }
  0x64   : > { %8472 = vmatpush3.bf16.msra.mxu1 %v874_v21  ;;  %v901_v21 = vpack.c.bf16 %v562_v10, %v561_v9  ;;  %v909_v36 = vpack.c.bf16 %v578_v24, %v577_v23  ;;  %v557_v40 = vld [vmem:[%s10143_s16 + $0x6d0] sm:$0xff]  ;;  %v542_v51 = vld [vmem:[%s10143_s16 + $0x658] sm:$0xff]  ;;  %v555_v56 = vld [vmem:[%s10143_s16 + $0x6c0] sm:$0xff] }
  0x65   : > { %8473 = vmatprep.subr.bf16.mxu1 %v881_v28  ;;  %1960 = vmatmul.mubr.bf16.gmra.mxu0 %v9649_v22  ;;  %v546_v22 = vld [vmem:[%s10143_s16 + $0x678] sm:$0xff]  ;;  %v560_v28 = vld [vmem:[%s10143_s16 + $0x6e8] sm:$0xff]  ;;  %v589_v44 = vld [vmem:[%s10143_s16 + $0x7d0] sm:$0xff]  ;;  %v899_v49 = vpack.c.bf16 %v558_v42, %v557_v40 }
  0x66   : > { %8434 = vmatpush3.bf16.msra.mxu0 %v857_v34  ;;  %1967 = vmatprep.mubr.bf16.mxu0 %v9653_v35  ;;  %v893_v34 = vpack.c.bf16 %v546_v22, %v545_v17  ;;  %v9665_v35 = vld [vmem:[%s12523_s1 + $0x10c] ss:$116 sps:$4 sm:$0xff]   ;;  %v9668_v43 = vld [vmem:[%s12523_s1 + $0x114] ss:$116 sps:$4 sm:$0xff]   ;;  %v574_v55 = vld [vmem:[%s10143_s16 + $0x758] sm:$0xff] }
  0x67   : > { %2025 = vmatmul.mubr.bf16.gmra.mxu1 %v9652_v27  ;;  %8435 = vmatprep.subr.bf16.mxu0 %v864_v39  ;;  %v559_v27 = vld [vmem:[%s10143_s16 + $0x6e0] sm:$0xff]  ;;  %v576_v39 = vld [vmem:[%s10143_s16 + $0x768] sm:$0xff]  ;;  %v541_v50 = vld [vmem:[%s10143_s16 + $0x650] sm:$0xff] }
  0x68   : > { %8474 = vmatpush3.bf16.msra.mxu1 %v873_v38  ;;  %2032 = vmatprep.mubr.bf16.mxu1 %v9656_v45  ;;  %v900_v37 = vpack.c.bf16 %v560_v28, %v559_v27  ;;  %v575_v38 = vld [vmem:[%s10143_s16 + $0x760] sm:$0xff]  ;;  %v590_v45 = vld [vmem:[%s10143_s16 + $0x7d8] sm:$0xff]  ;;  %v556_v57 = vld [vmem:[%s10143_s16 + $0x6c8] sm:$0xff]  ;;  %v891_v62 = vpack.c.bf16 %v542_v51, %v541_v50 }
  0x69   : > { %8475 = vmatprep.subr.bf16.mxu1 %v880_v41  ;;  %1161 = vperm.xlu1 %9610, %v1139_v13   ;;  %v916_v41 = vpack.c.bf16 %v592_v33, %v591_v32  ;;  %v908_v47 = vpack.c.bf16 %v576_v39, %v575_v38  ;;  %v587_v60 = vld [vmem:[%s10143_s16 + $0x7c0] sm:$0xff]  ;;  %v588_v61 = vld [vmem:[%s10143_s16 + $0x7c8] sm:$0xff]  ;;  %v553_v5 = vld [vmem:[%s10143_s16 + $0x6b0] sm:$0xff] }
  0x6a   : > { %8436 = vmatpush3.bf16.msra.mxu0 %v856_v48  ;;  %1146 = vperm.xlu0 %9609, %v1136_v18   ;;  %v9667_v48 = vld [vmem:[%s12523_s1 + $0x108] ss:$116 sps:$4 sm:$0xff]   ;;  %v571_v3 = vld [vmem:[%s10143_s16 + $0x740] sm:$0xff]  ;;  %v585_v9 = vld [vmem:[%s10143_s16 + $0x7b0] sm:$0xff] }
  0x6b   : > { %8437 = vmatprep.subr.bf16.mxu0 %v863_v54  ;;  %v915_v54 = vpack.c.bf16 %v590_v45, %v589_v44  ;;  %v9671_v63 = vld [vmem:[%s12523_s1 + $0x1f4] ss:$116 sps:$4 sm:$0xff]   ;;  %v9674_v8 = vld [vmem:[%s12523_s1 + $0x1fc] ss:$116 sps:$4 sm:$0xff]   ;;  %v9676_v18 = vld [vmem:[%s12523_s1 + $0x1f8] ss:$116 sps:$4 sm:$0xff]  }
  0x6c   : > { %8476 = vmatpush3.bf16.msra.mxu1 %v872_v52  ;;  %v573_v52 = vld [vmem:[%s10143_s16 + $0x750] sm:$0xff]  ;;  %v586_v10 = vld [vmem:[%s10143_s16 + $0x7b8] sm:$0xff]  ;;  %v552_v22 = vld [vmem:[%s10143_s16 + $0x6a8] sm:$0xff] }
  0x6d   : > { %8477 = vmatprep.subr.bf16.mxu1 %v879_v59  ;;  %1968 = vmatmul.mubr.bf16.gmra.mxu0 %v9655_v53  ;;  %v9670_v53 = vld [vmem:[%s12523_s1 + $0x110] ss:$116 sps:$4 sm:$0xff]   ;;  %v540_v59 = vld [vmem:[%s10143_s16 + $0x648] sm:$0xff]  ;;  %v907_v0 = vpack.c.bf16 %v574_v55, %v573_v52  ;;  %v582_v38 = vld [vmem:[%s10143_s16 + $0x798] sm:$0xff] }
  0x6e   : > { %8438 = vmatpush3.bf16.msra.mxu0 %v855_v2  ;;  %2073 = vmatprep.mubr.bf16.mxu0 %v9661_v4  ;;  %v898_v2 = vpack.c.bf16 %v556_v57, %v555_v56  ;;  %v572_v4 = vld [vmem:[%s10143_s16 + $0x748] sm:$0xff]  ;;  %v9673_v13 = vld [vmem:[%s12523_s1 + $0x1f0] ss:$116 sps:$4 sm:$0xff]   ;;  %v534_v44 = vld [vmem:[%s10143_s16 + $0x618] sm:$0xff] }
  0x6f   : > { %2033 = vmatmul.mubr.bf16.gmra.mxu1 %v9658_v58  ;;  %8439 = vmatprep.subr.bf16.mxu0 %v862_v7  ;;  %v539_v58 = vld [vmem:[%s10143_s16 + $0x640] sm:$0xff]  ;;  %v554_v7 = vld [vmem:[%s10143_s16 + $0x6b8] sm:$0xff]  ;;  %v537_v15 = vld [vmem:[%s10143_s16 + $0x630] sm:$0xff] }
  0x70   : > { %8478 = vmatpush3.bf16.msra.mxu1 %v871_v6  ;;  %2138 = vmatprep.mubr.bf16.mxu1 %v9664_v12  ;;  %v914_v6 = vpack.c.bf16 %v588_v61, %v587_v60  ;;  %v906_v12 = vpack.c.bf16 %v572_v4, %v571_v3  ;;  %v897_v14 = vpack.c.bf16 %v554_v7, %v553_v5  ;;  %v569_v17 = vld [vmem:[%s10143_s16 + $0x730] sm:$0xff]  ;;  %v535_v23 = vld [vmem:[%s10143_s16 + $0x620] sm:$0xff]  ;;  %v536_v24 = vld [vmem:[%s10143_s16 + $0x628] sm:$0xff] }
  0x71   : > { %8479 = vmatprep.subr.bf16.mxu1 %v878_v11  ;;  %1151 = vperm.xlu1 %9610, %v1137_v29   ;;  %v890_v11 = vpack.c.bf16 %v540_v59, %v539_v58  ;;  %v9677_v28 = vld [vmem:[%s12523_s1 + $0x2dc] ss:$116 sps:$4 sm:$0xff]   ;;  %v567_v31 = vld [vmem:[%s10143_s16 + $0x720] sm:$0xff]  ;;  %v568_v32 = vld [vmem:[%s10143_s16 + $0x728] sm:$0xff]  ;;  %v888_v39 = vpack.c.bf16 %v536_v24, %v535_v23 }
  0x72   : > { %8440 = vmatpush3.bf16.msra.mxu0 %v854_v16  ;;  %v538_v16 = vld [vmem:[%s10143_s16 + $0x638] sm:$0xff]  ;;  %v549_v33 = vld [vmem:[%s10143_s16 + $0x690] sm:$0xff]  ;;  %v904_v40 = vpack.c.bf16 %v568_v32, %v567_v31  ;;  %v548_v50 = vld [vmem:[%s10143_s16 + $0x688] sm:$0xff] }
  0x73   : > { %8505 = vmatprep.subr.bf16.mxu0 %v901_v21  ;;  %v551_v21 = vld [vmem:[%s10143_s16 + $0x6a0] sm:$0xff]  ;;  %v889_v27 = vpack.c.bf16 %v538_v16, %v537_v15  ;;  %v565_v45 = vld [vmem:[%s10143_s16 + $0x710] sm:$0xff]  ;;  %v532_v52 = vld [vmem:[%s10143_s16 + $0x608] sm:$0xff] }
  0x74   : > { %8480 = vmatpush3.bf16.msra.mxu1 %v870_v20  ;;  %v570_v20 = vld [vmem:[%s10143_s16 + $0x738] sm:$0xff]  ;;  %v896_v30 = vpack.c.bf16 %v552_v22, %v551_v21  ;;  %v531_v51 = vld [vmem:[%s10143_s16 + $0x600] sm:$0xff]  ;;  %v9685_v56 = vld [vmem:[%s12523_s1 + $0x34] ss:$116 sps:$4 sm:$0xff]  }
  0x75   : > { %8545 = vmatprep.subr.bf16.mxu1 %v917_v26  ;;  %2074 = vmatmul.mubr.bf16.vlgmr.msra.gmra.mxu0 %v9659_v19  ;;  %v913_v19 = vpack.c.bf16 %v586_v10, %v585_v9  ;;  %v584_v26 = vld [vmem:[%s10143_s16 + $0x7a8] sm:$0xff]  ;;  %v905_v29 = vpack.c.bf16 %v570_v20, %v569_v17  ;;  %v563_v59 = vld [vmem:[%s10143_s16 + $0x700] sm:$0xff]  ;;  %v625_v61 = vld [vmem:[%s10143_s16 + $0x8f0] sm:$0xff]  ;;  %v886_v4 = vpack.c.bf16 %v532_v52, %v531_v51 }
  0x76   : > { %8506 = vmatpush3.bf16.msra.mxu0 %v893_v34  ;;  %2081 = vmatprep.mubr.bf16.mxu0 %v9665_v35  ;;  %v550_v35 = vld [vmem:[%s10143_s16 + $0x698] sm:$0xff]  ;;  %v564_v60 = vld [vmem:[%s10143_s16 + $0x708] sm:$0xff]  ;;  %v9683_v5 = vld [vmem:[%s12523_s1 + $0x30] ss:$116 sps:$4 sm:$0xff]  }
  0x77   : > { %2139 = vmatmul.mubr.bf16.vlgmr.msra.gmra.mxu1 %v9662_v25  ;;  %8507 = vmatprep.subr.bf16.mxu0 %v900_v37  ;;  %v583_v25 = vld [vmem:[%s10143_s16 + $0x7a0] sm:$0xff]  ;;  %v581_v37 = vld [vmem:[%s10143_s16 + $0x790] sm:$0xff]  ;;  %v895_v42 = vpack.c.bf16 %v550_v35, %v549_v33  ;;  %v658_v3 = vld [vmem:[%s10143_s16 + $0x9f8] sm:$0xff] }
  0x78   : > { %8546 = vmatpush3.bf16.msra.mxu1 %v909_v36  ;;  %2146 = vmatprep.mubr.bf16.mxu1 %v9668_v43  ;;  %v912_v34 = vpack.c.bf16 %v584_v26, %v583_v25  ;;  %v9680_v36 = vld [vmem:[%s12523_s1 + $0x2e4] ss:$116 sps:$4 sm:$0xff]   ;;  %v533_v43 = vld [vmem:[%s10143_s16 + $0x610] sm:$0xff]  ;;  %v624_v15 = vld [vmem:[%s10143_s16 + $0x8e8] sm:$0xff] }
  0x79   : > { %8547 = vmatprep.subr.bf16.mxu1 %v916_v41  ;;  %v9679_v41 = vld [vmem:[%s12523_s1 + $0x2d8] ss:$116 sps:$4 sm:$0xff]   ;;  %v887_v55 = vpack.c.bf16 %v534_v44, %v533_v43  ;;  %v641_v10 = vld [vmem:[%s10143_s16 + $0x970] sm:$0xff]  ;;  %v607_v16 = vld [vmem:[%s10143_s16 + $0x860] sm:$0xff] }
  0x7a   : > { %8508 = vmatpush3.bf16.msra.mxu0 %v892_v46  ;;  %v9682_v46 = vld [vmem:[%s12523_s1 + $0x2e0] ss:$116 sps:$4 sm:$0xff]   ;;  %v610_v9 = vld [vmem:[%s10143_s16 + $0x878] sm:$0xff]  ;;  %v608_v17 = vld [vmem:[%s10143_s16 + $0x868] sm:$0xff] }
  0x7b   : > { %8509 = vmatprep.subr.bf16.mxu0 %v899_v49  ;;  %v547_v49 = vld [vmem:[%s10143_s16 + $0x680] sm:$0xff]  ;;  %v9689_v21 = vld [vmem:[%s12523_s1 + $0x11c] ss:$116 sps:$4 sm:$0xff]   ;;  %v640_v25 = vld [vmem:[%s10143_s16 + $0x968] sm:$0xff]  ;;  %v924_v32 = vpack.c.bf16 %v608_v17, %v607_v16 }
  0x7c   : > { %8548 = vmatpush3.bf16.msra.mxu1 %v908_v47  ;;  %v911_v47 = vpack.c.bf16 %v582_v38, %v581_v37  ;;  %v894_v58 = vpack.c.bf16 %v548_v50, %v547_v49  ;;  %v639_v24 = vld [vmem:[%s10143_s16 + $0x960] sm:$0xff]  ;;  %v621_v26 = vld [vmem:[%s10143_s16 + $0x8d0] sm:$0xff]  ;;  %v654_v31 = vld [vmem:[%s10143_s16 + $0x9d8] sm:$0xff] }
  0x7d   : > { %8549 = vmatprep.subr.bf16.mxu1 %v915_v54  ;;  %2082 = vmatmul.mubr.bf16.gmra.mxu0 %v9667_v48  ;;  %v566_v48 = vld [vmem:[%s10143_s16 + $0x718] sm:$0xff]  ;;  %v580_v54 = vld [vmem:[%s10143_s16 + $0x788] sm:$0xff]  ;;  %v940_v33 = vpack.c.bf16 %v640_v25, %v639_v24  ;;  %v637_v38 = vld [vmem:[%s10143_s16 + $0x950] sm:$0xff] }
  0x7e   : > { %8510 = vmatpush3.bf16.msra.mxu0 %v891_v62  ;;  %2089 = vmatprep.mubr.bf16.mxu0 %v9671_v63  ;;  %v903_v57 = vpack.c.bf16 %v566_v48, %v565_v45  ;;  %v626_v63 = vld [vmem:[%s10143_s16 + $0x8f8] sm:$0xff]  ;;  %v620_v43 = vld [vmem:[%s10143_s16 + $0x8c8] sm:$0xff]  ;;  %v603_v44 = vld [vmem:[%s10143_s16 + $0x840] sm:$0xff] }
  0x7f   : > { %2147 = vmatmul.mubr.bf16.gmra.mxu1 %v9670_v53  ;;  %8511 = vmatprep.subr.bf16.mxu0 %v898_v2  ;;  %v579_v53 = vld [vmem:[%s10143_s16 + $0x780] sm:$0xff]  ;;  %v657_v2 = vld [vmem:[%s10143_s16 + $0x9f0] sm:$0xff]  ;;  %v933_v7 = vpack.c.bf16 %v626_v63, %v625_v61  ;;  %v606_v37 = vld [vmem:[%s10143_s16 + $0x858] sm:$0xff] }
  0x80   : > { %8550 = vmatpush3.bf16.msra.mxu1 %v907_v0  ;;  %2154 = vmatprep.mubr.bf16.mxu1 %v9674_v8  ;;  %v910_v62 = vpack.c.bf16 %v580_v54, %v579_v53  ;;  %v9688_v0 = vld [vmem:[%s12523_s1 + $0x3c] ss:$116 sps:$4 sm:$0xff]   ;;  %v604_v45 = vld [vmem:[%s10143_s16 + $0x848] sm:$0xff]  ;;  %v9695_v49 = vld [vmem:[%s12523_s1 + $0x204] ss:$116 sps:$4 sm:$0xff]  }
  0x81   : > { %8551 = vmatprep.subr.bf16.mxu1 %v914_v6  ;;  %v902_v6 = vpack.c.bf16 %v564_v60, %v563_v59  ;;  %v609_v8 = vld [vmem:[%s10143_s16 + $0x870] sm:$0xff]  ;;  %v635_v52 = vld [vmem:[%s10143_s16 + $0x940] sm:$0xff]  ;;  %v636_v53 = vld [vmem:[%s10143_s16 + $0x948] sm:$0xff]  ;;  %v922_v60 = vpack.c.bf16 %v604_v45, %v603_v44 }
  0x82   : > { %8512 = vmatpush3.bf16.msra.mxu0 %v890_v11  ;;  %v9686_v11 = vld [vmem:[%s12523_s1 + $0x38] ss:$116 sps:$4 sm:$0xff]   ;;  %v925_v20 = vpack.c.bf16 %v610_v9, %v609_v8  ;;  %v617_v54 = vld [vmem:[%s10143_s16 + $0x8b0] sm:$0xff]  ;;  %v938_v61 = vpack.c.bf16 %v636_v53, %v635_v52  ;;  %v599_v9 = vld [vmem:[%s10143_s16 + $0x820] sm:$0xff] }
  0x83   : > { %8513 = vmatprep.subr.bf16.mxu0 %v897_v14  ;;  %v623_v14 = vld [vmem:[%s10143_s16 + $0x8e0] sm:$0xff]  ;;  %v650_v59 = vld [vmem:[%s10143_s16 + $0x9b8] sm:$0xff]  ;;  %v616_v8 = vld [vmem:[%s10143_s16 + $0x8a8] sm:$0xff] }
  0x84   : > { %8552 = vmatpush3.bf16.msra.mxu1 %v906_v12  ;;  %v949_v12 = vpack.c.bf16 %v658_v3, %v657_v2  ;;  %v932_v23 = vpack.c.bf16 %v624_v15, %v623_v14  ;;  %v602_v2 = vld [vmem:[%s10143_s16 + $0x838] sm:$0xff]  ;;  %v633_v3 = vld [vmem:[%s10143_s16 + $0x930] sm:$0xff]  ;;  %v9701_v14 = vld [vmem:[%s12523_s1 + $0x2ec] ss:$116 sps:$4 sm:$0xff]  }
  0x85   : > { %8553 = vmatprep.subr.bf16.mxu1 %v913_v19  ;;  %2090 = vmatmul.mubr.bf16.gmra.mxu0 %v9673_v13  ;;  %v642_v13 = vld [vmem:[%s10143_s16 + $0x978] sm:$0xff]  ;;  %v656_v19 = vld [vmem:[%s10143_s16 + $0x9e8] sm:$0xff]  ;;  %v631_v17 = vld [vmem:[%s10143_s16 + $0x920] sm:$0xff] }
  0x86   : > { %8514 = vmatpush3.bf16.msra.mxu0 %v889_v27  ;;  %2097 = vmatprep.mubr.bf16.mxu0 %v9677_v28  ;;  %v941_v22 = vpack.c.bf16 %v642_v13, %v641_v10  ;;  %v622_v28 = vld [vmem:[%s10143_s16 + $0x8d8] sm:$0xff]  ;;  %v600_v10 = vld [vmem:[%s10143_s16 + $0x828] sm:$0xff]  ;;  %v627_v45 = vld [vmem:[%s10143_s16 + $0x900] sm:$0xff] }
  0x87   : > { %2155 = vmatmul.mubr.bf16.gmra.mxu1 %v9676_v18  ;;  %8515 = vmatprep.subr.bf16.mxu0 %v896_v30  ;;  %v655_v18 = vld [vmem:[%s10143_s16 + $0x9e0] sm:$0xff]  ;;  %v653_v30 = vld [vmem:[%s10143_s16 + $0x9d0] sm:$0xff]  ;;  %v931_v35 = vpack.c.bf16 %v622_v28, %v621_v26  ;;  %v646_v24 = vld [vmem:[%s10143_s16 + $0x998] sm:$0xff]  ;;  %v920_v25 = vpack.c.bf16 %v600_v10, %v599_v9 }
  0x88   : > { %8554 = vmatpush3.bf16.msra.mxu1 %v905_v29  ;;  %2162 = vmatprep.mubr.bf16.mxu1 %v9680_v36  ;;  %v948_v27 = vpack.c.bf16 %v656_v19, %v655_v18  ;;  %v9692_v29 = vld [vmem:[%s12523_s1 + $0x124] ss:$116 sps:$4 sm:$0xff]   ;;  %v605_v36 = vld [vmem:[%s10143_s16 + $0x850] sm:$0xff]  ;;  %v632_v18 = vld [vmem:[%s10143_s16 + $0x928] sm:$0xff] }
  0x89   : > { %8555 = vmatprep.subr.bf16.mxu1 %v912_v34  ;;  %v9691_v34 = vld [vmem:[%s12523_s1 + $0x118] ss:$116 sps:$4 sm:$0xff]   ;;  %v923_v48 = vpack.c.bf16 %v606_v37, %v605_v36  ;;  %v613_v19 = vld [vmem:[%s10143_s16 + $0x890] sm:$0xff]  ;;  %v936_v26 = vpack.c.bf16 %v632_v18, %v631_v17  ;;  %v595_v37 = vld [vmem:[%s10143_s16 + $0x800] sm:$0xff] }
  0x8a   : > { %8516 = vmatpush3.bf16.msra.mxu0 %v888_v39  ;;  %v9694_v39 = vld [vmem:[%s12523_s1 + $0x120] ss:$116 sps:$4 sm:$0xff]   ;;  %v612_v36 = vld [vmem:[%s10143_s16 + $0x888] sm:$0xff]  ;;  %v722_v52 = vld [vmem:[%s10143_s16 + $0xbf8] sm:$0xff] }
  0x8b   : > { %8517 = vmatprep.subr.bf16.mxu0 %v895_v42  ;;  %v619_v42 = vld [vmem:[%s10143_s16 + $0x8c0] sm:$0xff]  ;;  %v718_v17 = vld [vmem:[%s10143_s16 + $0xbd8] sm:$0xff] }
  0x8c   : > { %8556 = vmatpush3.bf16.msra.mxu1 %v904_v40  ;;  %v947_v40 = vpack.c.bf16 %v654_v31, %v653_v30  ;;  %v930_v51 = vpack.c.bf16 %v620_v43, %v619_v42  ;;  %v598_v30 = vld [vmem:[%s10143_s16 + $0x818] sm:$0xff]  ;;  %v629_v31 = vld [vmem:[%s10143_s16 + $0x910] sm:$0xff]  ;;  %v703_v10 = vld [vmem:[%s10143_s16 + $0xb60] sm:$0xff] }
  0x8d   : > { %8557 = vmatprep.subr.bf16.mxu1 %v911_v47  ;;  %2098 = vmatmul.mubr.bf16.gmra.mxu0 %v9679_v41  ;;  %v638_v41 = vld [vmem:[%s10143_s16 + $0x958] sm:$0xff]  ;;  %v652_v47 = vld [vmem:[%s10143_s16 + $0x9c8] sm:$0xff] }
  0x8e   : > { %8518 = vmatpush3.bf16.msra.mxu0 %v887_v55  ;;  %2203 = vmatprep.mubr.bf16.mxu0 %v9685_v56  ;;  %v939_v50 = vpack.c.bf16 %v638_v41, %v637_v38  ;;  %v618_v56 = vld [vmem:[%s10143_s16 + $0x8b8] sm:$0xff]  ;;  %v596_v38 = vld [vmem:[%s10143_s16 + $0x808] sm:$0xff] }
  0x8f   : > { %2163 = vmatmul.mubr.bf16.gmra.mxu1 %v9682_v46  ;;  %8519 = vmatprep.subr.bf16.mxu0 %v894_v58  ;;  %v651_v46 = vld [vmem:[%s10143_s16 + $0x9c0] sm:$0xff]  ;;  %v649_v58 = vld [vmem:[%s10143_s16 + $0x9b0] sm:$0xff]  ;;  %v929_v63 = vpack.c.bf16 %v618_v56, %v617_v54  ;;  %v918_v53 = vpack.c.bf16 %v596_v38, %v595_v37 }
  0x90   : > { %8558 = vmatpush3.bf16.msra.mxu1 %v903_v57  ;;  %2268 = vmatprep.mubr.bf16.mxu1 %v9688_v0  ;;  %v946_v55 = vpack.c.bf16 %v652_v47, %v651_v46  ;;  %v9698_v57 = vld [vmem:[%s12523_s1 + $0x20c] ss:$116 sps:$4 sm:$0xff]   ;;  %v601_v0 = vld [vmem:[%s10143_s16 + $0x830] sm:$0xff]  ;;  %v9709_v42 = vld [vmem:[%s12523_s1 + $0x44] ss:$116 sps:$4 sm:$0xff]  }
  0x91   : > { %8559 = vmatprep.subr.bf16.mxu1 %v910_v62  ;;  %v9697_v62 = vld [vmem:[%s12523_s1 + $0x200] ss:$116 sps:$4 sm:$0xff]   ;;  %v921_v13 = vpack.c.bf16 %v602_v2, %v601_v0  ;;  %v628_v46 = vld [vmem:[%s10143_s16 + $0x908] sm:$0xff] }
  0x92   : > { %8520 = vmatpush3.bf16.msra.mxu0 %v886_v4  ;;  %v9700_v4 = vld [vmem:[%s12523_s1 + $0x208] ss:$116 sps:$4 sm:$0xff]   ;;  %v689_v47 = vld [vmem:[%s10143_s16 + $0xaf0] sm:$0xff]  ;;  %v671_v2 = vld [vmem:[%s10143_s16 + $0xa60] sm:$0xff] }
  0x93   : > { %8585 = vmatprep.subr.bf16.mxu0 %v933_v7  ;;  %v615_v7 = vld [vmem:[%s10143_s16 + $0x8a0] sm:$0xff]  ;;  %v688_v0 = vld [vmem:[%s10143_s16 + $0xae8] sm:$0xff] }
  0x94   : > { %8560 = vmatpush3.bf16.msra.mxu1 %v902_v6  ;;  %v634_v6 = vld [vmem:[%s10143_s16 + $0x938] sm:$0xff]  ;;  %v928_v16 = vpack.c.bf16 %v616_v8, %v615_v7  ;;  %v9707_v54 = vld [vmem:[%s12523_s1 + $0x40] ss:$116 sps:$4 sm:$0xff]  }
  0x95   : > { %8625 = vmatprep.subr.bf16.mxu1 %v949_v12  ;;  %2204 = vmatmul.mubr.bf16.vlgmr.msra.gmra.mxu0 %v9683_v5  ;;  %v945_v5 = vpack.c.bf16 %v650_v59, %v649_v58  ;;  %v648_v12 = vld [vmem:[%s10143_s16 + $0x9a8] sm:$0xff]  ;;  %v937_v15 = vpack.c.bf16 %v634_v6, %v633_v3  ;;  %v674_v58 = vld [vmem:[%s10143_s16 + $0xa78] sm:$0xff]  ;;  %v705_v59 = vld [vmem:[%s10143_s16 + $0xb70] sm:$0xff] }
  0x96   : > { %8586 = vmatpush3.bf16.msra.mxu0 %v925_v20  ;;  %2211 = vmatprep.mubr.bf16.mxu0 %v9689_v21  ;;  %v614_v21 = vld [vmem:[%s10143_s16 + $0x898] sm:$0xff]  ;;  %v672_v3 = vld [vmem:[%s10143_s16 + $0xa68] sm:$0xff]  ;;  %v699_v38 = vld [vmem:[%s10143_s16 + $0xb40] sm:$0xff] }
  0x97   : > { %2269 = vmatmul.mubr.bf16.vlgmr.msra.gmra.mxu1 %v9686_v11  ;;  %8587 = vmatprep.subr.bf16.mxu0 %v932_v23  ;;  %v647_v11 = vld [vmem:[%s10143_s16 + $0x9a0] sm:$0xff]  ;;  %v645_v23 = vld [vmem:[%s10143_s16 + $0x990] sm:$0xff]  ;;  %v927_v28 = vpack.c.bf16 %v614_v21, %v613_v19  ;;  %v956_v18 = vpack.c.bf16 %v672_v3, %v671_v2 }
  0x98   : > { %8626 = vmatpush3.bf16.msra.mxu1 %v941_v22  ;;  %2276 = vmatprep.mubr.bf16.mxu1 %v9692_v29  ;;  %v944_v20 = vpack.c.bf16 %v648_v12, %v647_v11  ;;  %v9704_v22 = vld [vmem:[%s12523_s1 + $0x2f4] ss:$116 sps:$4 sm:$0xff]   ;;  %v9713_v7 = vld [vmem:[%s12523_s1 + $0x12c] ss:$116 sps:$4 sm:$0xff]  }
  0x99   : > { %8627 = vmatprep.subr.bf16.mxu1 %v948_v27  ;;  %v9703_v27 = vld [vmem:[%s12523_s1 + $0x2e8] ss:$116 sps:$4 sm:$0xff]   ;;  %v597_v29 = vld [vmem:[%s10143_s16 + $0x810] sm:$0xff]  ;;  %v695_v3 = vld [vmem:[%s10143_s16 + $0xb20] sm:$0xff] }
  0x9a   : > { %8588 = vmatpush3.bf16.msra.mxu0 %v924_v32  ;;  %v9706_v32 = vld [vmem:[%s12523_s1 + $0x2f0] ss:$116 sps:$4 sm:$0xff]   ;;  %v919_v41 = vpack.c.bf16 %v598_v30, %v597_v29  ;;  %v704_v11 = vld [vmem:[%s10143_s16 + $0xb68] sm:$0xff] }
  0x9b   : > { %8589 = vmatprep.subr.bf16.mxu0 %v931_v35  ;;  %v611_v35 = vld [vmem:[%s10143_s16 + $0x880] sm:$0xff]  ;;  %v685_v12 = vld [vmem:[%s10143_s16 + $0xad0] sm:$0xff]  ;;  %v972_v19 = vpack.c.bf16 %v704_v11, %v703_v10  ;;  %v684_v29 = vld [vmem:[%s10143_s16 + $0xac8] sm:$0xff] }
  0x9c   : > { %8628 = vmatpush3.bf16.msra.mxu1 %v940_v33  ;;  %v943_v33 = vpack.c.bf16 %v646_v24, %v645_v23  ;;  %v926_v44 = vpack.c.bf16 %v612_v36, %v611_v35  ;;  %v670_v23 = vld [vmem:[%s10143_s16 + $0xa58] sm:$0xff]  ;;  %v701_v24 = vld [vmem:[%s10143_s16 + $0xb50] sm:$0xff]  ;;  %v667_v30 = vld [vmem:[%s10143_s16 + $0xa40] sm:$0xff] }
  0x9d   : > { %8629 = vmatprep.subr.bf16.mxu1 %v947_v40  ;;  %2212 = vmatmul.mubr.bf16.gmra.mxu0 %v9691_v34  ;;  %v630_v34 = vld [vmem:[%s10143_s16 + $0x918] sm:$0xff]  ;;  %v644_v40 = vld [vmem:[%s10143_s16 + $0x988] sm:$0xff] }
  0x9e   : > { %8590 = vmatpush3.bf16.msra.mxu0 %v923_v48  ;;  %2219 = vmatprep.mubr.bf16.mxu0 %v9695_v49  ;;  %v935_v43 = vpack.c.bf16 %v630_v34, %v629_v31  ;;  %v690_v49 = vld [vmem:[%s10143_s16 + $0xaf8] sm:$0xff]  ;;  %v668_v31 = vld [vmem:[%s10143_s16 + $0xa48] sm:$0xff] }
  0x9f   : > { %2277 = vmatmul.mubr.bf16.gmra.mxu1 %v9694_v39  ;;  %8591 = vmatprep.subr.bf16.mxu0 %v930_v51  ;;  %v643_v39 = vld [vmem:[%s10143_s16 + $0x980] sm:$0xff]  ;;  %v721_v51 = vld [vmem:[%s10143_s16 + $0xbf0] sm:$0xff]  ;;  %v965_v56 = vpack.c.bf16 %v690_v49, %v689_v47  ;;  %v710_v10 = vld [vmem:[%s10143_s16 + $0xb98] sm:$0xff] }
  0xa0   : > { %8630 = vmatpush3.bf16.msra.mxu1 %v939_v50  ;;  %2284 = vmatprep.mubr.bf16.mxu1 %v9698_v57  ;;  %v942_v48 = vpack.c.bf16 %v644_v40, %v643_v39  ;;  %v9712_v50 = vld [vmem:[%s12523_s1 + $0x4c] ss:$116 sps:$4 sm:$0xff]   ;;  %v673_v57 = vld [vmem:[%s10143_s16 + $0xa70] sm:$0xff] }
  0xa1   : > { %8631 = vmatprep.subr.bf16.mxu1 %v946_v55  ;;  %v934_v55 = vpack.c.bf16 %v628_v46, %v627_v45  ;;  %v957_v6 = vpack.c.bf16 %v674_v58, %v673_v57  ;;  %v9719_v35 = vld [vmem:[%s12523_s1 + $0x214] ss:$116 sps:$4 sm:$0xff]   ;;  %v714_v45 = vld [vmem:[%s10143_s16 + $0xbb8] sm:$0xff]  ;;  %v954_v46 = vpack.c.bf16 %v668_v31, %v667_v30  ;;  %v663_v58 = vld [vmem:[%s10143_s16 + $0xa20] sm:$0xff] }
  0xa2   : > { %8592 = vmatpush3.bf16.msra.mxu0 %v922_v60  ;;  %v9710_v60 = vld [vmem:[%s12523_s1 + $0x48] ss:$116 sps:$4 sm:$0xff]   ;;  %v681_v40 = vld [vmem:[%s10143_s16 + $0xab0] sm:$0xff]  ;;  %v691_v31 = vld [vmem:[%s10143_s16 + $0xb00] sm:$0xff] }
  0xa3   : > { %8593 = vmatprep.subr.bf16.mxu0 %v929_v63  ;;  %v687_v63 = vld [vmem:[%s10143_s16 + $0xae0] sm:$0xff]  ;;  %v700_v39 = vld [vmem:[%s10143_s16 + $0xb48] sm:$0xff] }
  0xa4   : > { %8632 = vmatpush3.bf16.msra.mxu1 %v938_v61  ;;  %v981_v61 = vpack.c.bf16 %v722_v52, %v721_v51  ;;  %v964_v9 = vpack.c.bf16 %v688_v0, %v687_v63  ;;  %v970_v47 = vpack.c.bf16 %v700_v39, %v699_v38  ;;  %v666_v51 = vld [vmem:[%s10143_s16 + $0xa38] sm:$0xff]  ;;  %v697_v52 = vld [vmem:[%s10143_s16 + $0xb30] sm:$0xff]  ;;  %v680_v57 = vld [vmem:[%s10143_s16 + $0xaa8] sm:$0xff] }
  0xa5   : > { %8633 = vmatprep.subr.bf16.mxu1 %v945_v5  ;;  %2220 = vmatmul.mubr.bf16.gmra.mxu0 %v9697_v62  ;;  %v706_v62 = vld [vmem:[%s10143_s16 + $0xb78] sm:$0xff]  ;;  %v720_v5 = vld [vmem:[%s10143_s16 + $0xbe8] sm:$0xff] }
  0xa6   : > { %8594 = vmatpush3.bf16.msra.mxu0 %v921_v13  ;;  %2227 = vmatprep.mubr.bf16.mxu0 %v9701_v14  ;;  %v973_v8 = vpack.c.bf16 %v706_v62, %v705_v59  ;;  %v686_v14 = vld [vmem:[%s10143_s16 + $0xad8] sm:$0xff]  ;;  %v664_v59 = vld [vmem:[%s10143_s16 + $0xa28] sm:$0xff] }
  0xa7   : > { %2285 = vmatmul.mubr.bf16.gmra.mxu1 %v9700_v4  ;;  %8595 = vmatprep.subr.bf16.mxu0 %v928_v16  ;;  %v719_v4 = vld [vmem:[%s10143_s16 + $0xbe0] sm:$0xff]  ;;  %v717_v16 = vld [vmem:[%s10143_s16 + $0xbd0] sm:$0xff]  ;;  %v963_v21 = vpack.c.bf16 %v686_v14, %v685_v12  ;;  %v952_v11 = vpack.c.bf16 %v664_v59, %v663_v58  ;;  %v786_v38 = vld [vmem:[%s10143_s16 + $0xdf8] sm:$0xff] }
  0xa8   : > { %8634 = vmatpush3.bf16.msra.mxu1 %v937_v15  ;;  %2292 = vmatprep.mubr.bf16.mxu1 %v9704_v22  ;;  %v980_v13 = vpack.c.bf16 %v720_v5, %v719_v4  ;;  %v9716_v15 = vld [vmem:[%s12523_s1 + $0x134] ss:$116 sps:$4 sm:$0xff]   ;;  %v9725_v63 = vld [vmem:[%s12523_s1 + $0x2fc] ss:$116 sps:$4 sm:$0xff]   ;;  %v767_v59 = vld [vmem:[%s10143_s16 + $0xd60] sm:$0xff] }
  0xa9   : > { %8635 = vmatprep.subr.bf16.mxu1 %v944_v20  ;;  %v9715_v20 = vld [vmem:[%s12523_s1 + $0x128] ss:$116 sps:$4 sm:$0xff]   ;;  %v669_v22 = vld [vmem:[%s10143_s16 + $0xa50] sm:$0xff] }
  0xaa   : > { %8596 = vmatpush3.bf16.msra.mxu0 %v920_v25  ;;  %v9718_v25 = vld [vmem:[%s12523_s1 + $0x130] ss:$116 sps:$4 sm:$0xff]   ;;  %v955_v34 = vpack.c.bf16 %v670_v23, %v669_v22  ;;  %v696_v4 = vld [vmem:[%s10143_s16 + $0xb28] sm:$0xff] }
  0xab   : > { %8597 = vmatprep.subr.bf16.mxu0 %v927_v28  ;;  %v683_v28 = vld [vmem:[%s10143_s16 + $0xac0] sm:$0xff]  ;;  %v677_v5 = vld [vmem:[%s10143_s16 + $0xa90] sm:$0xff]  ;;  %v968_v12 = vpack.c.bf16 %v696_v4, %v695_v3  ;;  %v676_v22 = vld [vmem:[%s10143_s16 + $0xa88] sm:$0xff] }
  0xac   : > { %8636 = vmatpush3.bf16.msra.mxu1 %v936_v26  ;;  %v979_v26 = vpack.c.bf16 %v718_v17, %v717_v16  ;;  %v962_v37 = vpack.c.bf16 %v684_v29, %v683_v28  ;;  %v662_v16 = vld [vmem:[%s10143_s16 + $0xa18] sm:$0xff]  ;;  %v693_v17 = vld [vmem:[%s10143_s16 + $0xb10] sm:$0xff]  ;;  %v659_v23 = vld [vmem:[%s10143_s16 + $0xa00] sm:$0xff] }
  0xad   : > { %8637 = vmatprep.subr.bf16.mxu1 %v943_v33  ;;  %2228 = vmatmul.mubr.bf16.gmra.mxu0 %v9703_v27  ;;  %v702_v27 = vld [vmem:[%s10143_s16 + $0xb58] sm:$0xff]  ;;  %v716_v33 = vld [vmem:[%s10143_s16 + $0xbc8] sm:$0xff] }
  0xae   : > { %8598 = vmatpush3.bf16.msra.mxu0 %v919_v41  ;;  %2333 = vmatprep.mubr.bf16.mxu0 %v9709_v42  ;;  %v971_v36 = vpack.c.bf16 %v702_v27, %v701_v24  ;;  %v682_v42 = vld [vmem:[%s10143_s16 + $0xab8] sm:$0xff]  ;;  %v660_v24 = vld [vmem:[%s10143_s16 + $0xa08] sm:$0xff] }
  0xaf   : > { %2293 = vmatmul.mubr.bf16.gmra.mxu1 %v9706_v32  ;;  %8599 = vmatprep.subr.bf16.mxu0 %v926_v44  ;;  %v715_v32 = vld [vmem:[%s10143_s16 + $0xbc0] sm:$0xff]  ;;  %v713_v44 = vld [vmem:[%s10143_s16 + $0xbb0] sm:$0xff]  ;;  %v961_v49 = vpack.c.bf16 %v682_v42, %v681_v40  ;;  %v950_v39 = vpack.c.bf16 %v660_v24, %v659_v23  ;;  %v782_v3 = vld [vmem:[%s10143_s16 + $0xdd8] sm:$0xff] }
  0xb0   : > { %8638 = vmatpush3.bf16.msra.mxu1 %v935_v43  ;;  %2398 = vmatprep.mubr.bf16.mxu1 %v9712_v50  ;;  %v978_v41 = vpack.c.bf16 %v716_v33, %v715_v32  ;;  %v9722_v43 = vld [vmem:[%s12523_s1 + $0x21c] ss:$116 sps:$4 sm:$0xff]   ;;  %v9733_v28 = vld [vmem:[%s12523_s1 + $0x54] ss:$116 sps:$4 sm:$0xff]   ;;  %v763_v24 = vld [vmem:[%s10143_s16 + $0xd40] sm:$0xff] }
  0xb1   : > { %8639 = vmatprep.subr.bf16.mxu1 %v942_v48  ;;  %v9721_v48 = vld [vmem:[%s12523_s1 + $0x210] ss:$116 sps:$4 sm:$0xff]   ;;  %v692_v32 = vld [vmem:[%s10143_s16 + $0xb08] sm:$0xff] }
  0xb2   : > { %8600 = vmatpush3.bf16.msra.mxu0 %v918_v53  ;;  %v665_v50 = vld [vmem:[%s10143_s16 + $0xa30] sm:$0xff]  ;;  %v9724_v53 = vld [vmem:[%s12523_s1 + $0x218] ss:$116 sps:$4 sm:$0xff]  }
  0xb3   : > { %8665 = vmatprep.subr.bf16.mxu0 %v965_v56  ;;  %v679_v56 = vld [vmem:[%s10143_s16 + $0xaa0] sm:$0xff]  ;;  %v953_v62 = vpack.c.bf16 %v666_v51, %v665_v50  ;;  %v753_v33 = vld [vmem:[%s10143_s16 + $0xcf0] sm:$0xff]  ;;  %v752_v50 = vld [vmem:[%s10143_s16 + $0xce8] sm:$0xff] }
  0xb4   : > { %8640 = vmatpush3.bf16.msra.mxu1 %v934_v55  ;;  %v698_v55 = vld [vmem:[%s10143_s16 + $0xb38] sm:$0xff]  ;;  %v960_v2 = vpack.c.bf16 %v680_v57, %v679_v56  ;;  %v9731_v40 = vld [vmem:[%s12523_s1 + $0x50] ss:$116 sps:$4 sm:$0xff]  }
  0xb5   : > { %8705 = vmatprep.subr.bf16.mxu1 %v981_v61  ;;  %2334 = vmatmul.mubr.bf16.vlgmr.msra.gmra.mxu0 %v9707_v54  ;;  %v977_v54 = vpack.c.bf16 %v714_v45, %v713_v44  ;;  %v712_v61 = vld [vmem:[%s10143_s16 + $0xba8] sm:$0xff]  ;;  %v969_v0 = vpack.c.bf16 %v698_v55, %v697_v52  ;;  %v738_v44 = vld [vmem:[%s10143_s16 + $0xc78] sm:$0xff]  ;;  %v769_v45 = vld [vmem:[%s10143_s16 + $0xd70] sm:$0xff] }
  0xb6   : > { %8666 = vmatpush3.bf16.msra.mxu0 %v957_v6  ;;  %2341 = vmatprep.mubr.bf16.mxu0 %v9713_v7  ;;  %v678_v7 = vld [vmem:[%s10143_s16 + $0xa98] sm:$0xff]  ;;  %v735_v51 = vld [vmem:[%s10143_s16 + $0xc60] sm:$0xff]  ;;  %v736_v52 = vld [vmem:[%s10143_s16 + $0xc68] sm:$0xff] }
  0xb7   : > { %2399 = vmatmul.mubr.bf16.vlgmr.msra.gmra.mxu1 %v9710_v60  ;;  %8667 = vmatprep.subr.bf16.mxu0 %v964_v9  ;;  %v711_v60 = vld [vmem:[%s10143_s16 + $0xba0] sm:$0xff]  ;;  %v709_v9 = vld [vmem:[%s10143_s16 + $0xb90] sm:$0xff]  ;;  %v959_v14 = vpack.c.bf16 %v678_v7, %v677_v5  ;;  %v988_v4 = vpack.c.bf16 %v736_v52, %v735_v51 }
  0xb8   : > { %8706 = vmatpush3.bf16.msra.mxu1 %v973_v8  ;;  %2406 = vmatprep.mubr.bf16.mxu1 %v9716_v15  ;;  %v976_v6 = vpack.c.bf16 %v712_v61, %v711_v60  ;;  %v9728_v8 = vld [vmem:[%s12523_s1 + $0x304] ss:$116 sps:$4 sm:$0xff]   ;;  %v661_v15 = vld [vmem:[%s10143_s16 + $0xa10] sm:$0xff]  ;;  %v768_v60 = vld [vmem:[%s10143_s16 + $0xd68] sm:$0xff] }
  0xb9   : > { %8707 = vmatprep.subr.bf16.mxu1 %v980_v13  ;;  %v9727_v13 = vld [vmem:[%s12523_s1 + $0x2f8] ss:$116 sps:$4 sm:$0xff]   ;;  %v951_v27 = vpack.c.bf16 %v662_v16, %v661_v15  ;;  %v9737_v56 = vld [vmem:[%s12523_s1 + $0x13c] ss:$116 sps:$4 sm:$0xff]   ;;  %v1004_v5 = vpack.c.bf16 %v768_v60, %v767_v59  ;;  %v731_v16 = vld [vmem:[%s10143_s16 + $0xc40] sm:$0xff] }
  0xba   : > { %8668 = vmatpush3.bf16.msra.mxu0 %v956_v18  ;;  %v9730_v18 = vld [vmem:[%s12523_s1 + $0x300] ss:$116 sps:$4 sm:$0xff]   ;;  %v748_v15 = vld [vmem:[%s10143_s16 + $0xcc8] sm:$0xff]  ;;  %v726_v60 = vld [vmem:[%s10143_s16 + $0xc18] sm:$0xff] }
  0xbb   : > { %8669 = vmatprep.subr.bf16.mxu0 %v963_v21  ;;  %v675_v21 = vld [vmem:[%s10143_s16 + $0xa80] sm:$0xff]  ;;  %v749_v61 = vld [vmem:[%s10143_s16 + $0xcd0] sm:$0xff] }
  0xbc   : > { %8708 = vmatpush3.bf16.msra.mxu1 %v972_v19  ;;  %v975_v19 = vpack.c.bf16 %v710_v10, %v709_v9  ;;  %v958_v30 = vpack.c.bf16 %v676_v22, %v675_v21  ;;  %v734_v9 = vld [vmem:[%s10143_s16 + $0xc58] sm:$0xff]  ;;  %v765_v10 = vld [vmem:[%s10143_s16 + $0xd50] sm:$0xff] }
  0xbd   : > { %8709 = vmatprep.subr.bf16.mxu1 %v979_v26  ;;  %2342 = vmatmul.mubr.bf16.gmra.mxu0 %v9715_v20  ;;  %v694_v20 = vld [vmem:[%s10143_s16 + $0xb18] sm:$0xff]  ;;  %v708_v26 = vld [vmem:[%s10143_s16 + $0xb88] sm:$0xff]  ;;  %v725_v59 = vld [vmem:[%s10143_s16 + $0xc10] sm:$0xff] }
  0xbe   : > { %8670 = vmatpush3.bf16.msra.mxu0 %v955_v34  ;;  %2349 = vmatprep.mubr.bf16.mxu0 %v9719_v35  ;;  %v967_v29 = vpack.c.bf16 %v694_v20, %v693_v17  ;;  %v754_v35 = vld [vmem:[%s10143_s16 + $0xcf8] sm:$0xff]  ;;  %v732_v17 = vld [vmem:[%s10143_s16 + $0xc48] sm:$0xff] }
  0xbf   : > { %2407 = vmatmul.mubr.bf16.gmra.mxu1 %v9718_v25  ;;  %8671 = vmatprep.subr.bf16.mxu0 %v962_v37  ;;  %v707_v25 = vld [vmem:[%s10143_s16 + $0xb80] sm:$0xff]  ;;  %v785_v37 = vld [vmem:[%s10143_s16 + $0xdf0] sm:$0xff]  ;;  %v997_v42 = vpack.c.bf16 %v754_v35, %v753_v33 }
  0xc0   : > { %8710 = vmatpush3.bf16.msra.mxu1 %v971_v36  ;;  %2414 = vmatprep.mubr.bf16.mxu1 %v9722_v43  ;;  %v974_v34 = vpack.c.bf16 %v708_v26, %v707_v25  ;;  %v9736_v36 = vld [vmem:[%s12523_s1 + $0x5c] ss:$116 sps:$4 sm:$0xff]   ;;  %v9743_v21 = vld [vmem:[%s12523_s1 + $0x224] ss:$116 sps:$4 sm:$0xff]   ;;  %v764_v25 = vld [vmem:[%s10143_s16 + $0xd48] sm:$0xff] }
  0xc1   : > { %8711 = vmatprep.subr.bf16.mxu1 %v978_v41  ;;  %v966_v41 = vpack.c.bf16 %v692_v32, %v691_v31  ;;  %v737_v43 = vld [vmem:[%s10143_s16 + $0xc70] sm:$0xff]  ;;  %v778_v31 = vld [vmem:[%s10143_s16 + $0xdb8] sm:$0xff]  ;;  %v986_v32 = vpack.c.bf16 %v732_v17, %v731_v16  ;;  %v1002_v33 = vpack.c.bf16 %v764_v25, %v763_v24  ;;  %v9760_v24 = vld [vmem:[%s12523_s1 + $0x6c] ss:$116 sps:$4 sm:$0xff]  }
  0xc2   : > { %8672 = vmatpush3.bf16.msra.mxu0 %v954_v46  ;;  %v9734_v46 = vld [vmem:[%s12523_s1 + $0x58] ss:$116 sps:$4 sm:$0xff]   ;;  %v989_v55 = vpack.c.bf16 %v738_v44, %v737_v43  ;;  %v745_v26 = vld [vmem:[%s10143_s16 + $0xcb0] sm:$0xff]  ;;  %v727_v44 = vld [vmem:[%s10143_s16 + $0xc20] sm:$0xff] }
  0xc3   : > { %8673 = vmatprep.subr.bf16.mxu0 %v961_v49  ;;  %v751_v49 = vld [vmem:[%s10143_s16 + $0xce0] sm:$0xff]  ;;  %v744_v43 = vld [vmem:[%s10143_s16 + $0xca8] sm:$0xff] }
  0xc4   : > { %8712 = vmatpush3.bf16.msra.mxu1 %v970_v47  ;;  %v1013_v47 = vpack.c.bf16 %v786_v38, %v785_v37  ;;  %v996_v58 = vpack.c.bf16 %v752_v50, %v751_v49  ;;  %v730_v37 = vld [vmem:[%s10143_s16 + $0xc38] sm:$0xff]  ;;  %v761_v38 = vld [vmem:[%s10143_s16 + $0xd30] sm:$0xff]  ;;  %v9749_v49 = vld [vmem:[%s12523_s1 + $0x30c] ss:$116 sps:$4 sm:$0xff]  }
  0xc5   : > { %8713 = vmatprep.subr.bf16.mxu1 %v977_v54  ;;  %2350 = vmatmul.mubr.bf16.gmra.mxu0 %v9721_v48  ;;  %v770_v48 = vld [vmem:[%s10143_s16 + $0xd78] sm:$0xff]  ;;  %v784_v54 = vld [vmem:[%s10143_s16 + $0xde8] sm:$0xff]  ;;  %v759_v50 = vld [vmem:[%s10143_s16 + $0xd20] sm:$0xff] }
  0xc6   : > { %8674 = vmatpush3.bf16.msra.mxu0 %v953_v62  ;;  %2357 = vmatprep.mubr.bf16.mxu0 %v9725_v63  ;;  %v1005_v57 = vpack.c.bf16 %v770_v48, %v769_v45  ;;  %v750_v63 = vld [vmem:[%s10143_s16 + $0xcd8] sm:$0xff]  ;;  %v728_v45 = vld [vmem:[%s10143_s16 + $0xc28] sm:$0xff] }
  0xc7   : > { %2415 = vmatmul.mubr.bf16.gmra.mxu1 %v9724_v53  ;;  %8675 = vmatprep.subr.bf16.mxu0 %v960_v2  ;;  %v783_v53 = vld [vmem:[%s10143_s16 + $0xde0] sm:$0xff]  ;;  %v781_v2 = vld [vmem:[%s10143_s16 + $0xdd0] sm:$0xff]  ;;  %v995_v7 = vpack.c.bf16 %v750_v63, %v749_v61  ;;  %v984_v63 = vpack.c.bf16 %v728_v45, %v727_v44  ;;  %v2773_v45 = vld [vmem:[%s12526_s4 + $0x8] sm:$0xff] }
  0xc8   : > { %8714 = vmatpush3.bf16.msra.mxu1 %v969_v0  ;;  %2422 = vmatprep.mubr.bf16.mxu1 %v9728_v8  ;;  %v1012_v62 = vpack.c.bf16 %v784_v54, %v783_v53  ;;  %v9740_v0 = vld [vmem:[%s12523_s1 + $0x144] ss:$116 sps:$4 sm:$0xff]   ;;  %v733_v8 = vld [vmem:[%s10143_s16 + $0xc50] sm:$0xff]  ;;  %v760_v53 = vld [vmem:[%s10143_s16 + $0xd28] sm:$0xff] }
  0xc9   : > { %8715 = vmatprep.subr.bf16.mxu1 %v976_v6  ;;  %v9739_v6 = vld [vmem:[%s12523_s1 + $0x138] ss:$116 sps:$4 sm:$0xff]   ;;  %v987_v20 = vpack.c.bf16 %v734_v9, %v733_v8  ;;  %v741_v54 = vld [vmem:[%s10143_s16 + $0xc90] sm:$0xff] }
  0xca   : > { %8676 = vmatpush3.bf16.msra.mxu0 %v952_v11  ;;  %v9742_v11 = vld [vmem:[%s12523_s1 + $0x140] ss:$116 sps:$4 sm:$0xff]   ;;  %v740_v9 = vld [vmem:[%s10143_s16 + $0xc88] sm:$0xff]  ;;  %v9757_v16 = vld [vmem:[%s12523_s1 + $0x64] ss:$116 sps:$4 sm:$0xff]  }
  0xcb   : > { %8677 = vmatprep.subr.bf16.mxu0 %v959_v14  ;;  %v747_v14 = vld [vmem:[%s10143_s16 + $0xcc0] sm:$0xff]  ;;  %v773_v61 = vld [vmem:[%s10143_s16 + $0xd90] sm:$0xff] }
  0xcc   : > { %8716 = vmatpush3.bf16.msra.mxu1 %v968_v12  ;;  %v1011_v12 = vpack.c.bf16 %v782_v3, %v781_v2  ;;  %v994_v23 = vpack.c.bf16 %v748_v15, %v747_v14  ;;  %v758_v2 = vld [vmem:[%s10143_s16 + $0xd18] sm:$0xff]  ;;  %v1000_v3 = vpack.c.bf16 %v760_v53, %v759_v50  ;;  %v772_v14 = vld [vmem:[%s10143_s16 + $0xd88] sm:$0xff]  ;;  %v983_v15 = vpack.c.bf16 %v726_v60, %v725_v59 }
  0xcd   : > { %8717 = vmatprep.subr.bf16.mxu1 %v975_v19  ;;  %2358 = vmatmul.mubr.bf16.gmra.mxu0 %v9727_v13  ;;  %v766_v13 = vld [vmem:[%s10143_s16 + $0xd58] sm:$0xff]  ;;  %v780_v19 = vld [vmem:[%s10143_s16 + $0xdc8] sm:$0xff] }
  0xce   : > { %8678 = vmatpush3.bf16.msra.mxu0 %v951_v27  ;;  %2463 = vmatprep.mubr.bf16.mxu0 %v9733_v28  ;;  %v1003_v22 = vpack.c.bf16 %v766_v13, %v765_v10  ;;  %v746_v28 = vld [vmem:[%s10143_s16 + $0xcb8] sm:$0xff]  ;;  %v771_v13 = vld [vmem:[%s10143_s16 + $0xd80] sm:$0xff]  ;;  %v9767_v53 = vld [vmem:[%s12523_s1 + $0x234] ss:$116 sps:$4 sm:$0xff]  }
  0xcf   : > { %2423 = vmatmul.mubr.bf16.gmra.mxu1 %v9730_v18  ;;  %8679 = vmatprep.subr.bf16.mxu0 %v958_v30  ;;  %v779_v18 = vld [vmem:[%s10143_s16 + $0xdc0] sm:$0xff]  ;;  %v777_v30 = vld [vmem:[%s10143_s16 + $0xdb0] sm:$0xff]  ;;  %v993_v35 = vpack.c.bf16 %v746_v28, %v745_v26 }
  0xd0   : > { %8718 = vmatpush3.bf16.msra.mxu1 %v967_v29  ;;  %2528 = vmatprep.mubr.bf16.mxu1 %v9736_v36  ;;  %v1010_v27 = vpack.c.bf16 %v780_v19, %v779_v18  ;;  %v9746_v29 = vld [vmem:[%s12523_s1 + $0x22c] ss:$116 sps:$4 sm:$0xff]   ;;  %v729_v36 = vld [vmem:[%s10143_s16 + $0xc30] sm:$0xff] }
  0xd1   : > { %8719 = vmatprep.subr.bf16.mxu1 %v974_v34  ;;  %v9745_v34 = vld [vmem:[%s12523_s1 + $0x220] ss:$116 sps:$4 sm:$0xff]   ;;  %v985_v48 = vpack.c.bf16 %v730_v37, %v729_v36  ;;  %v5294_v36 = vsel %vm5292_vm0, 65535, %v10063_v1 }
  0xd2   : > { %8680 = vmatpush3.bf16.msra.mxu0 %v950_v39  ;;  %v9748_v39 = vld [vmem:[%s12523_s1 + $0x228] ss:$116 sps:$4 sm:$0xff]   ;;  %v9755_v26 = vld [vmem:[%s12523_s1 + $0x60] ss:$116 sps:$4 sm:$0xff]  }
  0xd3   : > { %8745 = vmatprep.subr.bf16.mxu0 %v997_v42  ;;  %v743_v42 = vld [vmem:[%s10143_s16 + $0xca0] sm:$0xff]  ;;  %v9764_v37 = vld [vmem:[%s12523_s1 + $0x154] ss:$116 sps:$4 sm:$0xff]  }
  0xd4   : > { %8720 = vmatpush3.bf16.msra.mxu1 %v966_v41  ;;  %v762_v41 = vld [vmem:[%s10143_s16 + $0xd38] sm:$0xff]  ;;  %v992_v52 = vpack.c.bf16 %v744_v43, %v743_v42  ;;  %v10895_v10 = vpop.permute.xlu1 %1166  ;;  %v2772_v1 = vld [vmem:[%s12526_s4] sm:$0xff]  ;;  %v10943_v43 = vand.u32 1065369472, %v5294_v36 }
  0xd5   : > { %8785 = vmatprep.subr.bf16.mxu1 %v1013_v47  ;;  %2464 = vmatmul.mubr.bf16.vlgmr.msra.gmra.mxu0 %v9731_v40  ;;  %v1009_v40 = vpack.c.bf16 %v778_v31, %v777_v30  ;;  %v776_v47 = vld [vmem:[%s10143_s16 + $0xda8] sm:$0xff]  ;;  %v1001_v51 = vpack.c.bf16 %v762_v41, %v761_v38  ;;  %v787_v31 = vld [vmem:[%s10143_s16 + $0xe00] sm:$0xff]  ;;  %v2775_v38 = vld [vmem:[%s12526_s4 + $0x18] sm:$0xff] }
  0xd6   : > { %8746 = vmatpush3.bf16.msra.mxu0 %v989_v55  ;;  %2471 = vmatprep.mubr.bf16.mxu0 %v9737_v56  ;;  %v742_v55 = vld [vmem:[%s10143_s16 + $0xc98] sm:$0xff]  ;;  %12533 = vst [vmem:[#allocation2_spill] sm:$0xff] %v10943_v43 }
  0xd7   : > { %2529 = vmatmul.mubr.bf16.vlgmr.msra.gmra.mxu1 %v9734_v46  ;;  %8747 = vmatprep.subr.bf16.mxu0 %v996_v58  ;;  %v775_v46 = vld [vmem:[%s10143_s16 + $0xda0] sm:$0xff]  ;;  %v10879_v58 = vpop.permute.xlu0 %1176  ;;  %v9758_v30 = vld [vmem:[%s12523_s1 + $0x68] ss:$116 sps:$4 sm:$0xff]  }
  0xd8   : > { %8786 = vmatpush3.bf16.msra.mxu1 %v1005_v57  ;;  %2536 = vmatprep.mubr.bf16.mxu1 %v9740_v0  ;;  %v1008_v56 = vpack.c.bf16 %v776_v47, %v775_v46  ;;  %v9752_v57 = vld [vmem:[%s12523_s1 + $0x314] ss:$116 sps:$4 sm:$0xff]  }
  0xd9   : > { %8787 = vmatprep.subr.bf16.mxu1 %v1012_v62  ;;  %v774_v62 = vld [vmem:[%s10143_s16 + $0xd98] sm:$0xff]  ;;  %v757_v0 = vld [vmem:[%s10143_s16 + $0xd10] sm:$0xff]  ;;  %2793 = vperm.xlu1 %9610, %v2775_v38  }
  0xda   : > { %8748 = vmatpush3.bf16.msra.mxu0 %v988_v4  ;;  %v9751_v4 = vld [vmem:[%s12523_s1 + $0x308] ss:$116 sps:$4 sm:$0xff]   ;;  %v1007_v8 = vpack.c.bf16 %v774_v62, %v773_v61  ;;  %v999_v17 = vpack.c.bf16 %v758_v2, %v757_v0 }
  0xdb   : > { %8749 = vmatprep.subr.bf16.mxu0 %v995_v7  ;;  %v9754_v7 = vld [vmem:[%s12523_s1 + $0x310] ss:$116 sps:$4 sm:$0xff]   ;;  %v10904_v18 = vpop.permute.xlu0 %1181 }
  0xdc   : > { %8788 = vmatpush3.bf16.msra.mxu1 %v1004_v5  ;;  %v991_v5 = vpack.c.bf16 %v742_v55, %v741_v54  ;;  %v10915_v28 = vpop.permute.xlu1 %1171  ;;  %v2883_v54 = vld [vmem:[%s12528_s6 + $0x38] sm:$0xff] }
  0xdd   : > { %8789 = vmatprep.subr.bf16.mxu1 %v1011_v12  ;;  %2472 = vmatmul.mubr.bf16.gmra.mxu0 %v9739_v6  ;;  %v739_v6 = vld [vmem:[%s10143_s16 + $0xc80] sm:$0xff]  ;;  %v724_v12 = vld [vmem:[%s10143_s16 + $0xc08] sm:$0xff] }
  0xde   : > { %8750 = vmatpush3.bf16.msra.mxu0 %v987_v20  ;;  %2479 = vmatprep.mubr.bf16.mxu0 %v9743_v21  ;;  %v990_v19 = vpack.c.bf16 %v740_v9, %v739_v6  ;;  %v755_v20 = vld [vmem:[%s10143_s16 + $0xd00] sm:$0xff]  ;;  %v1006_v21 = vpack.c.bf16 %v772_v14, %v771_v13 }
  0xdf   : > { %2537 = vmatmul.mubr.bf16.gmra.mxu1 %v9742_v11  ;;  %8751 = vmatprep.subr.bf16.mxu0 %v994_v23  ;;  %v723_v11 = vld [vmem:[%s10143_s16 + $0xc00] sm:$0xff]  ;;  %v789_v23 = vld [vmem:[%s10143_s16 + $0xe10] sm:$0x3f] }
  0xe0   : > { %8790 = vmatpush3.bf16.msra.mxu1 %v1003_v22  ;;  %2544 = vmatprep.mubr.bf16.mxu1 %v9746_v29  ;;  %v756_v22 = vld [vmem:[%s10143_s16 + $0xd08] sm:$0xff]  ;;  %v982_v25 = vpack.c.bf16 %v724_v12, %v723_v11  ;;  %v1015_v29 = vpack.c.bf16 %v789_v23, %v789_v23  ;;  %v9769_v11 = vld [vmem:[%s12523_s1 + $0x230] ss:$116 sps:$4 sm:$0xff]  }
  0xe1   : > { %8791 = vmatprep.subr.bf16.mxu1 %v1010_v27  ;;  %v998_v27 = vpack.c.bf16 %v756_v22, %v755_v20  ;;  %2783 = vperm.xlu1 %9610, %v2773_v45   ;;  %v2878_v12 = vld [vmem:[%s12528_s6 + $0x10] sm:$0xff]  ;;  %v9776_v22 = vld [vmem:[%s12523_s1 + $0x324] ss:$116 sps:$4 sm:$0xff]  }
  0xe2   : > { %8752 = vmatpush3.bf16.msra.mxu0 %v986_v32  ;;  %v10921_v32 = vpop.permute.xlu0 %1156 }
  0xe3   : > { %8753 = vmatprep.subr.bf16.mxu0 %v993_v35  ;;  %v2774_v35 = vld [vmem:[%s12526_s4 + $0x10] sm:$0xff] }
  0xe4   : > { %8792 = vmatpush3.bf16.msra.mxu1 %v1002_v33  ;;  %v788_v33 = vld [vmem:[%s10143_s16 + $0xe08] sm:$0xff]  ;;  %2788 = vperm.xlu0 %9609, %v2774_v35   ;;  %v10938_v42 = vpop.permute.xlu1 %1161 }
  0xe5   : > { %8793 = vmatprep.subr.bf16.mxu1 %v1009_v40  ;;  %2480 = vmatmul.mubr.bf16.gmra.mxu0 %v9745_v34  ;;  %v9761_v34 = vld [vmem:[%s12523_s1 + $0x14c] ss:$116 sps:$4 sm:$0xff]   ;;  %v1014_v40 = vpack.c.bf16 %v788_v33, %v787_v31 }
  0xe6   : > { %8754 = vmatpush3.bf16.msra.mxu0 %v985_v48  ;;  %2487 = vmatprep.mubr.bf16.mxu0 %v9749_v49  ;;  %v1147_v47 = vpop.permute.xlu0 %1146  ;;  %v9763_v48 = vld [vmem:[%s12523_s1 + $0x148] ss:$116 sps:$4 sm:$0xff]   ;;  %v2882_v49 = vld [vmem:[%s12528_s6 + $0x30] sm:$0xff] }
  0xe7   : > { %2545 = vmatmul.mubr.bf16.gmra.mxu1 %v9748_v39  ;;  %8755 = vmatprep.subr.bf16.mxu0 %v992_v52  ;;  %v1779_v39 = vsel %vm1777_vm1, %v1015_v29, 0  ;;  %v9766_v52 = vld [vmem:[%s12523_s1 + $0x150] ss:$116 sps:$4 sm:$0xff]   ;;  %v2877_v31 = vld [vmem:[%s12528_s6 + $0x8] sm:$0xff] }
  0xe8   : > { %8794 = vmatpush3.bf16.msra.mxu1 %v1001_v51  ;;  %2552 = vmatprep.mubr.bf16.mxu1 %v9752_v57  ;;  %v9770_v57 = vld [vmem:[%s12523_s1 + $0x23c] ss:$116 sps:$4 sm:$0xff]  }
  0xe9   : > { %8795 = vmatprep.subr.bf16.mxu1 %v1008_v56  ;;  %2778 = vperm.xlu0 %9609, %v2772_v1  }
  0xea   : > { %8756 = vmatpush3.bf16.msra.mxu0 %v984_v63  ;;  %v2880_v63 = vld [vmem:[%s12528_s6 + $0x20] sm:$0xff]  ;;  %2921 = vperm.xlu1 %9610, %v2883_v54  }
  0xeb   : > { %8757 = vmatprep.subr.bf16.mxu0 %v991_v5 }
  0xec   : > { %8796 = vmatpush3.bf16.msra.mxu1 %v1000_v3  ;;  %v1152_v62 = vpop.permute.xlu1 %1151 }
  0xed   : > { %8797 = vmatprep.subr.bf16.mxu1 %v1007_v8  ;;  %2488 = vmatmul.mubr.bf16.gmra.mxu0 %v9751_v4  ;;  %v2881_v4 = vld [vmem:[%s12528_s6 + $0x28] sm:$0xff] }
  0xee   : > { %8758 = vmatpush3.bf16.msra.mxu0 %v983_v15  ;;  %2593 = vmatprep.mubr.bf16.mxu0 %v9757_v16  ;;  %v9772_v16 = vld [vmem:[%s12523_s1 + $0x238] ss:$116 sps:$4 sm:$0xff]  }
  0xef   : > { %2553 = vmatmul.mubr.bf16.gmra.mxu1 %v9754_v7  ;;  %8759 = vmatprep.subr.bf16.mxu0 %v990_v19  ;;  %v2879_v19 = vld [vmem:[%s12528_s6 + $0x18] sm:$0xff] }
  0xf0   : > { %8798 = vmatpush3.bf16.msra.mxu1 %v999_v17  ;;  %2658 = vmatprep.mubr.bf16.mxu1 %v9760_v24  ;;  %v9773_v17 = vld [vmem:[%s12523_s1 + $0x31c] ss:$116 sps:$4 sm:$0xff]  }
  0xf1   : > { %8799 = vmatprep.subr.bf16.mxu1 %v1006_v21  ;;  %2916 = vperm.xlu0 %9609, %v2882_v49  }
  0xf2   : > { %8760 = vmatpush3.bf16.msra.mxu0 %v982_v25  ;;  %2911 = vperm.xlu1 %9610, %v2881_v4  }
  0xf3   : > { %9582 = vmatprep.subr.msk.bf16.mxu0 %vm1777_vm1, %v1015_v29 }
  0xf4   : > { %8800 = vmatpush3.bf16.msra.mxu1 %v998_v27 }
  0xf5   : > { %v8281_v41 = vpop.f32.mrf.mxu0  ;;  %2594 = vmatmul.mubr.bf16.vlgmr.msra.gmra.mxu0 %v9755_v26  ;;  %2906 = vperm.xlu0 %9609, %v2880_v63   ;;  %v2876_v26 = vld [vmem:[%s12528_s6] sm:$0xff] }
  0xf6   : > { %2601 = vmatprep.mubr.bf16.mxu0 %v9761_v34  ;;  %9075 = vmatpush3.bf16.msra.mxu0 %v1779_v39 }
  0xf7   : > { %v8321_v44 = vpop.f32.mrf.mxu1  ;;  %2659 = vmatmul.mubr.bf16.vlgmr.msra.gmra.mxu1 %v9758_v30  ;;  %v8282_v46 = vpop.f32.mrf.mxu0  ;;  %9076 = vmatprep.subr.bf16.mxu0 %v1014_v40 }
  0xf8   : > { %2666 = vmatprep.mubr.bf16.mxu1 %v9764_v37  ;;  %v8283_v50 = vadd.f32 %v8282_v46, %v8281_v41  ;;  %2901 = vperm.xlu1 %9610, %v2879_v19   ;;  %v9775_v37 = vld [vmem:[%s12523_s1 + $0x318] ss:$116 sps:$4 sm:$0xff]   ;;  %v9778_v41 = vld [vmem:[%s12523_s1 + $0x320] ss:$116 sps:$4 sm:$0xff]  }
  0xf9   : > { %v8322_v51 = vpop.f32.mrf.mxu1  ;;  %v8284_v55 = vpop.f32.mrf.mxu0  ;;  %2896 = vperm.xlu0 %9609, %v2878_v12  }
  0xfa   : > { %v8323_v56 = vadd.f32 %v8322_v51, %v8321_v44  ;;  %v1816_v59 = vadd.f32 %v8283_v50, %v1147_v47  ;;  %9077 = vmatpush3.bf16.msra.mxu0 %v1014_v40 }
  0xfb   : > { %v8324_v60 = vpop.f32.mrf.mxu1  ;;  %v8285_v61 = vpop.f32.mrf.mxu0  ;;  %9110 = vmatprep.subr.bf16.mxu0 %v10943_v43 }
  0xfc   : > { %v10969_v0 = vadd.f32 %v8323_v56, %v1816_v59  ;;  %v8286_v2 = vadd.f32 %v8285_v61, %v8284_v55  ;;  %2891 = vperm.xlu1 %9610, %v2877_v31  }
  0xfd   : > { %v8325_v3 = vpop.f32.mrf.mxu1  ;;  %v8287_v5 = vpop.f32.mrf.mxu0  ;;  %2602 = vmatmul.mubr.bf16.gmra.mxu0 %v9763_v48  ;;  %2886 = vperm.xlu0 %9609, %v2876_v26  }
  0xfe   : > { %v8326_v6 = vadd.f32 %v8325_v3, %v8324_v60  ;;  %v1819_v7 = vadd.f32 %v8286_v2, %v1152_v62  ;;  %2609 = vmatprep.mubr.bf16.mxu0 %v9767_v53  ;;  %v9781_v60 = vld [vmem:[%s12523_s1 + $0x240] ss:$116 sps:$4 sm:$0xff]  }
  0xff   : > { %v8327_v8 = vpop.f32.mrf.mxu1  ;;  %2667 = vmatmul.mubr.bf16.gmra.mxu1 %v9766_v52  ;;  %v8288_v9 = vpop.f32.mrf.mxu0 }
 0x100   : > { %2674 = vmatprep.mubr.bf16.mxu1 %v9770_v57  ;;  %v10981_v13 = vadd.f32 %v8326_v6, %v1819_v7  ;;  %v8289_v14 = vadd.f32 %v8288_v9, %v8287_v5 }
 0x101   : > { %v8328_v15 = vpop.f32.mrf.mxu1  ;;  %v8290_v20 = vpop.f32.mrf.mxu0 }
 0x102   : > { %v8329_v21 = vadd.f32 %v8328_v15, %v8327_v8  ;;  %v1824_v23 = vadd.f32 %v8289_v14, %v10921_v32 }
 0x103   : > { %v8330_v24 = vpop.f32.mrf.mxu1  ;;  %v8291_v25 = vpop.f32.mrf.mxu0 }
 0x104   : > { %v10999_v27 = vadd.f32 %v8329_v21, %v1824_v23  ;;  %v8292_v29 = vadd.f32 %v8291_v25, %v8290_v20 }
 0x105   : > { %v8331_v30 = vpop.f32.mrf.mxu1  ;;  %v8293_v33 = vpop.f32.mrf.mxu0  ;;  %2610 = vmatmul.mubr.bf16.gmra.mxu0 %v9769_v11 }
 0x106   : > { %v8332_v34 = vadd.f32 %v8331_v30, %v8330_v24  ;;  %v1827_v32 = vadd.f32 %v8292_v29, %v10938_v42  ;;  %2617 = vmatprep.mubr.bf16.mxu0 %v9773_v17  ;;  %v9779_v42 = vld [vmem:[%s12523_s1 + $0x70] ss:$116 sps:$4 sm:$0xff]  }
 0x107   : > { %v8333_v35 = vpop.f32.mrf.mxu1  ;;  %2675 = vmatmul.mubr.bf16.gmra.mxu1 %v9772_v16  ;;  %v8294_v36 = vpop.f32.mrf.mxu0 }
 0x108   : > { %2682 = vmatprep.mubr.bf16.mxu1 %v9776_v22  ;;  %v11008_v38 = vadd.f32 %v8332_v34, %v1827_v32  ;;  %v8295_v39 = vadd.f32 %v8294_v36, %v8293_v33 }
 0x109   : > { %v8334_v40 = vpop.f32.mrf.mxu1  ;;  %v8296_v1 = vpop.f32.mrf.mxu0 }
 0x10a   : > { %v8335_v44 = vadd.f32 %v8334_v40, %v8333_v35  ;;  %v1832_v45 = vadd.f32 %v8295_v39, %v10895_v10  ;;  %v9780_v10 = vld [vmem:[%s12523_s1 + $0x158] ss:$116 sps:$4 sm:$0xff]  }
 0x10b   : > { %v8336_v46 = vpop.f32.mrf.mxu1  ;;  %v8297_v47 = vpop.f32.mrf.mxu0 }
 0x10c   : > { %v11017_v48 = vadd.f32 %v8335_v44, %v1832_v45  ;;  %v8298_v49 = vadd.f32 %v8297_v47, %v8296_v1 }
 0x10d   : > { %v8337_v50 = vpop.f32.mrf.mxu1  ;;  %v8299_v51 = vpop.f32.mrf.mxu0  ;;  %2618 = vmatmul.mubr.bf16.gmra.mxu0 %v9775_v37 }
 0x10e   : > { %v8338_v52 = vadd.f32 %v8337_v50, %v8336_v46  ;;  %v1835_v53 = vadd.f32 %v8298_v49, %v10915_v28  ;;  %9078 = vmatprep.mubr.msk.bf16.mxu0 %vm1764_vm2, %v9779_v42 }
 0x10f   : > { %v8339_v54 = vpop.f32.mrf.mxu1  ;;  %2683 = vmatmul.mubr.bf16.gmra.mxu1 %v9778_v41  ;;  %v8300_v55 = vpop.f32.mrf.mxu0 }
 0x110   : > { %v11024_v56 = vadd.f32 %v8338_v52, %v1835_v53  ;;  %v8301_v57 = vadd.f32 %v8300_v55, %v8299_v51 }
 0x111   : > { %v8340_v59 = vpop.f32.mrf.mxu1  ;;  %v8302_v61 = vpop.f32.mrf.mxu0 }
 0x112   : > { %v8341_v62 = vadd.f32 %v8340_v59, %v8339_v54  ;;  %v1840_v28 = vadd.f32 %v8301_v57, %v10879_v58  ;;  %v9782_v58 = vld [vmem:[%s12523_s1 + $0x328] ss:$116 sps:$4 sm:$0xff]  }
 0x113   : > { %v8342_v63 = vpop.f32.mrf.mxu1  ;;  %v8303_v2 = vpop.f32.mrf.mxu0 }
 0x114   : > { %v11030_v3 = vadd.f32 %v8341_v62, %v1840_v28  ;;  %v8304_v4 = vadd.f32 %v8303_v2, %v8302_v61 }
 0x115   : > { %v8343_v5 = vpop.f32.mrf.mxu1  ;;  %v8361_v7 = vpop.f32.mrf.mxu0  ;;  %9079 = vmatmul.mubr.msk.bf16.vlgmr.msra.gmra.mxu0 %vm1764_vm2, %v9780_v10 }
 0x116   : > { %v8344_v6 = vadd.f32 %v8343_v5, %v8342_v63  ;;  %v1843_v8 = vadd.f32 %v8304_v4, %v10904_v18  ;;  %9082 = vmatprep.mubr.msk.bf16.mxu0 %vm1764_vm2, %v9781_v60  ;;  %9111 = vmatpush3.bf16.msra.mxu0 %v10943_v43 }
 0x117   : > { %v8401_v9 = vpop.f32.mrf.mxu1  ;;  %v8362_v11 = vpop.f32.mrf.mxu0 }
 0x118   : > { %v1908_v12 = vadd.f32 %v8344_v6, %v1843_v8  ;;  %v8363_v14 = vadd.f32 %v8362_v11, %v8361_v7 }
 0x119   : > { %v8402_v15 = vpop.f32.mrf.mxu1  ;;  %v8364_v16 = vpop.f32.mrf.mxu0 }
 0x11a   : > { %v8403_v17 = vadd.f32 %v8402_v15, %v8401_v9  ;;  %v1946_v19 = vadd.f32 %v8363_v14, %v10969_v0 }
 0x11b   : > { %v8404_v20 = vpop.f32.mrf.mxu1  ;;  %v8365_v21 = vpop.f32.mrf.mxu0 }
 0x11c   : > { %v2011_v18 = vadd.f32 %v8403_v17, %v1946_v19  ;;  %v8366_v22 = vadd.f32 %v8365_v21, %v8364_v16 }
 0x11d   : > { %v8405_v23 = vpop.f32.mrf.mxu1  ;;  %v8367_v24 = vpop.f32.mrf.mxu0  ;;  %9083 = vmatmul.mubr.msk.bf16.gmra.mxu0 %vm1764_vm2, %v9782_v58 }
 0x11e   : > { %v8406_v25 = vadd.f32 %v8405_v23, %v8404_v20  ;;  %v1949_v26 = vadd.f32 %v8366_v22, %v10981_v13 }
 0x11f   : > { %v8407_v29 = vpop.f32.mrf.mxu1  ;;  %v8368_v30 = vpop.f32.mrf.mxu0 }
 0x120   : > { %v2014_v31 = vadd.f32 %v8406_v25, %v1949_v26  ;;  %v8369_v33 = vadd.f32 %v8368_v30, %v8367_v24 }
 0x121   : > { %v8408_v34 = vpop.f32.mrf.mxu1  ;;  %v8370_v32 = vpop.f32.mrf.mxu0 }
 0x122   : > { %v8409_v35 = vadd.f32 %v8408_v34, %v8407_v29  ;;  %v1954_v0 = vadd.f32 %v8369_v33, %v10999_v27 }
 0x123   : > { %v8410_v36 = vpop.f32.mrf.mxu1  ;;  %v8371_v37 = vpop.f32.mrf.mxu0 }
 0x124   : > { %v2019_v39 = vadd.f32 %v8409_v35, %v1954_v0  ;;  %v8372_v40 = vadd.f32 %v8371_v37, %v8370_v32 }
 0x125   : > { %v8411_v41 = vpop.f32.mrf.mxu1  ;;  %v8373_v42 = vpop.f32.mrf.mxu0 }
 0x126   : > { %v8412_v1 = vadd.f32 %v8411_v41, %v8410_v36  ;;  %v1957_v44 = vadd.f32 %v8372_v40, %v11008_v38 }
 0x127   : > { %v8413_v45 = vpop.f32.mrf.mxu1  ;;  %v8374_v13 = vpop.f32.mrf.mxu0 }
 0x128   : > { %v2022_v46 = vadd.f32 %v8412_v1, %v1957_v44  ;;  %v8375_v47 = vadd.f32 %v8374_v13, %v8373_v42 }
 0x129   : > { %v8414_v49 = vpop.f32.mrf.mxu1  ;;  %v8376_v50 = vpop.f32.mrf.mxu0 }
 0x12a   : > { %v8415_v51 = vadd.f32 %v8414_v49, %v8413_v45  ;;  %v1962_v52 = vadd.f32 %v8375_v47, %v11017_v48 }
 0x12b   : > { %v8416_v53 = vpop.f32.mrf.mxu1  ;;  %v8377_v27 = vpop.f32.mrf.mxu0 }
 0x12c   : > { %v2027_v54 = vadd.f32 %v8415_v51, %v1962_v52  ;;  %v8378_v55 = vadd.f32 %v8377_v27, %v8376_v50 }
 0x12d   : > { %v8417_v10 = vpop.f32.mrf.mxu1  ;;  %v8379_v57 = vpop.f32.mrf.mxu0 }
 0x12e   : > { %v8418_v59 = vadd.f32 %v8417_v10, %v8416_v53  ;;  %v1965_v60 = vadd.f32 %v8378_v55, %v11024_v56 }
 0x12f   : > { %v8419_v61 = vpop.f32.mrf.mxu1  ;;  %v8380_v38 = vpop.f32.mrf.mxu0 }
 0x130   : > { %v2030_v62 = vadd.f32 %v8418_v59, %v1965_v60  ;;  %v8381_v28 = vadd.f32 %v8380_v38, %v8379_v57 }
 0x131   : > { %v8420_v63 = vpop.f32.mrf.mxu1  ;;  %v8382_v2 = vpop.f32.mrf.mxu0 }
 0x132   : > { %v8421_v4 = vadd.f32 %v8420_v63, %v8419_v61  ;;  %v1970_v5 = vadd.f32 %v8381_v28, %v11030_v3 }
 0x133   : > { %v8422_v6 = vpop.f32.mrf.mxu1  ;;  %v8383_v48 = vpop.f32.mrf.mxu0 }
 0x134   : > { %v2035_v7 = vadd.f32 %v8421_v4, %v1970_v5  ;;  %v8384_v8 = vadd.f32 %v8383_v48, %v8382_v2 }
 0x135   : > { %v8423_v9 = vpop.f32.mrf.mxu1  ;;  %v8441_v58 = vpop.f32.mrf.mxu0 }
 0x136   : > { %v8424_v11 = vadd.f32 %v8423_v9, %v8422_v6  ;;  %v1973_v14 = vadd.f32 %v8384_v8, %v1908_v12 }
 0x137   : > { %v8481_v15 = vpop.f32.mrf.mxu1  ;;  %v8442_v16 = vpop.f32.mrf.mxu0 }
 0x138   : > { %v2038_v56 = vadd.f32 %v8424_v11, %v1973_v14  ;;  %v8443_v17 = vadd.f32 %v8442_v16, %v8441_v58 }
 0x139   : > { %v8482_v19 = vpop.f32.mrf.mxu1  ;;  %v8444_v20 = vpop.f32.mrf.mxu0 }
 0x13a   : > { %v8483_v21 = vadd.f32 %v8482_v19, %v8481_v15  ;;  %v2076_v22 = vadd.f32 %v8443_v17, %v2011_v18 }
 0x13b   : > { %v8484_v23 = vpop.f32.mrf.mxu1  ;;  %v8445_v24 = vpop.f32.mrf.mxu0 }
 0x13c   : > { %v2141_v25 = vadd.f32 %v8483_v21, %v2076_v22  ;;  %v8446_v3 = vadd.f32 %v8445_v24, %v8444_v20 }
 0x13d   : > { %v8485_v26 = vpop.f32.mrf.mxu1  ;;  %v8447_v29 = vpop.f32.mrf.mxu0 }
 0x13e   : > { %v8486_v30 = vadd.f32 %v8485_v26, %v8484_v23  ;;  %v2079_v33 = vadd.f32 %v8446_v3, %v2014_v31 }
 0x13f   : > { %v8487_v34 = vpop.f32.mrf.mxu1  ;;  %v8448_v32 = vpop.f32.mrf.mxu0 }
 0x140   : > { %v2144_v35 = vadd.f32 %v8486_v30, %v2079_v33  ;;  %v8449_v12 = vadd.f32 %v8448_v32, %v8447_v29 }
 0x141   : > { %v8488_v0 = vpop.f32.mrf.mxu1  ;;  %v8450_v36 = vpop.f32.mrf.mxu0 }
 0x142   : > { %v8489_v37 = vadd.f32 %v8488_v0, %v8487_v34  ;;  %v2084_v40 = vadd.f32 %v8449_v12, %v2019_v39 }
 0x143   : > { %v8490_v41 = vpop.f32.mrf.mxu1  ;;  %v8451_v42 = vpop.f32.mrf.mxu0 }
 0x144   : > { %v2149_v1 = vadd.f32 %v8489_v37, %v2084_v40  ;;  %v8452_v18 = vadd.f32 %v8451_v42, %v8450_v36 }
 0x145   : > { %v8491_v44 = vpop.f32.mrf.mxu1  ;;  %v8453_v45 = vpop.f32.mrf.mxu0 }
 0x146   : > { %v8492_v13 = vadd.f32 %v8491_v44, %v8490_v41  ;;  %v2087_v47 = vadd.f32 %v8452_v18, %v2022_v46 }
 0x147   : > { %v8493_v49 = vpop.f32.mrf.mxu1  ;;  %v8454_v50 = vpop.f32.mrf.mxu0 }
 0x148   : > { %v2152_v51 = vadd.f32 %v8492_v13, %v2087_v47  ;;  %v8455_v31 = vadd.f32 %v8454_v50, %v8453_v45 }
 0x149   : > { %v8494_v52 = vpop.f32.mrf.mxu1  ;;  %v8456_v53 = vpop.f32.mrf.mxu0 }
 0x14a   : > { %v8495_v27 = vadd.f32 %v8494_v52, %v8493_v49  ;;  %v2092_v55 = vadd.f32 %v8455_v31, %v2027_v54 }
 0x14b   : > { %v8496_v10 = vpop.f32.mrf.mxu1  ;;  %v8457_v57 = vpop.f32.mrf.mxu0 }
 0x14c   : > { %v2157_v59 = vadd.f32 %v8495_v27, %v2092_v55  ;;  %v8458_v39 = vadd.f32 %v8457_v57, %v8456_v53 }
 0x14d   : > { %v8497_v60 = vpop.f32.mrf.mxu1  ;;  %v8459_v61 = vpop.f32.mrf.mxu0 }
 0x14e   : > { %v8498_v38 = vadd.f32 %v8497_v60, %v8496_v10  ;;  %v2095_v28 = vadd.f32 %v8458_v39, %v2030_v62 }
 0x14f   : > { %v8499_v63 = vpop.f32.mrf.mxu1  ;;  %v8460_v2 = vpop.f32.mrf.mxu0 }
 0x150   : > { %v2160_v4 = vadd.f32 %v8498_v38, %v2095_v28  ;;  %v8461_v46 = vadd.f32 %v8460_v2, %v8459_v61 }
 0x151   : > { %v8500_v5 = vpop.f32.mrf.mxu1  ;;  %v8462_v6 = vpop.f32.mrf.mxu0 }
 0x152   : > { %v8501_v48 = vadd.f32 %v8500_v5, %v8499_v63  ;;  %v2100_v8 = vadd.f32 %v8461_v46, %v2035_v7 }
 0x153   : > { %v8502_v9 = vpop.f32.mrf.mxu1  ;;  %v8463_v11 = vpop.f32.mrf.mxu0 }
 0x154   : > { %v2165_v58 = vadd.f32 %v8501_v48, %v2100_v8  ;;  %v8464_v54 = vadd.f32 %v8463_v11, %v8462_v6 }
 0x155   : > { %v8503_v14 = vpop.f32.mrf.mxu1  ;;  %v8521_v16 = vpop.f32.mrf.mxu0 }
 0x156   : > { %v8504_v15 = vadd.f32 %v8503_v14, %v8502_v9  ;;  %v2103_v17 = vadd.f32 %v8464_v54, %v2038_v56 }
 0x157   : > { %v8561_v19 = vpop.f32.mrf.mxu1  ;;  %v8522_v20 = vpop.f32.mrf.mxu0 }
 0x158   : > { %v2168_v21 = vadd.f32 %v8504_v15, %v2103_v17  ;;  %v8523_v62 = vadd.f32 %v8522_v20, %v8521_v16 }
 0x159   : > { %v8562_v22 = vpop.f32.mrf.mxu1  ;;  %v8524_v23 = vpop.f32.mrf.mxu0 }
 0x15a   : > { %v8563_v24 = vadd.f32 %v8562_v22, %v8561_v19  ;;  %v2206_v3 = vadd.f32 %v8523_v62, %v2141_v25 }
 0x15b   : > { %v8564_v26 = vpop.f32.mrf.mxu1  ;;  %v8525_v29 = vpop.f32.mrf.mxu0 }
 0x15c   : > { %v2271_v30 = vadd.f32 %v8563_v24, %v2206_v3  ;;  %v8526_v7 = vadd.f32 %v8525_v29, %v8524_v23 }
 0x15d   : > { %v8565_v33 = vpop.f32.mrf.mxu1  ;;  %v8527_v34 = vpop.f32.mrf.mxu0 }
 0x15e   : > { %v8566_v32 = vadd.f32 %v8565_v33, %v8564_v26  ;;  %v2209_v12 = vadd.f32 %v8526_v7, %v2144_v35 }
 0x15f   : > { %v8567_v0 = vpop.f32.mrf.mxu1  ;;  %v8528_v36 = vpop.f32.mrf.mxu0 }
 0x160   : > { %v2274_v37 = vadd.f32 %v8566_v32, %v2209_v12  ;;  %v8529_v56 = vadd.f32 %v8528_v36, %v8527_v34 }
 0x161   : > { %v8568_v40 = vpop.f32.mrf.mxu1  ;;  %v8530_v41 = vpop.f32.mrf.mxu0 }
 0x162   : > { %v8569_v42 = vadd.f32 %v8568_v40, %v8567_v0  ;;  %v2214_v18 = vadd.f32 %v8529_v56, %v2149_v1 }
 0x163   : > { %v8570_v44 = vpop.f32.mrf.mxu1  ;;  %v8531_v45 = vpop.f32.mrf.mxu0 }
 0x164   : > { %v11047_v13 = vadd.f32 %v8569_v42, %v2214_v18  ;;  %v8532_v25 = vadd.f32 %v8531_v45, %v8530_v41 }
 0x165   : > { %v8571_v47 = vpop.f32.mrf.mxu1  ;;  %v8533_v49 = vpop.f32.mrf.mxu0 }
 0x166   : > { %v8572_v50 = vadd.f32 %v8571_v47, %v8570_v44  ;;  %v2217_v31 = vadd.f32 %v8532_v25, %v2152_v51  ;;  %v9783_v25 = vld [vmem:[%s12525_s3] sm:$0xff]  }
 0x167   : > { %v8573_v52 = vpop.f32.mrf.mxu1  ;;  %v8534_v53 = vpop.f32.mrf.mxu0  ;;  %9094 = vmatprep.mubr.msk.bf16.mxu1 %vm2806_vm3, %v9783_v25 }
 0x168   : > { %v11049_v35 = vadd.f32 %v8572_v50, %v2217_v31  ;;  %v8535_v27 = vadd.f32 %v8534_v53, %v8533_v49 }
 0x169   : > { %v8574_v55 = vpop.f32.mrf.mxu1  ;;  %v8536_v10 = vpop.f32.mrf.mxu0 }
 0x16a   : > { %v8575_v57 = vadd.f32 %v8574_v55, %v8573_v52  ;;  %v2222_v39 = vadd.f32 %v8535_v27, %v2157_v59 }
 0x16b   : > { %v8576_v60 = vpop.f32.mrf.mxu1  ;;  %v8537_v1 = vpop.f32.mrf.mxu0 }
 0x16c   : > { %v11051_v61 = vadd.f32 %v8575_v57, %v2222_v39  ;;  %v8538_v38 = vadd.f32 %v8537_v1, %v8536_v10 }
 0x16d   : > { %v8577_v28 = vpop.f32.mrf.mxu1  ;;  %v8539_v63 = vpop.f32.mrf.mxu0 }
 0x16e   : > { %v8578_v2 = vadd.f32 %v8577_v28, %v8576_v60  ;;  %v2225_v46 = vadd.f32 %v8538_v38, %v2160_v4 }
 0x16f   : > { %v8579_v5 = vpop.f32.mrf.mxu1  ;;  %v8540_v51 = vpop.f32.mrf.mxu0 }
 0x170   : > { %v11053_v6 = vadd.f32 %v8578_v2, %v2225_v46  ;;  %v8541_v48 = vadd.f32 %v8540_v51, %v8539_v63 }
 0x171   : > { %v8580_v8 = vpop.f32.mrf.mxu1  ;;  %v8542_v9 = vpop.f32.mrf.mxu0 }
 0x172   : > { %v8581_v11 = vadd.f32 %v8580_v8, %v8579_v5  ;;  %v2230_v54 = vadd.f32 %v8541_v48, %v2165_v58 }
 0x173   : > { %v8582_v14 = vpop.f32.mrf.mxu1  ;;  %v8543_v59 = vpop.f32.mrf.mxu0 }
 0x174   : > { %v11055_v15 = vadd.f32 %v8581_v11, %v2230_v54  ;;  %v8544_v16 = vadd.f32 %v8543_v59, %v8542_v9 }
 0x175   : > { %v8583_v17 = vpop.f32.mrf.mxu1  ;;  %v8601_v20 = vpop.f32.mrf.mxu0 }
 0x176   : > { %v8584_v19 = vadd.f32 %v8583_v17, %v8582_v14  ;;  %v2233_v62 = vadd.f32 %v8544_v16, %v2168_v21 }
 0x177   : > { %v8641_v22 = vpop.f32.mrf.mxu1  ;;  %v8602_v4 = vpop.f32.mrf.mxu0 }
 0x178   : > { %v2298_v23 = vadd.f32 %v8584_v19, %v2233_v62  ;;  %v8603_v24 = vadd.f32 %v8602_v4, %v8601_v20 }
 0x179   : > { %v8642_v3 = vpop.f32.mrf.mxu1  ;;  %v8604_v26 = vpop.f32.mrf.mxu0 }
 0x17a   : > { %v8643_v29 = vadd.f32 %v8642_v3, %v8641_v22  ;;  %v2336_v7 = vadd.f32 %v8603_v24, %v2271_v30 }
 0x17b   : > { %v8644_v33 = vpop.f32.mrf.mxu1  ;;  %v8605_v34 = vpop.f32.mrf.mxu0 }
 0x17c   : > { %v2401_v58 = vadd.f32 %v8643_v29, %v2336_v7  ;;  %v8606_v32 = vadd.f32 %v8605_v34, %v8604_v26 }
 0x17d   : > { %v8645_v12 = vpop.f32.mrf.mxu1  ;;  %v8607_v0 = vpop.f32.mrf.mxu0 }
 0x17e   : > { %v8646_v36 = vadd.f32 %v8645_v12, %v8644_v33  ;;  %v2339_v56 = vadd.f32 %v8606_v32, %v2274_v37 }
 0x17f   : > { %v8647_v40 = vpop.f32.mrf.mxu1  ;;  %v8608_v41 = vpop.f32.mrf.mxu0 }
 0x180   : > { %v2404_v42 = vadd.f32 %v8646_v36, %v2339_v56  ;;  %v8609_v21 = vadd.f32 %v8608_v41, %v8607_v0 }
 0x181   : > { %v8648_v18 = vpop.f32.mrf.mxu1  ;;  %v8610_v44 = vpop.f32.mrf.mxu0 }
 0x182   : > { %v8649_v45 = vadd.f32 %v8648_v18, %v8647_v40  ;;  %v2344_v30 = vadd.f32 %v8609_v21, %v11047_v13 }
 0x183   : > { %v8650_v47 = vpop.f32.mrf.mxu1  ;;  %v8611_v49 = vpop.f32.mrf.mxu0 }
 0x184   : > { %v2409_v50 = vadd.f32 %v8649_v45, %v2344_v30  ;;  %v8612_v37 = vadd.f32 %v8611_v49, %v8610_v44 }
 0x185   : > { %v8651_v31 = vpop.f32.mrf.mxu1  ;;  %v8613_v52 = vpop.f32.mrf.mxu0 }
 0x186   : > { %v8652_v53 = vadd.f32 %v8651_v31, %v8650_v47  ;;  %v2347_v27 = vadd.f32 %v8612_v37, %v11049_v35 }
 0x187   : > { %v8653_v55 = vpop.f32.mrf.mxu1  ;;  %v8614_v10 = vpop.f32.mrf.mxu0 }
 0x188   : > { %v11063_v57 = vadd.f32 %v8652_v53, %v2347_v27  ;;  %v8615_v39 = vadd.f32 %v8614_v10, %v8613_v52 }
 0x189   : > { %v8654_v60 = vpop.f32.mrf.mxu1  ;;  %v8616_v1 = vpop.f32.mrf.mxu0 }
 0x18a   : > { %v8655_v38 = vadd.f32 %v8654_v60, %v8653_v55  ;;  %v2352_v13 = vadd.f32 %v8615_v39, %v11051_v61 }
 0x18b   : > { %v8656_v28 = vpop.f32.mrf.mxu1  ;;  %v8617_v63 = vpop.f32.mrf.mxu0 }
 0x18c   : > { %v11066_v2 = vadd.f32 %v8655_v38, %v2352_v13  ;;  %v8618_v46 = vadd.f32 %v8617_v63, %v8616_v1 }
 0x18d   : > { %v8657_v5 = vpop.f32.mrf.mxu1  ;;  %v8619_v51 = vpop.f32.mrf.mxu0 }
 0x18e   : > { %v8658_v48 = vadd.f32 %v8657_v5, %v8656_v28  ;;  %v2355_v35 = vadd.f32 %v8618_v46, %v11053_v6 }
 0x18f   : > { %v11069_v8 = vpop.f32.mrf.mxu1  ;;  %v8620_v9 = vpop.f32.mrf.mxu0 }
 0x190   : > { %v11071_v11 = vadd.f32 %v8658_v48, %v2355_v35  ;;  %v8621_v54 = vadd.f32 %v8620_v9, %v8619_v51 }
 0x191   : > { %v11073_v14 = vpop.f32.mrf.mxu1  ;;  %v8622_v59 = vpop.f32.mrf.mxu0 }
 0x192   : > { %v11076_v61 = vadd.f32 %v8621_v54, %v11055_v15 }
 0x193   : > { %v11078_v16 = vpop.f32.mrf.mxu1  ;;  %v8623_v17 = vpop.f32.mrf.mxu0 }
 0x194   : > { %v8624_v19 = vadd.f32 %v8623_v17, %v8622_v59 }
 0x195   : > { %v11080_v20 = vpop.f32.mrf.mxu1  ;;  %v8681_v62 = vpop.f32.mrf.mxu0 }
 0x196   : > { %v11082_v6 = vadd.f32 %v8624_v19, %v2298_v23  ;;  %v8664_v43 = vadd.f32 %v11080_v20, %v11078_v16 }
 0x197   : > { %v8721_v22 = vpop.f32.mrf.mxu1  ;;  %v8682_v4 = vpop.f32.mrf.mxu0 }
 0x198   : > { %v8683_v24 = vadd.f32 %v8682_v4, %v8681_v62 }
 0x199   : > { %v8722_v3 = vpop.f32.mrf.mxu1  ;;  %v8684_v26 = vpop.f32.mrf.mxu0 }
 0x19a   : > { %v8723_v29 = vadd.f32 %v8722_v3, %v8721_v22  ;;  %v2466_v7 = vadd.f32 %v8683_v24, %v2401_v58 }
 0x19b   : > { %v8724_v33 = vpop.f32.mrf.mxu1  ;;  %v8685_v34 = vpop.f32.mrf.mxu0 }
 0x19c   : > { %v11084_v15 = vadd.f32 %v8723_v29, %v2466_v7  ;;  %v8686_v32 = vadd.f32 %v8685_v34, %v8684_v26 }
 0x19d   : > { %v8725_v12 = vpop.f32.mrf.mxu1  ;;  %v8687_v0 = vpop.f32.mrf.mxu0 }
 0x19e   : > { %v8726_v36 = vadd.f32 %v8725_v12, %v8724_v33  ;;  %v2469_v56 = vadd.f32 %v8686_v32, %v2404_v42 }
 0x19f   : > { %v8727_v40 = vpop.f32.mrf.mxu1  ;;  %v8688_v41 = vpop.f32.mrf.mxu0 }
 0x1a0   : > { %v11086_v23 = vadd.f32 %v8726_v36, %v2469_v56  ;;  %v8689_v21 = vadd.f32 %v8688_v41, %v8687_v0  ;;  %v8661_v56 = vadd.f32 %v11073_v14, %v11069_v8 }
 0x1a1   : > { %v8728_v18 = vpop.f32.mrf.mxu1  ;;  %v8690_v44 = vpop.f32.mrf.mxu0 }
 0x1a2   : > { %12534 = vst [vmem:[#allocation3_spill] sm:$0xff] %v11086_v23  ;;  %v2474_v45 = vadd.f32 %v8689_v21, %v2409_v50  ;;  %v8729_v12 = vadd.f32 %v8728_v18, %v8727_v40 }
 0x1a3   : > { %v8730_v25 = vpop.f32.mrf.mxu1  ;;  %v8691_v30 = vpop.f32.mrf.mxu0 }
 0x1a4   : > { %v8692_v34 = vadd.f32 %v8691_v30, %v8690_v44 }
 0x1a5   : > { %v8731_v58 = vpop.f32.mrf.mxu1  ;;  %v8693_v47 = vpop.f32.mrf.mxu0 }
 0x1a6   : > { %v8732_v23 = vadd.f32 %v8731_v58, %v8730_v25 }
 0x1a7   : > { %v11088_v49 = vpop.f32.mrf.mxu1  ;;  %v8694_v37 = vpop.f32.mrf.mxu0 }
 0x1a8   : > { %v8695_v40 = vadd.f32 %v8694_v37, %v8693_v47 }
 0x1a9   : > { %v11090_v31 = vpop.f32.mrf.mxu1  ;;  %v8696_v52 = vpop.f32.mrf.mxu0 }
 0x1aa   : > { %v2482_v47 = vadd.f32 %v8695_v40, %v11066_v2 }
 0x1ab   : > { %v11092_v53 = vpop.f32.mrf.mxu1  ;;  %v8697_v42 = vpop.f32.mrf.mxu0 }
 0x1ad   : > { %v11094_v27 = vpop.f32.mrf.mxu1  ;;  %v8699_v55 = vpop.f32.mrf.mxu0 }
 0x1ae   : > { %12535 = vst [vmem:[#allocation4_spill] sm:$0xff] %v11094_v27 }
 0x1af   : > { %v8739_v10 = vpop.f32.mrf.mxu1  ;;  %v8700_v39 = vpop.f32.mrf.mxu0 }
 0x1b0   : > { %v8701_v44 = vadd.f32 %v8700_v39, %v8699_v55 }
 0x1b1   : > { %v8740_v60 = vpop.f32.mrf.mxu1  ;;  %v8702_v50 = vpop.f32.mrf.mxu0 }
 0x1b2   : > { %v8741_v58 = vadd.f32 %v8740_v60, %v8739_v10 }
 0x1b3   : > { %v11096_v1 = vpop.f32.mrf.mxu1  ;;  %v8703_v38 = vpop.f32.mrf.mxu0 }
 0x1b4   : > { %12536 = vst [vmem:[#allocation5_spill] sm:$0xff] %v11096_v1  ;;  %v8698_v1 = vadd.f32 %v8697_v42, %v8696_v52  ;;  %v8704_v20 = vadd.f32 %v8703_v38, %v8702_v50 }
 0x1b5   : > { %v11098_v13 = vpop.f32.mrf.mxu1  ;;  %v8761_v28 = vpop.f32.mrf.mxu0 }
 0x1b6   : > { %12537 = vst [vmem:[#allocation6_spill] sm:$0xff] %v11098_v13  ;;  %v2539_v13 = vadd.f32 %v8729_v12, %v2474_v45  ;;  %v2485_v42 = vadd.f32 %v8698_v1, %v11071_v11 }
 0x1b7   : > { %v8801_v63 = vpop.f32.mrf.mxu1  ;;  %v8762_v46 = vpop.f32.mrf.mxu0 }
 0x1b8   : > { %v8763_v30 = vadd.f32 %v8762_v46, %v8761_v28 }
 0x1b9   : > { %v8802_v5 = vpop.f32.mrf.mxu1  ;;  %v8764_v51 = vpop.f32.mrf.mxu0 }
 0x1ba   : > { %v2596_v45 = vadd.f32 %v8763_v30, %v11084_v15  ;;  %v8803_v55 = vadd.f32 %v8802_v5, %v8801_v63  ;;  %v12545_v63 = vld [vmem:[#allocation3_spill] sm:$0xff] }
 0x1bb   : > { %v8804_v48 = vpop.f32.mrf.mxu1  ;;  %v8765_v35 = vpop.f32.mrf.mxu0  ;;  %v12543_v15 = vld [vmem:[#allocation5_spill] sm:$0xff] }
 0x1bd   : > { %v8805_v9 = vpop.f32.mrf.mxu1  ;;  %v8767_v54 = vpop.f32.mrf.mxu0 }
 0x1be   : > { %v8806_v46 = vadd.f32 %v8805_v9, %v8804_v48 }
 0x1bf   : > { %v8807_v59 = vpop.f32.mrf.mxu1  ;;  %v8768_v17 = vpop.f32.mrf.mxu0 }
 0x1c0   : > { %v8769_v41 = vadd.f32 %v8768_v17, %v8767_v54  ;;  %v2428_v17 = vadd.f32 %v8664_v43, %v11082_v6  ;;  %v12542_v43 = vld [vmem:[#allocation4_spill] sm:$0xff] }
 0x1c1   : > { %v8808_v19 = vpop.f32.mrf.mxu1  ;;  %v8770_v62 = vpop.f32.mrf.mxu0  ;;  %v8738_v6 = vadd.f32 %v12542_v43, %v11092_v53 }
 0x1c2   : > { %v2604_v27 = vadd.f32 %v8769_v41, %v2539_v13  ;;  %v8809_v8 = vadd.f32 %v8808_v19, %v8807_v59  ;;  %v2493_v60 = vadd.f32 %v8704_v20, %v2428_v17  ;;  %v12544_v13 = vld [vmem:[#allocation6_spill] sm:$0xff] }
 0x1c3   : > { %v8810_v22 = vpop.f32.mrf.mxu1  ;;  %v8771_v4 = vpop.f32.mrf.mxu0  ;;  %v8744_v28 = vadd.f32 %v12544_v13, %v12543_v15 }
 0x1c4   : > { %v8772_v18 = vadd.f32 %v8771_v4, %v8770_v62  ;;  %v2669_v38 = vadd.f32 %v8809_v8, %v2604_v27 }
 0x1c5   : > { %v8811_v24 = vpop.f32.mrf.mxu1  ;;  %v8773_v3 = vpop.f32.mrf.mxu0  ;;  %v2558_v4 = vadd.f32 %v8744_v28, %v2493_v60 }
 0x1c6   : > { %v8812_v52 = vadd.f32 %v8811_v24, %v8810_v22  ;;  %v2794_v60 = vpop.permute.xlu1 %2793 }
 0x1c7   : > { %v11100_v26 = vpop.f32.mrf.mxu1  ;;  %v8774_v29 = vpop.f32.mrf.mxu0 }
 0x1c8   : > { %12538 = vst [vmem:[#allocation7_spill] sm:$0xff] %v11100_v26  ;;  %v2477_v26 = vadd.f32 %v8692_v34, %v11063_v57  ;;  %v8766_v57 = vadd.f32 %v8765_v35, %v8764_v51  ;;  %v2661_v51 = vadd.f32 %v8803_v55, %v2596_v45 }
 0x1c9   : > { %v11102_v7 = vpop.f32.mrf.mxu1  ;;  %v8776_v33 = vpop.f32.mrf.mxu0 }
 0x1ca   : > { %12539 = vst [vmem:[#allocation8_spill] sm:$0xff] %v11102_v7  ;;  %v2542_v16 = vadd.f32 %v8732_v23, %v2477_v26  ;;  %v2599_v2 = vadd.f32 %v8766_v57, %v12545_v63 }
 0x1cb   : > { %v11104_v32 = vpop.f32.mrf.mxu1  ;;  %v8777_v0 = vpop.f32.mrf.mxu0 }
 0x1cc   : > { %12540 = vst [vmem:[#allocation9_spill] sm:$0xff] %v11104_v32  ;;  %v2607_v37 = vadd.f32 %v8772_v18, %v2542_v16  ;;  %v8778_v24 = vadd.f32 %v8777_v0, %v8776_v33  ;;  %v2664_v34 = vadd.f32 %v8806_v46, %v2599_v2 }
 0x1cd   : > { %v11106_v36 = vpop.f32.mrf.mxu1  ;;  %v8779_v21 = vpop.f32.mrf.mxu0 }
 0x1ce   : > { %12541 = vst [vmem:[#allocation10_spill] sm:$0xff] %v11106_v36  ;;  %v2425_v36 = vadd.f32 %v8661_v56, %v11076_v61  ;;  %v8735_v61 = vadd.f32 %v11090_v31, %v11088_v49  ;;  %v8775_v49 = vadd.f32 %v8774_v29, %v8773_v3  ;;  %v2672_v1 = vadd.f32 %v8812_v52, %v2607_v37 }
 0x1cf   : > { %v8819_v7 = vpop.f32.mrf.mxu1  ;;  %v8780_v32 = vpop.f32.mrf.mxu0  ;;  %v12546_v48 = vld [vmem:[#allocation7_spill] sm:$0xff] }
 0x1d0   : > { %v2490_v25 = vadd.f32 %v8701_v44, %v2425_v36  ;;  %v8781_v23 = vadd.f32 %v8780_v32, %v8779_v21  ;;  %v2547_v59 = vadd.f32 %v8735_v61, %v2482_v47  ;;  %v2550_v32 = vadd.f32 %v8738_v6, %v2485_v42 }
 0x1d1   : > { %v8782_v14 = vpop.f32.mrf.mxu0  ;;  %v8820_v54 = vpop.f32.mrf.mxu1  ;;  %v12547_v9 = vld [vmem:[#allocation8_spill] sm:$0xff] }
 0x1d2   : > { %v2555_v5 = vadd.f32 %v8741_v58, %v2490_v25  ;;  %v8821_v19 = vadd.f32 %v8820_v54, %v8819_v7  ;;  %v2612_v12 = vadd.f32 %v8775_v49, %v2547_v59  ;;  %v8815_v3 = vadd.f32 %v12547_v9, %v12546_v48  ;;  %v2784_v49 = vpop.permute.xlu1 %2783 }
 0x1d3   : > { %v8783_v39 = vpop.f32.mrf.mxu0  ;;  %v8822_v50 = vpop.f32.mrf.mxu1  ;;  %v2615_v44 = vadd.f32 %v8778_v24, %v2550_v32  ;;  %v12548_v30 = vld [vmem:[#allocation9_spill] sm:$0xff]  ;;  %v9789_v24 = vld [vmem:[%s12529_s7] sm:$0xff]  }
 0x1d4   : > { %v8784_v11 = vadd.f32 %v8783_v39, %v8782_v14  ;;  %v2620_v53 = vadd.f32 %v8781_v23, %v2555_v5  ;;  %v2677_v18 = vadd.f32 %v8815_v3, %v2612_v12  ;;  %9120 = vmatprep.mubr.msk.bf16.mxu0 %vm4613_vm5, %v9789_v24  ;;  %v9815_v24 = vld [vmem:[%s12529_s7 + $0x70] sm:$0xff]  }
 0x1d5   : > { %v9080_v10 = vpop.f32.mrf.mxu0  ;;  %v8823_v62 = vpop.f32.mrf.mxu1  ;;  %v12549_v40 = vld [vmem:[#allocation10_spill] sm:$0xff] }
 0x1d6   : > { %v2734_v31 = vadd.f32 %v9080_v10, %v2669_v38  ;;  %v2623_v36 = vadd.f32 %v8784_v11, %v2558_v4  ;;  %v8824_v56 = vadd.f32 %v8823_v62, %v8822_v50  ;;  %v2685_v7 = vadd.f32 %v8821_v19, %v2620_v53  ;;  %v9784_v50 = vld [vmem:[%s12525_s3 + $0x8] sm:$0xff]   ;;  %v9785_v38 = vld [vmem:[%s12527_s5] sm:$0xff]   ;;  %v2789_v10 = vpop.permute.xlu0 %2788  ;;  %v9788_v4 = vld [vmem:[%s12527_s5 + $0x18] sm:$0xff]  }
 0x1d7   : > { %v2725_v35 = vpop.f32.mrf.mxu0  ;;  %v8818_v33 = vadd.f32 %v12549_v40, %v12548_v30  ;;  %v9786_v62 = vld [vmem:[%s12527_s5 + $0x8] sm:$0xff]  }
 0x1d8   : > { %v2726_v27 = vadd.f32 %v2725_v35, %v2661_v51  ;;  %10015 = vtanh.f32 %v2734_v31  ;;  %v2688_v14 = vadd.f32 %v8824_v56, %v2623_v36 }
 0x1d9   : > { %v9081_v22 = vpop.f32.mrf.mxu0  ;;  %v2680_v20 = vadd.f32 %v8818_v33, %v2615_v44 }
 0x1da   : > { %v2737_v26 = vadd.f32 %v9081_v22, %v2672_v1  ;;  %v2779_v63 = vpop.permute.xlu0 %2778  ;;  %v12550_v22 = vld [vmem:[#allocation2_spill] sm:$0xff] }
 0x1db   : > { %v2728_v29 = vpop.f32.mrf.mxu0 }
 0x1dc   : > { %10017 = vtanh.f32 %v2737_v26  ;;  %v2729_v41 = vadd.f32 %v2728_v29, %v2664_v34  ;;  %v9792_v26 = vld [vmem:[%s12529_s7 + $0x390] sm:$0xff]   ;;  %v2922_v34 = vpop.permute.xlu1 %2921 }
 0x1dd   : > { %10019 = vtanh.f32 %v2726_v27  ;;  %v9084_v21 = vpop.f32.mrf.mxu0  ;;  %v9787_v27 = vld [vmem:[%s12527_s5 + $0x10] sm:$0xff]  }
 0x1de   : > { %10021 = vtanh.f32 %v2729_v41  ;;  %v2750_v0 = vadd.f32 %v9084_v21, %v2685_v7  ;;  %v2917_v12 = vpop.permute.xlu0 %2916 }
 0x1df   : > { %v2741_v8 = vpop.f32.mrf.mxu0 }
 0x1e0   : > { %v2742_v54 = vadd.f32 %v2741_v8, %v2677_v18  ;;  %10023 = vtanh.f32 %v2750_v0  ;;  %v2912_v3 = vpop.permute.xlu1 %2911 }
 0x1e1   : > { %v9085_v17 = vpop.f32.mrf.mxu0 }
 0x1e2   : > { %v2753_v16 = vadd.f32 %v9085_v17, %v2688_v14  ;;  %v2907_v36 = vpop.permute.xlu0 %2906 }
 0x1e3   : > { %v2744_v57 = vpop.f32.mrf.mxu0 }
 0x1e4   : > { %10025 = vtanh.f32 %v2753_v16  ;;  %v2745_v25 = vadd.f32 %v2744_v57, %v2680_v20  ;;  %v2902_v21 = vpop.permute.xlu1 %2901 }
 0x1e5   : > { %10027 = vtanh.f32 %v2742_v54  ;;  %v10016_v58 = vpop.eup %10015 }
 0x1e6   : > { %10029 = vtanh.f32 %v2745_v25  ;;  %v2897_v33 = vpop.permute.xlu0 %2896 }
 0x1e8   : > { %v2892_v25 = vpop.permute.xlu1 %2891 }
 0x1e9   : > { %v10018_v45 = vpop.eup %10017 }
 0x1ea   : > { %v10020_v55 = vpop.eup %10019  ;;  %v2769_v39 = vpack.c.bf16 %v10018_v45, %v10016_v58 }
 0x1eb   : > { %v10022_v47 = vpop.eup %10021 }
 0x1ec   : > { %v2768_v61 = vpack.c.bf16 %v10022_v47, %v10020_v55 }
 0x1ed   : > { %v10024_v37 = vpop.eup %10023 }
 0x1f1   : > { %v10026_v52 = vpop.eup %10025 }
 0x1f2   : > { %v10028_v42 = vpop.eup %10027  ;;  %v2771_v43 = vpack.c.bf16 %v10026_v52, %v10024_v37 }
 0x1f3   : > { %v10030_v6 = vpop.eup %10029 }
 0x1f4   : > { %9086 = vmatprep.subr.bf16.mxu1 %v2771_v43  ;;  %v2770_v23 = vpack.c.bf16 %v10030_v6, %v10028_v42  ;;  %v9790_v6 = vld [vmem:[%s12529_s7 + $0x8] sm:$0xff]  }
 0x1f5   : > { %9087 = vmatpush3.bf16.msra.mxu1 %v2771_v43 }
 0x1f6   : > { %9088 = vmatprep.subr.bf16.mxu1 %v2770_v23 }
 0x1f9   : > { %9089 = vmatpush3.bf16.msra.mxu1 %v2770_v23  ;;  %v9794_v23 = vld [vmem:[%s12529_s7 + $0x398] sm:$0xff]  }
 0x1fa   : > { %9090 = vmatprep.subr.bf16.mxu1 %v2769_v39 }
 0x1fd   : > { %9091 = vmatpush3.bf16.msra.mxu1 %v2769_v39  ;;  %v2887_v39 = vpop.permute.xlu0 %2886 }
 0x1fe   : > { %9092 = vmatprep.subr.bf16.mxu1 %v2768_v61 }
 0x201   : > { %9093 = vmatpush3.bf16.msra.mxu1 %v2768_v61 }
 0x204   : > { %9095 = vmatmul.mubr.msk.bf16.vlgmr.msra.gmra.mxu1 %vm2806_vm3, %v9784_v50  ;;  %v9791_v50 = vld [vmem:[%s12529_s7 + $0x10] sm:$0xff]  }
 0x205   : > { %9102 = vmatprep.mubr.msk.bf16.mxu1 %vm2944_vm4, %v9785_v38  ;;  %v9796_v38 = vld [vmem:[%s12529_s7 + $0x3a0] sm:$0xff]  }
 0x2c4   : > { %v9096_v15 = vpop.f32.mrf.mxu1 }
 0x2c5   : > { %v2856_v13 = vadd.f32 %v9096_v15, %v2789_v10  ;;  %v9793_v10 = vld [vmem:[%s12529_s7 + $0x18] sm:$0xff]   ;;  %v9795_v15 = vld [vmem:[%s12529_s7 + $0x20] sm:$0xff]  }
 0x2c6   : > { %v2847_v28 = vpop.f32.mrf.mxu1 }
 0x2c7   : > { %v2848_v2 = vadd.f32 %v2847_v28, %v2779_v63  ;;  %10031 = vtanh.f32 %v2856_v13  ;;  %v9800_v13 = vld [vmem:[%s12529_s7 + $0x3b0] sm:$0xff]   ;;  %v9797_v28 = vld [vmem:[%s12529_s7 + $0x28] sm:$0xff]   ;;  %v9802_v63 = vld [vmem:[%s12529_s7 + $0x3b8] sm:$0xff]  }
 0x2c8   : > { %v9097_v46 = vpop.f32.mrf.mxu1 }
 0x2c9   : > { %v2859_v5 = vadd.f32 %v9097_v46, %v2794_v60  ;;  %v9798_v60 = vld [vmem:[%s12529_s7 + $0x3a8] sm:$0xff]   ;;  %v9804_v46 = vld [vmem:[%s12529_s7 + $0x3c0] sm:$0xff]  }
 0x2ca   : > { %v2850_v31 = vpop.f32.mrf.mxu1 }
 0x2cb   : > { %10033 = vtanh.f32 %v2859_v5  ;;  %v2851_v51 = vadd.f32 %v2850_v31, %v2784_v49  ;;  %v9801_v5 = vld [vmem:[%s12529_s7 + $0x38] sm:$0xff]   ;;  %v9806_v49 = vld [vmem:[%s12529_s7 + $0x3c8] sm:$0xff]   ;;  %v9803_v31 = vld [vmem:[%s12529_s7 + $0x40] sm:$0xff]  }
 0x2cc   : > { %10035 = vtanh.f32 %v2848_v2  ;;  %v9799_v2 = vld [vmem:[%s12529_s7 + $0x30] sm:$0xff]  }
 0x2cd   : > { %10037 = vtanh.f32 %v2851_v51  ;;  %v9808_v51 = vld [vmem:[%s12529_s7 + $0x3d0] sm:$0xff]  }
 0x2d4   : > { %v10032_v35 = vpop.eup %10031 }
 0x2d8   : > { %v10034_v11 = vpop.eup %10033 }
 0x2d9   : > { %v10036_v1 = vpop.eup %10035  ;;  %v2875_v59 = vpack.c.bf16 %v10034_v11, %v10032_v35  ;;  %v9805_v35 = vld [vmem:[%s12529_s7 + $0x48] sm:$0xff]   ;;  %v9810_v11 = vld [vmem:[%s12529_s7 + $0x3d8] sm:$0xff]  }
 0x2da   : > { %v10038_v53 = vpop.eup %10037 }
 0x2db   : > { %9098 = vmatprep.subr.bf16.mxu1 %v2875_v59  ;;  %v2874_v19 = vpack.c.bf16 %v10038_v53, %v10036_v1  ;;  %v9807_v1 = vld [vmem:[%s12529_s7 + $0x50] sm:$0xff]   ;;  %v9809_v53 = vld [vmem:[%s12529_s7 + $0x58] sm:$0xff]  }
 0x2dc   : > { %9099 = vmatpush3.bf16.msra.mxu1 %v2875_v59  ;;  %v9812_v59 = vld [vmem:[%s12529_s7 + $0x3e0] sm:$0xff]  }
 0x2dd   : > { %9100 = vmatprep.subr.bf16.mxu1 %v2874_v19 }
 0x2e0   : > { %9101 = vmatpush3.bf16.msra.mxu1 %v2874_v19  ;;  %v9814_v19 = vld [vmem:[%s12529_s7 + $0x3e8] sm:$0xff]  }
 0x2e1   : > { %9572 = vmatprep.subr.bf16.mxu1 %v12550_v22 }
 0x2e3   : > { %9103 = vmatmul.mubr.msk.bf16.vlgmr.msra.gmra.mxu1 %vm2944_vm4, %v9786_v62  ;;  %v9811_v62 = vld [vmem:[%s12529_s7 + $0x60] sm:$0xff]  }
 0x2e4   : > { %9106 = vmatprep.mubr.msk.bf16.mxu1 %vm2944_vm4, %v9787_v27  ;;  %9577 = vmatpush3.bf16.msra.mxu1 %v12550_v22  ;;  %v9816_v27 = vld [vmem:[%s12529_s7 + $0x3f0] sm:$0xff]   ;;  %v9813_v22 = vld [vmem:[%s12529_s7 + $0x68] sm:$0xff]  }
 0x2eb   : > { %9107 = vmatmul.mubr.msk.bf16.gmra.mxu1 %vm2944_vm4, %v9788_v4  ;;  %v9818_v4 = vld [vmem:[%s12529_s7 + $0x3f8] sm:$0xff]  }
 0x2ec   : > { %9348 = vmatprep.mubr.msk.bf16.mxu1 %vm4613_vm5, %v9792_v26  ;;  %v9820_v26 = vld [vmem:[%s12529_s7 + $0x400] sm:$0xff]  }
 0x3a3   : > { %v9104_v32 = vpop.f32.mrf.mxu1 }
 0x3a4   : > { %v3000_v17 = vadd.f32 %v9104_v32, %v2897_v33  ;;  %v9822_v32 = vld [vmem:[%s12529_s7 + $0x408] sm:$0xff]   ;;  %v9836_v33 = vld [vmem:[%s12529_s7 + $0x440] sm:$0xff]  }
 0x3a5   : > { %v2991_v48 = vpop.f32.mrf.mxu1 }
 0x3a6   : > { %v3024_v47 = vmax.f32 %v3000_v17, 0.0  ;;  %v2992_v61 = vadd.f32 %v2991_v48, %v2887_v39  ;;  %v9824_v48 = vld [vmem:[%s12529_s7 + $0x410] sm:$0xff]   ;;  %v9842_v17 = vld [vmem:[%s12529_s7 + $0x458] sm:$0xff]  }
 0x3a7   : > { %v9105_v9 = vpop.f32.mrf.mxu1  ;;  %v9850_v39 = vld [vmem:[%s12529_s7 + $0x478] sm:$0xff]  }
 0x3a8   : > { %v3003_v18 = vadd.f32 %v9105_v9, %v2902_v21  ;;  %v3022_v42 = vmax.f32 %v2992_v61, 0.0  ;;  %v9821_v9 = vld [vmem:[%s12529_s7 + $0x88] sm:$0xff]   ;;  %v9832_v21 = vld [vmem:[%s12529_s7 + $0x430] sm:$0xff]   ;;  %v9852_v61 = vld [vmem:[%s12529_s7 + $0x480] sm:$0xff]  }
 0x3a9   : > { %v2994_v29 = vpop.f32.mrf.mxu1 }
 0x3aa   : > { %v3025_v58 = vmax.f32 %v3003_v18, 0.0  ;;  %v2995_v45 = vadd.f32 %v2994_v29, %v2892_v25  ;;  %v9823_v29 = vld [vmem:[%s12529_s7 + $0x90] sm:$0xff]   ;;  %v9838_v18 = vld [vmem:[%s12529_s7 + $0x448] sm:$0xff]  }
 0x3ab   : > { %v9108_v56 = vpop.f32.mrf.mxu1  ;;  %v9846_v25 = vld [vmem:[%s12529_s7 + $0x468] sm:$0xff]  }
 0x3ac   : > { %v3016_v7 = vadd.f32 %v9108_v56, %v2917_v12  ;;  %v3031_v37 = vpack.c.bf16 %v3025_v58, %v3024_v47  ;;  %v3023_v52 = vmax.f32 %v2995_v45, 0.0  ;;  %v9819_v12 = vld [vmem:[%s12529_s7 + $0x80] sm:$0xff]   ;;  %v9825_v56 = vld [vmem:[%s12529_s7 + $0x98] sm:$0xff]   ;;  %v9848_v45 = vld [vmem:[%s12529_s7 + $0x470] sm:$0xff]  }
 0x3ad   : > { %v3007_v41 = vpop.f32.mrf.mxu1  ;;  %v9843_v58 = vld [vmem:[%s12529_s7 + $0xe0] sm:$0xff]   ;;  %v9847_v47 = vld [vmem:[%s12529_s7 + $0xf0] sm:$0xff]  }
 0x3ae   : > { %v3008_v30 = vadd.f32 %v3007_v41, %v2907_v36  ;;  %v3028_v8 = vmax.f32 %v3016_v7, 0.0  ;;  %v3030_v43 = vpack.c.bf16 %v3023_v52, %v3022_v42  ;;  %v9828_v36 = vld [vmem:[%s12529_s7 + $0x420] sm:$0xff]   ;;  %v9830_v41 = vld [vmem:[%s12529_s7 + $0x428] sm:$0xff]  }
 0x3af   : > { %v9109_v44 = vpop.f32.mrf.mxu1  ;;  %v9827_v7 = vld [vmem:[%s12529_s7 + $0xa0] sm:$0xff]   ;;  %v9854_v52 = vld [vmem:[%s12529_s7 + $0x488] sm:$0xff]  }
 0x3b0   : > { %v3019_v40 = vadd.f32 %v9109_v44, %v2922_v34  ;;  %v3026_v16 = vmax.f32 %v3008_v30, 0.0  ;;  %v9817_v34 = vld [vmem:[%s12529_s7 + $0x78] sm:$0xff]   ;;  %v9829_v44 = vld [vmem:[%s12529_s7 + $0xa8] sm:$0xff]   ;;  %v9851_v42 = vld [vmem:[%s12529_s7 + $0x100] sm:$0xff]  }
 0x3b1   : > { %v3010_v0 = vpop.f32.mrf.mxu1  ;;  %v9834_v30 = vld [vmem:[%s12529_s7 + $0x438] sm:$0xff]  }
 0x3b2   : > { %v3029_v14 = vmax.f32 %v3019_v40, 0.0  ;;  %v3011_v54 = vadd.f32 %v3010_v0, %v2912_v3  ;;  %v9826_v3 = vld [vmem:[%s12529_s7 + $0x418] sm:$0xff]   ;;  %v9831_v40 = vld [vmem:[%s12529_s7 + $0xb0] sm:$0xff]  }
 0x3b3   : > { %v9833_v0 = vld [vmem:[%s12529_s7 + $0xb8] sm:$0xff]  }
 0x3b4   : > { %v3033_v20 = vpack.c.bf16 %v3029_v14, %v3028_v8  ;;  %v3027_v57 = vmax.f32 %v3011_v54, 0.0  ;;  %v9835_v8 = vld [vmem:[%s12529_s7 + $0xc0] sm:$0xff]   ;;  %v9840_v14 = vld [vmem:[%s12529_s7 + $0x450] sm:$0xff]   ;;  %v9837_v54 = vld [vmem:[%s12529_s7 + $0xc8] sm:$0xff]  }
 0x3b6   : > { %v3032_v55 = vpack.c.bf16 %v3027_v57, %v3026_v16  ;;  %9112 = vmatprep.subr.bf16.mxu0 %v3033_v20  ;;  %9573 = vmatprep.subr.bf16.mxu1 %v3033_v20  ;;  %v9839_v16 = vld [vmem:[%s12529_s7 + $0xd0] sm:$0xff]   ;;  %v9841_v57 = vld [vmem:[%s12529_s7 + $0xd8] sm:$0xff]  }
 0x3b7   : > { %9113 = vmatpush3.bf16.msra.mxu0 %v3033_v20  ;;  %9578 = vmatpush3.bf16.msra.mxu1 %v3033_v20  ;;  %v9844_v20 = vld [vmem:[%s12529_s7 + $0x460] sm:$0xff]  }
 0x3b8   : > { %9114 = vmatprep.subr.bf16.mxu0 %v3032_v55  ;;  %9574 = vmatprep.subr.bf16.mxu1 %v3032_v55 }
 0x3bb   : > { %9115 = vmatpush3.bf16.msra.mxu0 %v3032_v55  ;;  %9579 = vmatpush3.bf16.msra.mxu1 %v3032_v55  ;;  %v9845_v55 = vld [vmem:[%s12529_s7 + $0xe8] sm:$0xff]  }
 0x3bc   : > { %9116 = vmatprep.subr.bf16.mxu0 %v3031_v37  ;;  %9575 = vmatprep.subr.bf16.mxu1 %v3031_v37 }
 0x3bf   : > { %9117 = vmatpush3.bf16.msra.mxu0 %v3031_v37  ;;  %9580 = vmatpush3.bf16.msra.mxu1 %v3031_v37  ;;  %v9849_v37 = vld [vmem:[%s12529_s7 + $0xf8] sm:$0xff]  }
 0x3c0   : > { %9118 = vmatprep.subr.bf16.mxu0 %v3030_v43  ;;  %9576 = vmatprep.subr.bf16.mxu1 %v3030_v43 }
 0x3c3   : > { %9119 = vmatpush3.bf16.msra.mxu0 %v3030_v43  ;;  %9581 = vmatpush3.bf16.msra.mxu1 %v3030_v43  ;;  %v9856_v43 = vld [vmem:[%s12529_s7 + $0x490] sm:$0xff]  }
 0x3c6   : > { %9121 = vmatmul.mubr.msk.bf16.vlgmr.msra.gmra.mxu0 %vm4613_vm5, %v9790_v6  ;;  %9349 = vmatmul.mubr.msk.bf16.vlgmr.msra.gmra.mxu1 %vm4613_vm5, %v9794_v23  ;;  %v9853_v6 = vld [vmem:[%s12529_s7 + $0x108] sm:$0xff]   ;;  %v9858_v23 = vld [vmem:[%s12529_s7 + $0x498] sm:$0xff]  }
 0x3c7   : > { %9124 = vmatprep.mubr.msk.bf16.mxu0 %vm4613_vm5, %v9791_v50  ;;  %9352 = vmatprep.mubr.msk.bf16.mxu1 %vm4613_vm5, %v9796_v38  ;;  %v9855_v50 = vld [vmem:[%s12529_s7 + $0x110] sm:$0xff]   ;;  %v9860_v38 = vld [vmem:[%s12529_s7 + $0x4a0] sm:$0xff]  }
 0x3ce   : > { %9125 = vmatmul.mubr.msk.bf16.gmra.mxu0 %vm4613_vm5, %v9793_v10  ;;  %9353 = vmatmul.mubr.msk.bf16.gmra.mxu1 %vm4613_vm5, %v9798_v60  ;;  %v9857_v10 = vld [vmem:[%s12529_s7 + $0x118] sm:$0xff]   ;;  %v9862_v60 = vld [vmem:[%s12529_s7 + $0x4a8] sm:$0xff]  }
 0x3cf   : > { %9128 = vmatprep.mubr.msk.bf16.mxu0 %vm4613_vm5, %v9795_v15  ;;  %9356 = vmatprep.mubr.msk.bf16.mxu1 %vm4613_vm5, %v9800_v13  ;;  %v9859_v15 = vld [vmem:[%s12529_s7 + $0x120] sm:$0xff]   ;;  %v9864_v13 = vld [vmem:[%s12529_s7 + $0x4b0] sm:$0xff]  }
 0x3d6   : > { %9129 = vmatmul.mubr.msk.bf16.gmra.mxu0 %vm4613_vm5, %v9797_v28  ;;  %9357 = vmatmul.mubr.msk.bf16.gmra.mxu1 %vm4613_vm5, %v9802_v63  ;;  %v9861_v28 = vld [vmem:[%s12529_s7 + $0x128] sm:$0xff]   ;;  %v9866_v63 = vld [vmem:[%s12529_s7 + $0x4b8] sm:$0xff]  }
 0x3d7   : > { %9132 = vmatprep.mubr.msk.bf16.mxu0 %vm4613_vm5, %v9799_v2  ;;  %9360 = vmatprep.mubr.msk.bf16.mxu1 %vm4613_vm5, %v9804_v46  ;;  %v9863_v2 = vld [vmem:[%s12529_s7 + $0x130] sm:$0xff]   ;;  %v9868_v46 = vld [vmem:[%s12529_s7 + $0x4c0] sm:$0xff]  }
 0x3de   : > { %9133 = vmatmul.mubr.msk.bf16.gmra.mxu0 %vm4613_vm5, %v9801_v5  ;;  %9361 = vmatmul.mubr.msk.bf16.gmra.mxu1 %vm4613_vm5, %v9806_v49  ;;  %v9865_v5 = vld [vmem:[%s12529_s7 + $0x138] sm:$0xff]   ;;  %v9870_v49 = vld [vmem:[%s12529_s7 + $0x4c8] sm:$0xff]  }
 0x3df   : > { %9136 = vmatprep.mubr.msk.bf16.mxu0 %vm4613_vm5, %v9803_v31  ;;  %9364 = vmatprep.mubr.msk.bf16.mxu1 %vm4613_vm5, %v9808_v51  ;;  %v9867_v31 = vld [vmem:[%s12529_s7 + $0x140] sm:$0xff]   ;;  %v9872_v51 = vld [vmem:[%s12529_s7 + $0x4d0] sm:$0xff]  }
 0x3e6   : > { %9137 = vmatmul.mubr.msk.bf16.gmra.mxu0 %vm4613_vm5, %v9805_v35  ;;  %9365 = vmatmul.mubr.msk.bf16.gmra.mxu1 %vm4613_vm5, %v9810_v11  ;;  %v9869_v35 = vld [vmem:[%s12529_s7 + $0x148] sm:$0xff]   ;;  %v9874_v11 = vld [vmem:[%s12529_s7 + $0x4d8] sm:$0xff]  }
 0x3e7   : > { %9140 = vmatprep.mubr.msk.bf16.mxu0 %vm4613_vm5, %v9807_v1  ;;  %9368 = vmatprep.mubr.msk.bf16.mxu1 %vm4613_vm5, %v9812_v59  ;;  %v9871_v1 = vld [vmem:[%s12529_s7 + $0x150] sm:$0xff]   ;;  %v9876_v59 = vld [vmem:[%s12529_s7 + $0x4e0] sm:$0xff]  }
 0x3ee   : > { %9141 = vmatmul.mubr.msk.bf16.gmra.mxu0 %vm4613_vm5, %v9809_v53  ;;  %9369 = vmatmul.mubr.msk.bf16.gmra.mxu1 %vm4613_vm5, %v9814_v19  ;;  %v9873_v53 = vld [vmem:[%s12529_s7 + $0x158] sm:$0xff]   ;;  %v9878_v19 = vld [vmem:[%s12529_s7 + $0x4e8] sm:$0xff]  }
 0x3ef   : > { %9144 = vmatprep.mubr.msk.bf16.mxu0 %vm4613_vm5, %v9811_v62  ;;  %9372 = vmatprep.mubr.msk.bf16.mxu1 %vm4613_vm5, %v9816_v27  ;;  %v9875_v62 = vld [vmem:[%s12529_s7 + $0x160] sm:$0xff]   ;;  %v9880_v27 = vld [vmem:[%s12529_s7 + $0x4f0] sm:$0xff]  }
 0x3f6   : > { %9145 = vmatmul.mubr.msk.bf16.gmra.mxu0 %vm4613_vm5, %v9813_v22  ;;  %9373 = vmatmul.mubr.msk.bf16.gmra.mxu1 %vm4613_vm5, %v9818_v4  ;;  %v9877_v22 = vld [vmem:[%s12529_s7 + $0x168] sm:$0xff]   ;;  %v9882_v4 = vld [vmem:[%s12529_s7 + $0x4f8] sm:$0xff]  }
 0x3f7   : > { %9148 = vmatprep.mubr.msk.bf16.mxu0 %vm4613_vm5, %v9815_v24  ;;  %9376 = vmatprep.mubr.msk.bf16.mxu1 %vm4613_vm5, %v9820_v26  ;;  %v9879_v24 = vld [vmem:[%s12529_s7 + $0x170] sm:$0xff]   ;;  %v9884_v26 = vld [vmem:[%s12529_s7 + $0x500] sm:$0xff]  }
 0x3fe   : > { %9149 = vmatmul.mubr.msk.bf16.gmra.mxu0 %vm4613_vm5, %v9817_v34  ;;  %9377 = vmatmul.mubr.msk.bf16.gmra.mxu1 %vm4613_vm5, %v9822_v32  ;;  %v9881_v34 = vld [vmem:[%s12529_s7 + $0x178] sm:$0xff]   ;;  %v9886_v32 = vld [vmem:[%s12529_s7 + $0x508] sm:$0xff]  }
 0x3ff   : > { %9152 = vmatprep.mubr.msk.bf16.mxu0 %vm4613_vm5, %v9819_v12  ;;  %9380 = vmatprep.mubr.msk.bf16.mxu1 %vm4613_vm5, %v9824_v48  ;;  %v9883_v12 = vld [vmem:[%s12529_s7 + $0x180] sm:$0xff]   ;;  %v9888_v48 = vld [vmem:[%s12529_s7 + $0x510] sm:$0xff]  }
 0x406   : > { %9153 = vmatmul.mubr.msk.bf16.gmra.mxu0 %vm4613_vm5, %v9821_v9  ;;  %9381 = vmatmul.mubr.msk.bf16.gmra.mxu1 %vm4613_vm5, %v9826_v3  ;;  %v9885_v9 = vld [vmem:[%s12529_s7 + $0x188] sm:$0xff]   ;;  %v9890_v3 = vld [vmem:[%s12529_s7 + $0x518] sm:$0xff]  }
 0x407   : > { %9156 = vmatprep.mubr.msk.bf16.mxu0 %vm4613_vm5, %v9823_v29  ;;  %9384 = vmatprep.mubr.msk.bf16.mxu1 %vm4613_vm5, %v9828_v36  ;;  %v9887_v29 = vld [vmem:[%s12529_s7 + $0x190] sm:$0xff]   ;;  %v9892_v36 = vld [vmem:[%s12529_s7 + $0x520] sm:$0xff]  }
 0x40e   : > { %9157 = vmatmul.mubr.msk.bf16.gmra.mxu0 %vm4613_vm5, %v9825_v56  ;;  %9385 = vmatmul.mubr.msk.bf16.gmra.mxu1 %vm4613_vm5, %v9830_v41 }
 0x40f   : > { %9160 = vmatprep.mubr.msk.bf16.mxu0 %vm4613_vm5, %v9827_v7  ;;  %9388 = vmatprep.mubr.msk.bf16.mxu1 %vm4613_vm5, %v9832_v21 }
 0x416   : > { %9161 = vmatmul.mubr.msk.bf16.gmra.mxu0 %vm4613_vm5, %v9829_v44  ;;  %9389 = vmatmul.mubr.msk.bf16.gmra.mxu1 %vm4613_vm5, %v9834_v30  ;;  %v9889_v30 = vld [vmem:[%s12529_s7 + $0x198] sm:$0xff]  }
 0x417   : > { %9164 = vmatprep.mubr.msk.bf16.mxu0 %vm4613_vm5, %v9831_v40  ;;  %9392 = vmatprep.mubr.msk.bf16.mxu1 %vm4613_vm5, %v9836_v33  ;;  %v9894_v33 = vld [vmem:[%s12529_s7 + $0x528] sm:$0xff]  }
 0x41e   : > { %9165 = vmatmul.mubr.msk.bf16.gmra.mxu0 %vm4613_vm5, %v9833_v0  ;;  %9393 = vmatmul.mubr.msk.bf16.gmra.mxu1 %vm4613_vm5, %v9838_v18  ;;  %v9891_v0 = vld [vmem:[%s12529_s7 + $0x1a0] sm:$0xff]   ;;  %v9896_v18 = vld [vmem:[%s12529_s7 + $0x530] sm:$0xff]  }
 0x41f   : > { %9168 = vmatprep.mubr.msk.bf16.mxu0 %vm4613_vm5, %v9835_v8  ;;  %9396 = vmatprep.mubr.msk.bf16.mxu1 %vm4613_vm5, %v9840_v14 }
 0x426   : > { %9169 = vmatmul.mubr.msk.bf16.gmra.mxu0 %vm4613_vm5, %v9837_v54  ;;  %9397 = vmatmul.mubr.msk.bf16.gmra.mxu1 %vm4613_vm5, %v9842_v17 }
 0x427   : > { %9172 = vmatprep.mubr.msk.bf16.mxu0 %vm4613_vm5, %v9839_v16  ;;  %9400 = vmatprep.mubr.msk.bf16.mxu1 %vm4613_vm5, %v9844_v20 }
 0x42e   : > { %9173 = vmatmul.mubr.msk.bf16.gmra.mxu0 %vm4613_vm5, %v9841_v57  ;;  %9401 = vmatmul.mubr.msk.bf16.gmra.mxu1 %vm4613_vm5, %v9846_v25  ;;  %v9893_v25 = vld [vmem:[%s12529_s7 + $0x1a8] sm:$0xff]  }
 0x42f   : > { %9176 = vmatprep.mubr.msk.bf16.mxu0 %vm4613_vm5, %v9843_v58  ;;  %9404 = vmatprep.mubr.msk.bf16.mxu1 %vm4613_vm5, %v9848_v45  ;;  %v9898_v45 = vld [vmem:[%s12529_s7 + $0x538] sm:$0xff]  }
 0x436   : > { %9177 = vmatmul.mubr.msk.bf16.gmra.mxu0 %vm4613_vm5, %v9845_v55  ;;  %9405 = vmatmul.mubr.msk.bf16.gmra.mxu1 %vm4613_vm5, %v9850_v39  ;;  %v9895_v55 = vld [vmem:[%s12529_s7 + $0x1b0] sm:$0xff]   ;;  %v9900_v39 = vld [vmem:[%s12529_s7 + $0x540] sm:$0xff]  }
 0x437   : > { %9180 = vmatprep.mubr.msk.bf16.mxu0 %vm4613_vm5, %v9847_v47  ;;  %9408 = vmatprep.mubr.msk.bf16.mxu1 %vm4613_vm5, %v9852_v61 }
 0x43e   : > { %9181 = vmatmul.mubr.msk.bf16.gmra.mxu0 %vm4613_vm5, %v9849_v37  ;;  %9409 = vmatmul.mubr.msk.bf16.gmra.mxu1 %vm4613_vm5, %v9854_v52 }
 0x43f   : > { %9184 = vmatprep.mubr.msk.bf16.mxu0 %vm4613_vm5, %v9851_v42  ;;  %9412 = vmatprep.mubr.msk.bf16.mxu1 %vm4613_vm5, %v9856_v43 }
 0x446   : > { %9185 = vmatmul.mubr.msk.bf16.gmra.mxu0 %vm4613_vm5, %v9853_v6  ;;  %9413 = vmatmul.mubr.msk.bf16.gmra.mxu1 %vm4613_vm5, %v9858_v23  ;;  %v9897_v23 = vld [vmem:[%s12529_s7 + $0x1b8] sm:$0xff]  }
 0x447   : > { %9188 = vmatprep.mubr.msk.bf16.mxu0 %vm4613_vm5, %v9855_v50  ;;  %9416 = vmatprep.mubr.msk.bf16.mxu1 %vm4613_vm5, %v9860_v38  ;;  %v9902_v38 = vld [vmem:[%s12529_s7 + $0x548] sm:$0xff]  }
 0x44e   : > { %9189 = vmatmul.mubr.msk.bf16.gmra.mxu0 %vm4613_vm5, %v9857_v10  ;;  %9417 = vmatmul.mubr.msk.bf16.gmra.mxu1 %vm4613_vm5, %v9862_v60  ;;  %v9899_v10 = vld [vmem:[%s12529_s7 + $0x1c0] sm:$0xff]   ;;  %v9904_v60 = vld [vmem:[%s12529_s7 + $0x550] sm:$0xff]  }
 0x44f   : > { %9192 = vmatprep.mubr.msk.bf16.mxu0 %vm4613_vm5, %v9859_v15  ;;  %9420 = vmatprep.mubr.msk.bf16.mxu1 %vm4613_vm5, %v9864_v13 }
 0x456   : > { %9193 = vmatmul.mubr.msk.bf16.gmra.mxu0 %vm4613_vm5, %v9861_v28  ;;  %9421 = vmatmul.mubr.msk.bf16.gmra.mxu1 %vm4613_vm5, %v9866_v63 }
 0x457   : > { %9196 = vmatprep.mubr.msk.bf16.mxu0 %vm4613_vm5, %v9863_v2  ;;  %9424 = vmatprep.mubr.msk.bf16.mxu1 %vm4613_vm5, %v9868_v46 }
 0x45e   : > { %9197 = vmatmul.mubr.msk.bf16.gmra.mxu0 %vm4613_vm5, %v9865_v5  ;;  %9425 = vmatmul.mubr.msk.bf16.gmra.mxu1 %vm4613_vm5, %v9870_v49  ;;  %v9901_v49 = vld [vmem:[%s12529_s7 + $0x1c8] sm:$0xff]  }
 0x45f   : > { %9200 = vmatprep.mubr.msk.bf16.mxu0 %vm4613_vm5, %v9867_v31  ;;  %9428 = vmatprep.mubr.msk.bf16.mxu1 %vm4613_vm5, %v9872_v51  ;;  %v9906_v51 = vld [vmem:[%s12529_s7 + $0x558] sm:$0xff]  }
 0x466   : > { %9201 = vmatmul.mubr.msk.bf16.gmra.mxu0 %vm4613_vm5, %v9869_v35  ;;  %9429 = vmatmul.mubr.msk.bf16.gmra.mxu1 %vm4613_vm5, %v9874_v11  ;;  %v9903_v35 = vld [vmem:[%s12529_s7 + $0x1d0] sm:$0xff]   ;;  %v9908_v11 = vld [vmem:[%s12529_s7 + $0x560] sm:$0xff]  }
 0x467   : > { %9204 = vmatprep.mubr.msk.bf16.mxu0 %vm4613_vm5, %v9871_v1  ;;  %9432 = vmatprep.mubr.msk.bf16.mxu1 %vm4613_vm5, %v9876_v59 }
 0x46e   : > { %9205 = vmatmul.mubr.msk.bf16.gmra.mxu0 %vm4613_vm5, %v9873_v53  ;;  %9433 = vmatmul.mubr.msk.bf16.gmra.mxu1 %vm4613_vm5, %v9878_v19 }
 0x46f   : > { %9208 = vmatprep.mubr.msk.bf16.mxu0 %vm4613_vm5, %v9875_v62  ;;  %9436 = vmatprep.mubr.msk.bf16.mxu1 %vm4613_vm5, %v9880_v27 }
 0x476   : > { %9209 = vmatmul.mubr.msk.bf16.gmra.mxu0 %vm4613_vm5, %v9877_v22  ;;  %9437 = vmatmul.mubr.msk.bf16.gmra.mxu1 %vm4613_vm5, %v9882_v4  ;;  %v9905_v4 = vld [vmem:[%s12529_s7 + $0x1d8] sm:$0xff]  }
 0x477   : > { %9212 = vmatprep.mubr.msk.bf16.mxu0 %vm4613_vm5, %v9879_v24  ;;  %9440 = vmatprep.mubr.msk.bf16.mxu1 %vm4613_vm5, %v9884_v26  ;;  %v9910_v26 = vld [vmem:[%s12529_s7 + $0x568] sm:$0xff]  }
 0x47e   : > { %9213 = vmatmul.mubr.msk.bf16.gmra.mxu0 %vm4613_vm5, %v9881_v34  ;;  %9441 = vmatmul.mubr.msk.bf16.gmra.mxu1 %vm4613_vm5, %v9886_v32  ;;  %v9907_v34 = vld [vmem:[%s12529_s7 + $0x1e0] sm:$0xff]   ;;  %v9912_v32 = vld [vmem:[%s12529_s7 + $0x570] sm:$0xff]  }
 0x47f   : > { %9216 = vmatprep.mubr.msk.bf16.mxu0 %vm4613_vm5, %v9883_v12  ;;  %9444 = vmatprep.mubr.msk.bf16.mxu1 %vm4613_vm5, %v9888_v48 }
 0x486   : > { %v9122_v56 = vpop.f32.mrf.mxu0  ;;  %9217 = vmatmul.mubr.msk.bf16.gmra.mxu0 %vm4613_vm5, %v9885_v9  ;;  %v9350_v41 = vpop.f32.mrf.mxu1  ;;  %9445 = vmatmul.mubr.msk.bf16.gmra.mxu1 %vm4613_vm5, %v9890_v3 }
 0x487   : > { %7140 = vst [vmem:[%s11560_s23 + $0x10] sm:$0xff] %v9122_v56  ;;  %9220 = vmatprep.mubr.msk.bf16.mxu0 %vm4613_vm5, %v9887_v29  ;;  %7368 = vst [vmem:[%s11560_s23 + $0x730] sm:$0xff] %v9350_v41  ;;  %9448 = vmatprep.mubr.msk.bf16.mxu1 %vm4613_vm5, %v9892_v36  ;;  %v9909_v41 = vld [vmem:[%s12529_s7 + $0x1e8] sm:$0xff]  }
 0x488   : > { %v5332_v7 = vpop.f32.mrf.mxu0  ;;  %v6244_v21 = vpop.f32.mrf.mxu1 }
 0x489   : > { %7138 = vst [vmem:[%s11560_s23] sm:$0xff] %v5332_v7  ;;  %7366 = vst [vmem:[%s11560_s23 + $0x720] sm:$0xff] %v6244_v21  ;;  %v9914_v21 = vld [vmem:[%s12529_s7 + $0x578] sm:$0xff]  }
 0x48a   : > { %v9123_v44 = vpop.f32.mrf.mxu0  ;;  %v9351_v40 = vpop.f32.mrf.mxu1 }
 0x48b   : > { %7141 = vst [vmem:[%s11560_s23 + $0x18] sm:$0xff] %v9123_v44  ;;  %7369 = vst [vmem:[%s11560_s23 + $0x738] sm:$0xff] %v9351_v40  ;;  %v9911_v44 = vld [vmem:[%s12529_s7 + $0x1f0] sm:$0xff]  }
 0x48c   : > { %v5335_v8 = vpop.f32.mrf.mxu0  ;;  %v6247_v14 = vpop.f32.mrf.mxu1 }
 0x48d   : > { %7139 = vst [vmem:[%s11560_s23 + $0x8] sm:$0xff] %v5335_v8  ;;  %7367 = vst [vmem:[%s11560_s23 + $0x728] sm:$0xff] %v6247_v14 }
 0x48e   : > { %v9126_v54 = vpop.f32.mrf.mxu0  ;;  %9221 = vmatmul.mubr.msk.bf16.gmra.mxu0 %vm4613_vm5, %v9889_v30  ;;  %v9354_v17 = vpop.f32.mrf.mxu1  ;;  %9449 = vmatmul.mubr.msk.bf16.gmra.mxu1 %vm4613_vm5, %v9894_v33  ;;  %v9916_v30 = vld [vmem:[%s12529_s7 + $0x580] sm:$0xff]  }
 0x48f   : > { %7144 = vst [vmem:[%s11560_s23 + $0x30] sm:$0xff] %v9126_v54  ;;  %9224 = vmatprep.mubr.msk.bf16.mxu0 %vm4613_vm5, %v9891_v0  ;;  %7372 = vst [vmem:[%s11560_s23 + $0x750] sm:$0xff] %v9354_v17  ;;  %9452 = vmatprep.mubr.msk.bf16.mxu1 %vm4613_vm5, %v9896_v18  ;;  %v9913_v17 = vld [vmem:[%s12529_s7 + $0x1f8] sm:$0xff]  }
 0x490   : > { %v5348_v16 = vpop.f32.mrf.mxu0  ;;  %v6260_v20 = vpop.f32.mrf.mxu1 }
 0x491   : > { %7142 = vst [vmem:[%s11560_s23 + $0x20] sm:$0xff] %v5348_v16  ;;  %7370 = vst [vmem:[%s11560_s23 + $0x740] sm:$0xff] %v6260_v20  ;;  %v9918_v20 = vld [vmem:[%s12529_s7 + $0x588] sm:$0xff]  }
 0x492   : > { %v9127_v57 = vpop.f32.mrf.mxu0  ;;  %v9355_v58 = vpop.f32.mrf.mxu1 }
 0x493   : > { %7145 = vst [vmem:[%s11560_s23 + $0x38] sm:$0xff] %v9127_v57  ;;  %7373 = vst [vmem:[%s11560_s23 + $0x758] sm:$0xff] %v9355_v58  ;;  %v9915_v57 = vld [vmem:[%s12529_s7 + $0x200] sm:$0xff]  }
 0x494   : > { %v5351_v47 = vpop.f32.mrf.mxu0  ;;  %v6263_v61 = vpop.f32.mrf.mxu1 }
 0x495   : > { %7143 = vst [vmem:[%s11560_s23 + $0x28] sm:$0xff] %v5351_v47  ;;  %7371 = vst [vmem:[%s11560_s23 + $0x748] sm:$0xff] %v6263_v61 }
 0x496   : > { %v9130_v37 = vpop.f32.mrf.mxu0  ;;  %9225 = vmatmul.mubr.msk.bf16.gmra.mxu0 %vm4613_vm5, %v9893_v25  ;;  %v9358_v52 = vpop.f32.mrf.mxu1  ;;  %9453 = vmatmul.mubr.msk.bf16.gmra.mxu1 %vm4613_vm5, %v9898_v45  ;;  %v9920_v25 = vld [vmem:[%s12529_s7 + $0x590] sm:$0xff]  }
 0x497   : > { %7148 = vst [vmem:[%s11560_s23 + $0x50] sm:$0xff] %v9130_v37  ;;  %9228 = vmatprep.mubr.msk.bf16.mxu0 %vm4613_vm5, %v9895_v55  ;;  %7376 = vst [vmem:[%s11560_s23 + $0x770] sm:$0xff] %v9358_v52  ;;  %9456 = vmatprep.mubr.msk.bf16.mxu1 %vm4613_vm5, %v9900_v39  ;;  %v9917_v52 = vld [vmem:[%s12529_s7 + $0x208] sm:$0xff]  }
 0x498   : > { %v5364_v42 = vpop.f32.mrf.mxu0  ;;  %v6276_v43 = vpop.f32.mrf.mxu1 }
 0x499   : > { %7146 = vst [vmem:[%s11560_s23 + $0x40] sm:$0xff] %v5364_v42  ;;  %7374 = vst [vmem:[%s11560_s23 + $0x760] sm:$0xff] %v6276_v43  ;;  %v9922_v43 = vld [vmem:[%s12529_s7 + $0x598] sm:$0xff]  }
 0x49a   : > { %v9131_v6 = vpop.f32.mrf.mxu0  ;;  %v9359_v50 = vpop.f32.mrf.mxu1 }
 0x49b   : > { %7149 = vst [vmem:[%s11560_s23 + $0x58] sm:$0xff] %v9131_v6  ;;  %7377 = vst [vmem:[%s11560_s23 + $0x778] sm:$0xff] %v9359_v50  ;;  %v9919_v6 = vld [vmem:[%s12529_s7 + $0x210] sm:$0xff]  }
 0x49c   : > { %v5367_v15 = vpop.f32.mrf.mxu0  ;;  %v6279_v13 = vpop.f32.mrf.mxu1 }
 0x49d   : > { %7147 = vst [vmem:[%s11560_s23 + $0x48] sm:$0xff] %v5367_v15  ;;  %7375 = vst [vmem:[%s11560_s23 + $0x768] sm:$0xff] %v6279_v13 }
 0x49e   : > { %v9134_v28 = vpop.f32.mrf.mxu0  ;;  %9229 = vmatmul.mubr.msk.bf16.gmra.mxu0 %vm4613_vm5, %v9897_v23  ;;  %v9362_v63 = vpop.f32.mrf.mxu1  ;;  %9457 = vmatmul.mubr.msk.bf16.gmra.mxu1 %vm4613_vm5, %v9902_v38  ;;  %v9924_v23 = vld [vmem:[%s12529_s7 + $0x5a0] sm:$0xff]  }
 0x49f   : > { %7152 = vst [vmem:[%s11560_s23 + $0x70] sm:$0xff] %v9134_v28  ;;  %9232 = vmatprep.mubr.msk.bf16.mxu0 %vm4613_vm5, %v9899_v10  ;;  %7380 = vst [vmem:[%s11560_s23 + $0x790] sm:$0xff] %v9362_v63  ;;  %9460 = vmatprep.mubr.msk.bf16.mxu1 %vm4613_vm5, %v9904_v60  ;;  %v9921_v63 = vld [vmem:[%s12529_s7 + $0x218] sm:$0xff]  }
 0x4a0   : > { %v5380_v2 = vpop.f32.mrf.mxu0  ;;  %v6292_v46 = vpop.f32.mrf.mxu1 }
 0x4a1   : > { %7150 = vst [vmem:[%s11560_s23 + $0x60] sm:$0xff] %v5380_v2  ;;  %7378 = vst [vmem:[%s11560_s23 + $0x780] sm:$0xff] %v6292_v46  ;;  %v9926_v46 = vld [vmem:[%s12529_s7 + $0x5a8] sm:$0xff]  }
 0x4a2   : > { %v9135_v5 = vpop.f32.mrf.mxu0  ;;  %v9363_v31 = vpop.f32.mrf.mxu1 }
 0x4a3   : > { %7153 = vst [vmem:[%s11560_s23 + $0x78] sm:$0xff] %v9135_v5  ;;  %7381 = vst [vmem:[%s11560_s23 + $0x798] sm:$0xff] %v9363_v31  ;;  %v9923_v5 = vld [vmem:[%s12529_s7 + $0x220] sm:$0xff]  }
 0x4a4   : > { %v5383_v1 = vpop.f32.mrf.mxu0  ;;  %v6295_v59 = vpop.f32.mrf.mxu1 }
 0x4a5   : > { %7151 = vst [vmem:[%s11560_s23 + $0x68] sm:$0xff] %v5383_v1  ;;  %7379 = vst [vmem:[%s11560_s23 + $0x788] sm:$0xff] %v6295_v59 }
 0x4a6   : > { %v9138_v53 = vpop.f32.mrf.mxu0  ;;  %9233 = vmatmul.mubr.msk.bf16.gmra.mxu0 %vm4613_vm5, %v9901_v49  ;;  %v9366_v19 = vpop.f32.mrf.mxu1  ;;  %9461 = vmatmul.mubr.msk.bf16.gmra.mxu1 %vm4613_vm5, %v9906_v51  ;;  %v9928_v49 = vld [vmem:[%s12529_s7 + $0x5b0] sm:$0xff]  }
 0x4a7   : > { %7156 = vst [vmem:[%s11560_s23 + $0x90] sm:$0xff] %v9138_v53  ;;  %9236 = vmatprep.mubr.msk.bf16.mxu0 %vm4613_vm5, %v9903_v35  ;;  %7384 = vst [vmem:[%s11560_s23 + $0x7b0] sm:$0xff] %v9366_v19  ;;  %9464 = vmatprep.mubr.msk.bf16.mxu1 %vm4613_vm5, %v9908_v11  ;;  %v9925_v19 = vld [vmem:[%s12529_s7 + $0x228] sm:$0xff]  }
 0x4a8   : > { %v5396_v62 = vpop.f32.mrf.mxu0  ;;  %v6308_v27 = vpop.f32.mrf.mxu1 }
 0x4a9   : > { %7154 = vst [vmem:[%s11560_s23 + $0x80] sm:$0xff] %v5396_v62  ;;  %7382 = vst [vmem:[%s11560_s23 + $0x7a0] sm:$0xff] %v6308_v27  ;;  %v9930_v27 = vld [vmem:[%s12529_s7 + $0x5b8] sm:$0xff]  }
 0x4aa   : > { %v9139_v22 = vpop.f32.mrf.mxu0  ;;  %v9367_v24 = vpop.f32.mrf.mxu1 }
 0x4ab   : > { %7157 = vst [vmem:[%s11560_s23 + $0x98] sm:$0xff] %v9139_v22  ;;  %7385 = vst [vmem:[%s11560_s23 + $0x7b8] sm:$0xff] %v9367_v24  ;;  %v9927_v22 = vld [vmem:[%s12529_s7 + $0x230] sm:$0xff]  }
 0x4ac   : > { %v5399_v12 = vpop.f32.mrf.mxu0  ;;  %v6311_v48 = vpop.f32.mrf.mxu1 }
 0x4ad   : > { %7155 = vst [vmem:[%s11560_s23 + $0x88] sm:$0xff] %v5399_v12  ;;  %7383 = vst [vmem:[%s11560_s23 + $0x7a8] sm:$0xff] %v6311_v48 }
 0x4ae   : > { %v9142_v9 = vpop.f32.mrf.mxu0  ;;  %9237 = vmatmul.mubr.msk.bf16.gmra.mxu0 %vm4613_vm5, %v9905_v4  ;;  %v9370_v3 = vpop.f32.mrf.mxu1  ;;  %9465 = vmatmul.mubr.msk.bf16.gmra.mxu1 %vm4613_vm5, %v9910_v26  ;;  %v9932_v4 = vld [vmem:[%s12529_s7 + $0x5c0] sm:$0xff]  }
 0x4af   : > { %7160 = vst [vmem:[%s11560_s23 + $0xb0] sm:$0xff] %v9142_v9  ;;  %9240 = vmatprep.mubr.msk.bf16.mxu0 %vm4613_vm5, %v9907_v34  ;;  %7388 = vst [vmem:[%s11560_s23 + $0x7d0] sm:$0xff] %v9370_v3  ;;  %9468 = vmatprep.mubr.msk.bf16.mxu1 %vm4613_vm5, %v9912_v32  ;;  %v9929_v3 = vld [vmem:[%s12529_s7 + $0x238] sm:$0xff]  }
 0x4b0   : > { %v5412_v29 = vpop.f32.mrf.mxu0  ;;  %v6324_v36 = vpop.f32.mrf.mxu1 }
 0x4b1   : > { %7158 = vst [vmem:[%s11560_s23 + $0xa0] sm:$0xff] %v5412_v29  ;;  %7386 = vst [vmem:[%s11560_s23 + $0x7c0] sm:$0xff] %v6324_v36  ;;  %v9934_v36 = vld [vmem:[%s12529_s7 + $0x5c8] sm:$0xff]  }
 0x4b2   : > { %v9143_v56 = vpop.f32.mrf.mxu0  ;;  %v9371_v7 = vpop.f32.mrf.mxu1 }
 0x4b3   : > { %7161 = vst [vmem:[%s11560_s23 + $0xb8] sm:$0xff] %v9143_v56  ;;  %7389 = vst [vmem:[%s11560_s23 + $0x7d8] sm:$0xff] %v9371_v7  ;;  %v9931_v56 = vld [vmem:[%s12529_s7 + $0x240] sm:$0xff]  }
 0x4b4   : > { %v5415_v40 = vpop.f32.mrf.mxu0  ;;  %v6327_v33 = vpop.f32.mrf.mxu1 }
 0x4b5   : > { %7159 = vst [vmem:[%s11560_s23 + $0xa8] sm:$0xff] %v5415_v40  ;;  %7387 = vst [vmem:[%s11560_s23 + $0x7c8] sm:$0xff] %v6327_v33 }
 0x4b6   : > { %v9146_v0 = vpop.f32.mrf.mxu0  ;;  %9241 = vmatmul.mubr.msk.bf16.gmra.mxu0 %vm4613_vm5, %v9909_v41  ;;  %v9374_v18 = vpop.f32.mrf.mxu1  ;;  %9469 = vmatmul.mubr.msk.bf16.gmra.mxu1 %vm4613_vm5, %v9914_v21  ;;  %v9936_v41 = vld [vmem:[%s12529_s7 + $0x5d0] sm:$0xff]  }
 0x4b7   : > { %7164 = vst [vmem:[%s11560_s23 + $0xd0] sm:$0xff] %v9146_v0  ;;  %9244 = vmatprep.mubr.msk.bf16.mxu0 %vm4613_vm5, %v9911_v44  ;;  %7392 = vst [vmem:[%s11560_s23 + $0x7f0] sm:$0xff] %v9374_v18  ;;  %9472 = vmatprep.mubr.msk.bf16.mxu1 %vm4613_vm5, %v9916_v30  ;;  %v9933_v18 = vld [vmem:[%s12529_s7 + $0x248] sm:$0xff]  }
 0x4b8   : > { %v5428_v8 = vpop.f32.mrf.mxu0  ;;  %v6340_v14 = vpop.f32.mrf.mxu1 }
 0x4b9   : > { %7162 = vst [vmem:[%s11560_s23 + $0xc0] sm:$0xff] %v5428_v8  ;;  %7390 = vst [vmem:[%s11560_s23 + $0x7e0] sm:$0xff] %v6340_v14  ;;  %v9938_v14 = vld [vmem:[%s12529_s7 + $0x5d8] sm:$0xff]  }
 0x4ba   : > { %v9147_v54 = vpop.f32.mrf.mxu0  ;;  %v9375_v16 = vpop.f32.mrf.mxu1 }
 0x4bb   : > { %7165 = vst [vmem:[%s11560_s23 + $0xd8] sm:$0xff] %v9147_v54  ;;  %7393 = vst [vmem:[%s11560_s23 + $0x7f8] sm:$0xff] %v9375_v16  ;;  %v9935_v54 = vld [vmem:[%s12529_s7 + $0x250] sm:$0xff]  }
 0x4bc   : > { %v5431_v58 = vpop.f32.mrf.mxu0  ;;  %v6343_v45 = vpop.f32.mrf.mxu1 }
 0x4bd   : > { %7163 = vst [vmem:[%s11560_s23 + $0xc8] sm:$0xff] %v5431_v58  ;;  %7391 = vst [vmem:[%s11560_s23 + $0x7e8] sm:$0xff] %v6343_v45 }
 0x4be   : > { %v9150_v55 = vpop.f32.mrf.mxu0  ;;  %9245 = vmatmul.mubr.msk.bf16.gmra.mxu0 %vm4613_vm5, %v9913_v17  ;;  %v9378_v39 = vpop.f32.mrf.mxu1  ;;  %9473 = vmatmul.mubr.msk.bf16.gmra.mxu1 %vm4613_vm5, %v9918_v20  ;;  %v9940_v17 = vld [vmem:[%s12529_s7 + $0x5e0] sm:$0xff]  }
 0x4bf   : > { %7168 = vst [vmem:[%s11560_s23 + $0xf0] sm:$0xff] %v9150_v55  ;;  %9248 = vmatprep.mubr.msk.bf16.mxu0 %vm4613_vm5, %v9915_v57  ;;  %7396 = vst [vmem:[%s11560_s23 + $0x810] sm:$0xff] %v9378_v39  ;;  %9476 = vmatprep.mubr.msk.bf16.mxu1 %vm4613_vm5, %v9920_v25  ;;  %v9937_v39 = vld [vmem:[%s12529_s7 + $0x258] sm:$0xff]  }
 0x4c0   : > { %v5444_v47 = vpop.f32.mrf.mxu0  ;;  %v6356_v61 = vpop.f32.mrf.mxu1 }
 0x4c1   : > { %7166 = vst [vmem:[%s11560_s23 + $0xe0] sm:$0xff] %v5444_v47  ;;  %7394 = vst [vmem:[%s11560_s23 + $0x800] sm:$0xff] %v6356_v61  ;;  %v9942_v61 = vld [vmem:[%s12529_s7 + $0x5e8] sm:$0xff]  }
 0x4c2   : > { %v9151_v37 = vpop.f32.mrf.mxu0  ;;  %v9379_v42 = vpop.f32.mrf.mxu1 }
 0x4c3   : > { %7169 = vst [vmem:[%s11560_s23 + $0xf8] sm:$0xff] %v9151_v37  ;;  %7397 = vst [vmem:[%s11560_s23 + $0x818] sm:$0xff] %v9379_v42  ;;  %v9939_v37 = vld [vmem:[%s12529_s7 + $0x260] sm:$0xff]  }
 0x4c4   : > { %v5447_v50 = vpop.f32.mrf.mxu0  ;;  %v6359_v38 = vpop.f32.mrf.mxu1 }
 0x4c5   : > { %7167 = vst [vmem:[%s11560_s23 + $0xe8] sm:$0xff] %v5447_v50  ;;  %7395 = vst [vmem:[%s11560_s23 + $0x808] sm:$0xff] %v6359_v38 }
 0x4c6   : > { %v9154_v10 = vpop.f32.mrf.mxu0  ;;  %9249 = vmatmul.mubr.msk.bf16.gmra.mxu0 %vm4613_vm5, %v9917_v52  ;;  %v9382_v60 = vpop.f32.mrf.mxu1  ;;  %9477 = vmatmul.mubr.msk.bf16.gmra.mxu1 %vm4613_vm5, %v9922_v43  ;;  %v9944_v52 = vld [vmem:[%s12529_s7 + $0x5f0] sm:$0xff]  }
 0x4c7   : > { %7172 = vst [vmem:[%s11560_s23 + $0x110] sm:$0xff] %v9154_v10  ;;  %9252 = vmatprep.mubr.msk.bf16.mxu0 %vm4613_vm5, %v9919_v6  ;;  %7400 = vst [vmem:[%s11560_s23 + $0x830] sm:$0xff] %v9382_v60  ;;  %9480 = vmatprep.mubr.msk.bf16.mxu1 %vm4613_vm5, %v9924_v23  ;;  %v9941_v60 = vld [vmem:[%s12529_s7 + $0x268] sm:$0xff]  }
 0x4c8   : > { %v5460_v15 = vpop.f32.mrf.mxu0  ;;  %v6372_v13 = vpop.f32.mrf.mxu1 }
 0x4c9   : > { %7170 = vst [vmem:[%s11560_s23 + $0x100] sm:$0xff] %v5460_v15  ;;  %7398 = vst [vmem:[%s11560_s23 + $0x820] sm:$0xff] %v6372_v13  ;;  %v9946_v13 = vld [vmem:[%s12529_s7 + $0x5f8] sm:$0xff]  }
 0x4ca   : > { %v9155_v28 = vpop.f32.mrf.mxu0  ;;  %v9383_v2 = vpop.f32.mrf.mxu1 }
 0x4cb   : > { %7173 = vst [vmem:[%s11560_s23 + $0x118] sm:$0xff] %v9155_v28  ;;  %7401 = vst [vmem:[%s11560_s23 + $0x838] sm:$0xff] %v9383_v2  ;;  %v9943_v28 = vld [vmem:[%s12529_s7 + $0x270] sm:$0xff]  }
 0x4cc   : > { %v5463_v31 = vpop.f32.mrf.mxu0  ;;  %v6375_v51 = vpop.f32.mrf.mxu1 }
 0x4cd   : > { %7171 = vst [vmem:[%s11560_s23 + $0x108] sm:$0xff] %v5463_v31  ;;  %7399 = vst [vmem:[%s11560_s23 + $0x828] sm:$0xff] %v6375_v51 }
 0x4ce   : > { %v9158_v35 = vpop.f32.mrf.mxu0  ;;  %9253 = vmatmul.mubr.msk.bf16.gmra.mxu0 %vm4613_vm5, %v9921_v63  ;;  %v9386_v11 = vpop.f32.mrf.mxu1  ;;  %9481 = vmatmul.mubr.msk.bf16.gmra.mxu1 %vm4613_vm5, %v9926_v46  ;;  %v9948_v63 = vld [vmem:[%s12529_s7 + $0x600] sm:$0xff]  }
 0x4cf   : > { %7176 = vst [vmem:[%s11560_s23 + $0x130] sm:$0xff] %v9158_v35  ;;  %9256 = vmatprep.mubr.msk.bf16.mxu0 %vm4613_vm5, %v9923_v5  ;;  %7404 = vst [vmem:[%s11560_s23 + $0x850] sm:$0xff] %v9386_v11  ;;  %9484 = vmatprep.mubr.msk.bf16.mxu1 %vm4613_vm5, %v9928_v49  ;;  %v9945_v11 = vld [vmem:[%s12529_s7 + $0x278] sm:$0xff]  }
 0x4d0   : > { %v5476_v1 = vpop.f32.mrf.mxu0  ;;  %v6388_v59 = vpop.f32.mrf.mxu1 }
 0x4d1   : > { %7174 = vst [vmem:[%s11560_s23 + $0x120] sm:$0xff] %v5476_v1  ;;  %7402 = vst [vmem:[%s11560_s23 + $0x840] sm:$0xff] %v6388_v59  ;;  %v9950_v59 = vld [vmem:[%s12529_s7 + $0x608] sm:$0xff]  }
 0x4d2   : > { %v9159_v53 = vpop.f32.mrf.mxu0  ;;  %v9387_v62 = vpop.f32.mrf.mxu1 }
 0x4d3   : > { %7177 = vst [vmem:[%s11560_s23 + $0x138] sm:$0xff] %v9159_v53  ;;  %7405 = vst [vmem:[%s11560_s23 + $0x858] sm:$0xff] %v9387_v62  ;;  %v9947_v53 = vld [vmem:[%s12529_s7 + $0x280] sm:$0xff]  }
 0x4d4   : > { %v5479_v24 = vpop.f32.mrf.mxu0  ;;  %v6391_v26 = vpop.f32.mrf.mxu1 }
 0x4d5   : > { %7175 = vst [vmem:[%s11560_s23 + $0x128] sm:$0xff] %v5479_v24  ;;  %7403 = vst [vmem:[%s11560_s23 + $0x848] sm:$0xff] %v6391_v26 }
 0x4d6   : > { %v9162_v34 = vpop.f32.mrf.mxu0  ;;  %9257 = vmatmul.mubr.msk.bf16.gmra.mxu0 %vm4613_vm5, %v9925_v19  ;;  %v9390_v32 = vpop.f32.mrf.mxu1  ;;  %9485 = vmatmul.mubr.msk.bf16.gmra.mxu1 %vm4613_vm5, %v9930_v27  ;;  %v9952_v19 = vld [vmem:[%s12529_s7 + $0x610] sm:$0xff]  }
 0x4d7   : > { %7180 = vst [vmem:[%s11560_s23 + $0x150] sm:$0xff] %v9162_v34  ;;  %9260 = vmatprep.mubr.msk.bf16.mxu0 %vm4613_vm5, %v9927_v22  ;;  %7408 = vst [vmem:[%s11560_s23 + $0x870] sm:$0xff] %v9390_v32  ;;  %9488 = vmatprep.mubr.msk.bf16.mxu1 %vm4613_vm5, %v9932_v4  ;;  %v9949_v32 = vld [vmem:[%s12529_s7 + $0x288] sm:$0xff]  }
 0x4d8   : > { %v5492_v12 = vpop.f32.mrf.mxu0  ;;  %v6404_v48 = vpop.f32.mrf.mxu1 }
 0x4d9   : > { %7178 = vst [vmem:[%s11560_s23 + $0x140] sm:$0xff] %v5492_v12  ;;  %7406 = vst [vmem:[%s11560_s23 + $0x860] sm:$0xff] %v6404_v48  ;;  %v9954_v48 = vld [vmem:[%s12529_s7 + $0x618] sm:$0xff]  }
 0x4da   : > { %v9163_v9 = vpop.f32.mrf.mxu0  ;;  %v9391_v29 = vpop.f32.mrf.mxu1 }
 0x4db   : > { %7181 = vst [vmem:[%s11560_s23 + $0x158] sm:$0xff] %v9163_v9  ;;  %7409 = vst [vmem:[%s11560_s23 + $0x878] sm:$0xff] %v9391_v29  ;;  %v9951_v9 = vld [vmem:[%s12529_s7 + $0x290] sm:$0xff]  }
 0x4dc   : > { %v5495_v7 = vpop.f32.mrf.mxu0  ;;  %v6407_v21 = vpop.f32.mrf.mxu1 }
 0x4dd   : > { %7179 = vst [vmem:[%s11560_s23 + $0x148] sm:$0xff] %v5495_v7  ;;  %7407 = vst [vmem:[%s11560_s23 + $0x868] sm:$0xff] %v6407_v21 }
 0x4de   : > { %v9166_v44 = vpop.f32.mrf.mxu0  ;;  %9261 = vmatmul.mubr.msk.bf16.gmra.mxu0 %vm4613_vm5, %v9929_v3  ;;  %v9394_v30 = vpop.f32.mrf.mxu1  ;;  %9489 = vmatmul.mubr.msk.bf16.gmra.mxu1 %vm4613_vm5, %v9934_v36  ;;  %v9956_v3 = vld [vmem:[%s12529_s7 + $0x620] sm:$0xff]  }
 0x4df   : > { %7184 = vst [vmem:[%s11560_s23 + $0x170] sm:$0xff] %v9166_v44  ;;  %9264 = vmatprep.mubr.msk.bf16.mxu0 %vm4613_vm5, %v9931_v56  ;;  %7412 = vst [vmem:[%s11560_s23 + $0x890] sm:$0xff] %v9394_v30  ;;  %9492 = vmatprep.mubr.msk.bf16.mxu1 %vm4613_vm5, %v9936_v41  ;;  %v9953_v30 = vld [vmem:[%s12529_s7 + $0x298] sm:$0xff]  }
 0x4e0   : > { %v5508_v40 = vpop.f32.mrf.mxu0  ;;  %v6420_v33 = vpop.f32.mrf.mxu1 }
 0x4e1   : > { %7182 = vst [vmem:[%s11560_s23 + $0x160] sm:$0xff] %v5508_v40  ;;  %7410 = vst [vmem:[%s11560_s23 + $0x880] sm:$0xff] %v6420_v33  ;;  %v9958_v33 = vld [vmem:[%s12529_s7 + $0x628] sm:$0xff]  }
 0x4e2   : > { %v9167_v0 = vpop.f32.mrf.mxu0  ;;  %v9395_v8 = vpop.f32.mrf.mxu1 }
 0x4e3   : > { %7185 = vst [vmem:[%s11560_s23 + $0x178] sm:$0xff] %v9167_v0  ;;  %7413 = vst [vmem:[%s11560_s23 + $0x898] sm:$0xff] %v9395_v8  ;;  %v9955_v0 = vld [vmem:[%s12529_s7 + $0x2a0] sm:$0xff]  }
 0x4e4   : > { %v5511_v16 = vpop.f32.mrf.mxu0  ;;  %v6423_v20 = vpop.f32.mrf.mxu1 }
 0x4e5   : > { %7183 = vst [vmem:[%s11560_s23 + $0x168] sm:$0xff] %v5511_v16  ;;  %7411 = vst [vmem:[%s11560_s23 + $0x888] sm:$0xff] %v6423_v20 }
 0x4e6   : > { %v9170_v57 = vpop.f32.mrf.mxu0  ;;  %9265 = vmatmul.mubr.msk.bf16.gmra.mxu0 %vm4613_vm5, %v9933_v18  ;;  %v9398_v25 = vpop.f32.mrf.mxu1  ;;  %9493 = vmatmul.mubr.msk.bf16.gmra.mxu1 %vm4613_vm5, %v9938_v14  ;;  %v9960_v18 = vld [vmem:[%s12529_s7 + $0x630] sm:$0xff]  }
 0x4e7   : > { %7188 = vst [vmem:[%s11560_s23 + $0x190] sm:$0xff] %v9170_v57  ;;  %9268 = vmatprep.mubr.msk.bf16.mxu0 %vm4613_vm5, %v9935_v54  ;;  %7416 = vst [vmem:[%s11560_s23 + $0x8b0] sm:$0xff] %v9398_v25  ;;  %9496 = vmatprep.mubr.msk.bf16.mxu1 %vm4613_vm5, %v9940_v17  ;;  %v9957_v25 = vld [vmem:[%s12529_s7 + $0x2a8] sm:$0xff]  }
 0x4e8   : > { %v5524_v58 = vpop.f32.mrf.mxu0  ;;  %v6436_v45 = vpop.f32.mrf.mxu1 }
 0x4e9   : > { %7186 = vst [vmem:[%s11560_s23 + $0x180] sm:$0xff] %v5524_v58  ;;  %7414 = vst [vmem:[%s11560_s23 + $0x8a0] sm:$0xff] %v6436_v45  ;;  %v9962_v45 = vld [vmem:[%s12529_s7 + $0x638] sm:$0xff]  }
 0x4ea   : > { %v9171_v55 = vpop.f32.mrf.mxu0  ;;  %v9399_v47 = vpop.f32.mrf.mxu1 }
 0x4eb   : > { %7189 = vst [vmem:[%s11560_s23 + $0x198] sm:$0xff] %v9171_v55  ;;  %7417 = vst [vmem:[%s11560_s23 + $0x8b8] sm:$0xff] %v9399_v47  ;;  %v9959_v55 = vld [vmem:[%s12529_s7 + $0x2b0] sm:$0xff]  }
 0x4ec   : > { %v5527_v42 = vpop.f32.mrf.mxu0  ;;  %v6439_v43 = vpop.f32.mrf.mxu1 }
 0x4ed   : > { %7187 = vst [vmem:[%s11560_s23 + $0x188] sm:$0xff] %v5527_v42  ;;  %7415 = vst [vmem:[%s11560_s23 + $0x8a8] sm:$0xff] %v6439_v43 }
 0x4ee   : > { %v9174_v6 = vpop.f32.mrf.mxu0  ;;  %9269 = vmatmul.mubr.msk.bf16.gmra.mxu0 %vm4613_vm5, %v9937_v39  ;;  %v9402_v23 = vpop.f32.mrf.mxu1  ;;  %9497 = vmatmul.mubr.msk.bf16.gmra.mxu1 %vm4613_vm5, %v9942_v61  ;;  %v9964_v39 = vld [vmem:[%s12529_s7 + $0x640] sm:$0xff]  }
 0x4ef   : > { %7192 = vst [vmem:[%s11560_s23 + $0x1b0] sm:$0xff] %v9174_v6  ;;  %9272 = vmatprep.mubr.msk.bf16.mxu0 %vm4613_vm5, %v9939_v37  ;;  %7420 = vst [vmem:[%s11560_s23 + $0x8d0] sm:$0xff] %v9402_v23  ;;  %9500 = vmatprep.mubr.msk.bf16.mxu1 %vm4613_vm5, %v9944_v52  ;;  %v9961_v23 = vld [vmem:[%s12529_s7 + $0x2b8] sm:$0xff]  }
 0x4f0   : > { %v5540_v50 = vpop.f32.mrf.mxu0  ;;  %v6452_v38 = vpop.f32.mrf.mxu1 }
 0x4f1   : > { %7190 = vst [vmem:[%s11560_s23 + $0x1a0] sm:$0xff] %v5540_v50  ;;  %7418 = vst [vmem:[%s11560_s23 + $0x8c0] sm:$0xff] %v6452_v38  ;;  %v9966_v38 = vld [vmem:[%s12529_s7 + $0x648] sm:$0xff]  }
 0x4f2   : > { %v9175_v10 = vpop.f32.mrf.mxu0  ;;  %v9403_v15 = vpop.f32.mrf.mxu1 }
 0x4f3   : > { %7193 = vst [vmem:[%s11560_s23 + $0x1b8] sm:$0xff] %v9175_v10  ;;  %7421 = vst [vmem:[%s11560_s23 + $0x8d8] sm:$0xff] %v9403_v15  ;;  %v9963_v10 = vld [vmem:[%s12529_s7 + $0x2c0] sm:$0xff]  }
 0x4f4   : > { %v5543_v2 = vpop.f32.mrf.mxu0  ;;  %v6455_v46 = vpop.f32.mrf.mxu1 }
 0x4f5   : > { %7191 = vst [vmem:[%s11560_s23 + $0x1a8] sm:$0xff] %v5543_v2  ;;  %7419 = vst [vmem:[%s11560_s23 + $0x8c8] sm:$0xff] %v6455_v46 }
 0x4f6   : > { %v9178_v5 = vpop.f32.mrf.mxu0  ;;  %9273 = vmatmul.mubr.msk.bf16.gmra.mxu0 %vm4613_vm5, %v9941_v60  ;;  %v9406_v49 = vpop.f32.mrf.mxu1  ;;  %9501 = vmatmul.mubr.msk.bf16.gmra.mxu1 %vm4613_vm5, %v9946_v13  ;;  %v9968_v60 = vld [vmem:[%s12529_s7 + $0x650] sm:$0xff]  }
 0x4f7   : > { %7196 = vst [vmem:[%s11560_s23 + $0x1d0] sm:$0xff] %v9178_v5  ;;  %9276 = vmatprep.mubr.msk.bf16.mxu0 %vm4613_vm5, %v9943_v28  ;;  %7424 = vst [vmem:[%s11560_s23 + $0x8f0] sm:$0xff] %v9406_v49  ;;  %9504 = vmatprep.mubr.msk.bf16.mxu1 %vm4613_vm5, %v9948_v63  ;;  %v9965_v49 = vld [vmem:[%s12529_s7 + $0x2c8] sm:$0xff]  }
 0x4f8   : > { %v5556_v31 = vpop.f32.mrf.mxu0  ;;  %v6468_v51 = vpop.f32.mrf.mxu1 }
 0x4f9   : > { %7194 = vst [vmem:[%s11560_s23 + $0x1c0] sm:$0xff] %v5556_v31  ;;  %7422 = vst [vmem:[%s11560_s23 + $0x8e0] sm:$0xff] %v6468_v51  ;;  %v9970_v51 = vld [vmem:[%s12529_s7 + $0x658] sm:$0xff]  }
 0x4fa   : > { %v9179_v35 = vpop.f32.mrf.mxu0  ;;  %v9407_v1 = vpop.f32.mrf.mxu1 }
 0x4fb   : > { %7197 = vst [vmem:[%s11560_s23 + $0x1d8] sm:$0xff] %v9179_v35  ;;  %7425 = vst [vmem:[%s11560_s23 + $0x8f8] sm:$0xff] %v9407_v1  ;;  %v9967_v35 = vld [vmem:[%s12529_s7 + $0x2d0] sm:$0xff]  }
 0x4fc   : > { %v5559_v62 = vpop.f32.mrf.mxu0  ;;  %v6471_v27 = vpop.f32.mrf.mxu1 }
 0x4fd   : > { %7195 = vst [vmem:[%s11560_s23 + $0x1c8] sm:$0xff] %v5559_v62  ;;  %7423 = vst [vmem:[%s11560_s23 + $0x8e8] sm:$0xff] %v6471_v27 }
 0x4fe   : > { %v9182_v22 = vpop.f32.mrf.mxu0  ;;  %9277 = vmatmul.mubr.msk.bf16.gmra.mxu0 %vm4613_vm5, %v9945_v11  ;;  %v9410_v4 = vpop.f32.mrf.mxu1  ;;  %9505 = vmatmul.mubr.msk.bf16.gmra.mxu1 %vm4613_vm5, %v9950_v59  ;;  %v9972_v11 = vld [vmem:[%s12529_s7 + $0x660] sm:$0xff]  }
 0x4ff   : > { %7200 = vst [vmem:[%s11560_s23 + $0x1f0] sm:$0xff] %v9182_v22  ;;  %9280 = vmatprep.mubr.msk.bf16.mxu0 %vm4613_vm5, %v9947_v53  ;;  %7428 = vst [vmem:[%s11560_s23 + $0x910] sm:$0xff] %v9410_v4  ;;  %9508 = vmatprep.mubr.msk.bf16.mxu1 %vm4613_vm5, %v9952_v19  ;;  %v9969_v4 = vld [vmem:[%s12529_s7 + $0x2d8] sm:$0xff]  }
 0x500   : > { %v5572_v24 = vpop.f32.mrf.mxu0  ;;  %v6484_v26 = vpop.f32.mrf.mxu1 }
 0x501   : > { %7198 = vst [vmem:[%s11560_s23 + $0x1e0] sm:$0xff] %v5572_v24  ;;  %7426 = vst [vmem:[%s11560_s23 + $0x900] sm:$0xff] %v6484_v26  ;;  %v9974_v26 = vld [vmem:[%s12529_s7 + $0x668] sm:$0xff]  }
 0x502   : > { %v9183_v34 = vpop.f32.mrf.mxu0  ;;  %v9411_v12 = vpop.f32.mrf.mxu1 }
 0x503   : > { %7201 = vst [vmem:[%s11560_s23 + $0x1f8] sm:$0xff] %v9183_v34  ;;  %7429 = vst [vmem:[%s11560_s23 + $0x918] sm:$0xff] %v9411_v12  ;;  %v9971_v34 = vld [vmem:[%s12529_s7 + $0x2e0] sm:$0xff]  }
 0x504   : > { %v5575_v29 = vpop.f32.mrf.mxu0  ;;  %v6487_v36 = vpop.f32.mrf.mxu1 }
 0x505   : > { %7199 = vst [vmem:[%s11560_s23 + $0x1e8] sm:$0xff] %v5575_v29  ;;  %7427 = vst [vmem:[%s11560_s23 + $0x908] sm:$0xff] %v6487_v36 }
 0x506   : > { %v9186_v56 = vpop.f32.mrf.mxu0  ;;  %9281 = vmatmul.mubr.msk.bf16.gmra.mxu0 %vm4613_vm5, %v9949_v32  ;;  %v9414_v41 = vpop.f32.mrf.mxu1  ;;  %9509 = vmatmul.mubr.msk.bf16.gmra.mxu1 %vm4613_vm5, %v9954_v48  ;;  %v9976_v32 = vld [vmem:[%s12529_s7 + $0x670] sm:$0xff]  }
 0x507   : > { %7204 = vst [vmem:[%s11560_s23 + $0x210] sm:$0xff] %v9186_v56  ;;  %9284 = vmatprep.mubr.msk.bf16.mxu0 %vm4613_vm5, %v9951_v9  ;;  %7432 = vst [vmem:[%s11560_s23 + $0x930] sm:$0xff] %v9414_v41  ;;  %9512 = vmatprep.mubr.msk.bf16.mxu1 %vm4613_vm5, %v9956_v3  ;;  %v9973_v41 = vld [vmem:[%s12529_s7 + $0x2e8] sm:$0xff]  }
 0x508   : > { %v5588_v7 = vpop.f32.mrf.mxu0  ;;  %v6500_v21 = vpop.f32.mrf.mxu1 }
 0x509   : > { %7202 = vst [vmem:[%s11560_s23 + $0x200] sm:$0xff] %v5588_v7  ;;  %7430 = vst [vmem:[%s11560_s23 + $0x920] sm:$0xff] %v6500_v21  ;;  %v9978_v21 = vld [vmem:[%s12529_s7 + $0x678] sm:$0xff]  }
 0x50a   : > { %v9187_v44 = vpop.f32.mrf.mxu0  ;;  %v9415_v40 = vpop.f32.mrf.mxu1 }
 0x50b   : > { %7205 = vst [vmem:[%s11560_s23 + $0x218] sm:$0xff] %v9187_v44  ;;  %7433 = vst [vmem:[%s11560_s23 + $0x938] sm:$0xff] %v9415_v40  ;;  %v9975_v44 = vld [vmem:[%s12529_s7 + $0x2f0] sm:$0xff]  }
 0x50c   : > { %v5591_v8 = vpop.f32.mrf.mxu0  ;;  %v6503_v14 = vpop.f32.mrf.mxu1 }
 0x50d   : > { %7203 = vst [vmem:[%s11560_s23 + $0x208] sm:$0xff] %v5591_v8  ;;  %7431 = vst [vmem:[%s11560_s23 + $0x928] sm:$0xff] %v6503_v14 }
 0x50e   : > { %v9190_v54 = vpop.f32.mrf.mxu0  ;;  %9285 = vmatmul.mubr.msk.bf16.gmra.mxu0 %vm4613_vm5, %v9953_v30  ;;  %v9418_v17 = vpop.f32.mrf.mxu1  ;;  %9513 = vmatmul.mubr.msk.bf16.gmra.mxu1 %vm4613_vm5, %v9958_v33  ;;  %v9980_v30 = vld [vmem:[%s12529_s7 + $0x680] sm:$0xff]  }
 0x50f   : > { %7208 = vst [vmem:[%s11560_s23 + $0x230] sm:$0xff] %v9190_v54  ;;  %9288 = vmatprep.mubr.msk.bf16.mxu0 %vm4613_vm5, %v9955_v0  ;;  %7436 = vst [vmem:[%s11560_s23 + $0x950] sm:$0xff] %v9418_v17  ;;  %9516 = vmatprep.mubr.msk.bf16.mxu1 %vm4613_vm5, %v9960_v18  ;;  %v9977_v17 = vld [vmem:[%s12529_s7 + $0x2f8] sm:$0xff]  }
 0x510   : > { %v5604_v16 = vpop.f32.mrf.mxu0  ;;  %v6516_v20 = vpop.f32.mrf.mxu1 }
 0x511   : > { %7206 = vst [vmem:[%s11560_s23 + $0x220] sm:$0xff] %v5604_v16  ;;  %7434 = vst [vmem:[%s11560_s23 + $0x940] sm:$0xff] %v6516_v20  ;;  %v9982_v20 = vld [vmem:[%s12529_s7 + $0x688] sm:$0xff]  }
 0x512   : > { %v9191_v57 = vpop.f32.mrf.mxu0  ;;  %v9419_v58 = vpop.f32.mrf.mxu1 }
 0x513   : > { %7209 = vst [vmem:[%s11560_s23 + $0x238] sm:$0xff] %v9191_v57  ;;  %7437 = vst [vmem:[%s11560_s23 + $0x958] sm:$0xff] %v9419_v58  ;;  %v9979_v57 = vld [vmem:[%s12529_s7 + $0x300] sm:$0xff]  }
 0x514   : > { %v5607_v47 = vpop.f32.mrf.mxu0  ;;  %v6519_v61 = vpop.f32.mrf.mxu1 }
 0x515   : > { %7207 = vst [vmem:[%s11560_s23 + $0x228] sm:$0xff] %v5607_v47  ;;  %7435 = vst [vmem:[%s11560_s23 + $0x948] sm:$0xff] %v6519_v61 }
 0x516   : > { %v9194_v37 = vpop.f32.mrf.mxu0  ;;  %9289 = vmatmul.mubr.msk.bf16.gmra.mxu0 %vm4613_vm5, %v9957_v25  ;;  %v9422_v52 = vpop.f32.mrf.mxu1  ;;  %9517 = vmatmul.mubr.msk.bf16.gmra.mxu1 %vm4613_vm5, %v9962_v45  ;;  %v9984_v25 = vld [vmem:[%s12529_s7 + $0x690] sm:$0xff]  }
 0x517   : > { %7212 = vst [vmem:[%s11560_s23 + $0x250] sm:$0xff] %v9194_v37  ;;  %9292 = vmatprep.mubr.msk.bf16.mxu0 %vm4613_vm5, %v9959_v55  ;;  %7440 = vst [vmem:[%s11560_s23 + $0x970] sm:$0xff] %v9422_v52  ;;  %9520 = vmatprep.mubr.msk.bf16.mxu1 %vm4613_vm5, %v9964_v39  ;;  %v9981_v52 = vld [vmem:[%s12529_s7 + $0x308] sm:$0xff]  }
 0x518   : > { %v5620_v42 = vpop.f32.mrf.mxu0  ;;  %v6532_v43 = vpop.f32.mrf.mxu1 }
 0x519   : > { %7210 = vst [vmem:[%s11560_s23 + $0x240] sm:$0xff] %v5620_v42  ;;  %7438 = vst [vmem:[%s11560_s23 + $0x960] sm:$0xff] %v6532_v43  ;;  %v9986_v43 = vld [vmem:[%s12529_s7 + $0x698] sm:$0xff]  }
 0x51a   : > { %v9195_v6 = vpop.f32.mrf.mxu0  ;;  %v9423_v50 = vpop.f32.mrf.mxu1 }
 0x51b   : > { %7213 = vst [vmem:[%s11560_s23 + $0x258] sm:$0xff] %v9195_v6  ;;  %7441 = vst [vmem:[%s11560_s23 + $0x978] sm:$0xff] %v9423_v50  ;;  %v9983_v6 = vld [vmem:[%s12529_s7 + $0x310] sm:$0xff]  }
 0x51c   : > { %v5623_v15 = vpop.f32.mrf.mxu0  ;;  %v6535_v13 = vpop.f32.mrf.mxu1 }
 0x51d   : > { %7211 = vst [vmem:[%s11560_s23 + $0x248] sm:$0xff] %v5623_v15  ;;  %7439 = vst [vmem:[%s11560_s23 + $0x968] sm:$0xff] %v6535_v13 }
 0x51e   : > { %v9198_v28 = vpop.f32.mrf.mxu0  ;;  %9293 = vmatmul.mubr.msk.bf16.gmra.mxu0 %vm4613_vm5, %v9961_v23  ;;  %v9426_v63 = vpop.f32.mrf.mxu1  ;;  %9521 = vmatmul.mubr.msk.bf16.gmra.mxu1 %vm4613_vm5, %v9966_v38  ;;  %v9988_v23 = vld [vmem:[%s12529_s7 + $0x6a0] sm:$0xff]  }
 0x51f   : > { %7216 = vst [vmem:[%s11560_s23 + $0x270] sm:$0xff] %v9198_v28  ;;  %9296 = vmatprep.mubr.msk.bf16.mxu0 %vm4613_vm5, %v9963_v10  ;;  %7444 = vst [vmem:[%s11560_s23 + $0x990] sm:$0xff] %v9426_v63  ;;  %9524 = vmatprep.mubr.msk.bf16.mxu1 %vm4613_vm5, %v9968_v60  ;;  %v9985_v63 = vld [vmem:[%s12529_s7 + $0x318] sm:$0xff]  }
 0x520   : > { %v5636_v2 = vpop.f32.mrf.mxu0  ;;  %v6548_v46 = vpop.f32.mrf.mxu1 }
 0x521   : > { %7214 = vst [vmem:[%s11560_s23 + $0x260] sm:$0xff] %v5636_v2  ;;  %7442 = vst [vmem:[%s11560_s23 + $0x980] sm:$0xff] %v6548_v46  ;;  %v9990_v46 = vld [vmem:[%s12529_s7 + $0x6a8] sm:$0xff]  }
 0x522   : > { %v9199_v5 = vpop.f32.mrf.mxu0  ;;  %v9427_v31 = vpop.f32.mrf.mxu1 }
 0x523   : > { %7217 = vst [vmem:[%s11560_s23 + $0x278] sm:$0xff] %v9199_v5  ;;  %7445 = vst [vmem:[%s11560_s23 + $0x998] sm:$0xff] %v9427_v31  ;;  %v9987_v5 = vld [vmem:[%s12529_s7 + $0x320] sm:$0xff]  }
 0x524   : > { %v5639_v1 = vpop.f32.mrf.mxu0  ;;  %v6551_v59 = vpop.f32.mrf.mxu1 }
 0x525   : > { %7215 = vst [vmem:[%s11560_s23 + $0x268] sm:$0xff] %v5639_v1  ;;  %7443 = vst [vmem:[%s11560_s23 + $0x988] sm:$0xff] %v6551_v59 }
 0x526   : > { %v9202_v53 = vpop.f32.mrf.mxu0  ;;  %9297 = vmatmul.mubr.msk.bf16.gmra.mxu0 %vm4613_vm5, %v9965_v49  ;;  %v9430_v19 = vpop.f32.mrf.mxu1  ;;  %9525 = vmatmul.mubr.msk.bf16.gmra.mxu1 %vm4613_vm5, %v9970_v51  ;;  %v9992_v49 = vld [vmem:[%s12529_s7 + $0x6b0] sm:$0xff]  }
 0x527   : > { %7220 = vst [vmem:[%s11560_s23 + $0x290] sm:$0xff] %v9202_v53  ;;  %9300 = vmatprep.mubr.msk.bf16.mxu0 %vm4613_vm5, %v9967_v35  ;;  %7448 = vst [vmem:[%s11560_s23 + $0x9b0] sm:$0xff] %v9430_v19  ;;  %9528 = vmatprep.mubr.msk.bf16.mxu1 %vm4613_vm5, %v9972_v11  ;;  %v9989_v19 = vld [vmem:[%s12529_s7 + $0x328] sm:$0xff]  }
 0x528   : > { %v5652_v62 = vpop.f32.mrf.mxu0  ;;  %v6564_v27 = vpop.f32.mrf.mxu1 }
 0x529   : > { %7218 = vst [vmem:[%s11560_s23 + $0x280] sm:$0xff] %v5652_v62  ;;  %7446 = vst [vmem:[%s11560_s23 + $0x9a0] sm:$0xff] %v6564_v27  ;;  %v9994_v27 = vld [vmem:[%s12529_s7 + $0x6b8] sm:$0xff]  }
 0x52a   : > { %v9203_v22 = vpop.f32.mrf.mxu0  ;;  %v9431_v24 = vpop.f32.mrf.mxu1 }
 0x52b   : > { %7221 = vst [vmem:[%s11560_s23 + $0x298] sm:$0xff] %v9203_v22  ;;  %7449 = vst [vmem:[%s11560_s23 + $0x9b8] sm:$0xff] %v9431_v24  ;;  %v9991_v22 = vld [vmem:[%s12529_s7 + $0x330] sm:$0xff]  }
 0x52c   : > { %v5655_v12 = vpop.f32.mrf.mxu0  ;;  %v6567_v48 = vpop.f32.mrf.mxu1 }
 0x52d   : > { %7219 = vst [vmem:[%s11560_s23 + $0x288] sm:$0xff] %v5655_v12  ;;  %7447 = vst [vmem:[%s11560_s23 + $0x9a8] sm:$0xff] %v6567_v48 }
 0x52e   : > { %v9206_v9 = vpop.f32.mrf.mxu0  ;;  %9301 = vmatmul.mubr.msk.bf16.gmra.mxu0 %vm4613_vm5, %v9969_v4  ;;  %v9434_v3 = vpop.f32.mrf.mxu1  ;;  %9529 = vmatmul.mubr.msk.bf16.gmra.mxu1 %vm4613_vm5, %v9974_v26  ;;  %v9996_v4 = vld [vmem:[%s12529_s7 + $0x6c0] sm:$0xff]  }
 0x52f   : > { %7224 = vst [vmem:[%s11560_s23 + $0x2b0] sm:$0xff] %v9206_v9  ;;  %9304 = vmatprep.mubr.msk.bf16.mxu0 %vm4613_vm5, %v9971_v34  ;;  %7452 = vst [vmem:[%s11560_s23 + $0x9d0] sm:$0xff] %v9434_v3  ;;  %9532 = vmatprep.mubr.msk.bf16.mxu1 %vm4613_vm5, %v9976_v32  ;;  %v9993_v3 = vld [vmem:[%s12529_s7 + $0x338] sm:$0xff]  }
 0x530   : > { %v5668_v29 = vpop.f32.mrf.mxu0  ;;  %v6580_v36 = vpop.f32.mrf.mxu1 }
 0x531   : > { %7222 = vst [vmem:[%s11560_s23 + $0x2a0] sm:$0xff] %v5668_v29  ;;  %7450 = vst [vmem:[%s11560_s23 + $0x9c0] sm:$0xff] %v6580_v36  ;;  %v9998_v36 = vld [vmem:[%s12529_s7 + $0x6c8] sm:$0xff]  }
 0x532   : > { %v9207_v56 = vpop.f32.mrf.mxu0  ;;  %v9435_v7 = vpop.f32.mrf.mxu1 }
 0x533   : > { %7225 = vst [vmem:[%s11560_s23 + $0x2b8] sm:$0xff] %v9207_v56  ;;  %7453 = vst [vmem:[%s11560_s23 + $0x9d8] sm:$0xff] %v9435_v7  ;;  %v9995_v56 = vld [vmem:[%s12529_s7 + $0x340] sm:$0xff]  }
 0x534   : > { %v5671_v40 = vpop.f32.mrf.mxu0  ;;  %v6583_v33 = vpop.f32.mrf.mxu1 }
 0x535   : > { %7223 = vst [vmem:[%s11560_s23 + $0x2a8] sm:$0xff] %v5671_v40  ;;  %7451 = vst [vmem:[%s11560_s23 + $0x9c8] sm:$0xff] %v6583_v33 }
 0x536   : > { %v9210_v0 = vpop.f32.mrf.mxu0  ;;  %9305 = vmatmul.mubr.msk.bf16.gmra.mxu0 %vm4613_vm5, %v9973_v41  ;;  %v9438_v18 = vpop.f32.mrf.mxu1  ;;  %9533 = vmatmul.mubr.msk.bf16.gmra.mxu1 %vm4613_vm5, %v9978_v21  ;;  %v10000_v41 = vld [vmem:[%s12529_s7 + $0x6d0] sm:$0xff]  }
 0x537   : > { %7228 = vst [vmem:[%s11560_s23 + $0x2d0] sm:$0xff] %v9210_v0  ;;  %9308 = vmatprep.mubr.msk.bf16.mxu0 %vm4613_vm5, %v9975_v44  ;;  %7456 = vst [vmem:[%s11560_s23 + $0x9f0] sm:$0xff] %v9438_v18  ;;  %9536 = vmatprep.mubr.msk.bf16.mxu1 %vm4613_vm5, %v9980_v30  ;;  %v9997_v18 = vld [vmem:[%s12529_s7 + $0x348] sm:$0xff]  }
 0x538   : > { %v5684_v8 = vpop.f32.mrf.mxu0  ;;  %v6596_v14 = vpop.f32.mrf.mxu1 }
 0x539   : > { %7226 = vst [vmem:[%s11560_s23 + $0x2c0] sm:$0xff] %v5684_v8  ;;  %7454 = vst [vmem:[%s11560_s23 + $0x9e0] sm:$0xff] %v6596_v14  ;;  %v10002_v14 = vld [vmem:[%s12529_s7 + $0x6d8] sm:$0xff]  }
 0x53a   : > { %v9211_v54 = vpop.f32.mrf.mxu0  ;;  %v9439_v16 = vpop.f32.mrf.mxu1 }
 0x53b   : > { %7229 = vst [vmem:[%s11560_s23 + $0x2d8] sm:$0xff] %v9211_v54  ;;  %7457 = vst [vmem:[%s11560_s23 + $0x9f8] sm:$0xff] %v9439_v16  ;;  %v9999_v54 = vld [vmem:[%s12529_s7 + $0x350] sm:$0xff]  }
 0x53c   : > { %v5687_v58 = vpop.f32.mrf.mxu0  ;;  %v6599_v45 = vpop.f32.mrf.mxu1 }
 0x53d   : > { %7227 = vst [vmem:[%s11560_s23 + $0x2c8] sm:$0xff] %v5687_v58  ;;  %7455 = vst [vmem:[%s11560_s23 + $0x9e8] sm:$0xff] %v6599_v45 }
 0x53e   : > { %v9214_v55 = vpop.f32.mrf.mxu0  ;;  %9309 = vmatmul.mubr.msk.bf16.gmra.mxu0 %vm4613_vm5, %v9977_v17  ;;  %v9442_v39 = vpop.f32.mrf.mxu1  ;;  %9537 = vmatmul.mubr.msk.bf16.gmra.mxu1 %vm4613_vm5, %v9982_v20  ;;  %v10004_v17 = vld [vmem:[%s12529_s7 + $0x6e0] sm:$0xff]  }
 0x53f   : > { %7232 = vst [vmem:[%s11560_s23 + $0x2f0] sm:$0xff] %v9214_v55  ;;  %9312 = vmatprep.mubr.msk.bf16.mxu0 %vm4613_vm5, %v9979_v57  ;;  %7460 = vst [vmem:[%s11560_s23 + $0xa10] sm:$0xff] %v9442_v39  ;;  %9540 = vmatprep.mubr.msk.bf16.mxu1 %vm4613_vm5, %v9984_v25  ;;  %v10001_v39 = vld [vmem:[%s12529_s7 + $0x358] sm:$0xff]  }
 0x540   : > { %v5700_v47 = vpop.f32.mrf.mxu0  ;;  %v6612_v61 = vpop.f32.mrf.mxu1 }
 0x541   : > { %7230 = vst [vmem:[%s11560_s23 + $0x2e0] sm:$0xff] %v5700_v47  ;;  %7458 = vst [vmem:[%s11560_s23 + $0xa00] sm:$0xff] %v6612_v61  ;;  %v10006_v61 = vld [vmem:[%s12529_s7 + $0x6e8] sm:$0xff]  }
 0x542   : > { %v9215_v37 = vpop.f32.mrf.mxu0  ;;  %v9443_v42 = vpop.f32.mrf.mxu1 }
 0x543   : > { %7233 = vst [vmem:[%s11560_s23 + $0x2f8] sm:$0xff] %v9215_v37  ;;  %7461 = vst [vmem:[%s11560_s23 + $0xa18] sm:$0xff] %v9443_v42  ;;  %v10003_v37 = vld [vmem:[%s12529_s7 + $0x360] sm:$0xff]  }
 0x544   : > { %v5703_v50 = vpop.f32.mrf.mxu0  ;;  %v6615_v38 = vpop.f32.mrf.mxu1 }
 0x545   : > { %7231 = vst [vmem:[%s11560_s23 + $0x2e8] sm:$0xff] %v5703_v50  ;;  %7459 = vst [vmem:[%s11560_s23 + $0xa08] sm:$0xff] %v6615_v38 }
 0x546   : > { %v9218_v10 = vpop.f32.mrf.mxu0  ;;  %9313 = vmatmul.mubr.msk.bf16.gmra.mxu0 %vm4613_vm5, %v9981_v52  ;;  %v9446_v60 = vpop.f32.mrf.mxu1  ;;  %9541 = vmatmul.mubr.msk.bf16.gmra.mxu1 %vm4613_vm5, %v9986_v43  ;;  %v10008_v52 = vld [vmem:[%s12529_s7 + $0x6f0] sm:$0xff]  }
 0x547   : > { %7236 = vst [vmem:[%s11560_s23 + $0x310] sm:$0xff] %v9218_v10  ;;  %9316 = vmatprep.mubr.msk.bf16.mxu0 %vm4613_vm5, %v9983_v6  ;;  %7464 = vst [vmem:[%s11560_s23 + $0xa30] sm:$0xff] %v9446_v60  ;;  %9544 = vmatprep.mubr.msk.bf16.mxu1 %vm4613_vm5, %v9988_v23  ;;  %v10005_v60 = vld [vmem:[%s12529_s7 + $0x368] sm:$0xff]  }
 0x548   : > { %v5716_v15 = vpop.f32.mrf.mxu0  ;;  %v6628_v13 = vpop.f32.mrf.mxu1 }
 0x549   : > { %7234 = vst [vmem:[%s11560_s23 + $0x300] sm:$0xff] %v5716_v15  ;;  %7462 = vst [vmem:[%s11560_s23 + $0xa20] sm:$0xff] %v6628_v13  ;;  %v10010_v13 = vld [vmem:[%s12529_s7 + $0x6f8] sm:$0xff]  }
 0x54a   : > { %v9219_v28 = vpop.f32.mrf.mxu0  ;;  %v9447_v2 = vpop.f32.mrf.mxu1 }
 0x54b   : > { %7237 = vst [vmem:[%s11560_s23 + $0x318] sm:$0xff] %v9219_v28  ;;  %7465 = vst [vmem:[%s11560_s23 + $0xa38] sm:$0xff] %v9447_v2  ;;  %v10007_v28 = vld [vmem:[%s12529_s7 + $0x370] sm:$0xff]  }
 0x54c   : > { %v5719_v31 = vpop.f32.mrf.mxu0  ;;  %v6631_v51 = vpop.f32.mrf.mxu1 }
 0x54d   : > { %7235 = vst [vmem:[%s11560_s23 + $0x308] sm:$0xff] %v5719_v31  ;;  %7463 = vst [vmem:[%s11560_s23 + $0xa28] sm:$0xff] %v6631_v51 }
 0x54e   : > { %v9222_v35 = vpop.f32.mrf.mxu0  ;;  %9317 = vmatmul.mubr.msk.bf16.gmra.mxu0 %vm4613_vm5, %v9985_v63  ;;  %v9450_v11 = vpop.f32.mrf.mxu1  ;;  %9545 = vmatmul.mubr.msk.bf16.gmra.mxu1 %vm4613_vm5, %v9990_v46  ;;  %v10012_v63 = vld [vmem:[%s12529_s7 + $0x700] sm:$0xff]  }
 0x54f   : > { %7240 = vst [vmem:[%s11560_s23 + $0x330] sm:$0xff] %v9222_v35  ;;  %9320 = vmatprep.mubr.msk.bf16.mxu0 %vm4613_vm5, %v9987_v5  ;;  %7468 = vst [vmem:[%s11560_s23 + $0xa50] sm:$0xff] %v9450_v11  ;;  %9548 = vmatprep.mubr.msk.bf16.mxu1 %vm4613_vm5, %v9992_v49  ;;  %v10009_v11 = vld [vmem:[%s12529_s7 + $0x378] sm:$0xff]  }
 0x550   : > { %v5732_v1 = vpop.f32.mrf.mxu0  ;;  %v6644_v59 = vpop.f32.mrf.mxu1 }
 0x551   : > { %7238 = vst [vmem:[%s11560_s23 + $0x320] sm:$0xff] %v5732_v1  ;;  %7466 = vst [vmem:[%s11560_s23 + $0xa40] sm:$0xff] %v6644_v59  ;;  %v10014_v59 = vld [vmem:[%s12529_s7 + $0x708] ss:$0 sps:$4 sm:$0x77]  }
 0x552   : > { %v9223_v53 = vpop.f32.mrf.mxu0  ;;  %v9451_v62 = vpop.f32.mrf.mxu1 }
 0x553   : > { %7241 = vst [vmem:[%s11560_s23 + $0x338] sm:$0xff] %v9223_v53  ;;  %7469 = vst [vmem:[%s11560_s23 + $0xa58] sm:$0xff] %v9451_v62  ;;  %v10011_v53 = vld [vmem:[%s12529_s7 + $0x380] sm:$0xff]  }
 0x554   : > { %v5735_v24 = vpop.f32.mrf.mxu0  ;;  %v6647_v26 = vpop.f32.mrf.mxu1 }
 0x555   : > { %7239 = vst [vmem:[%s11560_s23 + $0x328] sm:$0xff] %v5735_v24  ;;  %7467 = vst [vmem:[%s11560_s23 + $0xa48] sm:$0xff] %v6647_v26 }
 0x556   : > { %v9226_v34 = vpop.f32.mrf.mxu0  ;;  %9321 = vmatmul.mubr.msk.bf16.gmra.mxu0 %vm4613_vm5, %v9989_v19  ;;  %v9454_v32 = vpop.f32.mrf.mxu1  ;;  %9549 = vmatmul.mubr.msk.bf16.gmra.mxu1 %vm4613_vm5, %v9994_v27 }
 0x557   : > { %7244 = vst [vmem:[%s11560_s23 + $0x350] sm:$0xff] %v9226_v34  ;;  %9324 = vmatprep.mubr.msk.bf16.mxu0 %vm4613_vm5, %v9991_v22  ;;  %7472 = vst [vmem:[%s11560_s23 + $0xa70] sm:$0xff] %v9454_v32  ;;  %9552 = vmatprep.mubr.msk.bf16.mxu1 %vm4613_vm5, %v9996_v4  ;;  %v10013_v34 = vld [vmem:[%s12529_s7 + $0x388] sm:$0xff]  }
 0x558   : > { %v5748_v12 = vpop.f32.mrf.mxu0  ;;  %v6660_v48 = vpop.f32.mrf.mxu1 }
 0x559   : > { %7242 = vst [vmem:[%s11560_s23 + $0x340] sm:$0xff] %v5748_v12  ;;  %7470 = vst [vmem:[%s11560_s23 + $0xa60] sm:$0xff] %v6660_v48 }
 0x55a   : > { %v9227_v9 = vpop.f32.mrf.mxu0  ;;  %v9455_v29 = vpop.f32.mrf.mxu1 }
 0x55b   : > { %7245 = vst [vmem:[%s11560_s23 + $0x358] sm:$0xff] %v9227_v9  ;;  %7473 = vst [vmem:[%s11560_s23 + $0xa78] sm:$0xff] %v9455_v29 }
 0x55c   : > { %v5751_v7 = vpop.f32.mrf.mxu0  ;;  %v6663_v21 = vpop.f32.mrf.mxu1 }
 0x55d   : > { %7243 = vst [vmem:[%s11560_s23 + $0x348] sm:$0xff] %v5751_v7  ;;  %7471 = vst [vmem:[%s11560_s23 + $0xa68] sm:$0xff] %v6663_v21 }
 0x55e   : > { %v9230_v44 = vpop.f32.mrf.mxu0  ;;  %9325 = vmatmul.mubr.msk.bf16.gmra.mxu0 %vm4613_vm5, %v9993_v3  ;;  %v9458_v30 = vpop.f32.mrf.mxu1  ;;  %9553 = vmatmul.mubr.msk.bf16.gmra.mxu1 %vm4613_vm5, %v9998_v36 }
 0x55f   : > { %7248 = vst [vmem:[%s11560_s23 + $0x370] sm:$0xff] %v9230_v44  ;;  %9328 = vmatprep.mubr.msk.bf16.mxu0 %vm4613_vm5, %v9995_v56  ;;  %7476 = vst [vmem:[%s11560_s23 + $0xa90] sm:$0xff] %v9458_v30  ;;  %9556 = vmatprep.mubr.msk.bf16.mxu1 %vm4613_vm5, %v10000_v41 }
 0x560   : > { %v5764_v40 = vpop.f32.mrf.mxu0  ;;  %v6676_v33 = vpop.f32.mrf.mxu1 }
 0x561   : > { %7246 = vst [vmem:[%s11560_s23 + $0x360] sm:$0xff] %v5764_v40  ;;  %7474 = vst [vmem:[%s11560_s23 + $0xa80] sm:$0xff] %v6676_v33 }
 0x562   : > { %v9231_v0 = vpop.f32.mrf.mxu0  ;;  %v9459_v8 = vpop.f32.mrf.mxu1 }
 0x563   : > { %7249 = vst [vmem:[%s11560_s23 + $0x378] sm:$0xff] %v9231_v0  ;;  %7477 = vst [vmem:[%s11560_s23 + $0xa98] sm:$0xff] %v9459_v8 }
 0x564   : > { %v5767_v16 = vpop.f32.mrf.mxu0  ;;  %v6679_v20 = vpop.f32.mrf.mxu1 }
 0x565   : > { %7247 = vst [vmem:[%s11560_s23 + $0x368] sm:$0xff] %v5767_v16  ;;  %7475 = vst [vmem:[%s11560_s23 + $0xa88] sm:$0xff] %v6679_v20 }
 0x566   : > { %v9234_v57 = vpop.f32.mrf.mxu0  ;;  %9329 = vmatmul.mubr.msk.bf16.gmra.mxu0 %vm4613_vm5, %v9997_v18  ;;  %v9462_v25 = vpop.f32.mrf.mxu1  ;;  %9557 = vmatmul.mubr.msk.bf16.gmra.mxu1 %vm4613_vm5, %v10002_v14 }
 0x567   : > { %7252 = vst [vmem:[%s11560_s23 + $0x390] sm:$0xff] %v9234_v57  ;;  %9332 = vmatprep.mubr.msk.bf16.mxu0 %vm4613_vm5, %v9999_v54  ;;  %7480 = vst [vmem:[%s11560_s23 + $0xab0] sm:$0xff] %v9462_v25  ;;  %9560 = vmatprep.mubr.msk.bf16.mxu1 %vm4613_vm5, %v10004_v17 }
 0x568   : > { %v5780_v58 = vpop.f32.mrf.mxu0  ;;  %v6692_v45 = vpop.f32.mrf.mxu1 }
 0x569   : > { %7250 = vst [vmem:[%s11560_s23 + $0x380] sm:$0xff] %v5780_v58  ;;  %7478 = vst [vmem:[%s11560_s23 + $0xaa0] sm:$0xff] %v6692_v45 }
 0x56a   : > { %v9235_v55 = vpop.f32.mrf.mxu0  ;;  %v9463_v47 = vpop.f32.mrf.mxu1 }
 0x56b   : > { %7253 = vst [vmem:[%s11560_s23 + $0x398] sm:$0xff] %v9235_v55  ;;  %7481 = vst [vmem:[%s11560_s23 + $0xab8] sm:$0xff] %v9463_v47 }
 0x56c   : > { %v5783_v42 = vpop.f32.mrf.mxu0  ;;  %v6695_v43 = vpop.f32.mrf.mxu1 }
 0x56d   : > { %7251 = vst [vmem:[%s11560_s23 + $0x388] sm:$0xff] %v5783_v42  ;;  %7479 = vst [vmem:[%s11560_s23 + $0xaa8] sm:$0xff] %v6695_v43 }
 0x56e   : > { %v9238_v6 = vpop.f32.mrf.mxu0  ;;  %9333 = vmatmul.mubr.msk.bf16.gmra.mxu0 %vm4613_vm5, %v10001_v39  ;;  %v9466_v23 = vpop.f32.mrf.mxu1  ;;  %9561 = vmatmul.mubr.msk.bf16.gmra.mxu1 %vm4613_vm5, %v10006_v61 }
 0x56f   : > { %7256 = vst [vmem:[%s11560_s23 + $0x3b0] sm:$0xff] %v9238_v6  ;;  %9336 = vmatprep.mubr.msk.bf16.mxu0 %vm4613_vm5, %v10003_v37  ;;  %7484 = vst [vmem:[%s11560_s23 + $0xad0] sm:$0xff] %v9466_v23  ;;  %9564 = vmatprep.mubr.msk.bf16.mxu1 %vm4613_vm5, %v10008_v52 }
 0x570   : > { %v5796_v50 = vpop.f32.mrf.mxu0  ;;  %v6708_v38 = vpop.f32.mrf.mxu1 }
 0x571   : > { %7254 = vst [vmem:[%s11560_s23 + $0x3a0] sm:$0xff] %v5796_v50  ;;  %7482 = vst [vmem:[%s11560_s23 + $0xac0] sm:$0xff] %v6708_v38 }
 0x572   : > { %v9239_v10 = vpop.f32.mrf.mxu0  ;;  %v9467_v15 = vpop.f32.mrf.mxu1 }
 0x573   : > { %7257 = vst [vmem:[%s11560_s23 + $0x3b8] sm:$0xff] %v9239_v10  ;;  %7485 = vst [vmem:[%s11560_s23 + $0xad8] sm:$0xff] %v9467_v15 }
 0x574   : > { %v5799_v2 = vpop.f32.mrf.mxu0  ;;  %v6711_v46 = vpop.f32.mrf.mxu1 }
 0x575   : > { %7255 = vst [vmem:[%s11560_s23 + $0x3a8] sm:$0xff] %v5799_v2  ;;  %7483 = vst [vmem:[%s11560_s23 + $0xac8] sm:$0xff] %v6711_v46 }
 0x576   : > { %v9242_v5 = vpop.f32.mrf.mxu0  ;;  %9337 = vmatmul.mubr.msk.bf16.gmra.mxu0 %vm4613_vm5, %v10005_v60  ;;  %v9470_v49 = vpop.f32.mrf.mxu1  ;;  %9565 = vmatmul.mubr.msk.bf16.gmra.mxu1 %vm4613_vm5, %v10010_v13 }
 0x577   : > { %7260 = vst [vmem:[%s11560_s23 + $0x3d0] sm:$0xff] %v9242_v5  ;;  %9340 = vmatprep.mubr.msk.bf16.mxu0 %vm4613_vm5, %v10007_v28  ;;  %7488 = vst [vmem:[%s11560_s23 + $0xaf0] sm:$0xff] %v9470_v49  ;;  %9568 = vmatprep.mubr.msk.bf16.mxu1 %vm4613_vm5, %v10012_v63 }
 0x578   : > { %v5812_v31 = vpop.f32.mrf.mxu0  ;;  %v6724_v51 = vpop.f32.mrf.mxu1 }
 0x579   : > { %7258 = vst [vmem:[%s11560_s23 + $0x3c0] sm:$0xff] %v5812_v31  ;;  %7486 = vst [vmem:[%s11560_s23 + $0xae0] sm:$0xff] %v6724_v51 }
 0x57a   : > { %v9243_v35 = vpop.f32.mrf.mxu0  ;;  %v9471_v1 = vpop.f32.mrf.mxu1 }
 0x57b   : > { %7261 = vst [vmem:[%s11560_s23 + $0x3d8] sm:$0xff] %v9243_v35  ;;  %7489 = vst [vmem:[%s11560_s23 + $0xaf8] sm:$0xff] %v9471_v1 }
 0x57c   : > { %v5815_v19 = vpop.f32.mrf.mxu0  ;;  %v6727_v62 = vpop.f32.mrf.mxu1 }
 0x57d   : > { %7259 = vst [vmem:[%s11560_s23 + $0x3c8] sm:$0xff] %v5815_v19  ;;  %7487 = vst [vmem:[%s11560_s23 + $0xae8] sm:$0xff] %v6727_v62 }
 0x57e   : > { %v9246_v27 = vpop.f32.mrf.mxu0  ;;  %9341 = vmatmul.mubr.msk.bf16.gmra.mxu0 %vm4613_vm5, %v10009_v11  ;;  %v9474_v22 = vpop.f32.mrf.mxu1  ;;  %9569 = vmatmul.mubr.msk.bf16.gmra.mxu1 %vm4613_vm5, %v10014_v59 }
 0x57f   : > { %7264 = vst [vmem:[%s11560_s23 + $0x3f0] sm:$0xff] %v9246_v27  ;;  %9344 = vmatprep.mubr.msk.bf16.mxu0 %vm4613_vm5, %v10011_v53  ;;  %7492 = vst [vmem:[%s11560_s23 + $0xb10] sm:$0xff] %v9474_v22 }
 0x580   : > { %v5828_v4 = vpop.f32.mrf.mxu0  ;;  %v6740_v24 = vpop.f32.mrf.mxu1 }
 0x581   : > { %7262 = vst [vmem:[%s11560_s23 + $0x3e0] sm:$0xff] %v5828_v4  ;;  %7490 = vst [vmem:[%s11560_s23 + $0xb00] sm:$0xff] %v6740_v24 }
 0x582   : > { %v9247_v26 = vpop.f32.mrf.mxu0  ;;  %v9475_v32 = vpop.f32.mrf.mxu1 }
 0x583   : > { %7265 = vst [vmem:[%s11560_s23 + $0x3f8] sm:$0xff] %v9247_v26  ;;  %7493 = vst [vmem:[%s11560_s23 + $0xb18] sm:$0xff] %v9475_v32 }
 0x584   : > { %v5831_v12 = vpop.f32.mrf.mxu0  ;;  %v6743_v48 = vpop.f32.mrf.mxu1 }
 0x585   : > { %7263 = vst [vmem:[%s11560_s23 + $0x3e8] sm:$0xff] %v5831_v12  ;;  %7491 = vst [vmem:[%s11560_s23 + $0xb08] sm:$0xff] %v6743_v48 }
 0x586   : > { %v9250_v9 = vpop.f32.mrf.mxu0  ;;  %9345 = vmatmul.mubr.msk.bf16.gmra.mxu0 %vm4613_vm5, %v10013_v34  ;;  %v9478_v3 = vpop.f32.mrf.mxu1 }
 0x587   : > { %7268 = vst [vmem:[%s11560_s23 + $0x410] sm:$0xff] %v9250_v9  ;;  %7496 = vst [vmem:[%s11560_s23 + $0xb30] sm:$0xff] %v9478_v3 }
 0x588   : > { %v5844_v29 = vpop.f32.mrf.mxu0  ;;  %v6756_v36 = vpop.f32.mrf.mxu1 }
 0x589   : > { %7266 = vst [vmem:[%s11560_s23 + $0x400] sm:$0xff] %v5844_v29  ;;  %7494 = vst [vmem:[%s11560_s23 + $0xb20] sm:$0xff] %v6756_v36 }
 0x58a   : > { %v9251_v56 = vpop.f32.mrf.mxu0  ;;  %v9479_v41 = vpop.f32.mrf.mxu1 }
 0x58b   : > { %7269 = vst [vmem:[%s11560_s23 + $0x418] sm:$0xff] %v9251_v56  ;;  %7497 = vst [vmem:[%s11560_s23 + $0xb38] sm:$0xff] %v9479_v41 }
 0x58c   : > { %v5847_v7 = vpop.f32.mrf.mxu0  ;;  %v6759_v21 = vpop.f32.mrf.mxu1 }
 0x58d   : > { %7267 = vst [vmem:[%s11560_s23 + $0x408] sm:$0xff] %v5847_v7  ;;  %7495 = vst [vmem:[%s11560_s23 + $0xb28] sm:$0xff] %v6759_v21 }
 0x58e   : > { %v9254_v44 = vpop.f32.mrf.mxu0  ;;  %v9482_v30 = vpop.f32.mrf.mxu1 }
 0x58f   : > { %7272 = vst [vmem:[%s11560_s23 + $0x430] sm:$0xff] %v9254_v44  ;;  %7500 = vst [vmem:[%s11560_s23 + $0xb50] sm:$0xff] %v9482_v30 }
 0x590   : > { %v5860_v40 = vpop.f32.mrf.mxu0  ;;  %v6772_v33 = vpop.f32.mrf.mxu1 }
 0x591   : > { %7270 = vst [vmem:[%s11560_s23 + $0x420] sm:$0xff] %v5860_v40  ;;  %7498 = vst [vmem:[%s11560_s23 + $0xb40] sm:$0xff] %v6772_v33 }
 0x592   : > { %v9255_v0 = vpop.f32.mrf.mxu0  ;;  %v9483_v18 = vpop.f32.mrf.mxu1 }
 0x593   : > { %7273 = vst [vmem:[%s11560_s23 + $0x438] sm:$0xff] %v9255_v0  ;;  %7501 = vst [vmem:[%s11560_s23 + $0xb58] sm:$0xff] %v9483_v18 }
 0x594   : > { %v5863_v8 = vpop.f32.mrf.mxu0  ;;  %v6775_v14 = vpop.f32.mrf.mxu1 }
 0x595   : > { %7271 = vst [vmem:[%s11560_s23 + $0x428] sm:$0xff] %v5863_v8  ;;  %7499 = vst [vmem:[%s11560_s23 + $0xb48] sm:$0xff] %v6775_v14 }
 0x596   : > { %v9258_v54 = vpop.f32.mrf.mxu0  ;;  %v9486_v17 = vpop.f32.mrf.mxu1 }
 0x597   : > { %7276 = vst [vmem:[%s11560_s23 + $0x450] sm:$0xff] %v9258_v54  ;;  %7504 = vst [vmem:[%s11560_s23 + $0xb70] sm:$0xff] %v9486_v17 }
 0x598   : > { %v5876_v16 = vpop.f32.mrf.mxu0  ;;  %v6788_v20 = vpop.f32.mrf.mxu1 }
 0x599   : > { %7274 = vst [vmem:[%s11560_s23 + $0x440] sm:$0xff] %v5876_v16  ;;  %7502 = vst [vmem:[%s11560_s23 + $0xb60] sm:$0xff] %v6788_v20 }
 0x59a   : > { %v9259_v57 = vpop.f32.mrf.mxu0  ;;  %v9487_v25 = vpop.f32.mrf.mxu1 }
 0x59b   : > { %7277 = vst [vmem:[%s11560_s23 + $0x458] sm:$0xff] %v9259_v57  ;;  %7505 = vst [vmem:[%s11560_s23 + $0xb78] sm:$0xff] %v9487_v25 }
 0x59c   : > { %v5879_v58 = vpop.f32.mrf.mxu0  ;;  %v6791_v45 = vpop.f32.mrf.mxu1 }
 0x59d   : > { %7275 = vst [vmem:[%s11560_s23 + $0x448] sm:$0xff] %v5879_v58  ;;  %7503 = vst [vmem:[%s11560_s23 + $0xb68] sm:$0xff] %v6791_v45 }
 0x59e   : > { %v9262_v55 = vpop.f32.mrf.mxu0  ;;  %v9490_v39 = vpop.f32.mrf.mxu1 }
 0x59f   : > { %7280 = vst [vmem:[%s11560_s23 + $0x470] sm:$0xff] %v9262_v55  ;;  %7508 = vst [vmem:[%s11560_s23 + $0xb90] sm:$0xff] %v9490_v39 }
 0x5a0   : > { %v5892_v47 = vpop.f32.mrf.mxu0  ;;  %v6804_v61 = vpop.f32.mrf.mxu1 }
 0x5a1   : > { %7278 = vst [vmem:[%s11560_s23 + $0x460] sm:$0xff] %v5892_v47  ;;  %7506 = vst [vmem:[%s11560_s23 + $0xb80] sm:$0xff] %v6804_v61 }
 0x5a2   : > { %v9263_v37 = vpop.f32.mrf.mxu0  ;;  %v9491_v52 = vpop.f32.mrf.mxu1 }
 0x5a3   : > { %7281 = vst [vmem:[%s11560_s23 + $0x478] sm:$0xff] %v9263_v37  ;;  %7509 = vst [vmem:[%s11560_s23 + $0xb98] sm:$0xff] %v9491_v52 }
 0x5a4   : > { %v5895_v42 = vpop.f32.mrf.mxu0  ;;  %v6807_v43 = vpop.f32.mrf.mxu1 }
 0x5a5   : > { %7279 = vst [vmem:[%s11560_s23 + $0x468] sm:$0xff] %v5895_v42  ;;  %7507 = vst [vmem:[%s11560_s23 + $0xb88] sm:$0xff] %v6807_v43 }
 0x5a6   : > { %v9266_v6 = vpop.f32.mrf.mxu0  ;;  %v9494_v23 = vpop.f32.mrf.mxu1 }
 0x5a7   : > { %7284 = vst [vmem:[%s11560_s23 + $0x490] sm:$0xff] %v9266_v6  ;;  %7512 = vst [vmem:[%s11560_s23 + $0xbb0] sm:$0xff] %v9494_v23 }
 0x5a8   : > { %v5908_v50 = vpop.f32.mrf.mxu0  ;;  %v6820_v38 = vpop.f32.mrf.mxu1 }
 0x5a9   : > { %7282 = vst [vmem:[%s11560_s23 + $0x480] sm:$0xff] %v5908_v50  ;;  %7510 = vst [vmem:[%s11560_s23 + $0xba0] sm:$0xff] %v6820_v38 }
 0x5aa   : > { %v9267_v10 = vpop.f32.mrf.mxu0  ;;  %v9495_v60 = vpop.f32.mrf.mxu1 }
 0x5ab   : > { %7285 = vst [vmem:[%s11560_s23 + $0x498] sm:$0xff] %v9267_v10  ;;  %7513 = vst [vmem:[%s11560_s23 + $0xbb8] sm:$0xff] %v9495_v60 }
 0x5ac   : > { %v5911_v15 = vpop.f32.mrf.mxu0  ;;  %v6823_v13 = vpop.f32.mrf.mxu1 }
 0x5ad   : > { %7283 = vst [vmem:[%s11560_s23 + $0x488] sm:$0xff] %v5911_v15  ;;  %7511 = vst [vmem:[%s11560_s23 + $0xba8] sm:$0xff] %v6823_v13 }
 0x5ae   : > { %v9270_v28 = vpop.f32.mrf.mxu0  ;;  %v9498_v63 = vpop.f32.mrf.mxu1 }
 0x5af   : > { %7288 = vst [vmem:[%s11560_s23 + $0x4b0] sm:$0xff] %v9270_v28  ;;  %7516 = vst [vmem:[%s11560_s23 + $0xbd0] sm:$0xff] %v9498_v63 }
 0x5b0   : > { %v5924_v2 = vpop.f32.mrf.mxu0  ;;  %v6836_v46 = vpop.f32.mrf.mxu1 }
 0x5b1   : > { %7286 = vst [vmem:[%s11560_s23 + $0x4a0] sm:$0xff] %v5924_v2  ;;  %7514 = vst [vmem:[%s11560_s23 + $0xbc0] sm:$0xff] %v6836_v46 }
 0x5b2   : > { %v9271_v5 = vpop.f32.mrf.mxu0  ;;  %v9499_v49 = vpop.f32.mrf.mxu1 }
 0x5b3   : > { %7289 = vst [vmem:[%s11560_s23 + $0x4b8] sm:$0xff] %v9271_v5  ;;  %7517 = vst [vmem:[%s11560_s23 + $0xbd8] sm:$0xff] %v9499_v49 }
 0x5b4   : > { %v5927_v31 = vpop.f32.mrf.mxu0  ;;  %v6839_v51 = vpop.f32.mrf.mxu1 }
 0x5b5   : > { %7287 = vst [vmem:[%s11560_s23 + $0x4a8] sm:$0xff] %v5927_v31  ;;  %7515 = vst [vmem:[%s11560_s23 + $0xbc8] sm:$0xff] %v6839_v51 }
 0x5b6   : > { %v9274_v35 = vpop.f32.mrf.mxu0  ;;  %v9502_v11 = vpop.f32.mrf.mxu1 }
 0x5b7   : > { %7292 = vst [vmem:[%s11560_s23 + $0x4d0] sm:$0xff] %v9274_v35  ;;  %7520 = vst [vmem:[%s11560_s23 + $0xbf0] sm:$0xff] %v9502_v11 }
 0x5b8   : > { %v5940_v1 = vpop.f32.mrf.mxu0  ;;  %v6852_v59 = vpop.f32.mrf.mxu1 }
 0x5b9   : > { %7290 = vst [vmem:[%s11560_s23 + $0x4c0] sm:$0xff] %v5940_v1  ;;  %7518 = vst [vmem:[%s11560_s23 + $0xbe0] sm:$0xff] %v6852_v59 }
 0x5ba   : > { %v9275_v53 = vpop.f32.mrf.mxu0  ;;  %v9503_v19 = vpop.f32.mrf.mxu1 }
 0x5bb   : > { %7293 = vst [vmem:[%s11560_s23 + $0x4d8] sm:$0xff] %v9275_v53  ;;  %7521 = vst [vmem:[%s11560_s23 + $0xbf8] sm:$0xff] %v9503_v19 }
 0x5bc   : > { %v5943_v62 = vpop.f32.mrf.mxu0  ;;  %v6855_v27 = vpop.f32.mrf.mxu1 }
 0x5bd   : > { %7291 = vst [vmem:[%s11560_s23 + $0x4c8] sm:$0xff] %v5943_v62  ;;  %7519 = vst [vmem:[%s11560_s23 + $0xbe8] sm:$0xff] %v6855_v27 }
 0x5be   : > { %v9278_v22 = vpop.f32.mrf.mxu0  ;;  %v9506_v4 = vpop.f32.mrf.mxu1 }
 0x5bf   : > { %7296 = vst [vmem:[%s11560_s23 + $0x4f0] sm:$0xff] %v9278_v22  ;;  %7524 = vst [vmem:[%s11560_s23 + $0xc10] sm:$0xff] %v9506_v4 }
 0x5c0   : > { %v5956_v24 = vpop.f32.mrf.mxu0  ;;  %v6868_v26 = vpop.f32.mrf.mxu1 }
 0x5c1   : > { %7294 = vst [vmem:[%s11560_s23 + $0x4e0] sm:$0xff] %v5956_v24  ;;  %7522 = vst [vmem:[%s11560_s23 + $0xc00] sm:$0xff] %v6868_v26 }
 0x5c2   : > { %v9279_v34 = vpop.f32.mrf.mxu0  ;;  %v9507_v32 = vpop.f32.mrf.mxu1 }
 0x5c3   : > { %7297 = vst [vmem:[%s11560_s23 + $0x4f8] sm:$0xff] %v9279_v34  ;;  %7525 = vst [vmem:[%s11560_s23 + $0xc18] sm:$0xff] %v9507_v32 }
 0x5c4   : > { %v5959_v12 = vpop.f32.mrf.mxu0  ;;  %v6871_v48 = vpop.f32.mrf.mxu1 }
 0x5c5   : > { %7295 = vst [vmem:[%s11560_s23 + $0x4e8] sm:$0xff] %v5959_v12  ;;  %7523 = vst [vmem:[%s11560_s23 + $0xc08] sm:$0xff] %v6871_v48 }
 0x5c6   : > { %v9282_v9 = vpop.f32.mrf.mxu0  ;;  %v9510_v3 = vpop.f32.mrf.mxu1 }
 0x5c7   : > { %7300 = vst [vmem:[%s11560_s23 + $0x510] sm:$0xff] %v9282_v9  ;;  %7528 = vst [vmem:[%s11560_s23 + $0xc30] sm:$0xff] %v9510_v3 }
 0x5c8   : > { %v5972_v29 = vpop.f32.mrf.mxu0  ;;  %v6884_v36 = vpop.f32.mrf.mxu1 }
 0x5c9   : > { %7298 = vst [vmem:[%s11560_s23 + $0x500] sm:$0xff] %v5972_v29  ;;  %7526 = vst [vmem:[%s11560_s23 + $0xc20] sm:$0xff] %v6884_v36 }
 0x5ca   : > { %v9283_v56 = vpop.f32.mrf.mxu0  ;;  %v9511_v41 = vpop.f32.mrf.mxu1 }
 0x5cb   : > { %7301 = vst [vmem:[%s11560_s23 + $0x518] sm:$0xff] %v9283_v56  ;;  %7529 = vst [vmem:[%s11560_s23 + $0xc38] sm:$0xff] %v9511_v41 }
 0x5cc   : > { %v5975_v7 = vpop.f32.mrf.mxu0  ;;  %v6887_v21 = vpop.f32.mrf.mxu1 }
 0x5cd   : > { %7299 = vst [vmem:[%s11560_s23 + $0x508] sm:$0xff] %v5975_v7  ;;  %7527 = vst [vmem:[%s11560_s23 + $0xc28] sm:$0xff] %v6887_v21 }
 0x5ce   : > { %v9286_v44 = vpop.f32.mrf.mxu0  ;;  %v9514_v30 = vpop.f32.mrf.mxu1 }
 0x5cf   : > { %7304 = vst [vmem:[%s11560_s23 + $0x530] sm:$0xff] %v9286_v44  ;;  %7532 = vst [vmem:[%s11560_s23 + $0xc50] sm:$0xff] %v9514_v30 }
 0x5d0   : > { %v5988_v40 = vpop.f32.mrf.mxu0  ;;  %v6900_v33 = vpop.f32.mrf.mxu1 }
 0x5d1   : > { %7302 = vst [vmem:[%s11560_s23 + $0x520] sm:$0xff] %v5988_v40  ;;  %7530 = vst [vmem:[%s11560_s23 + $0xc40] sm:$0xff] %v6900_v33 }
 0x5d2   : > { %v9287_v0 = vpop.f32.mrf.mxu0  ;;  %v9515_v18 = vpop.f32.mrf.mxu1 }
 0x5d3   : > { %7305 = vst [vmem:[%s11560_s23 + $0x538] sm:$0xff] %v9287_v0  ;;  %7533 = vst [vmem:[%s11560_s23 + $0xc58] sm:$0xff] %v9515_v18 }
 0x5d4   : > { %v5991_v8 = vpop.f32.mrf.mxu0  ;;  %v6903_v14 = vpop.f32.mrf.mxu1 }
 0x5d5   : > { %7303 = vst [vmem:[%s11560_s23 + $0x528] sm:$0xff] %v5991_v8  ;;  %7531 = vst [vmem:[%s11560_s23 + $0xc48] sm:$0xff] %v6903_v14 }
 0x5d6   : > { %v9290_v54 = vpop.f32.mrf.mxu0  ;;  %v9518_v17 = vpop.f32.mrf.mxu1 }
 0x5d7   : > { %7308 = vst [vmem:[%s11560_s23 + $0x550] sm:$0xff] %v9290_v54  ;;  %7536 = vst [vmem:[%s11560_s23 + $0xc70] sm:$0xff] %v9518_v17 }
 0x5d8   : > { %v6004_v16 = vpop.f32.mrf.mxu0  ;;  %v6916_v20 = vpop.f32.mrf.mxu1 }
 0x5d9   : > { %7306 = vst [vmem:[%s11560_s23 + $0x540] sm:$0xff] %v6004_v16  ;;  %7534 = vst [vmem:[%s11560_s23 + $0xc60] sm:$0xff] %v6916_v20 }
 0x5da   : > { %v9291_v57 = vpop.f32.mrf.mxu0  ;;  %v9519_v25 = vpop.f32.mrf.mxu1 }
 0x5db   : > { %7309 = vst [vmem:[%s11560_s23 + $0x558] sm:$0xff] %v9291_v57  ;;  %7537 = vst [vmem:[%s11560_s23 + $0xc78] sm:$0xff] %v9519_v25 }
 0x5dc   : > { %v6007_v58 = vpop.f32.mrf.mxu0  ;;  %v6919_v45 = vpop.f32.mrf.mxu1 }
 0x5dd   : > { %7307 = vst [vmem:[%s11560_s23 + $0x548] sm:$0xff] %v6007_v58  ;;  %7535 = vst [vmem:[%s11560_s23 + $0xc68] sm:$0xff] %v6919_v45 }
 0x5de   : > { %v9294_v55 = vpop.f32.mrf.mxu0  ;;  %v9522_v39 = vpop.f32.mrf.mxu1 }
 0x5df   : > { %7312 = vst [vmem:[%s11560_s23 + $0x570] sm:$0xff] %v9294_v55  ;;  %7540 = vst [vmem:[%s11560_s23 + $0xc90] sm:$0xff] %v9522_v39 }
 0x5e0   : > { %v6020_v47 = vpop.f32.mrf.mxu0  ;;  %v6932_v61 = vpop.f32.mrf.mxu1 }
 0x5e1   : > { %7310 = vst [vmem:[%s11560_s23 + $0x560] sm:$0xff] %v6020_v47  ;;  %7538 = vst [vmem:[%s11560_s23 + $0xc80] sm:$0xff] %v6932_v61 }
 0x5e2   : > { %v9295_v37 = vpop.f32.mrf.mxu0  ;;  %v9523_v52 = vpop.f32.mrf.mxu1 }
 0x5e3   : > { %7313 = vst [vmem:[%s11560_s23 + $0x578] sm:$0xff] %v9295_v37  ;;  %7541 = vst [vmem:[%s11560_s23 + $0xc98] sm:$0xff] %v9523_v52 }
 0x5e4   : > { %v6023_v42 = vpop.f32.mrf.mxu0  ;;  %v6935_v43 = vpop.f32.mrf.mxu1 }
 0x5e5   : > { %7311 = vst [vmem:[%s11560_s23 + $0x568] sm:$0xff] %v6023_v42  ;;  %7539 = vst [vmem:[%s11560_s23 + $0xc88] sm:$0xff] %v6935_v43 }
 0x5e6   : > { %v9298_v6 = vpop.f32.mrf.mxu0  ;;  %v9526_v23 = vpop.f32.mrf.mxu1 }
 0x5e7   : > { %7316 = vst [vmem:[%s11560_s23 + $0x590] sm:$0xff] %v9298_v6  ;;  %7544 = vst [vmem:[%s11560_s23 + $0xcb0] sm:$0xff] %v9526_v23 }
 0x5e8   : > { %v6036_v50 = vpop.f32.mrf.mxu0  ;;  %v6948_v38 = vpop.f32.mrf.mxu1 }
 0x5e9   : > { %7314 = vst [vmem:[%s11560_s23 + $0x580] sm:$0xff] %v6036_v50  ;;  %7542 = vst [vmem:[%s11560_s23 + $0xca0] sm:$0xff] %v6948_v38 }
 0x5ea   : > { %v9299_v10 = vpop.f32.mrf.mxu0  ;;  %v9527_v60 = vpop.f32.mrf.mxu1 }
 0x5eb   : > { %7317 = vst [vmem:[%s11560_s23 + $0x598] sm:$0xff] %v9299_v10  ;;  %7545 = vst [vmem:[%s11560_s23 + $0xcb8] sm:$0xff] %v9527_v60 }
 0x5ec   : > { %v6039_v15 = vpop.f32.mrf.mxu0  ;;  %v6951_v13 = vpop.f32.mrf.mxu1 }
 0x5ed   : > { %7315 = vst [vmem:[%s11560_s23 + $0x588] sm:$0xff] %v6039_v15  ;;  %7543 = vst [vmem:[%s11560_s23 + $0xca8] sm:$0xff] %v6951_v13 }
 0x5ee   : > { %v9302_v28 = vpop.f32.mrf.mxu0  ;;  %v9530_v63 = vpop.f32.mrf.mxu1 }
 0x5ef   : > { %7320 = vst [vmem:[%s11560_s23 + $0x5b0] sm:$0xff] %v9302_v28  ;;  %7548 = vst [vmem:[%s11560_s23 + $0xcd0] sm:$0xff] %v9530_v63 }
 0x5f0   : > { %v6052_v2 = vpop.f32.mrf.mxu0  ;;  %v6964_v46 = vpop.f32.mrf.mxu1 }
 0x5f1   : > { %7318 = vst [vmem:[%s11560_s23 + $0x5a0] sm:$0xff] %v6052_v2  ;;  %7546 = vst [vmem:[%s11560_s23 + $0xcc0] sm:$0xff] %v6964_v46 }
 0x5f2   : > { %v9303_v5 = vpop.f32.mrf.mxu0  ;;  %v9531_v49 = vpop.f32.mrf.mxu1 }
 0x5f3   : > { %7321 = vst [vmem:[%s11560_s23 + $0x5b8] sm:$0xff] %v9303_v5  ;;  %7549 = vst [vmem:[%s11560_s23 + $0xcd8] sm:$0xff] %v9531_v49 }
 0x5f4   : > { %v6055_v31 = vpop.f32.mrf.mxu0  ;;  %v6967_v51 = vpop.f32.mrf.mxu1 }
 0x5f5   : > { %7319 = vst [vmem:[%s11560_s23 + $0x5a8] sm:$0xff] %v6055_v31  ;;  %7547 = vst [vmem:[%s11560_s23 + $0xcc8] sm:$0xff] %v6967_v51 }
 0x5f6   : > { %v9306_v35 = vpop.f32.mrf.mxu0  ;;  %v9534_v11 = vpop.f32.mrf.mxu1 }
 0x5f7   : > { %7324 = vst [vmem:[%s11560_s23 + $0x5d0] sm:$0xff] %v9306_v35  ;;  %7552 = vst [vmem:[%s11560_s23 + $0xcf0] sm:$0xff] %v9534_v11 }
 0x5f8   : > { %v6068_v1 = vpop.f32.mrf.mxu0  ;;  %v6980_v59 = vpop.f32.mrf.mxu1 }
 0x5f9   : > { %7322 = vst [vmem:[%s11560_s23 + $0x5c0] sm:$0xff] %v6068_v1  ;;  %7550 = vst [vmem:[%s11560_s23 + $0xce0] sm:$0xff] %v6980_v59 }
 0x5fa   : > { %v9307_v53 = vpop.f32.mrf.mxu0  ;;  %v9535_v19 = vpop.f32.mrf.mxu1 }
 0x5fb   : > { %7325 = vst [vmem:[%s11560_s23 + $0x5d8] sm:$0xff] %v9307_v53  ;;  %7553 = vst [vmem:[%s11560_s23 + $0xcf8] sm:$0xff] %v9535_v19 }
 0x5fc   : > { %v6071_v62 = vpop.f32.mrf.mxu0  ;;  %v6983_v27 = vpop.f32.mrf.mxu1 }
 0x5fd   : > { %7323 = vst [vmem:[%s11560_s23 + $0x5c8] sm:$0xff] %v6071_v62  ;;  %7551 = vst [vmem:[%s11560_s23 + $0xce8] sm:$0xff] %v6983_v27 }
 0x5fe   : > { %v9310_v22 = vpop.f32.mrf.mxu0  ;;  %v9538_v4 = vpop.f32.mrf.mxu1 }
 0x5ff   : > { %7328 = vst [vmem:[%s11560_s23 + $0x5f0] sm:$0xff] %v9310_v22  ;;  %7556 = vst [vmem:[%s11560_s23 + $0xd10] sm:$0xff] %v9538_v4 }
 0x600   : > { %v6084_v24 = vpop.f32.mrf.mxu0  ;;  %v6996_v26 = vpop.f32.mrf.mxu1 }
 0x601   : > { %7326 = vst [vmem:[%s11560_s23 + $0x5e0] sm:$0xff] %v6084_v24  ;;  %7554 = vst [vmem:[%s11560_s23 + $0xd00] sm:$0xff] %v6996_v26 }
 0x602   : > { %v9311_v34 = vpop.f32.mrf.mxu0  ;;  %v9539_v32 = vpop.f32.mrf.mxu1 }
 0x603   : > { %7329 = vst [vmem:[%s11560_s23 + $0x5f8] sm:$0xff] %v9311_v34  ;;  %7557 = vst [vmem:[%s11560_s23 + $0xd18] sm:$0xff] %v9539_v32 }
 0x604   : > { %v6087_v12 = vpop.f32.mrf.mxu0  ;;  %v6999_v48 = vpop.f32.mrf.mxu1 }
 0x605   : > { %7327 = vst [vmem:[%s11560_s23 + $0x5e8] sm:$0xff] %v6087_v12  ;;  %7555 = vst [vmem:[%s11560_s23 + $0xd08] sm:$0xff] %v6999_v48 }
 0x606   : > { %v9314_v9 = vpop.f32.mrf.mxu0  ;;  %v9542_v3 = vpop.f32.mrf.mxu1 }
 0x607   : > { %7332 = vst [vmem:[%s11560_s23 + $0x610] sm:$0xff] %v9314_v9  ;;  %7560 = vst [vmem:[%s11560_s23 + $0xd30] sm:$0xff] %v9542_v3 }
 0x608   : > { %v6100_v29 = vpop.f32.mrf.mxu0  ;;  %v7012_v36 = vpop.f32.mrf.mxu1 }
 0x609   : > { %7330 = vst [vmem:[%s11560_s23 + $0x600] sm:$0xff] %v6100_v29  ;;  %7558 = vst [vmem:[%s11560_s23 + $0xd20] sm:$0xff] %v7012_v36 }
 0x60a   : > { %v9315_v56 = vpop.f32.mrf.mxu0  ;;  %v9543_v41 = vpop.f32.mrf.mxu1 }
 0x60b   : > { %7333 = vst [vmem:[%s11560_s23 + $0x618] sm:$0xff] %v9315_v56  ;;  %7561 = vst [vmem:[%s11560_s23 + $0xd38] sm:$0xff] %v9543_v41 }
 0x60c   : > { %v6103_v7 = vpop.f32.mrf.mxu0  ;;  %v7015_v21 = vpop.f32.mrf.mxu1 }
 0x60d   : > { %7331 = vst [vmem:[%s11560_s23 + $0x608] sm:$0xff] %v6103_v7  ;;  %7559 = vst [vmem:[%s11560_s23 + $0xd28] sm:$0xff] %v7015_v21 }
 0x60e   : > { %v9318_v44 = vpop.f32.mrf.mxu0  ;;  %v9546_v30 = vpop.f32.mrf.mxu1 }
 0x60f   : > { %7336 = vst [vmem:[%s11560_s23 + $0x630] sm:$0xff] %v9318_v44  ;;  %7564 = vst [vmem:[%s11560_s23 + $0xd50] sm:$0xff] %v9546_v30 }
 0x610   : > { %v6116_v40 = vpop.f32.mrf.mxu0  ;;  %v7028_v33 = vpop.f32.mrf.mxu1 }
 0x611   : > { %7334 = vst [vmem:[%s11560_s23 + $0x620] sm:$0xff] %v6116_v40  ;;  %7562 = vst [vmem:[%s11560_s23 + $0xd40] sm:$0xff] %v7028_v33 }
 0x612   : > { %v9319_v0 = vpop.f32.mrf.mxu0  ;;  %v9547_v18 = vpop.f32.mrf.mxu1 }
 0x613   : > { %7337 = vst [vmem:[%s11560_s23 + $0x638] sm:$0xff] %v9319_v0  ;;  %7565 = vst [vmem:[%s11560_s23 + $0xd58] sm:$0xff] %v9547_v18 }
 0x614   : > { %v6119_v8 = vpop.f32.mrf.mxu0  ;;  %v7031_v14 = vpop.f32.mrf.mxu1 }
 0x615   : > { %7335 = vst [vmem:[%s11560_s23 + $0x628] sm:$0xff] %v6119_v8  ;;  %7563 = vst [vmem:[%s11560_s23 + $0xd48] sm:$0xff] %v7031_v14 }
 0x616   : > { %v9322_v54 = vpop.f32.mrf.mxu0  ;;  %v9550_v17 = vpop.f32.mrf.mxu1 }
 0x617   : > { %7340 = vst [vmem:[%s11560_s23 + $0x650] sm:$0xff] %v9322_v54  ;;  %7568 = vst [vmem:[%s11560_s23 + $0xd70] sm:$0xff] %v9550_v17 }
 0x618   : > { %v6132_v16 = vpop.f32.mrf.mxu0  ;;  %v7044_v20 = vpop.f32.mrf.mxu1 }
 0x619   : > { %7338 = vst [vmem:[%s11560_s23 + $0x640] sm:$0xff] %v6132_v16  ;;  %7566 = vst [vmem:[%s11560_s23 + $0xd60] sm:$0xff] %v7044_v20 }
 0x61a   : > { %v9323_v57 = vpop.f32.mrf.mxu0  ;;  %v9551_v25 = vpop.f32.mrf.mxu1 }
 0x61b   : > { %7341 = vst [vmem:[%s11560_s23 + $0x658] sm:$0xff] %v9323_v57  ;;  %7569 = vst [vmem:[%s11560_s23 + $0xd78] sm:$0xff] %v9551_v25 }
 0x61c   : > { %v6135_v58 = vpop.f32.mrf.mxu0  ;;  %v7047_v45 = vpop.f32.mrf.mxu1 }
 0x61d   : > { %7339 = vst [vmem:[%s11560_s23 + $0x648] sm:$0xff] %v6135_v58  ;;  %7567 = vst [vmem:[%s11560_s23 + $0xd68] sm:$0xff] %v7047_v45 }
 0x61e   : > { %v9326_v55 = vpop.f32.mrf.mxu0  ;;  %v9554_v39 = vpop.f32.mrf.mxu1 }
 0x61f   : > { %7344 = vst [vmem:[%s11560_s23 + $0x670] sm:$0xff] %v9326_v55  ;;  %7572 = vst [vmem:[%s11560_s23 + $0xd90] sm:$0xff] %v9554_v39 }
 0x620   : > { %v6148_v47 = vpop.f32.mrf.mxu0  ;;  %v7060_v61 = vpop.f32.mrf.mxu1 }
 0x621   : > { %7342 = vst [vmem:[%s11560_s23 + $0x660] sm:$0xff] %v6148_v47  ;;  %7570 = vst [vmem:[%s11560_s23 + $0xd80] sm:$0xff] %v7060_v61 }
 0x622   : > { %v9327_v37 = vpop.f32.mrf.mxu0  ;;  %v9555_v52 = vpop.f32.mrf.mxu1 }
 0x623   : > { %7345 = vst [vmem:[%s11560_s23 + $0x678] sm:$0xff] %v9327_v37  ;;  %7573 = vst [vmem:[%s11560_s23 + $0xd98] sm:$0xff] %v9555_v52 }
 0x624   : > { %v6151_v42 = vpop.f32.mrf.mxu0  ;;  %v7063_v43 = vpop.f32.mrf.mxu1 }
 0x625   : > { %7343 = vst [vmem:[%s11560_s23 + $0x668] sm:$0xff] %v6151_v42  ;;  %7571 = vst [vmem:[%s11560_s23 + $0xd88] sm:$0xff] %v7063_v43 }
 0x626   : > { %v9330_v6 = vpop.f32.mrf.mxu0  ;;  %v9558_v23 = vpop.f32.mrf.mxu1 }
 0x627   : > { %7348 = vst [vmem:[%s11560_s23 + $0x690] sm:$0xff] %v9330_v6  ;;  %7576 = vst [vmem:[%s11560_s23 + $0xdb0] sm:$0xff] %v9558_v23 }
 0x628   : > { %v6164_v50 = vpop.f32.mrf.mxu0  ;;  %v7076_v38 = vpop.f32.mrf.mxu1 }
 0x629   : > { %7346 = vst [vmem:[%s11560_s23 + $0x680] sm:$0xff] %v6164_v50  ;;  %7574 = vst [vmem:[%s11560_s23 + $0xda0] sm:$0xff] %v7076_v38 }
 0x62a   : > { %v9331_v10 = vpop.f32.mrf.mxu0  ;;  %v9559_v60 = vpop.f32.mrf.mxu1 }
 0x62b   : > { %7349 = vst [vmem:[%s11560_s23 + $0x698] sm:$0xff] %v9331_v10  ;;  %7577 = vst [vmem:[%s11560_s23 + $0xdb8] sm:$0xff] %v9559_v60 }
 0x62c   : > { %v6167_v15 = vpop.f32.mrf.mxu0  ;;  %v7079_v13 = vpop.f32.mrf.mxu1 }
 0x62d   : > { %7347 = vst [vmem:[%s11560_s23 + $0x688] sm:$0xff] %v6167_v15  ;;  %7575 = vst [vmem:[%s11560_s23 + $0xda8] sm:$0xff] %v7079_v13 }
 0x62e   : > { %v9334_v28 = vpop.f32.mrf.mxu0  ;;  %v9562_v63 = vpop.f32.mrf.mxu1 }
 0x62f   : > { %7352 = vst [vmem:[%s11560_s23 + $0x6b0] sm:$0xff] %v9334_v28  ;;  %7580 = vst [vmem:[%s11560_s23 + $0xdd0] sm:$0xff] %v9562_v63 }
 0x630   : > { %v6180_v2 = vpop.f32.mrf.mxu0  ;;  %v7092_v46 = vpop.f32.mrf.mxu1 }
 0x631   : > { %7350 = vst [vmem:[%s11560_s23 + $0x6a0] sm:$0xff] %v6180_v2  ;;  %7578 = vst [vmem:[%s11560_s23 + $0xdc0] sm:$0xff] %v7092_v46 }
 0x632   : > { %v9335_v5 = vpop.f32.mrf.mxu0  ;;  %v9563_v49 = vpop.f32.mrf.mxu1 }
 0x633   : > { %7353 = vst [vmem:[%s11560_s23 + $0x6b8] sm:$0xff] %v9335_v5  ;;  %7581 = vst [vmem:[%s11560_s23 + $0xdd8] sm:$0xff] %v9563_v49 }
 0x634   : > { %v6183_v31 = vpop.f32.mrf.mxu0  ;;  %v7095_v51 = vpop.f32.mrf.mxu1 }
 0x635   : > { %7351 = vst [vmem:[%s11560_s23 + $0x6a8] sm:$0xff] %v6183_v31  ;;  %7579 = vst [vmem:[%s11560_s23 + $0xdc8] sm:$0xff] %v7095_v51 }
 0x636   : > { %v9338_v35 = vpop.f32.mrf.mxu0  ;;  %v9566_v11 = vpop.f32.mrf.mxu1 }
 0x637   : > { %7356 = vst [vmem:[%s11560_s23 + $0x6d0] sm:$0xff] %v9338_v35  ;;  %7584 = vst [vmem:[%s11560_s23 + $0xdf0] sm:$0xff] %v9566_v11 }
 0x638   : > { %v6196_v1 = vpop.f32.mrf.mxu0  ;;  %v7108_v59 = vpop.f32.mrf.mxu1 }
 0x639   : > { %7354 = vst [vmem:[%s11560_s23 + $0x6c0] sm:$0xff] %v6196_v1  ;;  %7582 = vst [vmem:[%s11560_s23 + $0xde0] sm:$0xff] %v7108_v59 }
 0x63a   : > { %v9339_v53 = vpop.f32.mrf.mxu0  ;;  %v9567_v19 = vpop.f32.mrf.mxu1 }
 0x63b   : > { %7357 = vst [vmem:[%s11560_s23 + $0x6d8] sm:$0xff] %v9339_v53  ;;  %7585 = vst [vmem:[%s11560_s23 + $0xdf8] sm:$0xff] %v9567_v19 }
 0x63c   : > { %v6199_v62 = vpop.f32.mrf.mxu0  ;;  %v7111_v27 = vpop.f32.mrf.mxu1 }
 0x63d   : > { %7355 = vst [vmem:[%s11560_s23 + $0x6c8] sm:$0xff] %v6199_v62  ;;  %7583 = vst [vmem:[%s11560_s23 + $0xde8] sm:$0xff] %v7111_v27 }
 0x63e   : > { %v9342_v22 = vpop.f32.mrf.mxu0  ;;  %v9570_v4 = vpop.f32.mrf.mxu1 }
 0x63f   : > { %7360 = vst [vmem:[%s11560_s23 + $0x6f0] sm:$0xff] %v9342_v22  ;;  %7588 = vst [vmem:[%s11560_s23 + $0xe10] sm:$0x3f] %v9570_v4 }
 0x640   : > { %v6212_v24 = vpop.f32.mrf.mxu0  ;;  %v7124_v26 = vpop.f32.mrf.mxu1 }
 0x641   : > { %7358 = vst [vmem:[%s11560_s23 + $0x6e0] sm:$0xff] %v6212_v24  ;;  %7586 = vst [vmem:[%s11560_s23 + $0xe00] sm:$0xff] %v7124_v26 }
 0x642   : > { %v9343_v34 = vpop.f32.mrf.mxu0  ;;  %v9571_v32 = vpop.f32.mrf.mxu1 }
 0x643   : > { %7361 = vst [vmem:[%s11560_s23 + $0x6f8] sm:$0xff] %v9343_v34 }
 0x644   : > { %v6215_v12 = vpop.f32.mrf.mxu0  ;;  %v7127_v48 = vpop.f32.mrf.mxu1 }
 0x645   : > { %7359 = vst [vmem:[%s11560_s23 + $0x6e8] sm:$0xff] %v6215_v12  ;;  %7587 = vst [vmem:[%s11560_s23 + $0xe08] sm:$0xff] %v7127_v48 }
 0x646   : > { %v9346_v9 = vpop.f32.mrf.mxu0 }
 0x647   : > { %7364 = vst [vmem:[%s11560_s23 + $0x710] sm:$0xff] %v9346_v9 }
 0x648   : > { %v6228_v3 = vpop.f32.mrf.mxu0 }
 0x649   : > { %7362 = vst [vmem:[%s11560_s23 + $0x700] sm:$0xff] %v6228_v3 }
 0x64a   : > { %v9347_v29 = vpop.f32.mrf.mxu0 }
 0x64b   : > { %7365 = vst [vmem:[%s11560_s23 + $0x718] sm:$0xff] %v9347_v29 }
 0x64c   : > { %v6231_v36 = vpop.f32.mrf.mxu0 }
 0x64d   : > { %7363 = vst [vmem:[%s11560_s23 + $0x708] sm:$0xff] %v6231_v36 }
 0x64e PF: > { %s18_s29 = sadd.s32 1, %s10061_s29   ;;  %s12551_s27 = smov %s10057_s28 }
 0x64f   : > { %p15_p5 = scmp.ge.s32.totalorder %s18_s29, 4   ;;  %s12552_s28 = smov %s12554_s30 }
 0x651   :  { %17 = sbr.rel (!%p15_p5) target bundleno = 2 (0x2), region = 82 }

// kernel: tpu_custom_call.1
= control target key start
LH: loop header
LB: loop body
LE: loop exit
PB: predicated region body
PF: predicated region fallthrough
CT: control target
= control target key end

     0   :  { %s10109_s27 = smov 0   ;;  %s10111_s28 = smov 0   ;;  %s12522_s0 = inlined_call_operand.vmem [shape: f32[2,3606,128], index: 0, kind: input, shape index: {}]   ;;  %s12523_s1 = inlined_call_operand.vmem [shape: bf16[64,3606], index: 1, kind: input, shape index: {}]   ;;  %s12524_s2 = inlined_call_operand.vmem [shape: f32[64,1], index: 2, kind: input, shape index: {}]   ;;  %s12525_s3 = inlined_call_operand.vmem [shape: bf16[32,64], index: 3, kind: input, shape index: {}]   ;;  %s12526_s4 = inlined_call_operand.vmem [shape: f32[32,1], index: 4, kind: input, shape index: {}]   ;;  %s12527_s5 = inlined_call_operand.vmem [shape: bf16[64,32], index: 5, kind: input, shape index: {}]   ;;  %s12528_s6 = inlined_call_operand.vmem [shape: f32[64,1], index: 6, kind: input, shape index: {}]   ;;  %s12529_s7 = inlined_call_operand.vmem [shape: bf16[3606,65], index: 7, kind: input, shape index: {}]   ;;  %s12530_s8 = inlined_call_operand.vmem [shape: f32[2,3606,128], index: 8, kind: output, shape index: {}]  }
   0x1   :  { %s10113_s29 = smov 0  }
   0x2 LB: > { %s30_s30 = sadd.s32 1, %s10057_s28  ;;  %p7676_p0 = scmp.ge.s32.totalorder %s10061_s29, 1  ;;  %s10061_s29 = sphi %s10113_s29, %s18_s29   ;;  %s10057_s28 = sphi %s10111_s28, %s12552_s28   ;;  %s10053_s27 = sphi %s10109_s27, %s12551_s27  }
   0x3   : > { %p32_p1 = scmp.ge.s32.totalorder %s30_s30, 2  ;;  %p281_p2 = scmp.lt.s32.totalorder %s10061_s29, 3 }
   0x5   : > { %s12554_s30 = smov (%p32_p1, %s30_s30), 0  ;;  %p282_p3 = pnand %p7676_p0, %p281_p2 }
   0x7   : > { %285 = sbr.rel (%p282_p3) target bundleno = 1614 (0x64e), region = 52 }
   0xc   : > { %p321_p4 = scmp.lt.s32.totalorder %s10053_s27, 1  ;;  %v9613_v0 = vld [vmem:[%s12523_s1 + $0x4] ss:$116 sps:$4 sm:$0xff]   ;;  %v10063_v1 = vmov 0   ;;  %v9616_v2 = vld [vmem:[%s12523_s1 + $0xc] ss:$116 sps:$4 sm:$0xff]  }
   0xd   : > { %9609 = vset.pattern.permute.xlu0 %v10063_v1  ;;  %9610 = vset.pattern.permute.xlu1 %v10063_v1  ;;  %vm5292_vm0 = vcmask 1040384   ;;  %vm1777_vm1 = vcmask 1042432   ;;  %vm1764_vm2 = vcmask 179200   ;;  %vm2806_vm3 = vcmask 523264  }
   0xe   : > { %s12556_s27 = smov (!%p321_p4, %s10053_s27), 1  ;;  %1813 = vmatprep.mubr.bf16.mxu0 %v9613_v0  ;;  %1878 = vmatprep.mubr.bf16.mxu1 %v9616_v2  ;;  %vm2944_vm4 = vcmask 261120   ;;  %vm4613_vm5 = vcmask 531456  }
   0xf   : > { %s9583_s13 = smul.u32 3608, %s12556_s27 }
  0x11   : > { %s10143_s16 = scalar_lea.vmem %s12522_s0, %s9583_s13  ;;  %s11560_s23 = scalar_lea.vmem %s12530_s8, %s9583_s13 }
  0x12   : > { %v369_v3 = vld [vmem:[%s10143_s16 + $0xf0] sm:$0xff]  ;;  %v370_v4 = vld [vmem:[%s10143_s16 + $0xf8] sm:$0xff]  ;;  %v367_v14 = vld [vmem:[%s10143_s16 + $0xe0] sm:$0xff] }
  0x13   : > { %v353_v5 = vld [vmem:[%s10143_s16 + $0x70] sm:$0xff]  ;;  %v805_v6 = vpack.c.bf16 %v370_v4, %v369_v3  ;;  %v354_v7 = vld [vmem:[%s10143_s16 + $0x78] sm:$0xff]  ;;  %v368_v16 = vld [vmem:[%s10143_s16 + $0xe8] sm:$0xff] }
  0x14   : > { %v401_v8 = vld [vmem:[%s10143_s16 + $0x1f0] sm:$0xff]  ;;  %v402_v9 = vld [vmem:[%s10143_s16 + $0x1f8] sm:$0xff]  ;;  %v797_v10 = vpack.c.bf16 %v354_v7, %v353_v5  ;;  %v351_v17 = vld [vmem:[%s10143_s16 + $0x60] sm:$0xff]  ;;  %v804_v19 = vpack.c.bf16 %v368_v16, %v367_v14 }
  0x15   : > { %v821_v11 = vpack.c.bf16 %v402_v9, %v401_v8  ;;  %v385_v12 = vld [vmem:[%s10143_s16 + $0x170] sm:$0xff]  ;;  %v386_v13 = vld [vmem:[%s10143_s16 + $0x178] sm:$0xff]  ;;  %8265 = vmatprep.subr.bf16.mxu0 %v805_v6  ;;  %v352_v18 = vld [vmem:[%s10143_s16 + $0x68] sm:$0xff] }
  0x16   : > { %v813_v15 = vpack.c.bf16 %v386_v13, %v385_v12  ;;  %8266 = vmatpush3.bf16.msra.mxu0 %v797_v10  ;;  %v796_v20 = vpack.c.bf16 %v352_v18, %v351_v17  ;;  %v399_v21 = vld [vmem:[%s10143_s16 + $0x1e0] sm:$0xff]  ;;  %v400_v22 = vld [vmem:[%s10143_s16 + $0x1e8] sm:$0xff]  ;;  %v365_v26 = vld [vmem:[%s10143_s16 + $0xd0] sm:$0xff] }
  0x17   : > { %8305 = vmatprep.subr.bf16.mxu1 %v821_v11  ;;  %v383_v23 = vld [vmem:[%s10143_s16 + $0x160] sm:$0xff]  ;;  %v820_v24 = vpack.c.bf16 %v400_v22, %v399_v21  ;;  %v384_v25 = vld [vmem:[%s10143_s16 + $0x168] sm:$0xff]  ;;  %v366_v27 = vld [vmem:[%s10143_s16 + $0xd8] sm:$0xff]  ;;  %8267 = vmatprep.subr.bf16.mxu0 %v804_v19 }
  0x18   : > { %8306 = vmatpush3.bf16.msra.mxu1 %v813_v15  ;;  %v812_v28 = vpack.c.bf16 %v384_v25, %v383_v23  ;;  %v803_v29 = vpack.c.bf16 %v366_v27, %v365_v26  ;;  %v349_v30 = vld [vmem:[%s10143_s16 + $0x50] sm:$0xff]  ;;  %v350_v31 = vld [vmem:[%s10143_s16 + $0x58] sm:$0xff]  ;;  %v363_v38 = vld [vmem:[%s10143_s16 + $0xc0] sm:$0xff] }
  0x19   : > { %v397_v32 = vld [vmem:[%s10143_s16 + $0x1d0] sm:$0xff]  ;;  %8307 = vmatprep.subr.bf16.mxu1 %v820_v24  ;;  %v398_v33 = vld [vmem:[%s10143_s16 + $0x1d8] sm:$0xff]  ;;  %v795_v36 = vpack.c.bf16 %v350_v31, %v349_v30  ;;  %v364_v39 = vld [vmem:[%s10143_s16 + $0xc8] sm:$0xff] }
  0x1a   : > { %v381_v34 = vld [vmem:[%s10143_s16 + $0x150] sm:$0xff]  ;;  %v382_v35 = vld [vmem:[%s10143_s16 + $0x158] sm:$0xff]  ;;  %8268 = vmatpush3.bf16.msra.mxu0 %v796_v20  ;;  %v819_v37 = vpack.c.bf16 %v398_v33, %v397_v32  ;;  %v347_v40 = vld [vmem:[%s10143_s16 + $0x40] sm:$0xff]  ;;  %v802_v42 = vpack.c.bf16 %v364_v39, %v363_v38 }
  0x1b   : > { %8269 = vmatprep.subr.bf16.mxu0 %v803_v29  ;;  %v811_v41 = vpack.c.bf16 %v382_v35, %v381_v34  ;;  %v348_v43 = vld [vmem:[%s10143_s16 + $0x48] sm:$0xff]  ;;  %v395_v44 = vld [vmem:[%s10143_s16 + $0x1c0] sm:$0xff]  ;;  %v361_v49 = vld [vmem:[%s10143_s16 + $0xb0] sm:$0xff] }
  0x1c   : > { %8308 = vmatpush3.bf16.msra.mxu1 %v812_v28  ;;  %v396_v45 = vld [vmem:[%s10143_s16 + $0x1c8] sm:$0xff]  ;;  %v379_v47 = vld [vmem:[%s10143_s16 + $0x140] sm:$0xff]  ;;  %v362_v50 = vld [vmem:[%s10143_s16 + $0xb8] sm:$0xff]  ;;  %v794_v51 = vpack.c.bf16 %v348_v43, %v347_v40 }
  0x1d   : > { %8309 = vmatprep.subr.bf16.mxu1 %v819_v37  ;;  %v818_v46 = vpack.c.bf16 %v396_v45, %v395_v44  ;;  %v380_v48 = vld [vmem:[%s10143_s16 + $0x148] sm:$0xff]  ;;  %v393_v52 = vld [vmem:[%s10143_s16 + $0x1b0] sm:$0xff]  ;;  %v394_v53 = vld [vmem:[%s10143_s16 + $0x1b8] sm:$0xff]  ;;  %v801_v55 = vpack.c.bf16 %v362_v50, %v361_v49 }
  0x1e   : > { %8270 = vmatpush3.bf16.msra.mxu0 %v795_v36  ;;  %v810_v54 = vpack.c.bf16 %v380_v48, %v379_v47  ;;  %v345_v56 = vld [vmem:[%s10143_s16 + $0x30] sm:$0xff]  ;;  %v346_v57 = vld [vmem:[%s10143_s16 + $0x38] sm:$0xff]  ;;  %v817_v59 = vpack.c.bf16 %v394_v53, %v393_v52  ;;  %v359_v61 = vld [vmem:[%s10143_s16 + $0xa0] sm:$0xff] }
  0x1f   : > { %8271 = vmatprep.subr.bf16.mxu0 %v802_v42  ;;  %v377_v58 = vld [vmem:[%s10143_s16 + $0x130] sm:$0xff]  ;;  %v378_v60 = vld [vmem:[%s10143_s16 + $0x138] sm:$0xff]  ;;  %v360_v62 = vld [vmem:[%s10143_s16 + $0xa8] sm:$0xff]  ;;  %v793_v2 = vpack.c.bf16 %v346_v57, %v345_v56 }
  0x20   : > { %8310 = vmatpush3.bf16.msra.mxu1 %v811_v41  ;;  %v391_v63 = vld [vmem:[%s10143_s16 + $0x1a0] sm:$0xff]  ;;  %v392_v0 = vld [vmem:[%s10143_s16 + $0x1a8] sm:$0xff]  ;;  %v809_v3 = vpack.c.bf16 %v378_v60, %v377_v58  ;;  %v800_v4 = vpack.c.bf16 %v360_v62, %v359_v61  ;;  %v357_v10 = vld [vmem:[%s10143_s16 + $0x90] sm:$0xff] }
  0x21   : > { %8311 = vmatprep.subr.bf16.mxu1 %v818_v46  ;;  %v343_v5 = vld [vmem:[%s10143_s16 + $0x20] sm:$0xff]  ;;  %v344_v6 = vld [vmem:[%s10143_s16 + $0x28] sm:$0xff]  ;;  %v816_v8 = vpack.c.bf16 %v392_v0, %v391_v63  ;;  %v358_v11 = vld [vmem:[%s10143_s16 + $0x98] sm:$0xff] }
  0x22   : > { %8272 = vmatpush3.bf16.msra.mxu0 %v794_v51  ;;  %v375_v7 = vld [vmem:[%s10143_s16 + $0x120] sm:$0xff]  ;;  %v376_v9 = vld [vmem:[%s10143_s16 + $0x128] sm:$0xff]  ;;  %v389_v12 = vld [vmem:[%s10143_s16 + $0x190] sm:$0xff]  ;;  %v792_v14 = vpack.c.bf16 %v344_v6, %v343_v5  ;;  %v799_v16 = vpack.c.bf16 %v358_v11, %v357_v10 }
  0x23   : > { %8273 = vmatprep.subr.bf16.mxu0 %v801_v55  ;;  %v390_v13 = vld [vmem:[%s10143_s16 + $0x198] sm:$0xff]  ;;  %v808_v15 = vpack.c.bf16 %v376_v9, %v375_v7  ;;  %v341_v17 = vld [vmem:[%s10143_s16 + $0x10] sm:$0xff]  ;;  %v355_v22 = vld [vmem:[%s10143_s16 + $0x80] sm:$0xff] }
  0x24   : > { %8312 = vmatpush3.bf16.msra.mxu1 %v810_v54  ;;  %v342_v18 = vld [vmem:[%s10143_s16 + $0x18] sm:$0xff]  ;;  %v373_v19 = vld [vmem:[%s10143_s16 + $0x110] sm:$0xff]  ;;  %v815_v20 = vpack.c.bf16 %v390_v13, %v389_v12  ;;  %v356_v23 = vld [vmem:[%s10143_s16 + $0x88] sm:$0xff] }
  0x25   : > { %8313 = vmatprep.subr.bf16.mxu1 %v817_v59  ;;  %v374_v21 = vld [vmem:[%s10143_s16 + $0x118] sm:$0xff]  ;;  %v387_v24 = vld [vmem:[%s10143_s16 + $0x180] sm:$0xff]  ;;  %v388_v25 = vld [vmem:[%s10143_s16 + $0x188] sm:$0xff]  ;;  %v791_v26 = vpack.c.bf16 %v342_v18, %v341_v17  ;;  %v798_v28 = vpack.c.bf16 %v356_v23, %v355_v22 }
  0x26   : > { %8274 = vmatpush3.bf16.msra.mxu0 %v793_v2  ;;  %v807_v27 = vpack.c.bf16 %v374_v21, %v373_v19  ;;  %v339_v29 = vld [vmem:[%s10143_s16] sm:$0xff]  ;;  %v340_v30 = vld [vmem:[%s10143_s16 + $0x8] sm:$0xff]  ;;  %v814_v32 = vpack.c.bf16 %v388_v25, %v387_v24  ;;  %v433_v34 = vld [vmem:[%s10143_s16 + $0x2f0] sm:$0xff] }
  0x27   : > { %8275 = vmatprep.subr.bf16.mxu0 %v800_v4  ;;  %v371_v31 = vld [vmem:[%s10143_s16 + $0x100] sm:$0xff]  ;;  %v372_v33 = vld [vmem:[%s10143_s16 + $0x108] sm:$0xff]  ;;  %v434_v35 = vld [vmem:[%s10143_s16 + $0x2f8] sm:$0xff]  ;;  %v790_v38 = vpack.c.bf16 %v340_v30, %v339_v29 }
  0x28   : > { %8314 = vmatpush3.bf16.msra.mxu1 %v809_v3  ;;  %v465_v36 = vld [vmem:[%s10143_s16 + $0x3f0] sm:$0xff]  ;;  %v466_v37 = vld [vmem:[%s10143_s16 + $0x3f8] sm:$0xff]  ;;  %v806_v39 = vpack.c.bf16 %v372_v33, %v371_v31  ;;  %v837_v40 = vpack.c.bf16 %v434_v35, %v433_v34  ;;  %v431_v46 = vld [vmem:[%s10143_s16 + $0x2e0] sm:$0xff] }
  0x29   : > { %8315 = vmatprep.subr.bf16.mxu1 %v816_v8  ;;  %v417_v41 = vld [vmem:[%s10143_s16 + $0x270] sm:$0xff]  ;;  %v418_v42 = vld [vmem:[%s10143_s16 + $0x278] sm:$0xff]  ;;  %v853_v44 = vpack.c.bf16 %v466_v37, %v465_v36  ;;  %v432_v47 = vld [vmem:[%s10143_s16 + $0x2e8] sm:$0xff] }
  0x2a   : > { %8276 = vmatpush3.bf16.msra.mxu0 %v792_v14  ;;  %v449_v43 = vld [vmem:[%s10143_s16 + $0x370] sm:$0xff]  ;;  %v450_v45 = vld [vmem:[%s10143_s16 + $0x378] sm:$0xff]  ;;  %v463_v49 = vld [vmem:[%s10143_s16 + $0x3e0] sm:$0xff]  ;;  %v829_v52 = vpack.c.bf16 %v418_v42, %v417_v41  ;;  %v836_v55 = vpack.c.bf16 %v432_v47, %v431_v46 }
  0x2b   : > { %8277 = vmatprep.subr.bf16.mxu0 %v799_v16  ;;  %v9611_v48 = vld [vmem:[%s12523_s1] ss:$116 sps:$4 sm:$0xff]   ;;  %v464_v50 = vld [vmem:[%s10143_s16 + $0x3e8] sm:$0xff]  ;;  %v845_v54 = vpack.c.bf16 %v450_v45, %v449_v43  ;;  %v430_v62 = vld [vmem:[%s10143_s16 + $0x2d8] sm:$0xff] }
  0x2c   : > { %8316 = vmatpush3.bf16.msra.mxu1 %v808_v15  ;;  %v9614_v51 = vld [vmem:[%s12523_s1 + $0x8] ss:$116 sps:$4 sm:$0xff]   ;;  %v9617_v53 = vld [vmem:[%s12523_s1 + $0xec] ss:$116 sps:$4 sm:$0xff]   ;;  %v852_v59 = vpack.c.bf16 %v464_v50, %v463_v49  ;;  %v429_v61 = vld [vmem:[%s10143_s16 + $0x2d0] sm:$0xff] }
  0x2d   : > { %8317 = vmatprep.subr.bf16.mxu1 %v815_v20  ;;  %v415_v56 = vld [vmem:[%s10143_s16 + $0x260] sm:$0xff]  ;;  %v416_v57 = vld [vmem:[%s10143_s16 + $0x268] sm:$0xff]  ;;  %v461_v0 = vld [vmem:[%s10143_s16 + $0x3d0] sm:$0xff]  ;;  %v835_v8 = vpack.c.bf16 %v430_v62, %v429_v61 }
  0x2e   : > { %8278 = vmatpush3.bf16.msra.mxu0 %v791_v26  ;;  %v447_v58 = vld [vmem:[%s10143_s16 + $0x360] sm:$0xff]  ;;  %v448_v60 = vld [vmem:[%s10143_s16 + $0x368] sm:$0xff]  ;;  %v462_v2 = vld [vmem:[%s10143_s16 + $0x3d8] sm:$0xff]  ;;  %v828_v3 = vpack.c.bf16 %v416_v57, %v415_v56 }
  0x2f   : > { %8279 = vmatprep.subr.bf16.mxu0 %v798_v28  ;;  %v9620_v63 = vld [vmem:[%s12523_s1 + $0xf4] ss:$116 sps:$4 sm:$0xff]   ;;  %v414_v5 = vld [vmem:[%s10143_s16 + $0x258] sm:$0xff]  ;;  %v844_v6 = vpack.c.bf16 %v448_v60, %v447_v58  ;;  %v851_v11 = vpack.c.bf16 %v462_v2, %v461_v0  ;;  %v427_v12 = vld [vmem:[%s10143_s16 + $0x2c0] sm:$0xff] }
  0x30   : > { %8318 = vmatpush3.bf16.msra.mxu1 %v807_v27  ;;  %v413_v4 = vld [vmem:[%s10143_s16 + $0x250] sm:$0xff]  ;;  %v9619_v7 = vld [vmem:[%s12523_s1 + $0xe8] ss:$116 sps:$4 sm:$0xff]   ;;  %v459_v15 = vld [vmem:[%s10143_s16 + $0x3c0] sm:$0xff] }
  0x31   : > { %8319 = vmatprep.subr.bf16.mxu1 %v814_v32  ;;  %v445_v9 = vld [vmem:[%s10143_s16 + $0x350] sm:$0xff]  ;;  %v446_v10 = vld [vmem:[%s10143_s16 + $0x358] sm:$0xff]  ;;  %v428_v13 = vld [vmem:[%s10143_s16 + $0x2c8] sm:$0xff]  ;;  %v827_v17 = vpack.c.bf16 %v414_v5, %v413_v4 }
  0x32   : > { %8280 = vmatpush3.bf16.msra.mxu0 %v790_v38  ;;  %v9622_v14 = vld [vmem:[%s12523_s1 + $0xf0] ss:$116 sps:$4 sm:$0xff]   ;;  %v460_v16 = vld [vmem:[%s10143_s16 + $0x3c8] sm:$0xff]  ;;  %v843_v19 = vpack.c.bf16 %v446_v10, %v445_v9  ;;  %v834_v20 = vpack.c.bf16 %v428_v13, %v427_v12  ;;  %v426_v27 = vld [vmem:[%s10143_s16 + $0x2b8] sm:$0xff] }
  0x33   : > { %8345 = vmatprep.subr.bf16.mxu0 %v837_v40  ;;  %v9623_v18 = vld [vmem:[%s12523_s1 + $0x1d4] ss:$116 sps:$4 sm:$0xff]   ;;  %v411_v21 = vld [vmem:[%s10143_s16 + $0x240] sm:$0xff]  ;;  %v850_v24 = vpack.c.bf16 %v460_v16, %v459_v15  ;;  %v9626_v28 = vld [vmem:[%s12523_s1 + $0x1dc] ss:$116 sps:$4 sm:$0xff]  }
  0x34   : > { %8320 = vmatpush3.bf16.msra.mxu1 %v806_v39  ;;  %v412_v22 = vld [vmem:[%s10143_s16 + $0x248] sm:$0xff]  ;;  %v443_v23 = vld [vmem:[%s10143_s16 + $0x340] sm:$0xff]  ;;  %v425_v26 = vld [vmem:[%s10143_s16 + $0x2b0] sm:$0xff] }
  0x35   : > { %8385 = vmatprep.subr.bf16.mxu1 %v853_v44  ;;  %1814 = vmatmul.mubr.bf16.vlgmr.msra.gmra.mxu0 %v9611_v48  ;;  %v444_v25 = vld [vmem:[%s10143_s16 + $0x348] sm:$0xff]  ;;  %v457_v29 = vld [vmem:[%s10143_s16 + $0x3b0] sm:$0xff]  ;;  %v458_v30 = vld [vmem:[%s10143_s16 + $0x3b8] sm:$0xff]  ;;  %v826_v31 = vpack.c.bf16 %v412_v22, %v411_v21  ;;  %v833_v36 = vpack.c.bf16 %v426_v27, %v425_v26 }
  0x36   : > { %8346 = vmatpush3.bf16.msra.mxu0 %v829_v52  ;;  %1821 = vmatprep.mubr.bf16.mxu0 %v9617_v53  ;;  %v409_v32 = vld [vmem:[%s10143_s16 + $0x230] sm:$0xff]  ;;  %v410_v33 = vld [vmem:[%s10143_s16 + $0x238] sm:$0xff]  ;;  %v842_v34 = vpack.c.bf16 %v444_v25, %v443_v23  ;;  %v849_v39 = vpack.c.bf16 %v458_v30, %v457_v29  ;;  %v423_v40 = vld [vmem:[%s10143_s16 + $0x2a0] sm:$0xff] }
  0x37   : > { %1879 = vmatmul.mubr.bf16.vlgmr.msra.gmra.mxu1 %v9614_v51  ;;  %8347 = vmatprep.subr.bf16.mxu0 %v836_v55  ;;  %v9625_v35 = vld [vmem:[%s12523_s1 + $0x1d0] ss:$116 sps:$4 sm:$0xff]   ;;  %v442_v38 = vld [vmem:[%s10143_s16 + $0x338] sm:$0xff]  ;;  %v424_v41 = vld [vmem:[%s10143_s16 + $0x2a8] sm:$0xff]  ;;  %v825_v45 = vpack.c.bf16 %v410_v33, %v409_v32 }
  0x38   : > { %8386 = vmatpush3.bf16.msra.mxu1 %v845_v54  ;;  %1886 = vmatprep.mubr.bf16.mxu1 %v9620_v63  ;;  %v441_v37 = vld [vmem:[%s10143_s16 + $0x330] sm:$0xff]  ;;  %v9628_v42 = vld [vmem:[%s12523_s1 + $0x1d8] ss:$116 sps:$4 sm:$0xff]   ;;  %v455_v43 = vld [vmem:[%s10143_s16 + $0x3a0] sm:$0xff]  ;;  %v832_v48 = vpack.c.bf16 %v424_v41, %v423_v40 }
  0x39   : > { %8387 = vmatprep.subr.bf16.mxu1 %v852_v59  ;;  %v456_v44 = vld [vmem:[%s10143_s16 + $0x3a8] sm:$0xff]  ;;  %v407_v46 = vld [vmem:[%s10143_s16 + $0x220] sm:$0xff]  ;;  %v841_v47 = vpack.c.bf16 %v442_v38, %v441_v37  ;;  %v9629_v50 = vld [vmem:[%s12523_s1 + $0x2bc] ss:$116 sps:$4 sm:$0xff]  }
  0x3a   : > { %8348 = vmatpush3.bf16.msra.mxu0 %v828_v3  ;;  %v408_v49 = vld [vmem:[%s10143_s16 + $0x228] sm:$0xff]  ;;  %v439_v51 = vld [vmem:[%s10143_s16 + $0x320] sm:$0xff]  ;;  %v848_v52 = vpack.c.bf16 %v456_v44, %v455_v43  ;;  %v421_v54 = vld [vmem:[%s10143_s16 + $0x290] sm:$0xff] }
  0x3b   : > { %8349 = vmatprep.subr.bf16.mxu0 %v835_v8  ;;  %v440_v53 = vld [vmem:[%s10143_s16 + $0x328] sm:$0xff]  ;;  %v422_v55 = vld [vmem:[%s10143_s16 + $0x298] sm:$0xff]  ;;  %v453_v57 = vld [vmem:[%s10143_s16 + $0x390] sm:$0xff]  ;;  %v824_v59 = vpack.c.bf16 %v408_v49, %v407_v46 }
  0x3c   : > { %8388 = vmatpush3.bf16.msra.mxu1 %v844_v6  ;;  %v9632_v56 = vld [vmem:[%s12523_s1 + $0x2c4] ss:$116 sps:$4 sm:$0xff]   ;;  %v405_v60 = vld [vmem:[%s10143_s16 + $0x210] sm:$0xff]  ;;  %v840_v62 = vpack.c.bf16 %v440_v53, %v439_v51  ;;  %v831_v0 = vpack.c.bf16 %v422_v55, %v421_v54  ;;  %v420_v6 = vld [vmem:[%s10143_s16 + $0x288] sm:$0xff] }
  0x3d   : > { %8389 = vmatprep.subr.bf16.mxu1 %v851_v11  ;;  %1822 = vmatmul.mubr.bf16.gmra.mxu0 %v9619_v7  ;;  %v454_v58 = vld [vmem:[%s10143_s16 + $0x398] sm:$0xff]  ;;  %v437_v2 = vld [vmem:[%s10143_s16 + $0x310] sm:$0xff]  ;;  %v419_v5 = vld [vmem:[%s10143_s16 + $0x280] sm:$0xff] }
  0x3e   : > { %8350 = vmatpush3.bf16.msra.mxu0 %v827_v17  ;;  %1829 = vmatprep.mubr.bf16.mxu0 %v9623_v18  ;;  %v406_v61 = vld [vmem:[%s10143_s16 + $0x218] sm:$0xff]  ;;  %v847_v4 = vpack.c.bf16 %v454_v58, %v453_v57  ;;  %v9634_v7 = vld [vmem:[%s12523_s1 + $0x2c0] ss:$116 sps:$4 sm:$0xff]   ;;  %v452_v9 = vld [vmem:[%s10143_s16 + $0x388] sm:$0xff]  ;;  %v830_v13 = vpack.c.bf16 %v420_v6, %v419_v5 }
  0x3f   : > { %1887 = vmatmul.mubr.bf16.gmra.mxu1 %v9622_v14  ;;  %8351 = vmatprep.subr.bf16.mxu0 %v834_v20  ;;  %v9631_v63 = vld [vmem:[%s12523_s1 + $0x2b8] ss:$116 sps:$4 sm:$0xff]   ;;  %v451_v8 = vld [vmem:[%s10143_s16 + $0x380] sm:$0xff]  ;;  %v823_v10 = vpack.c.bf16 %v406_v61, %v405_v60  ;;  %v9637_v15 = vld [vmem:[%s12523_s1 + $0x14] ss:$116 sps:$4 sm:$0xff]  }
  0x40   : > { %8390 = vmatpush3.bf16.msra.mxu1 %v843_v19  ;;  %1894 = vmatprep.mubr.bf16.mxu1 %v9626_v28  ;;  %v438_v3 = vld [vmem:[%s10143_s16 + $0x318] sm:$0xff]  ;;  %v403_v11 = vld [vmem:[%s10143_s16 + $0x200] sm:$0xff]  ;;  %v404_v14 = vld [vmem:[%s10143_s16 + $0x208] sm:$0xff]  ;;  %v846_v17 = vpack.c.bf16 %v452_v9, %v451_v8 }
  0x41   : > { %8391 = vmatprep.subr.bf16.mxu1 %v850_v24  ;;  %v839_v12 = vpack.c.bf16 %v438_v3, %v437_v2  ;;  %v435_v16 = vld [vmem:[%s10143_s16 + $0x300] sm:$0xff]  ;;  %v436_v18 = vld [vmem:[%s10143_s16 + $0x308] sm:$0xff]  ;;  %v497_v19 = vld [vmem:[%s10143_s16 + $0x4f0] sm:$0xff]  ;;  %v822_v24 = vpack.c.bf16 %v404_v14, %v403_v11 }
  0x42   : > { %8352 = vmatpush3.bf16.msra.mxu0 %v826_v31  ;;  %v498_v20 = vld [vmem:[%s10143_s16 + $0x4f8] sm:$0xff]  ;;  %v529_v22 = vld [vmem:[%s10143_s16 + $0x5f0] sm:$0xff]  ;;  %v838_v28 = vpack.c.bf16 %v436_v18, %v435_v16  ;;  %v495_v33 = vld [vmem:[%s10143_s16 + $0x4e0] sm:$0xff] }
  0x43   : > { %8353 = vmatprep.subr.bf16.mxu0 %v833_v36  ;;  %v9640_v21 = vld [vmem:[%s12523_s1 + $0x1c] ss:$116 sps:$4 sm:$0xff]   ;;  %v869_v29 = vpack.c.bf16 %v498_v20, %v497_v19  ;;  %v527_v36 = vld [vmem:[%s10143_s16 + $0x5e0] sm:$0xff]  ;;  %v528_v37 = vld [vmem:[%s10143_s16 + $0x5e8] sm:$0xff] }
  0x44   : > { %8392 = vmatpush3.bf16.msra.mxu1 %v842_v34  ;;  %v530_v23 = vld [vmem:[%s10143_s16 + $0x5f8] sm:$0xff]  ;;  %v481_v25 = vld [vmem:[%s10143_s16 + $0x470] sm:$0xff]  ;;  %v496_v34 = vld [vmem:[%s10143_s16 + $0x4e8] sm:$0xff] }
  0x45   : > { %8393 = vmatprep.subr.bf16.mxu1 %v849_v39  ;;  %1830 = vmatmul.mubr.bf16.gmra.mxu0 %v9625_v35  ;;  %v482_v26 = vld [vmem:[%s10143_s16 + $0x478] sm:$0xff]  ;;  %v9635_v27 = vld [vmem:[%s12523_s1 + $0x10] ss:$116 sps:$4 sm:$0xff]   ;;  %v885_v32 = vpack.c.bf16 %v530_v23, %v529_v22  ;;  %v868_v41 = vpack.c.bf16 %v496_v34, %v495_v33  ;;  %v512_v46 = vld [vmem:[%s10143_s16 + $0x568] sm:$0xff] }
  0x46   : > { %8354 = vmatpush3.bf16.msra.mxu0 %v825_v45  ;;  %1837 = vmatprep.mubr.bf16.mxu0 %v9629_v50  ;;  %v513_v30 = vld [vmem:[%s10143_s16 + $0x570] sm:$0xff]  ;;  %v514_v31 = vld [vmem:[%s10143_s16 + $0x578] sm:$0xff]  ;;  %v861_v38 = vpack.c.bf16 %v482_v26, %v481_v25  ;;  %v479_v39 = vld [vmem:[%s10143_s16 + $0x460] sm:$0xff]  ;;  %v884_v45 = vpack.c.bf16 %v528_v37, %v527_v36 }
  0x47   : > { %1895 = vmatmul.mubr.bf16.gmra.mxu1 %v9628_v42  ;;  %8355 = vmatprep.subr.bf16.mxu0 %v832_v48  ;;  %v9638_v35 = vld [vmem:[%s12523_s1 + $0x18] ss:$116 sps:$4 sm:$0xff]   ;;  %v877_v40 = vpack.c.bf16 %v514_v31, %v513_v30  ;;  %v9641_v43 = vld [vmem:[%s12523_s1 + $0xfc] ss:$116 sps:$4 sm:$0xff]   ;;  %v511_v44 = vld [vmem:[%s10143_s16 + $0x560] sm:$0xff] }
  0x48   : > { %8394 = vmatpush3.bf16.msra.mxu1 %v841_v47  ;;  %1902 = vmatprep.mubr.bf16.mxu1 %v9632_v56  ;;  %v480_v42 = vld [vmem:[%s10143_s16 + $0x468] sm:$0xff]  ;;  %v493_v47 = vld [vmem:[%s10143_s16 + $0x4d0] sm:$0xff]  ;;  %v494_v48 = vld [vmem:[%s10143_s16 + $0x4d8] sm:$0xff]  ;;  %v876_v55 = vpack.c.bf16 %v512_v46, %v511_v44 }
  0x49   : > { %8395 = vmatprep.subr.bf16.mxu1 %v848_v52  ;;  %v9644_v49 = vld [vmem:[%s12523_s1 + $0x104] ss:$116 sps:$4 sm:$0xff]   ;;  %v525_v50 = vld [vmem:[%s10143_s16 + $0x5d0] sm:$0xff]  ;;  %v860_v52 = vpack.c.bf16 %v480_v42, %v479_v39  ;;  %v867_v57 = vpack.c.bf16 %v494_v48, %v493_v47  ;;  %v524_v2 = vld [vmem:[%s10143_s16 + $0x5c8] sm:$0xff] }
  0x4a   : > { %8356 = vmatpush3.bf16.msra.mxu0 %v824_v59  ;;  %v526_v51 = vld [vmem:[%s10143_s16 + $0x5d8] sm:$0xff]  ;;  %v477_v53 = vld [vmem:[%s10143_s16 + $0x450] sm:$0xff]  ;;  %v491_v61 = vld [vmem:[%s10143_s16 + $0x4c0] sm:$0xff] }
  0x4b   : > { %8357 = vmatprep.subr.bf16.mxu0 %v831_v0  ;;  %v478_v54 = vld [vmem:[%s10143_s16 + $0x458] sm:$0xff]  ;;  %v509_v58 = vld [vmem:[%s10143_s16 + $0x550] sm:$0xff]  ;;  %v883_v60 = vpack.c.bf16 %v526_v51, %v525_v50  ;;  %v523_v0 = vld [vmem:[%s10143_s16 + $0x5c0] sm:$0xff] }
  0x4c   : > { %8396 = vmatpush3.bf16.msra.mxu1 %v840_v62  ;;  %v9643_v56 = vld [vmem:[%s12523_s1 + $0xf8] ss:$116 sps:$4 sm:$0xff]   ;;  %v859_v3 = vpack.c.bf16 %v478_v54, %v477_v53  ;;  %v507_v9 = vld [vmem:[%s10143_s16 + $0x540] sm:$0xff]  ;;  %v473_v18 = vld [vmem:[%s10143_s16 + $0x430] sm:$0xff] }
  0x4d   : > { %8397 = vmatprep.subr.bf16.mxu1 %v847_v4  ;;  %1838 = vmatmul.mubr.bf16.gmra.mxu0 %v9631_v63  ;;  %v510_v59 = vld [vmem:[%s10143_s16 + $0x558] sm:$0xff]  ;;  %v492_v62 = vld [vmem:[%s10143_s16 + $0x4c8] sm:$0xff]  ;;  %v9646_v63 = vld [vmem:[%s12523_s1 + $0x100] ss:$116 sps:$4 sm:$0xff]  }
  0x4e   : > { %8358 = vmatpush3.bf16.msra.mxu0 %v823_v10  ;;  %1943 = vmatprep.mubr.bf16.mxu0 %v9637_v15  ;;  %v475_v4 = vld [vmem:[%s10143_s16 + $0x440] sm:$0xff]  ;;  %v875_v5 = vpack.c.bf16 %v510_v59, %v509_v58  ;;  %v866_v6 = vpack.c.bf16 %v492_v62, %v491_v61  ;;  %v882_v10 = vpack.c.bf16 %v524_v2, %v523_v0  ;;  %v508_v11 = vld [vmem:[%s10143_s16 + $0x548] sm:$0xff]  ;;  %v521_v15 = vld [vmem:[%s10143_s16 + $0x5b0] sm:$0xff] }
  0x4f   : > { %1903 = vmatmul.mubr.bf16.gmra.mxu1 %v9634_v7  ;;  %8359 = vmatprep.subr.bf16.mxu0 %v830_v13  ;;  %v476_v7 = vld [vmem:[%s10143_s16 + $0x448] sm:$0xff]  ;;  %v9647_v8 = vld [vmem:[%s12523_s1 + $0x1e4] ss:$116 sps:$4 sm:$0xff]   ;;  %v1142_v20 = vld [vmem:[%s12524_s2 + $0x30] sm:$0xff] }
  0x50   : > { %8398 = vmatpush3.bf16.msra.mxu1 %v839_v12  ;;  %2008 = vmatprep.mubr.bf16.mxu1 %v9640_v21  ;;  %v489_v12 = vld [vmem:[%s10143_s16 + $0x4b0] sm:$0xff]  ;;  %v490_v13 = vld [vmem:[%s10143_s16 + $0x4b8] sm:$0xff]  ;;  %v9650_v14 = vld [vmem:[%s12523_s1 + $0x1ec] ss:$116 sps:$4 sm:$0xff]   ;;  %v874_v21 = vpack.c.bf16 %v508_v11, %v507_v9 }
  0x51   : > { %8399 = vmatprep.subr.bf16.mxu1 %v846_v17  ;;  %v522_v16 = vld [vmem:[%s10143_s16 + $0x5b8] sm:$0xff]  ;;  %v858_v17 = vpack.c.bf16 %v476_v7, %v475_v4  ;;  %v9649_v22 = vld [vmem:[%s12523_s1 + $0x1e0] ss:$116 sps:$4 sm:$0xff]   ;;  %v865_v23 = vpack.c.bf16 %v490_v13, %v489_v12  ;;  %v472_v31 = vld [vmem:[%s10143_s16 + $0x428] sm:$0xff]  ;;  %1176 = vperm.xlu0 %9609, %v1142_v20  }
  0x52   : > { %8360 = vmatpush3.bf16.msra.mxu0 %v822_v24  ;;  %v474_v19 = vld [vmem:[%s10143_s16 + $0x438] sm:$0xff]  ;;  %v505_v24 = vld [vmem:[%s10143_s16 + $0x530] sm:$0xff]  ;;  %v487_v26 = vld [vmem:[%s10143_s16 + $0x4a0] sm:$0xff] }
  0x53   : > { %8425 = vmatprep.subr.bf16.mxu0 %v869_v29  ;;  %v506_v25 = vld [vmem:[%s10143_s16 + $0x538] sm:$0xff]  ;;  %v488_v29 = vld [vmem:[%s10143_s16 + $0x4a8] sm:$0xff]  ;;  %v471_v30 = vld [vmem:[%s10143_s16 + $0x420] sm:$0xff]  ;;  %v857_v34 = vpack.c.bf16 %v474_v19, %v473_v18 }
  0x54   : > { %8400 = vmatpush3.bf16.msra.mxu1 %v838_v28  ;;  %v881_v28 = vpack.c.bf16 %v522_v16, %v521_v15  ;;  %v520_v33 = vld [vmem:[%s10143_s16 + $0x5a8] sm:$0xff]  ;;  %v503_v36 = vld [vmem:[%s10143_s16 + $0x520] sm:$0xff]  ;;  %v1143_v37 = vld [vmem:[%s12524_s2 + $0x38] sm:$0xff]  ;;  %v864_v39 = vpack.c.bf16 %v488_v29, %v487_v26  ;;  %v856_v48 = vpack.c.bf16 %v472_v31, %v471_v30 }
  0x55   : > { %8465 = vmatprep.subr.bf16.mxu1 %v885_v32  ;;  %1944 = vmatmul.mubr.bf16.vlgmr.msra.gmra.mxu0 %v9635_v27  ;;  %v9652_v27 = vld [vmem:[%s12523_s1 + $0x1e8] ss:$116 sps:$4 sm:$0xff]   ;;  %v519_v32 = vld [vmem:[%s10143_s16 + $0x5a0] sm:$0xff]  ;;  %v517_v46 = vld [vmem:[%s10143_s16 + $0x590] sm:$0xff] }
  0x56   : > { %8426 = vmatpush3.bf16.msra.mxu0 %v861_v38  ;;  %1951 = vmatprep.mubr.bf16.mxu0 %v9641_v43  ;;  %v873_v38 = vpack.c.bf16 %v506_v25, %v505_v24  ;;  %v504_v42 = vld [vmem:[%s10143_s16 + $0x528] sm:$0xff]  ;;  %v485_v43 = vld [vmem:[%s10143_s16 + $0x490] sm:$0xff]  ;;  %v486_v44 = vld [vmem:[%s10143_s16 + $0x498] sm:$0xff] }
  0x57   : > { %2009 = vmatmul.mubr.bf16.vlgmr.msra.gmra.mxu1 %v9638_v35  ;;  %8427 = vmatprep.subr.bf16.mxu0 %v868_v41  ;;  %v9653_v35 = vld [vmem:[%s12523_s1 + $0x2cc] ss:$116 sps:$4 sm:$0xff]   ;;  %v880_v41 = vpack.c.bf16 %v520_v33, %v519_v32  ;;  %v518_v47 = vld [vmem:[%s10143_s16 + $0x598] sm:$0xff]  ;;  %v501_v51 = vld [vmem:[%s10143_s16 + $0x510] sm:$0xff]  ;;  %v863_v54 = vpack.c.bf16 %v486_v44, %v485_v43 }
  0x58   : > { %8466 = vmatpush3.bf16.msra.mxu1 %v877_v40  ;;  %2016 = vmatprep.mubr.bf16.mxu1 %v9644_v49  ;;  %v1140_v40 = vld [vmem:[%s12524_s2 + $0x20] sm:$0xff]  ;;  %v469_v49 = vld [vmem:[%s10143_s16 + $0x410] sm:$0xff]  ;;  %v470_v50 = vld [vmem:[%s10143_s16 + $0x418] sm:$0xff]  ;;  %v879_v59 = vpack.c.bf16 %v518_v47, %v517_v46 }
  0x59   : > { %8467 = vmatprep.subr.bf16.mxu1 %v884_v45  ;;  %1166 = vperm.xlu1 %9610, %v1140_v40   ;;  %v9656_v45 = vld [vmem:[%s12523_s1 + $0x2d4] ss:$116 sps:$4 sm:$0xff]   ;;  %v9658_v58 = vld [vmem:[%s12523_s1 + $0x2d0] ss:$116 sps:$4 sm:$0xff]   ;;  %v855_v2 = vpack.c.bf16 %v470_v50, %v469_v49  ;;  %v9664_v12 = vld [vmem:[%s12523_s1 + $0x2c] ss:$116 sps:$4 sm:$0xff]  }
  0x5a   : > { %8428 = vmatpush3.bf16.msra.mxu0 %v860_v52  ;;  %1181 = vperm.xlu0 %9609, %v1143_v37   ;;  %v872_v52 = vpack.c.bf16 %v504_v42, %v503_v36  ;;  %v9655_v53 = vld [vmem:[%s12523_s1 + $0x2c8] ss:$116 sps:$4 sm:$0xff]   ;;  %v515_v62 = vld [vmem:[%s10143_s16 + $0x580] sm:$0xff]  ;;  %v561_v9 = vld [vmem:[%s10143_s16 + $0x6f0] sm:$0xff] }
  0x5b   : > { %8429 = vmatprep.subr.bf16.mxu0 %v867_v57  ;;  %v1138_v57 = vld [vmem:[%s12524_s2 + $0x10] sm:$0xff]  ;;  %v484_v61 = vld [vmem:[%s10143_s16 + $0x488] sm:$0xff]  ;;  %v9661_v4 = vld [vmem:[%s12523_s1 + $0x24] ss:$116 sps:$4 sm:$0xff]  }
  0x5c   : > { %8468 = vmatpush3.bf16.msra.mxu1 %v876_v55  ;;  %v502_v55 = vld [vmem:[%s10143_s16 + $0x518] sm:$0xff]  ;;  %v516_v0 = vld [vmem:[%s10143_s16 + $0x588] sm:$0xff]  ;;  %v1136_v18 = vld [vmem:[%s12524_s2] sm:$0xff] }
  0x5d   : > { %8469 = vmatprep.subr.bf16.mxu1 %v883_v60  ;;  %1952 = vmatmul.mubr.bf16.gmra.mxu0 %v9643_v56  ;;  %v1141_v56 = vld [vmem:[%s12524_s2 + $0x28] sm:$0xff]  ;;  %v483_v60 = vld [vmem:[%s10143_s16 + $0x480] sm:$0xff]  ;;  %v878_v11 = vpack.c.bf16 %v516_v0, %v515_v62  ;;  %v1139_v13 = vld [vmem:[%s12524_s2 + $0x18] sm:$0xff] }
  0x5e   : > { %8430 = vmatpush3.bf16.msra.mxu0 %v859_v3  ;;  %1959 = vmatprep.mubr.bf16.mxu0 %v9647_v8  ;;  %v468_v3 = vld [vmem:[%s10143_s16 + $0x408] sm:$0xff]  ;;  %v862_v7 = vpack.c.bf16 %v484_v61, %v483_v60  ;;  %v594_v15 = vld [vmem:[%s10143_s16 + $0x7f8] sm:$0xff]  ;;  %v9659_v19 = vld [vmem:[%s12523_s1 + $0x20] ss:$116 sps:$4 sm:$0xff]  }
  0x5f   : > { %2017 = vmatmul.mubr.bf16.gmra.mxu1 %v9646_v63  ;;  %8431 = vmatprep.subr.bf16.mxu0 %v866_v6  ;;  %v467_v63 = vld [vmem:[%s10143_s16 + $0x400] sm:$0xff]  ;;  %v871_v6 = vpack.c.bf16 %v502_v55, %v501_v51  ;;  %v500_v8 = vld [vmem:[%s10143_s16 + $0x508] sm:$0xff]  ;;  %v578_v24 = vld [vmem:[%s10143_s16 + $0x778] sm:$0xff] }
  0x60   : > { %8470 = vmatpush3.bf16.msra.mxu1 %v875_v5  ;;  %2024 = vmatprep.mubr.bf16.mxu1 %v9650_v14  ;;  %v499_v5 = vld [vmem:[%s10143_s16 + $0x500] sm:$0xff]  ;;  %v593_v14 = vld [vmem:[%s10143_s16 + $0x7f0] sm:$0xff]  ;;  %v854_v16 = vpack.c.bf16 %v468_v3, %v467_v63  ;;  %v9662_v25 = vld [vmem:[%s12523_s1 + $0x28] ss:$116 sps:$4 sm:$0xff]  }
  0x61   : > { %8471 = vmatprep.subr.bf16.mxu1 %v882_v10  ;;  %1171 = vperm.xlu1 %9610, %v1141_v56   ;;  %v562_v10 = vld [vmem:[%s10143_s16 + $0x6f8] sm:$0xff]  ;;  %v870_v20 = vpack.c.bf16 %v500_v8, %v499_v5  ;;  %v917_v26 = vpack.c.bf16 %v594_v15, %v593_v14  ;;  %v1137_v29 = vld [vmem:[%s12524_s2 + $0x8] sm:$0xff]  ;;  %v543_v30 = vld [vmem:[%s10143_s16 + $0x660] sm:$0xff] }
  0x62   : > { %8432 = vmatpush3.bf16.msra.mxu0 %v858_v17  ;;  %1156 = vperm.xlu0 %9609, %v1138_v57   ;;  %v545_v17 = vld [vmem:[%s10143_s16 + $0x670] sm:$0xff]  ;;  %v544_v31 = vld [vmem:[%s10143_s16 + $0x668] sm:$0xff]  ;;  %v591_v32 = vld [vmem:[%s10143_s16 + $0x7e0] sm:$0xff] }
  0x63   : > { %8433 = vmatprep.subr.bf16.mxu0 %v865_v23  ;;  %v577_v23 = vld [vmem:[%s10143_s16 + $0x770] sm:$0xff]  ;;  %v592_v33 = vld [vmem:[%s10143_s16 + $0x7e8] sm:$0xff]  ;;  %v558_v42 = vld [vmem:[%s10143_s16 + $0x6d8] sm:$0xff]  ;;  %v892_v46 = vpack.c.bf16 %v544_v31, %v543_v30 }
  0x64   : > { %8472 = vmatpush3.bf16.msra.mxu1 %v874_v21  ;;  %v901_v21 = vpack.c.bf16 %v562_v10, %v561_v9  ;;  %v909_v36 = vpack.c.bf16 %v578_v24, %v577_v23  ;;  %v557_v40 = vld [vmem:[%s10143_s16 + $0x6d0] sm:$0xff]  ;;  %v542_v51 = vld [vmem:[%s10143_s16 + $0x658] sm:$0xff]  ;;  %v555_v56 = vld [vmem:[%s10143_s16 + $0x6c0] sm:$0xff] }
  0x65   : > { %8473 = vmatprep.subr.bf16.mxu1 %v881_v28  ;;  %1960 = vmatmul.mubr.bf16.gmra.mxu0 %v9649_v22  ;;  %v546_v22 = vld [vmem:[%s10143_s16 + $0x678] sm:$0xff]  ;;  %v560_v28 = vld [vmem:[%s10143_s16 + $0x6e8] sm:$0xff]  ;;  %v589_v44 = vld [vmem:[%s10143_s16 + $0x7d0] sm:$0xff]  ;;  %v899_v49 = vpack.c.bf16 %v558_v42, %v557_v40 }
  0x66   : > { %8434 = vmatpush3.bf16.msra.mxu0 %v857_v34  ;;  %1967 = vmatprep.mubr.bf16.mxu0 %v9653_v35  ;;  %v893_v34 = vpack.c.bf16 %v546_v22, %v545_v17  ;;  %v9665_v35 = vld [vmem:[%s12523_s1 + $0x10c] ss:$116 sps:$4 sm:$0xff]   ;;  %v9668_v43 = vld [vmem:[%s12523_s1 + $0x114] ss:$116 sps:$4 sm:$0xff]   ;;  %v574_v55 = vld [vmem:[%s10143_s16 + $0x758] sm:$0xff] }
  0x67   : > { %2025 = vmatmul.mubr.bf16.gmra.mxu1 %v9652_v27  ;;  %8435 = vmatprep.subr.bf16.mxu0 %v864_v39  ;;  %v559_v27 = vld [vmem:[%s10143_s16 + $0x6e0] sm:$0xff]  ;;  %v576_v39 = vld [vmem:[%s10143_s16 + $0x768] sm:$0xff]  ;;  %v541_v50 = vld [vmem:[%s10143_s16 + $0x650] sm:$0xff] }
  0x68   : > { %8474 = vmatpush3.bf16.msra.mxu1 %v873_v38  ;;  %2032 = vmatprep.mubr.bf16.mxu1 %v9656_v45  ;;  %v900_v37 = vpack.c.bf16 %v560_v28, %v559_v27  ;;  %v575_v38 = vld [vmem:[%s10143_s16 + $0x760] sm:$0xff]  ;;  %v590_v45 = vld [vmem:[%s10143_s16 + $0x7d8] sm:$0xff]  ;;  %v556_v57 = vld [vmem:[%s10143_s16 + $0x6c8] sm:$0xff]  ;;  %v891_v62 = vpack.c.bf16 %v542_v51, %v541_v50 }
  0x69   : > { %8475 = vmatprep.subr.bf16.mxu1 %v880_v41  ;;  %1161 = vperm.xlu1 %9610, %v1139_v13   ;;  %v916_v41 = vpack.c.bf16 %v592_v33, %v591_v32  ;;  %v908_v47 = vpack.c.bf16 %v576_v39, %v575_v38  ;;  %v587_v60 = vld [vmem:[%s10143_s16 + $0x7c0] sm:$0xff]  ;;  %v588_v61 = vld [vmem:[%s10143_s16 + $0x7c8] sm:$0xff]  ;;  %v553_v5 = vld [vmem:[%s10143_s16 + $0x6b0] sm:$0xff] }
  0x6a   : > { %8436 = vmatpush3.bf16.msra.mxu0 %v856_v48  ;;  %1146 = vperm.xlu0 %9609, %v1136_v18   ;;  %v9667_v48 = vld [vmem:[%s12523_s1 + $0x108] ss:$116 sps:$4 sm:$0xff]   ;;  %v571_v3 = vld [vmem:[%s10143_s16 + $0x740] sm:$0xff]  ;;  %v585_v9 = vld [vmem:[%s10143_s16 + $0x7b0] sm:$0xff] }
  0x6b   : > { %8437 = vmatprep.subr.bf16.mxu0 %v863_v54  ;;  %v915_v54 = vpack.c.bf16 %v590_v45, %v589_v44  ;;  %v9671_v63 = vld [vmem:[%s12523_s1 + $0x1f4] ss:$116 sps:$4 sm:$0xff]   ;;  %v9674_v8 = vld [vmem:[%s12523_s1 + $0x1fc] ss:$116 sps:$4 sm:$0xff]   ;;  %v9676_v18 = vld [vmem:[%s12523_s1 + $0x1f8] ss:$116 sps:$4 sm:$0xff]  }
  0x6c   : > { %8476 = vmatpush3.bf16.msra.mxu1 %v872_v52  ;;  %v573_v52 = vld [vmem:[%s10143_s16 + $0x750] sm:$0xff]  ;;  %v586_v10 = vld [vmem:[%s10143_s16 + $0x7b8] sm:$0xff]  ;;  %v552_v22 = vld [vmem:[%s10143_s16 + $0x6a8] sm:$0xff] }
  0x6d   : > { %8477 = vmatprep.subr.bf16.mxu1 %v879_v59  ;;  %1968 = vmatmul.mubr.bf16.gmra.mxu0 %v9655_v53  ;;  %v9670_v53 = vld [vmem:[%s12523_s1 + $0x110] ss:$116 sps:$4 sm:$0xff]   ;;  %v540_v59 = vld [vmem:[%s10143_s16 + $0x648] sm:$0xff]  ;;  %v907_v0 = vpack.c.bf16 %v574_v55, %v573_v52  ;;  %v582_v38 = vld [vmem:[%s10143_s16 + $0x798] sm:$0xff] }
  0x6e   : > { %8438 = vmatpush3.bf16.msra.mxu0 %v855_v2  ;;  %2073 = vmatprep.mubr.bf16.mxu0 %v9661_v4  ;;  %v898_v2 = vpack.c.bf16 %v556_v57, %v555_v56  ;;  %v572_v4 = vld [vmem:[%s10143_s16 + $0x748] sm:$0xff]  ;;  %v9673_v13 = vld [vmem:[%s12523_s1 + $0x1f0] ss:$116 sps:$4 sm:$0xff]   ;;  %v534_v44 = vld [vmem:[%s10143_s16 + $0x618] sm:$0xff] }
  0x6f   : > { %2033 = vmatmul.mubr.bf16.gmra.mxu1 %v9658_v58  ;;  %8439 = vmatprep.subr.bf16.mxu0 %v862_v7  ;;  %v539_v58 = vld [vmem:[%s10143_s16 + $0x640] sm:$0xff]  ;;  %v554_v7 = vld [vmem:[%s10143_s16 + $0x6b8] sm:$0xff]  ;;  %v537_v15 = vld [vmem:[%s10143_s16 + $0x630] sm:$0xff] }
  0x70   : > { %8478 = vmatpush3.bf16.msra.mxu1 %v871_v6  ;;  %2138 = vmatprep.mubr.bf16.mxu1 %v9664_v12  ;;  %v914_v6 = vpack.c.bf16 %v588_v61, %v587_v60  ;;  %v906_v12 = vpack.c.bf16 %v572_v4, %v571_v3  ;;  %v897_v14 = vpack.c.bf16 %v554_v7, %v553_v5  ;;  %v569_v17 = vld [vmem:[%s10143_s16 + $0x730] sm:$0xff]  ;;  %v535_v23 = vld [vmem:[%s10143_s16 + $0x620] sm:$0xff]  ;;  %v536_v24 = vld [vmem:[%s10143_s16 + $0x628] sm:$0xff] }
  0x71   : > { %8479 = vmatprep.subr.bf16.mxu1 %v878_v11  ;;  %1151 = vperm.xlu1 %9610, %v1137_v29   ;;  %v890_v11 = vpack.c.bf16 %v540_v59, %v539_v58  ;;  %v9677_v28 = vld [vmem:[%s12523_s1 + $0x2dc] ss:$116 sps:$4 sm:$0xff]   ;;  %v567_v31 = vld [vmem:[%s10143_s16 + $0x720] sm:$0xff]  ;;  %v568_v32 = vld [vmem:[%s10143_s16 + $0x728] sm:$0xff]  ;;  %v888_v39 = vpack.c.bf16 %v536_v24, %v535_v23 }
  0x72   : > { %8440 = vmatpush3.bf16.msra.mxu0 %v854_v16  ;;  %v538_v16 = vld [vmem:[%s10143_s16 + $0x638] sm:$0xff]  ;;  %v549_v33 = vld [vmem:[%s10143_s16 + $0x690] sm:$0xff]  ;;  %v904_v40 = vpack.c.bf16 %v568_v32, %v567_v31  ;;  %v548_v50 = vld [vmem:[%s10143_s16 + $0x688] sm:$0xff] }
  0x73   : > { %8505 = vmatprep.subr.bf16.mxu0 %v901_v21  ;;  %v551_v21 = vld [vmem:[%s10143_s16 + $0x6a0] sm:$0xff]  ;;  %v889_v27 = vpack.c.bf16 %v538_v16, %v537_v15  ;;  %v565_v45 = vld [vmem:[%s10143_s16 + $0x710] sm:$0xff]  ;;  %v532_v52 = vld [vmem:[%s10143_s16 + $0x608] sm:$0xff] }
  0x74   : > { %8480 = vmatpush3.bf16.msra.mxu1 %v870_v20  ;;  %v570_v20 = vld [vmem:[%s10143_s16 + $0x738] sm:$0xff]  ;;  %v896_v30 = vpack.c.bf16 %v552_v22, %v551_v21  ;;  %v531_v51 = vld [vmem:[%s10143_s16 + $0x600] sm:$0xff]  ;;  %v9685_v56 = vld [vmem:[%s12523_s1 + $0x34] ss:$116 sps:$4 sm:$0xff]  }
  0x75   : > { %8545 = vmatprep.subr.bf16.mxu1 %v917_v26  ;;  %2074 = vmatmul.mubr.bf16.vlgmr.msra.gmra.mxu0 %v9659_v19  ;;  %v913_v19 = vpack.c.bf16 %v586_v10, %v585_v9  ;;  %v584_v26 = vld [vmem:[%s10143_s16 + $0x7a8] sm:$0xff]  ;;  %v905_v29 = vpack.c.bf16 %v570_v20, %v569_v17  ;;  %v563_v59 = vld [vmem:[%s10143_s16 + $0x700] sm:$0xff]  ;;  %v625_v61 = vld [vmem:[%s10143_s16 + $0x8f0] sm:$0xff]  ;;  %v886_v4 = vpack.c.bf16 %v532_v52, %v531_v51 }
  0x76   : > { %8506 = vmatpush3.bf16.msra.mxu0 %v893_v34  ;;  %2081 = vmatprep.mubr.bf16.mxu0 %v9665_v35  ;;  %v550_v35 = vld [vmem:[%s10143_s16 + $0x698] sm:$0xff]  ;;  %v564_v60 = vld [vmem:[%s10143_s16 + $0x708] sm:$0xff]  ;;  %v9683_v5 = vld [vmem:[%s12523_s1 + $0x30] ss:$116 sps:$4 sm:$0xff]  }
  0x77   : > { %2139 = vmatmul.mubr.bf16.vlgmr.msra.gmra.mxu1 %v9662_v25  ;;  %8507 = vmatprep.subr.bf16.mxu0 %v900_v37  ;;  %v583_v25 = vld [vmem:[%s10143_s16 + $0x7a0] sm:$0xff]  ;;  %v581_v37 = vld [vmem:[%s10143_s16 + $0x790] sm:$0xff]  ;;  %v895_v42 = vpack.c.bf16 %v550_v35, %v549_v33  ;;  %v658_v3 = vld [vmem:[%s10143_s16 + $0x9f8] sm:$0xff] }
  0x78   : > { %8546 = vmatpush3.bf16.msra.mxu1 %v909_v36  ;;  %2146 = vmatprep.mubr.bf16.mxu1 %v9668_v43  ;;  %v912_v34 = vpack.c.bf16 %v584_v26, %v583_v25  ;;  %v9680_v36 = vld [vmem:[%s12523_s1 + $0x2e4] ss:$116 sps:$4 sm:$0xff]   ;;  %v533_v43 = vld [vmem:[%s10143_s16 + $0x610] sm:$0xff]  ;;  %v624_v15 = vld [vmem:[%s10143_s16 + $0x8e8] sm:$0xff] }
  0x79   : > { %8547 = vmatprep.subr.bf16.mxu1 %v916_v41  ;;  %v9679_v41 = vld [vmem:[%s12523_s1 + $0x2d8] ss:$116 sps:$4 sm:$0xff]   ;;  %v887_v55 = vpack.c.bf16 %v534_v44, %v533_v43  ;;  %v641_v10 = vld [vmem:[%s10143_s16 + $0x970] sm:$0xff]  ;;  %v607_v16 = vld [vmem:[%s10143_s16 + $0x860] sm:$0xff] }
  0x7a   : > { %8508 = vmatpush3.bf16.msra.mxu0 %v892_v46  ;;  %v9682_v46 = vld [vmem:[%s12523_s1 + $0x2e0] ss:$116 sps:$4 sm:$0xff]   ;;  %v610_v9 = vld [vmem:[%s10143_s16 + $0x878] sm:$0xff]  ;;  %v608_v17 = vld [vmem:[%s10143_s16 + $0x868] sm:$0xff] }
  0x7b   : > { %8509 = vmatprep.subr.bf16.mxu0 %v899_v49  ;;  %v547_v49 = vld [vmem:[%s10143_s16 + $0x680] sm:$0xff]  ;;  %v9689_v21 = vld [vmem:[%s12523_s1 + $0x11c] ss:$116 sps:$4 sm:$0xff]   ;;  %v640_v25 = vld [vmem:[%s10143_s16 + $0x968] sm:$0xff]  ;;  %v924_v32 = vpack.c.bf16 %v608_v17, %v607_v16 }
  0x7c   : > { %8548 = vmatpush3.bf16.msra.mxu1 %v908_v47  ;;  %v911_v47 = vpack.c.bf16 %v582_v38, %v581_v37  ;;  %v894_v58 = vpack.c.bf16 %v548_v50, %v547_v49  ;;  %v639_v24 = vld [vmem:[%s10143_s16 + $0x960] sm:$0xff]  ;;  %v621_v26 = vld [vmem:[%s10143_s16 + $0x8d0] sm:$0xff]  ;;  %v654_v31 = vld [vmem:[%s10143_s16 + $0x9d8] sm:$0xff] }
  0x7d   : > { %8549 = vmatprep.subr.bf16.mxu1 %v915_v54  ;;  %2082 = vmatmul.mubr.bf16.gmra.mxu0 %v9667_v48  ;;  %v566_v48 = vld [vmem:[%s10143_s16 + $0x718] sm:$0xff]  ;;  %v580_v54 = vld [vmem:[%s10143_s16 + $0x788] sm:$0xff]  ;;  %v940_v33 = vpack.c.bf16 %v640_v25, %v639_v24  ;;  %v637_v38 = vld [vmem:[%s10143_s16 + $0x950] sm:$0xff] }
  0x7e   : > { %8510 = vmatpush3.bf16.msra.mxu0 %v891_v62  ;;  %2089 = vmatprep.mubr.bf16.mxu0 %v9671_v63  ;;  %v903_v57 = vpack.c.bf16 %v566_v48, %v565_v45  ;;  %v626_v63 = vld [vmem:[%s10143_s16 + $0x8f8] sm:$0xff]  ;;  %v620_v43 = vld [vmem:[%s10143_s16 + $0x8c8] sm:$0xff]  ;;  %v603_v44 = vld [vmem:[%s10143_s16 + $0x840] sm:$0xff] }
  0x7f   : > { %2147 = vmatmul.mubr.bf16.gmra.mxu1 %v9670_v53  ;;  %8511 = vmatprep.subr.bf16.mxu0 %v898_v2  ;;  %v579_v53 = vld [vmem:[%s10143_s16 + $0x780] sm:$0xff]  ;;  %v657_v2 = vld [vmem:[%s10143_s16 + $0x9f0] sm:$0xff]  ;;  %v933_v7 = vpack.c.bf16 %v626_v63, %v625_v61  ;;  %v606_v37 = vld [vmem:[%s10143_s16 + $0x858] sm:$0xff] }
  0x80   : > { %8550 = vmatpush3.bf16.msra.mxu1 %v907_v0  ;;  %2154 = vmatprep.mubr.bf16.mxu1 %v9674_v8  ;;  %v910_v62 = vpack.c.bf16 %v580_v54, %v579_v53  ;;  %v9688_v0 = vld [vmem:[%s12523_s1 + $0x3c] ss:$116 sps:$4 sm:$0xff]   ;;  %v604_v45 = vld [vmem:[%s10143_s16 + $0x848] sm:$0xff]  ;;  %v9695_v49 = vld [vmem:[%s12523_s1 + $0x204] ss:$116 sps:$4 sm:$0xff]  }
  0x81   : > { %8551 = vmatprep.subr.bf16.mxu1 %v914_v6  ;;  %v902_v6 = vpack.c.bf16 %v564_v60, %v563_v59  ;;  %v609_v8 = vld [vmem:[%s10143_s16 + $0x870] sm:$0xff]  ;;  %v635_v52 = vld [vmem:[%s10143_s16 + $0x940] sm:$0xff]  ;;  %v636_v53 = vld [vmem:[%s10143_s16 + $0x948] sm:$0xff]  ;;  %v922_v60 = vpack.c.bf16 %v604_v45, %v603_v44 }
  0x82   : > { %8512 = vmatpush3.bf16.msra.mxu0 %v890_v11  ;;  %v9686_v11 = vld [vmem:[%s12523_s1 + $0x38] ss:$116 sps:$4 sm:$0xff]   ;;  %v925_v20 = vpack.c.bf16 %v610_v9, %v609_v8  ;;  %v617_v54 = vld [vmem:[%s10143_s16 + $0x8b0] sm:$0xff]  ;;  %v938_v61 = vpack.c.bf16 %v636_v53, %v635_v52  ;;  %v599_v9 = vld [vmem:[%s10143_s16 + $0x820] sm:$0xff] }
  0x83   : > { %8513 = vmatprep.subr.bf16.mxu0 %v897_v14  ;;  %v623_v14 = vld [vmem:[%s10143_s16 + $0x8e0] sm:$0xff]  ;;  %v650_v59 = vld [vmem:[%s10143_s16 + $0x9b8] sm:$0xff]  ;;  %v616_v8 = vld [vmem:[%s10143_s16 + $0x8a8] sm:$0xff] }
  0x84   : > { %8552 = vmatpush3.bf16.msra.mxu1 %v906_v12  ;;  %v949_v12 = vpack.c.bf16 %v658_v3, %v657_v2  ;;  %v932_v23 = vpack.c.bf16 %v624_v15, %v623_v14  ;;  %v602_v2 = vld [vmem:[%s10143_s16 + $0x838] sm:$0xff]  ;;  %v633_v3 = vld [vmem:[%s10143_s16 + $0x930] sm:$0xff]  ;;  %v9701_v14 = vld [vmem:[%s12523_s1 + $0x2ec] ss:$116 sps:$4 sm:$0xff]  }
  0x85   : > { %8553 = vmatprep.subr.bf16.mxu1 %v913_v19  ;;  %2090 = vmatmul.mubr.bf16.gmra.mxu0 %v9673_v13  ;;  %v642_v13 = vld [vmem:[%s10143_s16 + $0x978] sm:$0xff]  ;;  %v656_v19 = vld [vmem:[%s10143_s16 + $0x9e8] sm:$0xff]  ;;  %v631_v17 = vld [vmem:[%s10143_s16 + $0x920] sm:$0xff] }
  0x86   : > { %8514 = vmatpush3.bf16.msra.mxu0 %v889_v27  ;;  %2097 = vmatprep.mubr.bf16.mxu0 %v9677_v28  ;;  %v941_v22 = vpack.c.bf16 %v642_v13, %v641_v10  ;;  %v622_v28 = vld [vmem:[%s10143_s16 + $0x8d8] sm:$0xff]  ;;  %v600_v10 = vld [vmem:[%s10143_s16 + $0x828] sm:$0xff]  ;;  %v627_v45 = vld [vmem:[%s10143_s16 + $0x900] sm:$0xff] }
  0x87   : > { %2155 = vmatmul.mubr.bf16.gmra.mxu1 %v9676_v18  ;;  %8515 = vmatprep.subr.bf16.mxu0 %v896_v30  ;;  %v655_v18 = vld [vmem:[%s10143_s16 + $0x9e0] sm:$0xff]  ;;  %v653_v30 = vld [vmem:[%s10143_s16 + $0x9d0] sm:$0xff]  ;;  %v931_v35 = vpack.c.bf16 %v622_v28, %v621_v26  ;;  %v646_v24 = vld [vmem:[%s10143_s16 + $0x998] sm:$0xff]  ;;  %v920_v25 = vpack.c.bf16 %v600_v10, %v599_v9 }
  0x88   : > { %8554 = vmatpush3.bf16.msra.mxu1 %v905_v29  ;;  %2162 = vmatprep.mubr.bf16.mxu1 %v9680_v36  ;;  %v948_v27 = vpack.c.bf16 %v656_v19, %v655_v18  ;;  %v9692_v29 = vld [vmem:[%s12523_s1 + $0x124] ss:$116 sps:$4 sm:$0xff]   ;;  %v605_v36 = vld [vmem:[%s10143_s16 + $0x850] sm:$0xff]  ;;  %v632_v18 = vld [vmem:[%s10143_s16 + $0x928] sm:$0xff] }
  0x89   : > { %8555 = vmatprep.subr.bf16.mxu1 %v912_v34  ;;  %v9691_v34 = vld [vmem:[%s12523_s1 + $0x118] ss:$116 sps:$4 sm:$0xff]   ;;  %v923_v48 = vpack.c.bf16 %v606_v37, %v605_v36  ;;  %v613_v19 = vld [vmem:[%s10143_s16 + $0x890] sm:$0xff]  ;;  %v936_v26 = vpack.c.bf16 %v632_v18, %v631_v17  ;;  %v595_v37 = vld [vmem:[%s10143_s16 + $0x800] sm:$0xff] }
  0x8a   : > { %8516 = vmatpush3.bf16.msra.mxu0 %v888_v39  ;;  %v9694_v39 = vld [vmem:[%s12523_s1 + $0x120] ss:$116 sps:$4 sm:$0xff]   ;;  %v612_v36 = vld [vmem:[%s10143_s16 + $0x888] sm:$0xff]  ;;  %v722_v52 = vld [vmem:[%s10143_s16 + $0xbf8] sm:$0xff] }
  0x8b   : > { %8517 = vmatprep.subr.bf16.mxu0 %v895_v42  ;;  %v619_v42 = vld [vmem:[%s10143_s16 + $0x8c0] sm:$0xff]  ;;  %v718_v17 = vld [vmem:[%s10143_s16 + $0xbd8] sm:$0xff] }
  0x8c   : > { %8556 = vmatpush3.bf16.msra.mxu1 %v904_v40  ;;  %v947_v40 = vpack.c.bf16 %v654_v31, %v653_v30  ;;  %v930_v51 = vpack.c.bf16 %v620_v43, %v619_v42  ;;  %v598_v30 = vld [vmem:[%s10143_s16 + $0x818] sm:$0xff]  ;;  %v629_v31 = vld [vmem:[%s10143_s16 + $0x910] sm:$0xff]  ;;  %v703_v10 = vld [vmem:[%s10143_s16 + $0xb60] sm:$0xff] }
  0x8d   : > { %8557 = vmatprep.subr.bf16.mxu1 %v911_v47  ;;  %2098 = vmatmul.mubr.bf16.gmra.mxu0 %v9679_v41  ;;  %v638_v41 = vld [vmem:[%s10143_s16 + $0x958] sm:$0xff]  ;;  %v652_v47 = vld [vmem:[%s10143_s16 + $0x9c8] sm:$0xff] }
  0x8e   : > { %8518 = vmatpush3.bf16.msra.mxu0 %v887_v55  ;;  %2203 = vmatprep.mubr.bf16.mxu0 %v9685_v56  ;;  %v939_v50 = vpack.c.bf16 %v638_v41, %v637_v38  ;;  %v618_v56 = vld [vmem:[%s10143_s16 + $0x8b8] sm:$0xff]  ;;  %v596_v38 = vld [vmem:[%s10143_s16 + $0x808] sm:$0xff] }
  0x8f   : > { %2163 = vmatmul.mubr.bf16.gmra.mxu1 %v9682_v46  ;;  %8519 = vmatprep.subr.bf16.mxu0 %v894_v58  ;;  %v651_v46 = vld [vmem:[%s10143_s16 + $0x9c0] sm:$0xff]  ;;  %v649_v58 = vld [vmem:[%s10143_s16 + $0x9b0] sm:$0xff]  ;;  %v929_v63 = vpack.c.bf16 %v618_v56, %v617_v54  ;;  %v918_v53 = vpack.c.bf16 %v596_v38, %v595_v37 }
  0x90   : > { %8558 = vmatpush3.bf16.msra.mxu1 %v903_v57  ;;  %2268 = vmatprep.mubr.bf16.mxu1 %v9688_v0  ;;  %v946_v55 = vpack.c.bf16 %v652_v47, %v651_v46  ;;  %v9698_v57 = vld [vmem:[%s12523_s1 + $0x20c] ss:$116 sps:$4 sm:$0xff]   ;;  %v601_v0 = vld [vmem:[%s10143_s16 + $0x830] sm:$0xff]  ;;  %v9709_v42 = vld [vmem:[%s12523_s1 + $0x44] ss:$116 sps:$4 sm:$0xff]  }
  0x91   : > { %8559 = vmatprep.subr.bf16.mxu1 %v910_v62  ;;  %v9697_v62 = vld [vmem:[%s12523_s1 + $0x200] ss:$116 sps:$4 sm:$0xff]   ;;  %v921_v13 = vpack.c.bf16 %v602_v2, %v601_v0  ;;  %v628_v46 = vld [vmem:[%s10143_s16 + $0x908] sm:$0xff] }
  0x92   : > { %8520 = vmatpush3.bf16.msra.mxu0 %v886_v4  ;;  %v9700_v4 = vld [vmem:[%s12523_s1 + $0x208] ss:$116 sps:$4 sm:$0xff]   ;;  %v689_v47 = vld [vmem:[%s10143_s16 + $0xaf0] sm:$0xff]  ;;  %v671_v2 = vld [vmem:[%s10143_s16 + $0xa60] sm:$0xff] }
  0x93   : > { %8585 = vmatprep.subr.bf16.mxu0 %v933_v7  ;;  %v615_v7 = vld [vmem:[%s10143_s16 + $0x8a0] sm:$0xff]  ;;  %v688_v0 = vld [vmem:[%s10143_s16 + $0xae8] sm:$0xff] }
  0x94   : > { %8560 = vmatpush3.bf16.msra.mxu1 %v902_v6  ;;  %v634_v6 = vld [vmem:[%s10143_s16 + $0x938] sm:$0xff]  ;;  %v928_v16 = vpack.c.bf16 %v616_v8, %v615_v7  ;;  %v9707_v54 = vld [vmem:[%s12523_s1 + $0x40] ss:$116 sps:$4 sm:$0xff]  }
  0x95   : > { %8625 = vmatprep.subr.bf16.mxu1 %v949_v12  ;;  %2204 = vmatmul.mubr.bf16.vlgmr.msra.gmra.mxu0 %v9683_v5  ;;  %v945_v5 = vpack.c.bf16 %v650_v59, %v649_v58  ;;  %v648_v12 = vld [vmem:[%s10143_s16 + $0x9a8] sm:$0xff]  ;;  %v937_v15 = vpack.c.bf16 %v634_v6, %v633_v3  ;;  %v674_v58 = vld [vmem:[%s10143_s16 + $0xa78] sm:$0xff]  ;;  %v705_v59 = vld [vmem:[%s10143_s16 + $0xb70] sm:$0xff] }
  0x96   : > { %8586 = vmatpush3.bf16.msra.mxu0 %v925_v20  ;;  %2211 = vmatprep.mubr.bf16.mxu0 %v9689_v21  ;;  %v614_v21 = vld [vmem:[%s10143_s16 + $0x898] sm:$0xff]  ;;  %v672_v3 = vld [vmem:[%s10143_s16 + $0xa68] sm:$0xff]  ;;  %v699_v38 = vld [vmem:[%s10143_s16 + $0xb40] sm:$0xff] }
  0x97   : > { %2269 = vmatmul.mubr.bf16.vlgmr.msra.gmra.mxu1 %v9686_v11  ;;  %8587 = vmatprep.subr.bf16.mxu0 %v932_v23  ;;  %v647_v11 = vld [vmem:[%s10143_s16 + $0x9a0] sm:$0xff]  ;;  %v645_v23 = vld [vmem:[%s10143_s16 + $0x990] sm:$0xff]  ;;  %v927_v28 = vpack.c.bf16 %v614_v21, %v613_v19  ;;  %v956_v18 = vpack.c.bf16 %v672_v3, %v671_v2 }
  0x98   : > { %8626 = vmatpush3.bf16.msra.mxu1 %v941_v22  ;;  %2276 = vmatprep.mubr.bf16.mxu1 %v9692_v29  ;;  %v944_v20 = vpack.c.bf16 %v648_v12, %v647_v11  ;;  %v9704_v22 = vld [vmem:[%s12523_s1 + $0x2f4] ss:$116 sps:$4 sm:$0xff]   ;;  %v9713_v7 = vld [vmem:[%s12523_s1 + $0x12c] ss:$116 sps:$4 sm:$0xff]  }
  0x99   : > { %8627 = vmatprep.subr.bf16.mxu1 %v948_v27  ;;  %v9703_v27 = vld [vmem:[%s12523_s1 + $0x2e8] ss:$116 sps:$4 sm:$0xff]   ;;  %v597_v29 = vld [vmem:[%s10143_s16 + $0x810] sm:$0xff]  ;;  %v695_v3 = vld [vmem:[%s10143_s16 + $0xb20] sm:$0xff] }
  0x9a   : > { %8588 = vmatpush3.bf16.msra.mxu0 %v924_v32  ;;  %v9706_v32 = vld [vmem:[%s12523_s1 + $0x2f0] ss:$116 sps:$4 sm:$0xff]   ;;  %v919_v41 = vpack.c.bf16 %v598_v30, %v597_v29  ;;  %v704_v11 = vld [vmem:[%s10143_s16 + $0xb68] sm:$0xff] }
  0x9b   : > { %8589 = vmatprep.subr.bf16.mxu0 %v931_v35  ;;  %v611_v35 = vld [vmem:[%s10143_s16 + $0x880] sm:$0xff]  ;;  %v685_v12 = vld [vmem:[%s10143_s16 + $0xad0] sm:$0xff]  ;;  %v972_v19 = vpack.c.bf16 %v704_v11, %v703_v10  ;;  %v684_v29 = vld [vmem:[%s10143_s16 + $0xac8] sm:$0xff] }
  0x9c   : > { %8628 = vmatpush3.bf16.msra.mxu1 %v940_v33  ;;  %v943_v33 = vpack.c.bf16 %v646_v24, %v645_v23  ;;  %v926_v44 = vpack.c.bf16 %v612_v36, %v611_v35  ;;  %v670_v23 = vld [vmem:[%s10143_s16 + $0xa58] sm:$0xff]  ;;  %v701_v24 = vld [vmem:[%s10143_s16 + $0xb50] sm:$0xff]  ;;  %v667_v30 = vld [vmem:[%s10143_s16 + $0xa40] sm:$0xff] }
  0x9d   : > { %8629 = vmatprep.subr.bf16.mxu1 %v947_v40  ;;  %2212 = vmatmul.mubr.bf16.gmra.mxu0 %v9691_v34  ;;  %v630_v34 = vld [vmem:[%s10143_s16 + $0x918] sm:$0xff]  ;;  %v644_v40 = vld [vmem:[%s10143_s16 + $0x988] sm:$0xff] }
  0x9e   : > { %8590 = vmatpush3.bf16.msra.mxu0 %v923_v48  ;;  %2219 = vmatprep.mubr.bf16.mxu0 %v9695_v49  ;;  %v935_v43 = vpack.c.bf16 %v630_v34, %v629_v31  ;;  %v690_v49 = vld [vmem:[%s10143_s16 + $0xaf8] sm:$0xff]  ;;  %v668_v31 = vld [vmem:[%s10143_s16 + $0xa48] sm:$0xff] }
  0x9f   : > { %2277 = vmatmul.mubr.bf16.gmra.mxu1 %v9694_v39  ;;  %8591 = vmatprep.subr.bf16.mxu0 %v930_v51  ;;  %v643_v39 = vld [vmem:[%s10143_s16 + $0x980] sm:$0xff]  ;;  %v721_v51 = vld [vmem:[%s10143_s16 + $0xbf0] sm:$0xff]  ;;  %v965_v56 = vpack.c.bf16 %v690_v49, %v689_v47  ;;  %v710_v10 = vld [vmem:[%s10143_s16 + $0xb98] sm:$0xff] }
  0xa0   : > { %8630 = vmatpush3.bf16.msra.mxu1 %v939_v50  ;;  %2284 = vmatprep.mubr.bf16.mxu1 %v9698_v57  ;;  %v942_v48 = vpack.c.bf16 %v644_v40, %v643_v39  ;;  %v9712_v50 = vld [vmem:[%s12523_s1 + $0x4c] ss:$116 sps:$4 sm:$0xff]   ;;  %v673_v57 = vld [vmem:[%s10143_s16 + $0xa70] sm:$0xff] }
  0xa1   : > { %8631 = vmatprep.subr.bf16.mxu1 %v946_v55  ;;  %v934_v55 = vpack.c.bf16 %v628_v46, %v627_v45  ;;  %v957_v6 = vpack.c.bf16 %v674_v58, %v673_v57  ;;  %v9719_v35 = vld [vmem:[%s12523_s1 + $0x214] ss:$116 sps:$4 sm:$0xff]   ;;  %v714_v45 = vld [vmem:[%s10143_s16 + $0xbb8] sm:$0xff]  ;;  %v954_v46 = vpack.c.bf16 %v668_v31, %v667_v30  ;;  %v663_v58 = vld [vmem:[%s10143_s16 + $0xa20] sm:$0xff] }
  0xa2   : > { %8592 = vmatpush3.bf16.msra.mxu0 %v922_v60  ;;  %v9710_v60 = vld [vmem:[%s12523_s1 + $0x48] ss:$116 sps:$4 sm:$0xff]   ;;  %v681_v40 = vld [vmem:[%s10143_s16 + $0xab0] sm:$0xff]  ;;  %v691_v31 = vld [vmem:[%s10143_s16 + $0xb00] sm:$0xff] }
  0xa3   : > { %8593 = vmatprep.subr.bf16.mxu0 %v929_v63  ;;  %v687_v63 = vld [vmem:[%s10143_s16 + $0xae0] sm:$0xff]  ;;  %v700_v39 = vld [vmem:[%s10143_s16 + $0xb48] sm:$0xff] }
  0xa4   : > { %8632 = vmatpush3.bf16.msra.mxu1 %v938_v61  ;;  %v981_v61 = vpack.c.bf16 %v722_v52, %v721_v51  ;;  %v964_v9 = vpack.c.bf16 %v688_v0, %v687_v63  ;;  %v970_v47 = vpack.c.bf16 %v700_v39, %v699_v38  ;;  %v666_v51 = vld [vmem:[%s10143_s16 + $0xa38] sm:$0xff]  ;;  %v697_v52 = vld [vmem:[%s10143_s16 + $0xb30] sm:$0xff]  ;;  %v680_v57 = vld [vmem:[%s10143_s16 + $0xaa8] sm:$0xff] }
  0xa5   : > { %8633 = vmatprep.subr.bf16.mxu1 %v945_v5  ;;  %2220 = vmatmul.mubr.bf16.gmra.mxu0 %v9697_v62  ;;  %v706_v62 = vld [vmem:[%s10143_s16 + $0xb78] sm:$0xff]  ;;  %v720_v5 = vld [vmem:[%s10143_s16 + $0xbe8] sm:$0xff] }
  0xa6   : > { %8594 = vmatpush3.bf16.msra.mxu0 %v921_v13  ;;  %2227 = vmatprep.mubr.bf16.mxu0 %v9701_v14  ;;  %v973_v8 = vpack.c.bf16 %v706_v62, %v705_v59  ;;  %v686_v14 = vld [vmem:[%s10143_s16 + $0xad8] sm:$0xff]  ;;  %v664_v59 = vld [vmem:[%s10143_s16 + $0xa28] sm:$0xff] }
  0xa7   : > { %2285 = vmatmul.mubr.bf16.gmra.mxu1 %v9700_v4  ;;  %8595 = vmatprep.subr.bf16.mxu0 %v928_v16  ;;  %v719_v4 = vld [vmem:[%s10143_s16 + $0xbe0] sm:$0xff]  ;;  %v717_v16 = vld [vmem:[%s10143_s16 + $0xbd0] sm:$0xff]  ;;  %v963_v21 = vpack.c.bf16 %v686_v14, %v685_v12  ;;  %v952_v11 = vpack.c.bf16 %v664_v59, %v663_v58  ;;  %v786_v38 = vld [vmem:[%s10143_s16 + $0xdf8] sm:$0xff] }
  0xa8   : > { %8634 = vmatpush3.bf16.msra.mxu1 %v937_v15  ;;  %2292 = vmatprep.mubr.bf16.mxu1 %v9704_v22  ;;  %v980_v13 = vpack.c.bf16 %v720_v5, %v719_v4  ;;  %v9716_v15 = vld [vmem:[%s12523_s1 + $0x134] ss:$116 sps:$4 sm:$0xff]   ;;  %v9725_v63 = vld [vmem:[%s12523_s1 + $0x2fc] ss:$116 sps:$4 sm:$0xff]   ;;  %v767_v59 = vld [vmem:[%s10143_s16 + $0xd60] sm:$0xff] }
  0xa9   : > { %8635 = vmatprep.subr.bf16.mxu1 %v944_v20  ;;  %v9715_v20 = vld [vmem:[%s12523_s1 + $0x128] ss:$116 sps:$4 sm:$0xff]   ;;  %v669_v22 = vld [vmem:[%s10143_s16 + $0xa50] sm:$0xff] }
  0xaa   : > { %8596 = vmatpush3.bf16.msra.mxu0 %v920_v25  ;;  %v9718_v25 = vld [vmem:[%s12523_s1 + $0x130] ss:$116 sps:$4 sm:$0xff]   ;;  %v955_v34 = vpack.c.bf16 %v670_v23, %v669_v22  ;;  %v696_v4 = vld [vmem:[%s10143_s16 + $0xb28] sm:$0xff] }
  0xab   : > { %8597 = vmatprep.subr.bf16.mxu0 %v927_v28  ;;  %v683_v28 = vld [vmem:[%s10143_s16 + $0xac0] sm:$0xff]  ;;  %v677_v5 = vld [vmem:[%s10143_s16 + $0xa90] sm:$0xff]  ;;  %v968_v12 = vpack.c.bf16 %v696_v4, %v695_v3  ;;  %v676_v22 = vld [vmem:[%s10143_s16 + $0xa88] sm:$0xff] }
  0xac   : > { %8636 = vmatpush3.bf16.msra.mxu1 %v936_v26  ;;  %v979_v26 = vpack.c.bf16 %v718_v17, %v717_v16  ;;  %v962_v37 = vpack.c.bf16 %v684_v29, %v683_v28  ;;  %v662_v16 = vld [vmem:[%s10143_s16 + $0xa18] sm:$0xff]  ;;  %v693_v17 = vld [vmem:[%s10143_s16 + $0xb10] sm:$0xff]  ;;  %v659_v23 = vld [vmem:[%s10143_s16 + $0xa00] sm:$0xff] }
  0xad   : > { %8637 = vmatprep.subr.bf16.mxu1 %v943_v33  ;;  %2228 = vmatmul.mubr.bf16.gmra.mxu0 %v9703_v27  ;;  %v702_v27 = vld [vmem:[%s10143_s16 + $0xb58] sm:$0xff]  ;;  %v716_v33 = vld [vmem:[%s10143_s16 + $0xbc8] sm:$0xff] }
  0xae   : > { %8598 = vmatpush3.bf16.msra.mxu0 %v919_v41  ;;  %2333 = vmatprep.mubr.bf16.mxu0 %v9709_v42  ;;  %v971_v36 = vpack.c.bf16 %v702_v27, %v701_v24  ;;  %v682_v42 = vld [vmem:[%s10143_s16 + $0xab8] sm:$0xff]  ;;  %v660_v24 = vld [vmem:[%s10143_s16 + $0xa08] sm:$0xff] }
  0xaf   : > { %2293 = vmatmul.mubr.bf16.gmra.mxu1 %v9706_v32  ;;  %8599 = vmatprep.subr.bf16.mxu0 %v926_v44  ;;  %v715_v32 = vld [vmem:[%s10143_s16 + $0xbc0] sm:$0xff]  ;;  %v713_v44 = vld [vmem:[%s10143_s16 + $0xbb0] sm:$0xff]  ;;  %v961_v49 = vpack.c.bf16 %v682_v42, %v681_v40  ;;  %v950_v39 = vpack.c.bf16 %v660_v24, %v659_v23  ;;  %v782_v3 = vld [vmem:[%s10143_s16 + $0xdd8] sm:$0xff] }
  0xb0   : > { %8638 = vmatpush3.bf16.msra.mxu1 %v935_v43  ;;  %2398 = vmatprep.mubr.bf16.mxu1 %v9712_v50  ;;  %v978_v41 = vpack.c.bf16 %v716_v33, %v715_v32  ;;  %v9722_v43 = vld [vmem:[%s12523_s1 + $0x21c] ss:$116 sps:$4 sm:$0xff]   ;;  %v9733_v28 = vld [vmem:[%s12523_s1 + $0x54] ss:$116 sps:$4 sm:$0xff]   ;;  %v763_v24 = vld [vmem:[%s10143_s16 + $0xd40] sm:$0xff] }
  0xb1   : > { %8639 = vmatprep.subr.bf16.mxu1 %v942_v48  ;;  %v9721_v48 = vld [vmem:[%s12523_s1 + $0x210] ss:$116 sps:$4 sm:$0xff]   ;;  %v692_v32 = vld [vmem:[%s10143_s16 + $0xb08] sm:$0xff] }
  0xb2   : > { %8600 = vmatpush3.bf16.msra.mxu0 %v918_v53  ;;  %v665_v50 = vld [vmem:[%s10143_s16 + $0xa30] sm:$0xff]  ;;  %v9724_v53 = vld [vmem:[%s12523_s1 + $0x218] ss:$116 sps:$4 sm:$0xff]  }
  0xb3   : > { %8665 = vmatprep.subr.bf16.mxu0 %v965_v56  ;;  %v679_v56 = vld [vmem:[%s10143_s16 + $0xaa0] sm:$0xff]  ;;  %v953_v62 = vpack.c.bf16 %v666_v51, %v665_v50  ;;  %v753_v33 = vld [vmem:[%s10143_s16 + $0xcf0] sm:$0xff]  ;;  %v752_v50 = vld [vmem:[%s10143_s16 + $0xce8] sm:$0xff] }
  0xb4   : > { %8640 = vmatpush3.bf16.msra.mxu1 %v934_v55  ;;  %v698_v55 = vld [vmem:[%s10143_s16 + $0xb38] sm:$0xff]  ;;  %v960_v2 = vpack.c.bf16 %v680_v57, %v679_v56  ;;  %v9731_v40 = vld [vmem:[%s12523_s1 + $0x50] ss:$116 sps:$4 sm:$0xff]  }
  0xb5   : > { %8705 = vmatprep.subr.bf16.mxu1 %v981_v61  ;;  %2334 = vmatmul.mubr.bf16.vlgmr.msra.gmra.mxu0 %v9707_v54  ;;  %v977_v54 = vpack.c.bf16 %v714_v45, %v713_v44  ;;  %v712_v61 = vld [vmem:[%s10143_s16 + $0xba8] sm:$0xff]  ;;  %v969_v0 = vpack.c.bf16 %v698_v55, %v697_v52  ;;  %v738_v44 = vld [vmem:[%s10143_s16 + $0xc78] sm:$0xff]  ;;  %v769_v45 = vld [vmem:[%s10143_s16 + $0xd70] sm:$0xff] }
  0xb6   : > { %8666 = vmatpush3.bf16.msra.mxu0 %v957_v6  ;;  %2341 = vmatprep.mubr.bf16.mxu0 %v9713_v7  ;;  %v678_v7 = vld [vmem:[%s10143_s16 + $0xa98] sm:$0xff]  ;;  %v735_v51 = vld [vmem:[%s10143_s16 + $0xc60] sm:$0xff]  ;;  %v736_v52 = vld [vmem:[%s10143_s16 + $0xc68] sm:$0xff] }
  0xb7   : > { %2399 = vmatmul.mubr.bf16.vlgmr.msra.gmra.mxu1 %v9710_v60  ;;  %8667 = vmatprep.subr.bf16.mxu0 %v964_v9  ;;  %v711_v60 = vld [vmem:[%s10143_s16 + $0xba0] sm:$0xff]  ;;  %v709_v9 = vld [vmem:[%s10143_s16 + $0xb90] sm:$0xff]  ;;  %v959_v14 = vpack.c.bf16 %v678_v7, %v677_v5  ;;  %v988_v4 = vpack.c.bf16 %v736_v52, %v735_v51 }
  0xb8   : > { %8706 = vmatpush3.bf16.msra.mxu1 %v973_v8  ;;  %2406 = vmatprep.mubr.bf16.mxu1 %v9716_v15  ;;  %v976_v6 = vpack.c.bf16 %v712_v61, %v711_v60  ;;  %v9728_v8 = vld [vmem:[%s12523_s1 + $0x304] ss:$116 sps:$4 sm:$0xff]   ;;  %v661_v15 = vld [vmem:[%s10143_s16 + $0xa10] sm:$0xff]  ;;  %v768_v60 = vld [vmem:[%s10143_s16 + $0xd68] sm:$0xff] }
  0xb9   : > { %8707 = vmatprep.subr.bf16.mxu1 %v980_v13  ;;  %v9727_v13 = vld [vmem:[%s12523_s1 + $0x2f8] ss:$116 sps:$4 sm:$0xff]   ;;  %v951_v27 = vpack.c.bf16 %v662_v16, %v661_v15  ;;  %v9737_v56 = vld [vmem:[%s12523_s1 + $0x13c] ss:$116 sps:$4 sm:$0xff]   ;;  %v1004_v5 = vpack.c.bf16 %v768_v60, %v767_v59  ;;  %v731_v16 = vld [vmem:[%s10143_s16 + $0xc40] sm:$0xff] }
  0xba   : > { %8668 = vmatpush3.bf16.msra.mxu0 %v956_v18  ;;  %v9730_v18 = vld [vmem:[%s12523_s1 + $0x300] ss:$116 sps:$4 sm:$0xff]   ;;  %v748_v15 = vld [vmem:[%s10143_s16 + $0xcc8] sm:$0xff]  ;;  %v726_v60 = vld [vmem:[%s10143_s16 + $0xc18] sm:$0xff] }
  0xbb   : > { %8669 = vmatprep.subr.bf16.mxu0 %v963_v21  ;;  %v675_v21 = vld [vmem:[%s10143_s16 + $0xa80] sm:$0xff]  ;;  %v749_v61 = vld [vmem:[%s10143_s16 + $0xcd0] sm:$0xff] }
  0xbc   : > { %8708 = vmatpush3.bf16.msra.mxu1 %v972_v19  ;;  %v975_v19 = vpack.c.bf16 %v710_v10, %v709_v9  ;;  %v958_v30 = vpack.c.bf16 %v676_v22, %v675_v21  ;;  %v734_v9 = vld [vmem:[%s10143_s16 + $0xc58] sm:$0xff]  ;;  %v765_v10 = vld [vmem:[%s10143_s16 + $0xd50] sm:$0xff] }
  0xbd   : > { %8709 = vmatprep.subr.bf16.mxu1 %v979_v26  ;;  %2342 = vmatmul.mubr.bf16.gmra.mxu0 %v9715_v20  ;;  %v694_v20 = vld [vmem:[%s10143_s16 + $0xb18] sm:$0xff]  ;;  %v708_v26 = vld [vmem:[%s10143_s16 + $0xb88] sm:$0xff]  ;;  %v725_v59 = vld [vmem:[%s10143_s16 + $0xc10] sm:$0xff] }
  0xbe   : > { %8670 = vmatpush3.bf16.msra.mxu0 %v955_v34  ;;  %2349 = vmatprep.mubr.bf16.mxu0 %v9719_v35  ;;  %v967_v29 = vpack.c.bf16 %v694_v20, %v693_v17  ;;  %v754_v35 = vld [vmem:[%s10143_s16 + $0xcf8] sm:$0xff]  ;;  %v732_v17 = vld [vmem:[%s10143_s16 + $0xc48] sm:$0xff] }
  0xbf   : > { %2407 = vmatmul.mubr.bf16.gmra.mxu1 %v9718_v25  ;;  %8671 = vmatprep.subr.bf16.mxu0 %v962_v37  ;;  %v707_v25 = vld [vmem:[%s10143_s16 + $0xb80] sm:$0xff]  ;;  %v785_v37 = vld [vmem:[%s10143_s16 + $0xdf0] sm:$0xff]  ;;  %v997_v42 = vpack.c.bf16 %v754_v35, %v753_v33 }
  0xc0   : > { %8710 = vmatpush3.bf16.msra.mxu1 %v971_v36  ;;  %2414 = vmatprep.mubr.bf16.mxu1 %v9722_v43  ;;  %v974_v34 = vpack.c.bf16 %v708_v26, %v707_v25  ;;  %v9736_v36 = vld [vmem:[%s12523_s1 + $0x5c] ss:$116 sps:$4 sm:$0xff]   ;;  %v9743_v21 = vld [vmem:[%s12523_s1 + $0x224] ss:$116 sps:$4 sm:$0xff]   ;;  %v764_v25 = vld [vmem:[%s10143_s16 + $0xd48] sm:$0xff] }
  0xc1   : > { %8711 = vmatprep.subr.bf16.mxu1 %v978_v41  ;;  %v966_v41 = vpack.c.bf16 %v692_v32, %v691_v31  ;;  %v737_v43 = vld [vmem:[%s10143_s16 + $0xc70] sm:$0xff]  ;;  %v778_v31 = vld [vmem:[%s10143_s16 + $0xdb8] sm:$0xff]  ;;  %v986_v32 = vpack.c.bf16 %v732_v17, %v731_v16  ;;  %v1002_v33 = vpack.c.bf16 %v764_v25, %v763_v24  ;;  %v9760_v24 = vld [vmem:[%s12523_s1 + $0x6c] ss:$116 sps:$4 sm:$0xff]  }
  0xc2   : > { %8672 = vmatpush3.bf16.msra.mxu0 %v954_v46  ;;  %v9734_v46 = vld [vmem:[%s12523_s1 + $0x58] ss:$116 sps:$4 sm:$0xff]   ;;  %v989_v55 = vpack.c.bf16 %v738_v44, %v737_v43  ;;  %v745_v26 = vld [vmem:[%s10143_s16 + $0xcb0] sm:$0xff]  ;;  %v727_v44 = vld [vmem:[%s10143_s16 + $0xc20] sm:$0xff] }
  0xc3   : > { %8673 = vmatprep.subr.bf16.mxu0 %v961_v49  ;;  %v751_v49 = vld [vmem:[%s10143_s16 + $0xce0] sm:$0xff]  ;;  %v744_v43 = vld [vmem:[%s10143_s16 + $0xca8] sm:$0xff] }
  0xc4   : > { %8712 = vmatpush3.bf16.msra.mxu1 %v970_v47  ;;  %v1013_v47 = vpack.c.bf16 %v786_v38, %v785_v37  ;;  %v996_v58 = vpack.c.bf16 %v752_v50, %v751_v49  ;;  %v730_v37 = vld [vmem:[%s10143_s16 + $0xc38] sm:$0xff]  ;;  %v761_v38 = vld [vmem:[%s10143_s16 + $0xd30] sm:$0xff]  ;;  %v9749_v49 = vld [vmem:[%s12523_s1 + $0x30c] ss:$116 sps:$4 sm:$0xff]  }
  0xc5   : > { %8713 = vmatprep.subr.bf16.mxu1 %v977_v54  ;;  %2350 = vmatmul.mubr.bf16.gmra.mxu0 %v9721_v48  ;;  %v770_v48 = vld [vmem:[%s10143_s16 + $0xd78] sm:$0xff]  ;;  %v784_v54 = vld [vmem:[%s10143_s16 + $0xde8] sm:$0xff]  ;;  %v759_v50 = vld [vmem:[%s10143_s16 + $0xd20] sm:$0xff] }
  0xc6   : > { %8674 = vmatpush3.bf16.msra.mxu0 %v953_v62  ;;  %2357 = vmatprep.mubr.bf16.mxu0 %v9725_v63  ;;  %v1005_v57 = vpack.c.bf16 %v770_v48, %v769_v45  ;;  %v750_v63 = vld [vmem:[%s10143_s16 + $0xcd8] sm:$0xff]  ;;  %v728_v45 = vld [vmem:[%s10143_s16 + $0xc28] sm:$0xff] }
  0xc7   : > { %2415 = vmatmul.mubr.bf16.gmra.mxu1 %v9724_v53  ;;  %8675 = vmatprep.subr.bf16.mxu0 %v960_v2  ;;  %v783_v53 = vld [vmem:[%s10143_s16 + $0xde0] sm:$0xff]  ;;  %v781_v2 = vld [vmem:[%s10143_s16 + $0xdd0] sm:$0xff]  ;;  %v995_v7 = vpack.c.bf16 %v750_v63, %v749_v61  ;;  %v984_v63 = vpack.c.bf16 %v728_v45, %v727_v44  ;;  %v2773_v45 = vld [vmem:[%s12526_s4 + $0x8] sm:$0xff] }
  0xc8   : > { %8714 = vmatpush3.bf16.msra.mxu1 %v969_v0  ;;  %2422 = vmatprep.mubr.bf16.mxu1 %v9728_v8  ;;  %v1012_v62 = vpack.c.bf16 %v784_v54, %v783_v53  ;;  %v9740_v0 = vld [vmem:[%s12523_s1 + $0x144] ss:$116 sps:$4 sm:$0xff]   ;;  %v733_v8 = vld [vmem:[%s10143_s16 + $0xc50] sm:$0xff]  ;;  %v760_v53 = vld [vmem:[%s10143_s16 + $0xd28] sm:$0xff] }
  0xc9   : > { %8715 = vmatprep.subr.bf16.mxu1 %v976_v6  ;;  %v9739_v6 = vld [vmem:[%s12523_s1 + $0x138] ss:$116 sps:$4 sm:$0xff]   ;;  %v987_v20 = vpack.c.bf16 %v734_v9, %v733_v8  ;;  %v741_v54 = vld [vmem:[%s10143_s16 + $0xc90] sm:$0xff] }
  0xca   : > { %8676 = vmatpush3.bf16.msra.mxu0 %v952_v11  ;;  %v9742_v11 = vld [vmem:[%s12523_s1 + $0x140] ss:$116 sps:$4 sm:$0xff]   ;;  %v740_v9 = vld [vmem:[%s10143_s16 + $0xc88] sm:$0xff]  ;;  %v9757_v16 = vld [vmem:[%s12523_s1 + $0x64] ss:$116 sps:$4 sm:$0xff]  }
  0xcb   : > { %8677 = vmatprep.subr.bf16.mxu0 %v959_v14  ;;  %v747_v14 = vld [vmem:[%s10143_s16 + $0xcc0] sm:$0xff]  ;;  %v773_v61 = vld [vmem:[%s10143_s16 + $0xd90] sm:$0xff] }
  0xcc   : > { %8716 = vmatpush3.bf16.msra.mxu1 %v968_v12  ;;  %v1011_v12 = vpack.c.bf16 %v782_v3, %v781_v2  ;;  %v994_v23 = vpack.c.bf16 %v748_v15, %v747_v14  ;;  %v758_v2 = vld [vmem:[%s10143_s16 + $0xd18] sm:$0xff]  ;;  %v1000_v3 = vpack.c.bf16 %v760_v53, %v759_v50  ;;  %v772_v14 = vld [vmem:[%s10143_s16 + $0xd88] sm:$0xff]  ;;  %v983_v15 = vpack.c.bf16 %v726_v60, %v725_v59 }
  0xcd   : > { %8717 = vmatprep.subr.bf16.mxu1 %v975_v19  ;;  %2358 = vmatmul.mubr.bf16.gmra.mxu0 %v9727_v13  ;;  %v766_v13 = vld [vmem:[%s10143_s16 + $0xd58] sm:$0xff]  ;;  %v780_v19 = vld [vmem:[%s10143_s16 + $0xdc8] sm:$0xff] }
  0xce   : > { %8678 = vmatpush3.bf16.msra.mxu0 %v951_v27  ;;  %2463 = vmatprep.mubr.bf16.mxu0 %v9733_v28  ;;  %v1003_v22 = vpack.c.bf16 %v766_v13, %v765_v10  ;;  %v746_v28 = vld [vmem:[%s10143_s16 + $0xcb8] sm:$0xff]  ;;  %v771_v13 = vld [vmem:[%s10143_s16 + $0xd80] sm:$0xff]  ;;  %v9767_v53 = vld [vmem:[%s12523_s1 + $0x234] ss:$116 sps:$4 sm:$0xff]  }
  0xcf   : > { %2423 = vmatmul.mubr.bf16.gmra.mxu1 %v9730_v18  ;;  %8679 = vmatprep.subr.bf16.mxu0 %v958_v30  ;;  %v779_v18 = vld [vmem:[%s10143_s16 + $0xdc0] sm:$0xff]  ;;  %v777_v30 = vld [vmem:[%s10143_s16 + $0xdb0] sm:$0xff]  ;;  %v993_v35 = vpack.c.bf16 %v746_v28, %v745_v26 }
  0xd0   : > { %8718 = vmatpush3.bf16.msra.mxu1 %v967_v29  ;;  %2528 = vmatprep.mubr.bf16.mxu1 %v9736_v36  ;;  %v1010_v27 = vpack.c.bf16 %v780_v19, %v779_v18  ;;  %v9746_v29 = vld [vmem:[%s12523_s1 + $0x22c] ss:$116 sps:$4 sm:$0xff]   ;;  %v729_v36 = vld [vmem:[%s10143_s16 + $0xc30] sm:$0xff] }
  0xd1   : > { %8719 = vmatprep.subr.bf16.mxu1 %v974_v34  ;;  %v9745_v34 = vld [vmem:[%s12523_s1 + $0x220] ss:$116 sps:$4 sm:$0xff]   ;;  %v985_v48 = vpack.c.bf16 %v730_v37, %v729_v36  ;;  %v5294_v36 = vsel %vm5292_vm0, 65535, %v10063_v1 }
  0xd2   : > { %8680 = vmatpush3.bf16.msra.mxu0 %v950_v39  ;;  %v9748_v39 = vld [vmem:[%s12523_s1 + $0x228] ss:$116 sps:$4 sm:$0xff]   ;;  %v9755_v26 = vld [vmem:[%s12523_s1 + $0x60] ss:$116 sps:$4 sm:$0xff]  }
  0xd3   : > { %8745 = vmatprep.subr.bf16.mxu0 %v997_v42  ;;  %v743_v42 = vld [vmem:[%s10143_s16 + $0xca0] sm:$0xff]  ;;  %v9764_v37 = vld [vmem:[%s12523_s1 + $0x154] ss:$116 sps:$4 sm:$0xff]  }
  0xd4   : > { %8720 = vmatpush3.bf16.msra.mxu1 %v966_v41  ;;  %v762_v41 = vld [vmem:[%s10143_s16 + $0xd38] sm:$0xff]  ;;  %v992_v52 = vpack.c.bf16 %v744_v43, %v743_v42  ;;  %v10895_v10 = vpop.permute.xlu1 %1166  ;;  %v2772_v1 = vld [vmem:[%s12526_s4] sm:$0xff]  ;;  %v10943_v43 = vand.u32 1065369472, %v5294_v36 }
  0xd5   : > { %8785 = vmatprep.subr.bf16.mxu1 %v1013_v47  ;;  %2464 = vmatmul.mubr.bf16.vlgmr.msra.gmra.mxu0 %v9731_v40  ;;  %v1009_v40 = vpack.c.bf16 %v778_v31, %v777_v30  ;;  %v776_v47 = vld [vmem:[%s10143_s16 + $0xda8] sm:$0xff]  ;;  %v1001_v51 = vpack.c.bf16 %v762_v41, %v761_v38  ;;  %v787_v31 = vld [vmem:[%s10143_s16 + $0xe00] sm:$0xff]  ;;  %v2775_v38 = vld [vmem:[%s12526_s4 + $0x18] sm:$0xff] }
  0xd6   : > { %8746 = vmatpush3.bf16.msra.mxu0 %v989_v55  ;;  %2471 = vmatprep.mubr.bf16.mxu0 %v9737_v56  ;;  %v742_v55 = vld [vmem:[%s10143_s16 + $0xc98] sm:$0xff]  ;;  %12533 = vst [vmem:[#allocation2_spill] sm:$0xff] %v10943_v43 }
  0xd7   : > { %2529 = vmatmul.mubr.bf16.vlgmr.msra.gmra.mxu1 %v9734_v46  ;;  %8747 = vmatprep.subr.bf16.mxu0 %v996_v58  ;;  %v775_v46 = vld [vmem:[%s10143_s16 + $0xda0] sm:$0xff]  ;;  %v10879_v58 = vpop.permute.xlu0 %1176  ;;  %v9758_v30 = vld [vmem:[%s12523_s1 + $0x68] ss:$116 sps:$4 sm:$0xff]  }
  0xd8   : > { %8786 = vmatpush3.bf16.msra.mxu1 %v1005_v57  ;;  %2536 = vmatprep.mubr.bf16.mxu1 %v9740_v0  ;;  %v1008_v56 = vpack.c.bf16 %v776_v47, %v775_v46  ;;  %v9752_v57 = vld [vmem:[%s12523_s1 + $0x314] ss:$116 sps:$4 sm:$0xff]  }
  0xd9   : > { %8787 = vmatprep.subr.bf16.mxu1 %v1012_v62  ;;  %v774_v62 = vld [vmem:[%s10143_s16 + $0xd98] sm:$0xff]  ;;  %v757_v0 = vld [vmem:[%s10143_s16 + $0xd10] sm:$0xff]  ;;  %2793 = vperm.xlu1 %9610, %v2775_v38  }
  0xda   : > { %8748 = vmatpush3.bf16.msra.mxu0 %v988_v4  ;;  %v9751_v4 = vld [vmem:[%s12523_s1 + $0x308] ss:$116 sps:$4 sm:$0xff]   ;;  %v1007_v8 = vpack.c.bf16 %v774_v62, %v773_v61  ;;  %v999_v17 = vpack.c.bf16 %v758_v2, %v757_v0 }
  0xdb   : > { %8749 = vmatprep.subr.bf16.mxu0 %v995_v7  ;;  %v9754_v7 = vld [vmem:[%s12523_s1 + $0x310] ss:$116 sps:$4 sm:$0xff]   ;;  %v10904_v18 = vpop.permute.xlu0 %1181 }
  0xdc   : > { %8788 = vmatpush3.bf16.msra.mxu1 %v1004_v5  ;;  %v991_v5 = vpack.c.bf16 %v742_v55, %v741_v54  ;;  %v10915_v28 = vpop.permute.xlu1 %1171  ;;  %v2883_v54 = vld [vmem:[%s12528_s6 + $0x38] sm:$0xff] }
  0xdd   : > { %8789 = vmatprep.subr.bf16.mxu1 %v1011_v12  ;;  %2472 = vmatmul.mubr.bf16.gmra.mxu0 %v9739_v6  ;;  %v739_v6 = vld [vmem:[%s10143_s16 + $0xc80] sm:$0xff]  ;;  %v724_v12 = vld [vmem:[%s10143_s16 + $0xc08] sm:$0xff] }
  0xde   : > { %8750 = vmatpush3.bf16.msra.mxu0 %v987_v20  ;;  %2479 = vmatprep.mubr.bf16.mxu0 %v9743_v21  ;;  %v990_v19 = vpack.c.bf16 %v740_v9, %v739_v6  ;;  %v755_v20 = vld [vmem:[%s10143_s16 + $0xd00] sm:$0xff]  ;;  %v1006_v21 = vpack.c.bf16 %v772_v14, %v771_v13 }
  0xdf   : > { %2537 = vmatmul.mubr.bf16.gmra.mxu1 %v9742_v11  ;;  %8751 = vmatprep.subr.bf16.mxu0 %v994_v23  ;;  %v723_v11 = vld [vmem:[%s10143_s16 + $0xc00] sm:$0xff]  ;;  %v789_v23 = vld [vmem:[%s10143_s16 + $0xe10] sm:$0x3f] }
  0xe0   : > { %8790 = vmatpush3.bf16.msra.mxu1 %v1003_v22  ;;  %2544 = vmatprep.mubr.bf16.mxu1 %v9746_v29  ;;  %v756_v22 = vld [vmem:[%s10143_s16 + $0xd08] sm:$0xff]  ;;  %v982_v25 = vpack.c.bf16 %v724_v12, %v723_v11  ;;  %v1015_v29 = vpack.c.bf16 %v789_v23, %v789_v23  ;;  %v9769_v11 = vld [vmem:[%s12523_s1 + $0x230] ss:$116 sps:$4 sm:$0xff]  }
  0xe1   : > { %8791 = vmatprep.subr.bf16.mxu1 %v1010_v27  ;;  %v998_v27 = vpack.c.bf16 %v756_v22, %v755_v20  ;;  %2783 = vperm.xlu1 %9610, %v2773_v45   ;;  %v2878_v12 = vld [vmem:[%s12528_s6 + $0x10] sm:$0xff]  ;;  %v9776_v22 = vld [vmem:[%s12523_s1 + $0x324] ss:$116 sps:$4 sm:$0xff]  }
  0xe2   : > { %8752 = vmatpush3.bf16.msra.mxu0 %v986_v32  ;;  %v10921_v32 = vpop.permute.xlu0 %1156 }
  0xe3   : > { %8753 = vmatprep.subr.bf16.mxu0 %v993_v35  ;;  %v2774_v35 = vld [vmem:[%s12526_s4 + $0x10] sm:$0xff] }
  0xe4   : > { %8792 = vmatpush3.bf16.msra.mxu1 %v1002_v33  ;;  %v788_v33 = vld [vmem:[%s10143_s16 + $0xe08] sm:$0xff]  ;;  %2788 = vperm.xlu0 %9609, %v2774_v35   ;;  %v10938_v42 = vpop.permute.xlu1 %1161 }
  0xe5   : > { %8793 = vmatprep.subr.bf16.mxu1 %v1009_v40  ;;  %2480 = vmatmul.mubr.bf16.gmra.mxu0 %v9745_v34  ;;  %v9761_v34 = vld [vmem:[%s12523_s1 + $0x14c] ss:$116 sps:$4 sm:$0xff]   ;;  %v1014_v40 = vpack.c.bf16 %v788_v33, %v787_v31 }
  0xe6   : > { %8754 = vmatpush3.bf16.msra.mxu0 %v985_v48  ;;  %2487 = vmatprep.mubr.bf16.mxu0 %v9749_v49  ;;  %v1147_v47 = vpop.permute.xlu0 %1146  ;;  %v9763_v48 = vld [vmem:[%s12523_s1 + $0x148] ss:$116 sps:$4 sm:$0xff]   ;;  %v2882_v49 = vld [vmem:[%s12528_s6 + $0x30] sm:$0xff] }
  0xe7   : > { %2545 = vmatmul.mubr.bf16.gmra.mxu1 %v9748_v39  ;;  %8755 = vmatprep.subr.bf16.mxu0 %v992_v52  ;;  %v1779_v39 = vsel %vm1777_vm1, %v1015_v29, 0  ;;  %v9766_v52 = vld [vmem:[%s12523_s1 + $0x150] ss:$116 sps:$4 sm:$0xff]   ;;  %v2877_v31 = vld [vmem:[%s12528_s6 + $0x8] sm:$0xff] }
  0xe8   : > { %8794 = vmatpush3.bf16.msra.mxu1 %v1001_v51  ;;  %2552 = vmatprep.mubr.bf16.mxu1 %v9752_v57  ;;  %v9770_v57 = vld [vmem:[%s12523_s1 + $0x23c] ss:$116 sps:$4 sm:$0xff]  }
  0xe9   : > { %8795 = vmatprep.subr.bf16.mxu1 %v1008_v56  ;;  %2778 = vperm.xlu0 %9609, %v2772_v1  }
  0xea   : > { %8756 = vmatpush3.bf16.msra.mxu0 %v984_v63  ;;  %v2880_v63 = vld [vmem:[%s12528_s6 + $0x20] sm:$0xff]  ;;  %2921 = vperm.xlu1 %9610, %v2883_v54  }
  0xeb   : > { %8757 = vmatprep.subr.bf16.mxu0 %v991_v5 }
  0xec   : > { %8796 = vmatpush3.bf16.msra.mxu1 %v1000_v3  ;;  %v1152_v62 = vpop.permute.xlu1 %1151 }
  0xed   : > { %8797 = vmatprep.subr.bf16.mxu1 %v1007_v8  ;;  %2488 = vmatmul.mubr.bf16.gmra.mxu0 %v9751_v4  ;;  %v2881_v4 = vld [vmem:[%s12528_s6 + $0x28] sm:$0xff] }
  0xee   : > { %8758 = vmatpush3.bf16.msra.mxu0 %v983_v15  ;;  %2593 = vmatprep.mubr.bf16.mxu0 %v9757_v16  ;;  %v9772_v16 = vld [vmem:[%s12523_s1 + $0x238] ss:$116 sps:$4 sm:$0xff]  }
  0xef   : > { %2553 = vmatmul.mubr.bf16.gmra.mxu1 %v9754_v7  ;;  %8759 = vmatprep.subr.bf16.mxu0 %v990_v19  ;;  %v2879_v19 = vld [vmem:[%s12528_s6 + $0x18] sm:$0xff] }
  0xf0   : > { %8798 = vmatpush3.bf16.msra.mxu1 %v999_v17  ;;  %2658 = vmatprep.mubr.bf16.mxu1 %v9760_v24  ;;  %v9773_v17 = vld [vmem:[%s12523_s1 + $0x31c] ss:$116 sps:$4 sm:$0xff]  }
  0xf1   : > { %8799 = vmatprep.subr.bf16.mxu1 %v1006_v21  ;;  %2916 = vperm.xlu0 %9609, %v2882_v49  }
  0xf2   : > { %8760 = vmatpush3.bf16.msra.mxu0 %v982_v25  ;;  %2911 = vperm.xlu1 %9610, %v2881_v4  }
  0xf3   : > { %9582 = vmatprep.subr.msk.bf16.mxu0 %vm1777_vm1, %v1015_v29 }
  0xf4   : > { %8800 = vmatpush3.bf16.msra.mxu1 %v998_v27 }
  0xf5   : > { %v8281_v41 = vpop.f32.mrf.mxu0  ;;  %2594 = vmatmul.mubr.bf16.vlgmr.msra.gmra.mxu0 %v9755_v26  ;;  %2906 = vperm.xlu0 %9609, %v2880_v63   ;;  %v2876_v26 = vld [vmem:[%s12528_s6] sm:$0xff] }
  0xf6   : > { %2601 = vmatprep.mubr.bf16.mxu0 %v9761_v34  ;;  %9075 = vmatpush3.bf16.msra.mxu0 %v1779_v39 }
  0xf7   : > { %v8321_v44 = vpop.f32.mrf.mxu1  ;;  %2659 = vmatmul.mubr.bf16.vlgmr.msra.gmra.mxu1 %v9758_v30  ;;  %v8282_v46 = vpop.f32.mrf.mxu0  ;;  %9076 = vmatprep.subr.bf16.mxu0 %v1014_v40 }
  0xf8   : > { %2666 = vmatprep.mubr.bf16.mxu1 %v9764_v37  ;;  %v8283_v50 = vadd.f32 %v8282_v46, %v8281_v41  ;;  %2901 = vperm.xlu1 %9610, %v2879_v19   ;;  %v9775_v37 = vld [vmem:[%s12523_s1 + $0x318] ss:$116 sps:$4 sm:$0xff]   ;;  %v9778_v41 = vld [vmem:[%s12523_s1 + $0x320] ss:$116 sps:$4 sm:$0xff]  }
  0xf9   : > { %v8322_v51 = vpop.f32.mrf.mxu1  ;;  %v8284_v55 = vpop.f32.mrf.mxu0  ;;  %2896 = vperm.xlu0 %9609, %v2878_v12  }
  0xfa   : > { %v8323_v56 = vadd.f32 %v8322_v51, %v8321_v44  ;;  %v1816_v59 = vadd.f32 %v8283_v50, %v1147_v47  ;;  %9077 = vmatpush3.bf16.msra.mxu0 %v1014_v40 }
  0xfb   : > { %v8324_v60 = vpop.f32.mrf.mxu1  ;;  %v8285_v61 = vpop.f32.mrf.mxu0  ;;  %9110 = vmatprep.subr.bf16.mxu0 %v10943_v43 }
  0xfc   : > { %v10969_v0 = vadd.f32 %v8323_v56, %v1816_v59  ;;  %v8286_v2 = vadd.f32 %v8285_v61, %v8284_v55  ;;  %2891 = vperm.xlu1 %9610, %v2877_v31  }
  0xfd   : > { %v8325_v3 = vpop.f32.mrf.mxu1  ;;  %v8287_v5 = vpop.f32.mrf.mxu0  ;;  %2602 = vmatmul.mubr.bf16.gmra.mxu0 %v9763_v48  ;;  %2886 = vperm.xlu0 %9609, %v2876_v26  }
  0xfe   : > { %v8326_v6 = vadd.f32 %v8325_v3, %v8324_v60  ;;  %v1819_v7 = vadd.f32 %v8286_v2, %v1152_v62  ;;  %2609 = vmatprep.mubr.bf16.mxu0 %v9767_v53  ;;  %v9781_v60 = vld [vmem:[%s12523_s1 + $0x240] ss:$116 sps:$4 sm:$0xff]  }
  0xff   : > { %v8327_v8 = vpop.f32.mrf.mxu1  ;;  %2667 = vmatmul.mubr.bf16.gmra.mxu1 %v9766_v52  ;;  %v8288_v9 = vpop.f32.mrf.mxu0 }
 0x100   : > { %2674 = vmatprep.mubr.bf16.mxu1 %v9770_v57  ;;  %v10981_v13 = vadd.f32 %v8326_v6, %v1819_v7  ;;  %v8289_v14 = vadd.f32 %v8288_v9, %v8287_v5 }
 0x101   : > { %v8328_v15 = vpop.f32.mrf.mxu1  ;;  %v8290_v20 = vpop.f32.mrf.mxu0 }
 0x102   : > { %v8329_v21 = vadd.f32 %v8328_v15, %v8327_v8  ;;  %v1824_v23 = vadd.f32 %v8289_v14, %v10921_v32 }
 0x103   : > { %v8330_v24 = vpop.f32.mrf.mxu1  ;;  %v8291_v25 = vpop.f32.mrf.mxu0 }
 0x104   : > { %v10999_v27 = vadd.f32 %v8329_v21, %v1824_v23  ;;  %v8292_v29 = vadd.f32 %v8291_v25, %v8290_v20 }
 0x105   : > { %v8331_v30 = vpop.f32.mrf.mxu1  ;;  %v8293_v33 = vpop.f32.mrf.mxu0  ;;  %2610 = vmatmul.mubr.bf16.gmra.mxu0 %v9769_v11 }
 0x106   : > { %v8332_v34 = vadd.f32 %v8331_v30, %v8330_v24  ;;  %v1827_v32 = vadd.f32 %v8292_v29, %v10938_v42  ;;  %2617 = vmatprep.mubr.bf16.mxu0 %v9773_v17  ;;  %v9779_v42 = vld [vmem:[%s12523_s1 + $0x70] ss:$116 sps:$4 sm:$0xff]  }
 0x107   : > { %v8333_v35 = vpop.f32.mrf.mxu1  ;;  %2675 = vmatmul.mubr.bf16.gmra.mxu1 %v9772_v16  ;;  %v8294_v36 = vpop.f32.mrf.mxu0 }
 0x108   : > { %2682 = vmatprep.mubr.bf16.mxu1 %v9776_v22  ;;  %v11008_v38 = vadd.f32 %v8332_v34, %v1827_v32  ;;  %v8295_v39 = vadd.f32 %v8294_v36, %v8293_v33 }
 0x109   : > { %v8334_v40 = vpop.f32.mrf.mxu1  ;;  %v8296_v1 = vpop.f32.mrf.mxu0 }
 0x10a   : > { %v8335_v44 = vadd.f32 %v8334_v40, %v8333_v35  ;;  %v1832_v45 = vadd.f32 %v8295_v39, %v10895_v10  ;;  %v9780_v10 = vld [vmem:[%s12523_s1 + $0x158] ss:$116 sps:$4 sm:$0xff]  }
 0x10b   : > { %v8336_v46 = vpop.f32.mrf.mxu1  ;;  %v8297_v47 = vpop.f32.mrf.mxu0 }
 0x10c   : > { %v11017_v48 = vadd.f32 %v8335_v44, %v1832_v45  ;;  %v8298_v49 = vadd.f32 %v8297_v47, %v8296_v1 }
 0x10d   : > { %v8337_v50 = vpop.f32.mrf.mxu1  ;;  %v8299_v51 = vpop.f32.mrf.mxu0  ;;  %2618 = vmatmul.mubr.bf16.gmra.mxu0 %v9775_v37 }
 0x10e   : > { %v8338_v52 = vadd.f32 %v8337_v50, %v8336_v46  ;;  %v1835_v53 = vadd.f32 %v8298_v49, %v10915_v28  ;;  %9078 = vmatprep.mubr.msk.bf16.mxu0 %vm1764_vm2, %v9779_v42 }
 0x10f   : > { %v8339_v54 = vpop.f32.mrf.mxu1  ;;  %2683 = vmatmul.mubr.bf16.gmra.mxu1 %v9778_v41  ;;  %v8300_v55 = vpop.f32.mrf.mxu0 }
 0x110   : > { %v11024_v56 = vadd.f32 %v8338_v52, %v1835_v53  ;;  %v8301_v57 = vadd.f32 %v8300_v55, %v8299_v51 }
 0x111   : > { %v8340_v59 = vpop.f32.mrf.mxu1  ;;  %v8302_v61 = vpop.f32.mrf.mxu0 }
 0x112   : > { %v8341_v62 = vadd.f32 %v8340_v59, %v8339_v54  ;;  %v1840_v28 = vadd.f32 %v8301_v57, %v10879_v58  ;;  %v9782_v58 = vld [vmem:[%s12523_s1 + $0x328] ss:$116 sps:$4 sm:$0xff]  }
 0x113   : > { %v8342_v63 = vpop.f32.mrf.mxu1  ;;  %v8303_v2 = vpop.f32.mrf.mxu0 }
 0x114   : > { %v11030_v3 = vadd.f32 %v8341_v62, %v1840_v28  ;;  %v8304_v4 = vadd.f32 %v8303_v2, %v8302_v61 }
 0x115   : > { %v8343_v5 = vpop.f32.mrf.mxu1  ;;  %v8361_v7 = vpop.f32.mrf.mxu0  ;;  %9079 = vmatmul.mubr.msk.bf16.vlgmr.msra.gmra.mxu0 %vm1764_vm2, %v9780_v10 }
 0x116   : > { %v8344_v6 = vadd.f32 %v8343_v5, %v8342_v63  ;;  %v1843_v8 = vadd.f32 %v8304_v4, %v10904_v18  ;;  %9082 = vmatprep.mubr.msk.bf16.mxu0 %vm1764_vm2, %v9781_v60  ;;  %9111 = vmatpush3.bf16.msra.mxu0 %v10943_v43 }
 0x117   : > { %v8401_v9 = vpop.f32.mrf.mxu1  ;;  %v8362_v11 = vpop.f32.mrf.mxu0 }
 0x118   : > { %v1908_v12 = vadd.f32 %v8344_v6, %v1843_v8  ;;  %v8363_v14 = vadd.f32 %v8362_v11, %v8361_v7 }
 0x119   : > { %v8402_v15 = vpop.f32.mrf.mxu1  ;;  %v8364_v16 = vpop.f32.mrf.mxu0 }
 0x11a   : > { %v8403_v17 = vadd.f32 %v8402_v15, %v8401_v9  ;;  %v1946_v19 = vadd.f32 %v8363_v14, %v10969_v0 }
 0x11b   : > { %v8404_v20 = vpop.f32.mrf.mxu1  ;;  %v8365_v21 = vpop.f32.mrf.mxu0 }
 0x11c   : > { %v2011_v18 = vadd.f32 %v8403_v17, %v1946_v19  ;;  %v8366_v22 = vadd.f32 %v8365_v21, %v8364_v16 }
 0x11d   : > { %v8405_v23 = vpop.f32.mrf.mxu1  ;;  %v8367_v24 = vpop.f32.mrf.mxu0  ;;  %9083 = vmatmul.mubr.msk.bf16.gmra.mxu0 %vm1764_vm2, %v9782_v58 }
 0x11e   : > { %v8406_v25 = vadd.f32 %v8405_v23, %v8404_v20  ;;  %v1949_v26 = vadd.f32 %v8366_v22, %v10981_v13 }
 0x11f   : > { %v8407_v29 = vpop.f32.mrf.mxu1  ;;  %v8368_v30 = vpop.f32.mrf.mxu0 }
 0x120   : > { %v2014_v31 = vadd.f32 %v8406_v25, %v1949_v26  ;;  %v8369_v33 = vadd.f32 %v8368_v30, %v8367_v24 }
 0x121   : > { %v8408_v34 = vpop.f32.mrf.mxu1  ;;  %v8370_v32 = vpop.f32.mrf.mxu0 }
 0x122   : > { %v8409_v35 = vadd.f32 %v8408_v34, %v8407_v29  ;;  %v1954_v0 = vadd.f32 %v8369_v33, %v10999_v27 }
 0x123   : > { %v8410_v36 = vpop.f32.mrf.mxu1  ;;  %v8371_v37 = vpop.f32.mrf.mxu0 }
 0x124   : > { %v2019_v39 = vadd.f32 %v8409_v35, %v1954_v0  ;;  %v8372_v40 = vadd.f32 %v8371_v37, %v8370_v32 }
 0x125   : > { %v8411_v41 = vpop.f32.mrf.mxu1  ;;  %v8373_v42 = vpop.f32.mrf.mxu0 }
 0x126   : > { %v8412_v1 = vadd.f32 %v8411_v41, %v8410_v36  ;;  %v1957_v44 = vadd.f32 %v8372_v40, %v11008_v38 }
 0x127   : > { %v8413_v45 = vpop.f32.mrf.mxu1  ;;  %v8374_v13 = vpop.f32.mrf.mxu0 }
 0x128   : > { %v2022_v46 = vadd.f32 %v8412_v1, %v1957_v44  ;;  %v8375_v47 = vadd.f32 %v8374_v13, %v8373_v42 }
 0x129   : > { %v8414_v49 = vpop.f32.mrf.mxu1  ;;  %v8376_v50 = vpop.f32.mrf.mxu0 }
 0x12a   : > { %v8415_v51 = vadd.f32 %v8414_v49, %v8413_v45  ;;  %v1962_v52 = vadd.f32 %v8375_v47, %v11017_v48 }
 0x12b   : > { %v8416_v53 = vpop.f32.mrf.mxu1  ;;  %v8377_v27 = vpop.f32.mrf.mxu0 }
 0x12c   : > { %v2027_v54 = vadd.f32 %v8415_v51, %v1962_v52  ;;  %v8378_v55 = vadd.f32 %v8377_v27, %v8376_v50 }
 0x12d   : > { %v8417_v10 = vpop.f32.mrf.mxu1  ;;  %v8379_v57 = vpop.f32.mrf.mxu0 }
 0x12e   : > { %v8418_v59 = vadd.f32 %v8417_v10, %v8416_v53  ;;  %v1965_v60 = vadd.f32 %v8378_v55, %v11024_v56 }
 0x12f   : > { %v8419_v61 = vpop.f32.mrf.mxu1  ;;  %v8380_v38 = vpop.f32.mrf.mxu0 }
 0x130   : > { %v2030_v62 = vadd.f32 %v8418_v59, %v1965_v60  ;;  %v8381_v28 = vadd.f32 %v8380_v38, %v8379_v57 }
 0x131   : > { %v8420_v63 = vpop.f32.mrf.mxu1  ;;  %v8382_v2 = vpop.f32.mrf.mxu0 }
 0x132   : > { %v8421_v4 = vadd.f32 %v8420_v63, %v8419_v61  ;;  %v1970_v5 = vadd.f32 %v8381_v28, %v11030_v3 }
 0x133   : > { %v8422_v6 = vpop.f32.mrf.mxu1  ;;  %v8383_v48 = vpop.f32.mrf.mxu0 }
 0x134   : > { %v2035_v7 = vadd.f32 %v8421_v4, %v1970_v5  ;;  %v8384_v8 = vadd.f32 %v8383_v48, %v8382_v2 }
 0x135   : > { %v8423_v9 = vpop.f32.mrf.mxu1  ;;  %v8441_v58 = vpop.f32.mrf.mxu0 }
 0x136   : > { %v8424_v11 = vadd.f32 %v8423_v9, %v8422_v6  ;;  %v1973_v14 = vadd.f32 %v8384_v8, %v1908_v12 }
 0x137   : > { %v8481_v15 = vpop.f32.mrf.mxu1  ;;  %v8442_v16 = vpop.f32.mrf.mxu0 }
 0x138   : > { %v2038_v56 = vadd.f32 %v8424_v11, %v1973_v14  ;;  %v8443_v17 = vadd.f32 %v8442_v16, %v8441_v58 }
 0x139   : > { %v8482_v19 = vpop.f32.mrf.mxu1  ;;  %v8444_v20 = vpop.f32.mrf.mxu0 }
 0x13a   : > { %v8483_v21 = vadd.f32 %v8482_v19, %v8481_v15  ;;  %v2076_v22 = vadd.f32 %v8443_v17, %v2011_v18 }
 0x13b   : > { %v8484_v23 = vpop.f32.mrf.mxu1  ;;  %v8445_v24 = vpop.f32.mrf.mxu0 }
 0x13c   : > { %v2141_v25 = vadd.f32 %v8483_v21, %v2076_v22  ;;  %v8446_v3 = vadd.f32 %v8445_v24, %v8444_v20 }
 0x13d   : > { %v8485_v26 = vpop.f32.mrf.mxu1  ;;  %v8447_v29 = vpop.f32.mrf.mxu0 }
 0x13e   : > { %v8486_v30 = vadd.f32 %v8485_v26, %v8484_v23  ;;  %v2079_v33 = vadd.f32 %v8446_v3, %v2014_v31 }
 0x13f   : > { %v8487_v34 = vpop.f32.mrf.mxu1  ;;  %v8448_v32 = vpop.f32.mrf.mxu0 }
 0x140   : > { %v2144_v35 = vadd.f32 %v8486_v30, %v2079_v33  ;;  %v8449_v12 = vadd.f32 %v8448_v32, %v8447_v29 }
 0x141   : > { %v8488_v0 = vpop.f32.mrf.mxu1  ;;  %v8450_v36 = vpop.f32.mrf.mxu0 }
 0x142   : > { %v8489_v37 = vadd.f32 %v8488_v0, %v8487_v34  ;;  %v2084_v40 = vadd.f32 %v8449_v12, %v2019_v39 }
 0x143   : > { %v8490_v41 = vpop.f32.mrf.mxu1  ;;  %v8451_v42 = vpop.f32.mrf.mxu0 }
 0x144   : > { %v2149_v1 = vadd.f32 %v8489_v37, %v2084_v40  ;;  %v8452_v18 = vadd.f32 %v8451_v42, %v8450_v36 }
 0x145   : > { %v8491_v44 = vpop.f32.mrf.mxu1  ;;  %v8453_v45 = vpop.f32.mrf.mxu0 }
 0x146   : > { %v8492_v13 = vadd.f32 %v8491_v44, %v8490_v41  ;;  %v2087_v47 = vadd.f32 %v8452_v18, %v2022_v46 }
 0x147   : > { %v8493_v49 = vpop.f32.mrf.mxu1  ;;  %v8454_v50 = vpop.f32.mrf.mxu0 }
 0x148   : > { %v2152_v51 = vadd.f32 %v8492_v13, %v2087_v47  ;;  %v8455_v31 = vadd.f32 %v8454_v50, %v8453_v45 }
 0x149   : > { %v8494_v52 = vpop.f32.mrf.mxu1  ;;  %v8456_v53 = vpop.f32.mrf.mxu0 }
 0x14a   : > { %v8495_v27 = vadd.f32 %v8494_v52, %v8493_v49  ;;  %v2092_v55 = vadd.f32 %v8455_v31, %v2027_v54 }
 0x14b   : > { %v8496_v10 = vpop.f32.mrf.mxu1  ;;  %v8457_v57 = vpop.f32.mrf.mxu0 }
 0x14c   : > { %v2157_v59 = vadd.f32 %v8495_v27, %v2092_v55  ;;  %v8458_v39 = vadd.f32 %v8457_v57, %v8456_v53 }
 0x14d   : > { %v8497_v60 = vpop.f32.mrf.mxu1  ;;  %v8459_v61 = vpop.f32.mrf.mxu0 }
 0x14e   : > { %v8498_v38 = vadd.f32 %v8497_v60, %v8496_v10  ;;  %v2095_v28 = vadd.f32 %v8458_v39, %v2030_v62 }
 0x14f   : > { %v8499_v63 = vpop.f32.mrf.mxu1  ;;  %v8460_v2 = vpop.f32.mrf.mxu0 }
 0x150   : > { %v2160_v4 = vadd.f32 %v8498_v38, %v2095_v28  ;;  %v8461_v46 = vadd.f32 %v8460_v2, %v8459_v61 }
 0x151   : > { %v8500_v5 = vpop.f32.mrf.mxu1  ;;  %v8462_v6 = vpop.f32.mrf.mxu0 }
 0x152   : > { %v8501_v48 = vadd.f32 %v8500_v5, %v8499_v63  ;;  %v2100_v8 = vadd.f32 %v8461_v46, %v2035_v7 }
 0x153   : > { %v8502_v9 = vpop.f32.mrf.mxu1  ;;  %v8463_v11 = vpop.f32.mrf.mxu0 }
 0x154   : > { %v2165_v58 = vadd.f32 %v8501_v48, %v2100_v8  ;;  %v8464_v54 = vadd.f32 %v8463_v11, %v8462_v6 }
 0x155   : > { %v8503_v14 = vpop.f32.mrf.mxu1  ;;  %v8521_v16 = vpop.f32.mrf.mxu0 }
 0x156   : > { %v8504_v15 = vadd.f32 %v8503_v14, %v8502_v9  ;;  %v2103_v17 = vadd.f32 %v8464_v54, %v2038_v56 }
 0x157   : > { %v8561_v19 = vpop.f32.mrf.mxu1  ;;  %v8522_v20 = vpop.f32.mrf.mxu0 }
 0x158   : > { %v2168_v21 = vadd.f32 %v8504_v15, %v2103_v17  ;;  %v8523_v62 = vadd.f32 %v8522_v20, %v8521_v16 }
 0x159   : > { %v8562_v22 = vpop.f32.mrf.mxu1  ;;  %v8524_v23 = vpop.f32.mrf.mxu0 }
 0x15a   : > { %v8563_v24 = vadd.f32 %v8562_v22, %v8561_v19  ;;  %v2206_v3 = vadd.f32 %v8523_v62, %v2141_v25 }
 0x15b   : > { %v8564_v26 = vpop.f32.mrf.mxu1  ;;  %v8525_v29 = vpop.f32.mrf.mxu0 }
 0x15c   : > { %v2271_v30 = vadd.f32 %v8563_v24, %v2206_v3  ;;  %v8526_v7 = vadd.f32 %v8525_v29, %v8524_v23 }
 0x15d   : > { %v8565_v33 = vpop.f32.mrf.mxu1  ;;  %v8527_v34 = vpop.f32.mrf.mxu0 }
 0x15e   : > { %v8566_v32 = vadd.f32 %v8565_v33, %v8564_v26  ;;  %v2209_v12 = vadd.f32 %v8526_v7, %v2144_v35 }
 0x15f   : > { %v8567_v0 = vpop.f32.mrf.mxu1  ;;  %v8528_v36 = vpop.f32.mrf.mxu0 }
 0x160   : > { %v2274_v37 = vadd.f32 %v8566_v32, %v2209_v12  ;;  %v8529_v56 = vadd.f32 %v8528_v36, %v8527_v34 }
 0x161   : > { %v8568_v40 = vpop.f32.mrf.mxu1  ;;  %v8530_v41 = vpop.f32.mrf.mxu0 }
 0x162   : > { %v8569_v42 = vadd.f32 %v8568_v40, %v8567_v0  ;;  %v2214_v18 = vadd.f32 %v8529_v56, %v2149_v1 }
 0x163   : > { %v8570_v44 = vpop.f32.mrf.mxu1  ;;  %v8531_v45 = vpop.f32.mrf.mxu0 }
 0x164   : > { %v11047_v13 = vadd.f32 %v8569_v42, %v2214_v18  ;;  %v8532_v25 = vadd.f32 %v8531_v45, %v8530_v41 }
 0x165   : > { %v8571_v47 = vpop.f32.mrf.mxu1  ;;  %v8533_v49 = vpop.f32.mrf.mxu0 }
 0x166   : > { %v8572_v50 = vadd.f32 %v8571_v47, %v8570_v44  ;;  %v2217_v31 = vadd.f32 %v8532_v25, %v2152_v51  ;;  %v9783_v25 = vld [vmem:[%s12525_s3] sm:$0xff]  }
 0x167   : > { %v8573_v52 = vpop.f32.mrf.mxu1  ;;  %v8534_v53 = vpop.f32.mrf.mxu0  ;;  %9094 = vmatprep.mubr.msk.bf16.mxu1 %vm2806_vm3, %v9783_v25 }
 0x168   : > { %v11049_v35 = vadd.f32 %v8572_v50, %v2217_v31  ;;  %v8535_v27 = vadd.f32 %v8534_v53, %v8533_v49 }
 0x169   : > { %v8574_v55 = vpop.f32.mrf.mxu1  ;;  %v8536_v10 = vpop.f32.mrf.mxu0 }
 0x16a   : > { %v8575_v57 = vadd.f32 %v8574_v55, %v8573_v52  ;;  %v2222_v39 = vadd.f32 %v8535_v27, %v2157_v59 }
 0x16b   : > { %v8576_v60 = vpop.f32.mrf.mxu1  ;;  %v8537_v1 = vpop.f32.mrf.mxu0 }
 0x16c   : > { %v11051_v61 = vadd.f32 %v8575_v57, %v2222_v39  ;;  %v8538_v38 = vadd.f32 %v8537_v1, %v8536_v10 }
 0x16d   : > { %v8577_v28 = vpop.f32.mrf.mxu1  ;;  %v8539_v63 = vpop.f32.mrf.mxu0 }
 0x16e   : > { %v8578_v2 = vadd.f32 %v8577_v28, %v8576_v60  ;;  %v2225_v46 = vadd.f32 %v8538_v38, %v2160_v4 }
 0x16f   : > { %v8579_v5 = vpop.f32.mrf.mxu1  ;;  %v8540_v51 = vpop.f32.mrf.mxu0 }
 0x170   : > { %v11053_v6 = vadd.f32 %v8578_v2, %v2225_v46  ;;  %v8541_v48 = vadd.f32 %v8540_v51, %v8539_v63 }
 0x171   : > { %v8580_v8 = vpop.f32.mrf.mxu1  ;;  %v8542_v9 = vpop.f32.mrf.mxu0 }
 0x172   : > { %v8581_v11 = vadd.f32 %v8580_v8, %v8579_v5  ;;  %v2230_v54 = vadd.f32 %v8541_v48, %v2165_v58 }
 0x173   : > { %v8582_v14 = vpop.f32.mrf.mxu1  ;;  %v8543_v59 = vpop.f32.mrf.mxu0 }
 0x174   : > { %v11055_v15 = vadd.f32 %v8581_v11, %v2230_v54  ;;  %v8544_v16 = vadd.f32 %v8543_v59, %v8542_v9 }
 0x175   : > { %v8583_v17 = vpop.f32.mrf.mxu1  ;;  %v8601_v20 = vpop.f32.mrf.mxu0 }
 0x176   : > { %v8584_v19 = vadd.f32 %v8583_v17, %v8582_v14  ;;  %v2233_v62 = vadd.f32 %v8544_v16, %v2168_v21 }
 0x177   : > { %v8641_v22 = vpop.f32.mrf.mxu1  ;;  %v8602_v4 = vpop.f32.mrf.mxu0 }
 0x178   : > { %v2298_v23 = vadd.f32 %v8584_v19, %v2233_v62  ;;  %v8603_v24 = vadd.f32 %v8602_v4, %v8601_v20 }
 0x179   : > { %v8642_v3 = vpop.f32.mrf.mxu1  ;;  %v8604_v26 = vpop.f32.mrf.mxu0 }
 0x17a   : > { %v8643_v29 = vadd.f32 %v8642_v3, %v8641_v22  ;;  %v2336_v7 = vadd.f32 %v8603_v24, %v2271_v30 }
 0x17b   : > { %v8644_v33 = vpop.f32.mrf.mxu1  ;;  %v8605_v34 = vpop.f32.mrf.mxu0 }
 0x17c   : > { %v2401_v58 = vadd.f32 %v8643_v29, %v2336_v7  ;;  %v8606_v32 = vadd.f32 %v8605_v34, %v8604_v26 }
 0x17d   : > { %v8645_v12 = vpop.f32.mrf.mxu1  ;;  %v8607_v0 = vpop.f32.mrf.mxu0 }
 0x17e   : > { %v8646_v36 = vadd.f32 %v8645_v12, %v8644_v33  ;;  %v2339_v56 = vadd.f32 %v8606_v32, %v2274_v37 }
 0x17f   : > { %v8647_v40 = vpop.f32.mrf.mxu1  ;;  %v8608_v41 = vpop.f32.mrf.mxu0 }
 0x180   : > { %v2404_v42 = vadd.f32 %v8646_v36, %v2339_v56  ;;  %v8609_v21 = vadd.f32 %v8608_v41, %v8607_v0 }
 0x181   : > { %v8648_v18 = vpop.f32.mrf.mxu1  ;;  %v8610_v44 = vpop.f32.mrf.mxu0 }
 0x182   : > { %v8649_v45 = vadd.f32 %v8648_v18, %v8647_v40  ;;  %v2344_v30 = vadd.f32 %v8609_v21, %v11047_v13 }
 0x183   : > { %v8650_v47 = vpop.f32.mrf.mxu1  ;;  %v8611_v49 = vpop.f32.mrf.mxu0 }
 0x184   : > { %v2409_v50 = vadd.f32 %v8649_v45, %v2344_v30  ;;  %v8612_v37 = vadd.f32 %v8611_v49, %v8610_v44 }
 0x185   : > { %v8651_v31 = vpop.f32.mrf.mxu1  ;;  %v8613_v52 = vpop.f32.mrf.mxu0 }
 0x186   : > { %v8652_v53 = vadd.f32 %v8651_v31, %v8650_v47  ;;  %v2347_v27 = vadd.f32 %v8612_v37, %v11049_v35 }
 0x187   : > { %v8653_v55 = vpop.f32.mrf.mxu1  ;;  %v8614_v10 = vpop.f32.mrf.mxu0 }
 0x188   : > { %v11063_v57 = vadd.f32 %v8652_v53, %v2347_v27  ;;  %v8615_v39 = vadd.f32 %v8614_v10, %v8613_v52 }
 0x189   : > { %v8654_v60 = vpop.f32.mrf.mxu1  ;;  %v8616_v1 = vpop.f32.mrf.mxu0 }
 0x18a   : > { %v8655_v38 = vadd.f32 %v8654_v60, %v8653_v55  ;;  %v2352_v13 = vadd.f32 %v8615_v39, %v11051_v61 }
 0x18b   : > { %v8656_v28 = vpop.f32.mrf.mxu1  ;;  %v8617_v63 = vpop.f32.mrf.mxu0 }
 0x18c   : > { %v11066_v2 = vadd.f32 %v8655_v38, %v2352_v13  ;;  %v8618_v46 = vadd.f32 %v8617_v63, %v8616_v1 }
 0x18d   : > { %v8657_v5 = vpop.f32.mrf.mxu1  ;;  %v8619_v51 = vpop.f32.mrf.mxu0 }
 0x18e   : > { %v8658_v48 = vadd.f32 %v8657_v5, %v8656_v28  ;;  %v2355_v35 = vadd.f32 %v8618_v46, %v11053_v6 }
 0x18f   : > { %v11069_v8 = vpop.f32.mrf.mxu1  ;;  %v8620_v9 = vpop.f32.mrf.mxu0 }
 0x190   : > { %v11071_v11 = vadd.f32 %v8658_v48, %v2355_v35  ;;  %v8621_v54 = vadd.f32 %v8620_v9, %v8619_v51 }
 0x191   : > { %v11073_v14 = vpop.f32.mrf.mxu1  ;;  %v8622_v59 = vpop.f32.mrf.mxu0 }
 0x192   : > { %v11076_v61 = vadd.f32 %v8621_v54, %v11055_v15 }
 0x193   : > { %v11078_v16 = vpop.f32.mrf.mxu1  ;;  %v8623_v17 = vpop.f32.mrf.mxu0 }
 0x194   : > { %v8624_v19 = vadd.f32 %v8623_v17, %v8622_v59 }
 0x195   : > { %v11080_v20 = vpop.f32.mrf.mxu1  ;;  %v8681_v62 = vpop.f32.mrf.mxu0 }
 0x196   : > { %v11082_v6 = vadd.f32 %v8624_v19, %v2298_v23  ;;  %v8664_v43 = vadd.f32 %v11080_v20, %v11078_v16 }
 0x197   : > { %v8721_v22 = vpop.f32.mrf.mxu1  ;;  %v8682_v4 = vpop.f32.mrf.mxu0 }
 0x198   : > { %v8683_v24 = vadd.f32 %v8682_v4, %v8681_v62 }
 0x199   : > { %v8722_v3 = vpop.f32.mrf.mxu1  ;;  %v8684_v26 = vpop.f32.mrf.mxu0 }
 0x19a   : > { %v8723_v29 = vadd.f32 %v8722_v3, %v8721_v22  ;;  %v2466_v7 = vadd.f32 %v8683_v24, %v2401_v58 }
 0x19b   : > { %v8724_v33 = vpop.f32.mrf.mxu1  ;;  %v8685_v34 = vpop.f32.mrf.mxu0 }
 0x19c   : > { %v11084_v15 = vadd.f32 %v8723_v29, %v2466_v7  ;;  %v8686_v32 = vadd.f32 %v8685_v34, %v8684_v26 }
 0x19d   : > { %v8725_v12 = vpop.f32.mrf.mxu1  ;;  %v8687_v0 = vpop.f32.mrf.mxu0 }
 0x19e   : > { %v8726_v36 = vadd.f32 %v8725_v12, %v8724_v33  ;;  %v2469_v56 = vadd.f32 %v8686_v32, %v2404_v42 }
 0x19f   : > { %v8727_v40 = vpop.f32.mrf.mxu1  ;;  %v8688_v41 = vpop.f32.mrf.mxu0 }
 0x1a0   : > { %v11086_v23 = vadd.f32 %v8726_v36, %v2469_v56  ;;  %v8689_v21 = vadd.f32 %v8688_v41, %v8687_v0  ;;  %v8661_v56 = vadd.f32 %v11073_v14, %v11069_v8 }
 0x1a1   : > { %v8728_v18 = vpop.f32.mrf.mxu1  ;;  %v8690_v44 = vpop.f32.mrf.mxu0 }
 0x1a2   : > { %12534 = vst [vmem:[#allocation3_spill] sm:$0xff] %v11086_v23  ;;  %v2474_v45 = vadd.f32 %v8689_v21, %v2409_v50  ;;  %v8729_v12 = vadd.f32 %v8728_v18, %v8727_v40 }
 0x1a3   : > { %v8730_v25 = vpop.f32.mrf.mxu1  ;;  %v8691_v30 = vpop.f32.mrf.mxu0 }
 0x1a4   : > { %v8692_v34 = vadd.f32 %v8691_v30, %v8690_v44 }
 0x1a5   : > { %v8731_v58 = vpop.f32.mrf.mxu1  ;;  %v8693_v47 = vpop.f32.mrf.mxu0 }
 0x1a6   : > { %v8732_v23 = vadd.f32 %v8731_v58, %v8730_v25 }
 0x1a7   : > { %v11088_v49 = vpop.f32.mrf.mxu1  ;;  %v8694_v37 = vpop.f32.mrf.mxu0 }
 0x1a8   : > { %v8695_v40 = vadd.f32 %v8694_v37, %v8693_v47 }
 0x1a9   : > { %v11090_v31 = vpop.f32.mrf.mxu1  ;;  %v8696_v52 = vpop.f32.mrf.mxu0 }
 0x1aa   : > { %v2482_v47 = vadd.f32 %v8695_v40, %v11066_v2 }
 0x1ab   : > { %v11092_v53 = vpop.f32.mrf.mxu1  ;;  %v8697_v42 = vpop.f32.mrf.mxu0 }
 0x1ad   : > { %v11094_v27 = vpop.f32.mrf.mxu1  ;;  %v8699_v55 = vpop.f32.mrf.mxu0 }
 0x1ae   : > { %12535 = vst [vmem:[#allocation4_spill] sm:$0xff] %v11094_v27 }
 0x1af   : > { %v8739_v10 = vpop.f32.mrf.mxu1  ;;  %v8700_v39 = vpop.f32.mrf.mxu0 }
 0x1b0   : > { %v8701_v44 = vadd.f32 %v8700_v39, %v8699_v55 }
 0x1b1   : > { %v8740_v60 = vpop.f32.mrf.mxu1  ;;  %v8702_v50 = vpop.f32.mrf.mxu0 }
 0x1b2   : > { %v8741_v58 = vadd.f32 %v8740_v60, %v8739_v10 }
 0x1b3   : > { %v11096_v1 = vpop.f32.mrf.mxu1  ;;  %v8703_v38 = vpop.f32.mrf.mxu0 }
 0x1b4   : > { %12536 = vst [vmem:[#allocation5_spill] sm:$0xff] %v11096_v1  ;;  %v8698_v1 = vadd.f32 %v8697_v42, %v8696_v52  ;;  %v8704_v20 = vadd.f32 %v8703_v38, %v8702_v50 }
 0x1b5   : > { %v11098_v13 = vpop.f32.mrf.mxu1  ;;  %v8761_v28 = vpop.f32.mrf.mxu0 }
 0x1b6   : > { %12537 = vst [vmem:[#allocation6_spill] sm:$0xff] %v11098_v13  ;;  %v2539_v13 = vadd.f32 %v8729_v12, %v2474_v45  ;;  %v2485_v42 = vadd.f32 %v8698_v1, %v11071_v11 }
 0x1b7   : > { %v8801_v63 = vpop.f32.mrf.mxu1  ;;  %v8762_v46 = vpop.f32.mrf.mxu0 }
 0x1b8   : > { %v8763_v30 = vadd.f32 %v8762_v46, %v8761_v28 }
 0x1b9   : > { %v8802_v5 = vpop.f32.mrf.mxu1  ;;  %v8764_v51 = vpop.f32.mrf.mxu0 }
 0x1ba   : > { %v2596_v45 = vadd.f32 %v8763_v30, %v11084_v15  ;;  %v8803_v55 = vadd.f32 %v8802_v5, %v8801_v63  ;;  %v12545_v63 = vld [vmem:[#allocation3_spill] sm:$0xff] }
 0x1bb   : > { %v8804_v48 = vpop.f32.mrf.mxu1  ;;  %v8765_v35 = vpop.f32.mrf.mxu0  ;;  %v12543_v15 = vld [vmem:[#allocation5_spill] sm:$0xff] }
 0x1bd   : > { %v8805_v9 = vpop.f32.mrf.mxu1  ;;  %v8767_v54 = vpop.f32.mrf.mxu0 }
 0x1be   : > { %v8806_v46 = vadd.f32 %v8805_v9, %v8804_v48 }
 0x1bf   : > { %v8807_v59 = vpop.f32.mrf.mxu1  ;;  %v8768_v17 = vpop.f32.mrf.mxu0 }
 0x1c0   : > { %v8769_v41 = vadd.f32 %v8768_v17, %v8767_v54  ;;  %v2428_v17 = vadd.f32 %v8664_v43, %v11082_v6  ;;  %v12542_v43 = vld [vmem:[#allocation4_spill] sm:$0xff] }
 0x1c1   : > { %v8808_v19 = vpop.f32.mrf.mxu1  ;;  %v8770_v62 = vpop.f32.mrf.mxu0  ;;  %v8738_v6 = vadd.f32 %v12542_v43, %v11092_v53 }
 0x1c2   : > { %v2604_v27 = vadd.f32 %v8769_v41, %v2539_v13  ;;  %v8809_v8 = vadd.f32 %v8808_v19, %v8807_v59  ;;  %v2493_v60 = vadd.f32 %v8704_v20, %v2428_v17  ;;  %v12544_v13 = vld [vmem:[#allocation6_spill] sm:$0xff] }
 0x1c3   : > { %v8810_v22 = vpop.f32.mrf.mxu1  ;;  %v8771_v4 = vpop.f32.mrf.mxu0  ;;  %v8744_v28 = vadd.f32 %v12544_v13, %v12543_v15 }
 0x1c4   : > { %v8772_v18 = vadd.f32 %v8771_v4, %v8770_v62  ;;  %v2669_v38 = vadd.f32 %v8809_v8, %v2604_v27 }
 0x1c5   : > { %v8811_v24 = vpop.f32.mrf.mxu1  ;;  %v8773_v3 = vpop.f32.mrf.mxu0  ;;  %v2558_v4 = vadd.f32 %v8744_v28, %v2493_v60 }
 0x1c6   : > { %v8812_v52 = vadd.f32 %v8811_v24, %v8810_v22  ;;  %v2794_v60 = vpop.permute.xlu1 %2793 }
 0x1c7   : > { %v11100_v26 = vpop.f32.mrf.mxu1  ;;  %v8774_v29 = vpop.f32.mrf.mxu0 }
 0x1c8   : > { %12538 = vst [vmem:[#allocation7_spill] sm:$0xff] %v11100_v26  ;;  %v2477_v26 = vadd.f32 %v8692_v34, %v11063_v57  ;;  %v8766_v57 = vadd.f32 %v8765_v35, %v8764_v51  ;;  %v2661_v51 = vadd.f32 %v8803_v55, %v2596_v45 }
 0x1c9   : > { %v11102_v7 = vpop.f32.mrf.mxu1  ;;  %v8776_v33 = vpop.f32.mrf.mxu0 }
 0x1ca   : > { %12539 = vst [vmem:[#allocation8_spill] sm:$0xff] %v11102_v7  ;;  %v2542_v16 = vadd.f32 %v8732_v23, %v2477_v26  ;;  %v2599_v2 = vadd.f32 %v8766_v57, %v12545_v63 }
 0x1cb   : > { %v11104_v32 = vpop.f32.mrf.mxu1  ;;  %v8777_v0 = vpop.f32.mrf.mxu0 }
 0x1cc   : > { %12540 = vst [vmem:[#allocation9_spill] sm:$0xff] %v11104_v32  ;;  %v2607_v37 = vadd.f32 %v8772_v18, %v2542_v16  ;;  %v8778_v24 = vadd.f32 %v8777_v0, %v8776_v33  ;;  %v2664_v34 = vadd.f32 %v8806_v46, %v2599_v2 }
 0x1cd   : > { %v11106_v36 = vpop.f32.mrf.mxu1  ;;  %v8779_v21 = vpop.f32.mrf.mxu0 }
 0x1ce   : > { %12541 = vst [vmem:[#allocation10_spill] sm:$0xff] %v11106_v36  ;;  %v2425_v36 = vadd.f32 %v8661_v56, %v11076_v61  ;;  %v8735_v61 = vadd.f32 %v11090_v31, %v11088_v49  ;;  %v8775_v49 = vadd.f32 %v8774_v29, %v8773_v3  ;;  %v2672_v1 = vadd.f32 %v8812_v52, %v2607_v37 }
 0x1cf   : > { %v8819_v7 = vpop.f32.mrf.mxu1  ;;  %v8780_v32 = vpop.f32.mrf.mxu0  ;;  %v12546_v48 = vld [vmem:[#allocation7_spill] sm:$0xff] }
 0x1d0   : > { %v2490_v25 = vadd.f32 %v8701_v44, %v2425_v36  ;;  %v8781_v23 = vadd.f32 %v8780_v32, %v8779_v21  ;;  %v2547_v59 = vadd.f32 %v8735_v61, %v2482_v47  ;;  %v2550_v32 = vadd.f32 %v8738_v6, %v2485_v42 }
 0x1d1   : > { %v8782_v14 = vpop.f32.mrf.mxu0  ;;  %v8820_v54 = vpop.f32.mrf.mxu1  ;;  %v12547_v9 = vld [vmem:[#allocation8_spill] sm:$0xff] }
 0x1d2   : > { %v2555_v5 = vadd.f32 %v8741_v58, %v2490_v25  ;;  %v8821_v19 = vadd.f32 %v8820_v54, %v8819_v7  ;;  %v2612_v12 = vadd.f32 %v8775_v49, %v2547_v59  ;;  %v8815_v3 = vadd.f32 %v12547_v9, %v12546_v48  ;;  %v2784_v49 = vpop.permute.xlu1 %2783 }
 0x1d3   : > { %v8783_v39 = vpop.f32.mrf.mxu0  ;;  %v8822_v50 = vpop.f32.mrf.mxu1  ;;  %v2615_v44 = vadd.f32 %v8778_v24, %v2550_v32  ;;  %v12548_v30 = vld [vmem:[#allocation9_spill] sm:$0xff]  ;;  %v9789_v24 = vld [vmem:[%s12529_s7] sm:$0xff]  }
 0x1d4   : > { %v8784_v11 = vadd.f32 %v8783_v39, %v8782_v14  ;;  %v2620_v53 = vadd.f32 %v8781_v23, %v2555_v5  ;;  %v2677_v18 = vadd.f32 %v8815_v3, %v2612_v12  ;;  %9120 = vmatprep.mubr.msk.bf16.mxu0 %vm4613_vm5, %v9789_v24  ;;  %v9815_v24 = vld [vmem:[%s12529_s7 + $0x70] sm:$0xff]  }
 0x1d5   : > { %v9080_v10 = vpop.f32.mrf.mxu0  ;;  %v8823_v62 = vpop.f32.mrf.mxu1  ;;  %v12549_v40 = vld [vmem:[#allocation10_spill] sm:$0xff] }
 0x1d6   : > { %v2734_v31 = vadd.f32 %v9080_v10, %v2669_v38  ;;  %v2623_v36 = vadd.f32 %v8784_v11, %v2558_v4  ;;  %v8824_v56 = vadd.f32 %v8823_v62, %v8822_v50  ;;  %v2685_v7 = vadd.f32 %v8821_v19, %v2620_v53  ;;  %v9784_v50 = vld [vmem:[%s12525_s3 + $0x8] sm:$0xff]   ;;  %v9785_v38 = vld [vmem:[%s12527_s5] sm:$0xff]   ;;  %v2789_v10 = vpop.permute.xlu0 %2788  ;;  %v9788_v4 = vld [vmem:[%s12527_s5 + $0x18] sm:$0xff]  }
 0x1d7   : > { %v2725_v35 = vpop.f32.mrf.mxu0  ;;  %v8818_v33 = vadd.f32 %v12549_v40, %v12548_v30  ;;  %v9786_v62 = vld [vmem:[%s12527_s5 + $0x8] sm:$0xff]  }
 0x1d8   : > { %v2726_v27 = vadd.f32 %v2725_v35, %v2661_v51  ;;  %10015 = vtanh.f32 %v2734_v31  ;;  %v2688_v14 = vadd.f32 %v8824_v56, %v2623_v36 }
 0x1d9   : > { %v9081_v22 = vpop.f32.mrf.mxu0  ;;  %v2680_v20 = vadd.f32 %v8818_v33, %v2615_v44 }
 0x1da   : > { %v2737_v26 = vadd.f32 %v9081_v22, %v2672_v1  ;;  %v2779_v63 = vpop.permute.xlu0 %2778  ;;  %v12550_v22 = vld [vmem:[#allocation2_spill] sm:$0xff] }
 0x1db   : > { %v2728_v29 = vpop.f32.mrf.mxu0 }
 0x1dc   : > { %10017 = vtanh.f32 %v2737_v26  ;;  %v2729_v41 = vadd.f32 %v2728_v29, %v2664_v34  ;;  %v9792_v26 = vld [vmem:[%s12529_s7 + $0x390] sm:$0xff]   ;;  %v2922_v34 = vpop.permute.xlu1 %2921 }
 0x1dd   : > { %10019 = vtanh.f32 %v2726_v27  ;;  %v9084_v21 = vpop.f32.mrf.mxu0  ;;  %v9787_v27 = vld [vmem:[%s12527_s5 + $0x10] sm:$0xff]  }
 0x1de   : > { %10021 = vtanh.f32 %v2729_v41  ;;  %v2750_v0 = vadd.f32 %v9084_v21, %v2685_v7  ;;  %v2917_v12 = vpop.permute.xlu0 %2916 }
 0x1df   : > { %v2741_v8 = vpop.f32.mrf.mxu0 }
 0x1e0   : > { %v2742_v54 = vadd.f32 %v2741_v8, %v2677_v18  ;;  %10023 = vtanh.f32 %v2750_v0  ;;  %v2912_v3 = vpop.permute.xlu1 %2911 }
 0x1e1   : > { %v9085_v17 = vpop.f32.mrf.mxu0 }
 0x1e2   : > { %v2753_v16 = vadd.f32 %v9085_v17, %v2688_v14  ;;  %v2907_v36 = vpop.permute.xlu0 %2906 }
 0x1e3   : > { %v2744_v57 = vpop.f32.mrf.mxu0 }
 0x1e4   : > { %10025 = vtanh.f32 %v2753_v16  ;;  %v2745_v25 = vadd.f32 %v2744_v57, %v2680_v20  ;;  %v2902_v21 = vpop.permute.xlu1 %2901 }
 0x1e5   : > { %10027 = vtanh.f32 %v2742_v54  ;;  %v10016_v58 = vpop.eup %10015 }
 0x1e6   : > { %10029 = vtanh.f32 %v2745_v25  ;;  %v2897_v33 = vpop.permute.xlu0 %2896 }
 0x1e8   : > { %v2892_v25 = vpop.permute.xlu1 %2891 }
 0x1e9   : > { %v10018_v45 = vpop.eup %10017 }
 0x1ea   : > { %v10020_v55 = vpop.eup %10019  ;;  %v2769_v39 = vpack.c.bf16 %v10018_v45, %v10016_v58 }
 0x1eb   : > { %v10022_v47 = vpop.eup %10021 }
 0x1ec   : > { %v2768_v61 = vpack.c.bf16 %v10022_v47, %v10020_v55 }
 0x1ed   : > { %v10024_v37 = vpop.eup %10023 }
 0x1f1   : > { %v10026_v52 = vpop.eup %10025 }
 0x1f2   : > { %v10028_v42 = vpop.eup %10027  ;;  %v2771_v43 = vpack.c.bf16 %v10026_v52, %v10024_v37 }
 0x1f3   : > { %v10030_v6 = vpop.eup %10029 }
 0x1f4   : > { %9086 = vmatprep.subr.bf16.mxu1 %v2771_v43  ;;  %v2770_v23 = vpack.c.bf16 %v10030_v6, %v10028_v42  ;;  %v9790_v6 = vld [vmem:[%s12529_s7 + $0x8] sm:$0xff]  }
 0x1f5   : > { %9087 = vmatpush3.bf16.msra.mxu1 %v2771_v43 }
 0x1f6   : > { %9088 = vmatprep.subr.bf16.mxu1 %v2770_v23 }
 0x1f9   : > { %9089 = vmatpush3.bf16.msra.mxu1 %v2770_v23  ;;  %v9794_v23 = vld [vmem:[%s12529_s7 + $0x398] sm:$0xff]  }
 0x1fa   : > { %9090 = vmatprep.subr.bf16.mxu1 %v2769_v39 }
 0x1fd   : > { %9091 = vmatpush3.bf16.msra.mxu1 %v2769_v39  ;;  %v2887_v39 = vpop.permute.xlu0 %2886 }
 0x1fe   : > { %9092 = vmatprep.subr.bf16.mxu1 %v2768_v61 }
 0x201   : > { %9093 = vmatpush3.bf16.msra.mxu1 %v2768_v61 }
 0x204   : > { %9095 = vmatmul.mubr.msk.bf16.vlgmr.msra.gmra.mxu1 %vm2806_vm3, %v9784_v50  ;;  %v9791_v50 = vld [vmem:[%s12529_s7 + $0x10] sm:$0xff]  }
 0x205   : > { %9102 = vmatprep.mubr.msk.bf16.mxu1 %vm2944_vm4, %v9785_v38  ;;  %v9796_v38 = vld [vmem:[%s12529_s7 + $0x3a0] sm:$0xff]  }
 0x2c4   : > { %v9096_v15 = vpop.f32.mrf.mxu1 }
 0x2c5   : > { %v2856_v13 = vadd.f32 %v9096_v15, %v2789_v10  ;;  %v9793_v10 = vld [vmem:[%s12529_s7 + $0x18] sm:$0xff]   ;;  %v9795_v15 = vld [vmem:[%s12529_s7 + $0x20] sm:$0xff]  }
 0x2c6   : > { %v2847_v28 = vpop.f32.mrf.mxu1 }
 0x2c7   : > { %v2848_v2 = vadd.f32 %v2847_v28, %v2779_v63  ;;  %10031 = vtanh.f32 %v2856_v13  ;;  %v9800_v13 = vld [vmem:[%s12529_s7 + $0x3b0] sm:$0xff]   ;;  %v9797_v28 = vld [vmem:[%s12529_s7 + $0x28] sm:$0xff]   ;;  %v9802_v63 = vld [vmem:[%s12529_s7 + $0x3b8] sm:$0xff]  }
 0x2c8   : > { %v9097_v46 = vpop.f32.mrf.mxu1 }
 0x2c9   : > { %v2859_v5 = vadd.f32 %v9097_v46, %v2794_v60  ;;  %v9798_v60 = vld [vmem:[%s12529_s7 + $0x3a8] sm:$0xff]   ;;  %v9804_v46 = vld [vmem:[%s12529_s7 + $0x3c0] sm:$0xff]  }
 0x2ca   : > { %v2850_v31 = vpop.f32.mrf.mxu1 }
 0x2cb   : > { %10033 = vtanh.f32 %v2859_v5  ;;  %v2851_v51 = vadd.f32 %v2850_v31, %v2784_v49  ;;  %v9801_v5 = vld [vmem:[%s12529_s7 + $0x38] sm:$0xff]   ;;  %v9806_v49 = vld [vmem:[%s12529_s7 + $0x3c8] sm:$0xff]   ;;  %v9803_v31 = vld [vmem:[%s12529_s7 + $0x40] sm:$0xff]  }
 0x2cc   : > { %10035 = vtanh.f32 %v2848_v2  ;;  %v9799_v2 = vld [vmem:[%s12529_s7 + $0x30] sm:$0xff]  }
 0x2cd   : > { %10037 = vtanh.f32 %v2851_v51  ;;  %v9808_v51 = vld [vmem:[%s12529_s7 + $0x3d0] sm:$0xff]  }
 0x2d4   : > { %v10032_v35 = vpop.eup %10031 }
 0x2d8   : > { %v10034_v11 = vpop.eup %10033 }
 0x2d9   : > { %v10036_v1 = vpop.eup %10035  ;;  %v2875_v59 = vpack.c.bf16 %v10034_v11, %v10032_v35  ;;  %v9805_v35 = vld [vmem:[%s12529_s7 + $0x48] sm:$0xff]   ;;  %v9810_v11 = vld [vmem:[%s12529_s7 + $0x3d8] sm:$0xff]  }
 0x2da   : > { %v10038_v53 = vpop.eup %10037 }
 0x2db   : > { %9098 = vmatprep.subr.bf16.mxu1 %v2875_v59  ;;  %v2874_v19 = vpack.c.bf16 %v10038_v53, %v10036_v1  ;;  %v9807_v1 = vld [vmem:[%s12529_s7 + $0x50] sm:$0xff]   ;;  %v9809_v53 = vld [vmem:[%s12529_s7 + $0x58] sm:$0xff]  }
 0x2dc   : > { %9099 = vmatpush3.bf16.msra.mxu1 %v2875_v59  ;;  %v9812_v59 = vld [vmem:[%s12529_s7 + $0x3e0] sm:$0xff]  }
 0x2dd   : > { %9100 = vmatprep.subr.bf16.mxu1 %v2874_v19 }
 0x2e0   : > { %9101 = vmatpush3.bf16.msra.mxu1 %v2874_v19  ;;  %v9814_v19 = vld [vmem:[%s12529_s7 + $0x3e8] sm:$0xff]  }
 0x2e1   : > { %9572 = vmatprep.subr.bf16.mxu1 %v12550_v22 }
 0x2e3   : > { %9103 = vmatmul.mubr.msk.bf16.vlgmr.msra.gmra.mxu1 %vm2944_vm4, %v9786_v62  ;;  %v9811_v62 = vld [vmem:[%s12529_s7 + $0x60] sm:$0xff]  }
 0x2e4   : > { %9106 = vmatprep.mubr.msk.bf16.mxu1 %vm2944_vm4, %v9787_v27  ;;  %9577 = vmatpush3.bf16.msra.mxu1 %v12550_v22  ;;  %v9816_v27 = vld [vmem:[%s12529_s7 + $0x3f0] sm:$0xff]   ;;  %v9813_v22 = vld [vmem:[%s12529_s7 + $0x68] sm:$0xff]  }
 0x2eb   : > { %9107 = vmatmul.mubr.msk.bf16.gmra.mxu1 %vm2944_vm4, %v9788_v4  ;;  %v9818_v4 = vld [vmem:[%s12529_s7 + $0x3f8] sm:$0xff]  }
 0x2ec   : > { %9348 = vmatprep.mubr.msk.bf16.mxu1 %vm4613_vm5, %v9792_v26  ;;  %v9820_v26 = vld [vmem:[%s12529_s7 + $0x400] sm:$0xff]  }
 0x3a3   : > { %v9104_v32 = vpop.f32.mrf.mxu1 }
 0x3a4   : > { %v3000_v17 = vadd.f32 %v9104_v32, %v2897_v33  ;;  %v9822_v32 = vld [vmem:[%s12529_s7 + $0x408] sm:$0xff]   ;;  %v9836_v33 = vld [vmem:[%s12529_s7 + $0x440] sm:$0xff]  }
 0x3a5   : > { %v2991_v48 = vpop.f32.mrf.mxu1 }
 0x3a6   : > { %v3024_v47 = vmax.f32 %v3000_v17, 0.0  ;;  %v2992_v61 = vadd.f32 %v2991_v48, %v2887_v39  ;;  %v9824_v48 = vld [vmem:[%s12529_s7 + $0x410] sm:$0xff]   ;;  %v9842_v17 = vld [vmem:[%s12529_s7 + $0x458] sm:$0xff]  }
 0x3a7   : > { %v9105_v9 = vpop.f32.mrf.mxu1  ;;  %v9850_v39 = vld [vmem:[%s12529_s7 + $0x478] sm:$0xff]  }
 0x3a8   : > { %v3003_v18 = vadd.f32 %v9105_v9, %v2902_v21  ;;  %v3022_v42 = vmax.f32 %v2992_v61, 0.0  ;;  %v9821_v9 = vld [vmem:[%s12529_s7 + $0x88] sm:$0xff]   ;;  %v9832_v21 = vld [vmem:[%s12529_s7 + $0x430] sm:$0xff]   ;;  %v9852_v61 = vld [vmem:[%s12529_s7 + $0x480] sm:$0xff]  }
 0x3a9   : > { %v2994_v29 = vpop.f32.mrf.mxu1 }
 0x3aa   : > { %v3025_v58 = vmax.f32 %v3003_v18, 0.0  ;;  %v2995_v45 = vadd.f32 %v2994_v29, %v2892_v25  ;;  %v9823_v29 = vld [vmem:[%s12529_s7 + $0x90] sm:$0xff]   ;;  %v9838_v18 = vld [vmem:[%s12529_s7 + $0x448] sm:$0xff]  }
 0x3ab   : > { %v9108_v56 = vpop.f32.mrf.mxu1  ;;  %v9846_v25 = vld [vmem:[%s12529_s7 + $0x468] sm:$0xff]  }
 0x3ac   : > { %v3016_v7 = vadd.f32 %v9108_v56, %v2917_v12  ;;  %v3031_v37 = vpack.c.bf16 %v3025_v58, %v3024_v47  ;;  %v3023_v52 = vmax.f32 %v2995_v45, 0.0  ;;  %v9819_v12 = vld [vmem:[%s12529_s7 + $0x80] sm:$0xff]   ;;  %v9825_v56 = vld [vmem:[%s12529_s7 + $0x98] sm:$0xff]   ;;  %v9848_v45 = vld [vmem:[%s12529_s7 + $0x470] sm:$0xff]  }
 0x3ad   : > { %v3007_v41 = vpop.f32.mrf.mxu1  ;;  %v9843_v58 = vld [vmem:[%s12529_s7 + $0xe0] sm:$0xff]   ;;  %v9847_v47 = vld [vmem:[%s12529_s7 + $0xf0] sm:$0xff]  }
 0x3ae   : > { %v3008_v30 = vadd.f32 %v3007_v41, %v2907_v36  ;;  %v3028_v8 = vmax.f32 %v3016_v7, 0.0  ;;  %v3030_v43 = vpack.c.bf16 %v3023_v52, %v3022_v42  ;;  %v9828_v36 = vld [vmem:[%s12529_s7 + $0x420] sm:$0xff]   ;;  %v9830_v41 = vld [vmem:[%s12529_s7 + $0x428] sm:$0xff]  }
 0x3af   : > { %v9109_v44 = vpop.f32.mrf.mxu1  ;;  %v9827_v7 = vld [vmem:[%s12529_s7 + $0xa0] sm:$0xff]   ;;  %v9854_v52 = vld [vmem:[%s12529_s7 + $0x488] sm:$0xff]  }
 0x3b0   : > { %v3019_v40 = vadd.f32 %v9109_v44, %v2922_v34  ;;  %v3026_v16 = vmax.f32 %v3008_v30, 0.0  ;;  %v9817_v34 = vld [vmem:[%s12529_s7 + $0x78] sm:$0xff]   ;;  %v9829_v44 = vld [vmem:[%s12529_s7 + $0xa8] sm:$0xff]   ;;  %v9851_v42 = vld [vmem:[%s12529_s7 + $0x100] sm:$0xff]  }
 0x3b1   : > { %v3010_v0 = vpop.f32.mrf.mxu1  ;;  %v9834_v30 = vld [vmem:[%s12529_s7 + $0x438] sm:$0xff]  }
 0x3b2   : > { %v3029_v14 = vmax.f32 %v3019_v40, 0.0  ;;  %v3011_v54 = vadd.f32 %v3010_v0, %v2912_v3  ;;  %v9826_v3 = vld [vmem:[%s12529_s7 + $0x418] sm:$0xff]   ;;  %v9831_v40 = vld [vmem:[%s12529_s7 + $0xb0] sm:$0xff]  }
 0x3b3   : > { %v9833_v0 = vld [vmem:[%s12529_s7 + $0xb8] sm:$0xff]  }
 0x3b4   : > { %v3033_v20 = vpack.c.bf16 %v3029_v14, %v3028_v8  ;;  %v3027_v57 = vmax.f32 %v3011_v54, 0.0  ;;  %v9835_v8 = vld [vmem:[%s12529_s7 + $0xc0] sm:$0xff]   ;;  %v9840_v14 = vld [vmem:[%s12529_s7 + $0x450] sm:$0xff]   ;;  %v9837_v54 = vld [vmem:[%s12529_s7 + $0xc8] sm:$0xff]  }
 0x3b6   : > { %v3032_v55 = vpack.c.bf16 %v3027_v57, %v3026_v16  ;;  %9112 = vmatprep.subr.bf16.mxu0 %v3033_v20  ;;  %9573 = vmatprep.subr.bf16.mxu1 %v3033_v20  ;;  %v9839_v16 = vld [vmem:[%s12529_s7 + $0xd0] sm:$0xff]   ;;  %v9841_v57 = vld [vmem:[%s12529_s7 + $0xd8] sm:$0xff]  }
 0x3b7   : > { %9113 = vmatpush3.bf16.msra.mxu0 %v3033_v20  ;;  %9578 = vmatpush3.bf16.msra.mxu1 %v3033_v20  ;;  %v9844_v20 = vld [vmem:[%s12529_s7 + $0x460] sm:$0xff]  }
 0x3b8   : > { %9114 = vmatprep.subr.bf16.mxu0 %v3032_v55  ;;  %9574 = vmatprep.subr.bf16.mxu1 %v3032_v55 }
 0x3bb   : > { %9115 = vmatpush3.bf16.msra.mxu0 %v3032_v55  ;;  %9579 = vmatpush3.bf16.msra.mxu1 %v3032_v55  ;;  %v9845_v55 = vld [vmem:[%s12529_s7 + $0xe8] sm:$0xff]  }
 0x3bc   : > { %9116 = vmatprep.subr.bf16.mxu0 %v3031_v37  ;;  %9575 = vmatprep.subr.bf16.mxu1 %v3031_v37 }
 0x3bf   : > { %9117 = vmatpush3.bf16.msra.mxu0 %v3031_v37  ;;  %9580 = vmatpush3.bf16.msra.mxu1 %v3031_v37  ;;  %v9849_v37 = vld [vmem:[%s12529_s7 + $0xf8] sm:$0xff]  }
 0x3c0   : > { %9118 = vmatprep.subr.bf16.mxu0 %v3030_v43  ;;  %9576 = vmatprep.subr.bf16.mxu1 %v3030_v43 }
 0x3c3   : > { %9119 = vmatpush3.bf16.msra.mxu0 %v3030_v43  ;;  %9581 = vmatpush3.bf16.msra.mxu1 %v3030_v43  ;;  %v9856_v43 = vld [vmem:[%s12529_s7 + $0x490] sm:$0xff]  }
 0x3c6   : > { %9121 = vmatmul.mubr.msk.bf16.vlgmr.msra.gmra.mxu0 %vm4613_vm5, %v9790_v6  ;;  %9349 = vmatmul.mubr.msk.bf16.vlgmr.msra.gmra.mxu1 %vm4613_vm5, %v9794_v23  ;;  %v9853_v6 = vld [vmem:[%s12529_s7 + $0x108] sm:$0xff]   ;;  %v9858_v23 = vld [vmem:[%s12529_s7 + $0x498] sm:$0xff]  }
 0x3c7   : > { %9124 = vmatprep.mubr.msk.bf16.mxu0 %vm4613_vm5, %v9791_v50  ;;  %9352 = vmatprep.mubr.msk.bf16.mxu1 %vm4613_vm5, %v9796_v38  ;;  %v9855_v50 = vld [vmem:[%s12529_s7 + $0x110] sm:$0xff]   ;;  %v9860_v38 = vld [vmem:[%s12529_s7 + $0x4a0] sm:$0xff]  }
 0x3ce   : > { %9125 = vmatmul.mubr.msk.bf16.gmra.mxu0 %vm4613_vm5, %v9793_v10  ;;  %9353 = vmatmul.mubr.msk.bf16.gmra.mxu1 %vm4613_vm5, %v9798_v60  ;;  %v9857_v10 = vld [vmem:[%s12529_s7 + $0x118] sm:$0xff]   ;;  %v9862_v60 = vld [vmem:[%s12529_s7 + $0x4a8] sm:$0xff]  }
 0x3cf   : > { %9128 = vmatprep.mubr.msk.bf16.mxu0 %vm4613_vm5, %v9795_v15  ;;  %9356 = vmatprep.mubr.msk.bf16.mxu1 %vm4613_vm5, %v9800_v13  ;;  %v9859_v15 = vld [vmem:[%s12529_s7 + $0x120] sm:$0xff]   ;;  %v9864_v13 = vld [vmem:[%s12529_s7 + $0x4b0] sm:$0xff]  }
 0x3d6   : > { %9129 = vmatmul.mubr.msk.bf16.gmra.mxu0 %vm4613_vm5, %v9797_v28  ;;  %9357 = vmatmul.mubr.msk.bf16.gmra.mxu1 %vm4613_vm5, %v9802_v63  ;;  %v9861_v28 = vld [vmem:[%s12529_s7 + $0x128] sm:$0xff]   ;;  %v9866_v63 = vld [vmem:[%s12529_s7 + $0x4b8] sm:$0xff]  }
 0x3d7   : > { %9132 = vmatprep.mubr.msk.bf16.mxu0 %vm4613_vm5, %v9799_v2  ;;  %9360 = vmatprep.mubr.msk.bf16.mxu1 %vm4613_vm5, %v9804_v46  ;;  %v9863_v2 = vld [vmem:[%s12529_s7 + $0x130] sm:$0xff]   ;;  %v9868_v46 = vld [vmem:[%s12529_s7 + $0x4c0] sm:$0xff]  }
 0x3de   : > { %9133 = vmatmul.mubr.msk.bf16.gmra.mxu0 %vm4613_vm5, %v9801_v5  ;;  %9361 = vmatmul.mubr.msk.bf16.gmra.mxu1 %vm4613_vm5, %v9806_v49  ;;  %v9865_v5 = vld [vmem:[%s12529_s7 + $0x138] sm:$0xff]   ;;  %v9870_v49 = vld [vmem:[%s12529_s7 + $0x4c8] sm:$0xff]  }
 0x3df   : > { %9136 = vmatprep.mubr.msk.bf16.mxu0 %vm4613_vm5, %v9803_v31  ;;  %9364 = vmatprep.mubr.msk.bf16.mxu1 %vm4613_vm5, %v9808_v51  ;;  %v9867_v31 = vld [vmem:[%s12529_s7 + $0x140] sm:$0xff]   ;;  %v9872_v51 = vld [vmem:[%s12529_s7 + $0x4d0] sm:$0xff]  }
 0x3e6   : > { %9137 = vmatmul.mubr.msk.bf16.gmra.mxu0 %vm4613_vm5, %v9805_v35  ;;  %9365 = vmatmul.mubr.msk.bf16.gmra.mxu1 %vm4613_vm5, %v9810_v11  ;;  %v9869_v35 = vld [vmem:[%s12529_s7 + $0x148] sm:$0xff]   ;;  %v9874_v11 = vld [vmem:[%s12529_s7 + $0x4d8] sm:$0xff]  }
 0x3e7   : > { %9140 = vmatprep.mubr.msk.bf16.mxu0 %vm4613_vm5, %v9807_v1  ;;  %9368 = vmatprep.mubr.msk.bf16.mxu1 %vm4613_vm5, %v9812_v59  ;;  %v9871_v1 = vld [vmem:[%s12529_s7 + $0x150] sm:$0xff]   ;;  %v9876_v59 = vld [vmem:[%s12529_s7 + $0x4e0] sm:$0xff]  }
 0x3ee   : > { %9141 = vmatmul.mubr.msk.bf16.gmra.mxu0 %vm4613_vm5, %v9809_v53  ;;  %9369 = vmatmul.mubr.msk.bf16.gmra.mxu1 %vm4613_vm5, %v9814_v19  ;;  %v9873_v53 = vld [vmem:[%s12529_s7 + $0x158] sm:$0xff]   ;;  %v9878_v19 = vld [vmem:[%s12529_s7 + $0x4e8] sm:$0xff]  }
 0x3ef   : > { %9144 = vmatprep.mubr.msk.bf16.mxu0 %vm4613_vm5, %v9811_v62  ;;  %9372 = vmatprep.mubr.msk.bf16.mxu1 %vm4613_vm5, %v9816_v27  ;;  %v9875_v62 = vld [vmem:[%s12529_s7 + $0x160] sm:$0xff]   ;;  %v9880_v27 = vld [vmem:[%s12529_s7 + $0x4f0] sm:$0xff]  }
 0x3f6   : > { %9145 = vmatmul.mubr.msk.bf16.gmra.mxu0 %vm4613_vm5, %v9813_v22  ;;  %9373 = vmatmul.mubr.msk.bf16.gmra.mxu1 %vm4613_vm5, %v9818_v4  ;;  %v9877_v22 = vld [vmem:[%s12529_s7 + $0x168] sm:$0xff]   ;;  %v9882_v4 = vld [vmem:[%s12529_s7 + $0x4f8] sm:$0xff]  }
 0x3f7   : > { %9148 = vmatprep.mubr.msk.bf16.mxu0 %vm4613_vm5, %v9815_v24  ;;  %9376 = vmatprep.mubr.msk.bf16.mxu1 %vm4613_vm5, %v9820_v26  ;;  %v9879_v24 = vld [vmem:[%s12529_s7 + $0x170] sm:$0xff]   ;;  %v9884_v26 = vld [vmem:[%s12529_s7 + $0x500] sm:$0xff]  }
 0x3fe   : > { %9149 = vmatmul.mubr.msk.bf16.gmra.mxu0 %vm4613_vm5, %v9817_v34  ;;  %9377 = vmatmul.mubr.msk.bf16.gmra.mxu1 %vm4613_vm5, %v9822_v32  ;;  %v9881_v34 = vld [vmem:[%s12529_s7 + $0x178] sm:$0xff]   ;;  %v9886_v32 = vld [vmem:[%s12529_s7 + $0x508] sm:$0xff]  }
 0x3ff   : > { %9152 = vmatprep.mubr.msk.bf16.mxu0 %vm4613_vm5, %v9819_v12  ;;  %9380 = vmatprep.mubr.msk.bf16.mxu1 %vm4613_vm5, %v9824_v48  ;;  %v9883_v12 = vld [vmem:[%s12529_s7 + $0x180] sm:$0xff]   ;;  %v9888_v48 = vld [vmem:[%s12529_s7 + $0x510] sm:$0xff]  }
 0x406   : > { %9153 = vmatmul.mubr.msk.bf16.gmra.mxu0 %vm4613_vm5, %v9821_v9  ;;  %9381 = vmatmul.mubr.msk.bf16.gmra.mxu1 %vm4613_vm5, %v9826_v3  ;;  %v9885_v9 = vld [vmem:[%s12529_s7 + $0x188] sm:$0xff]   ;;  %v9890_v3 = vld [vmem:[%s12529_s7 + $0x518] sm:$0xff]  }
 0x407   : > { %9156 = vmatprep.mubr.msk.bf16.mxu0 %vm4613_vm5, %v9823_v29  ;;  %9384 = vmatprep.mubr.msk.bf16.mxu1 %vm4613_vm5, %v9828_v36  ;;  %v9887_v29 = vld [vmem:[%s12529_s7 + $0x190] sm:$0xff]   ;;  %v9892_v36 = vld [vmem:[%s12529_s7 + $0x520] sm:$0xff]  }
 0x40e   : > { %9157 = vmatmul.mubr.msk.bf16.gmra.mxu0 %vm4613_vm5, %v9825_v56  ;;  %9385 = vmatmul.mubr.msk.bf16.gmra.mxu1 %vm4613_vm5, %v9830_v41 }
 0x40f   : > { %9160 = vmatprep.mubr.msk.bf16.mxu0 %vm4613_vm5, %v9827_v7  ;;  %9388 = vmatprep.mubr.msk.bf16.mxu1 %vm4613_vm5, %v9832_v21 }
 0x416   : > { %9161 = vmatmul.mubr.msk.bf16.gmra.mxu0 %vm4613_vm5, %v9829_v44  ;;  %9389 = vmatmul.mubr.msk.bf16.gmra.mxu1 %vm4613_vm5, %v9834_v30  ;;  %v9889_v30 = vld [vmem:[%s12529_s7 + $0x198] sm:$0xff]  }
 0x417   : > { %9164 = vmatprep.mubr.msk.bf16.mxu0 %vm4613_vm5, %v9831_v40  ;;  %9392 = vmatprep.mubr.msk.bf16.mxu1 %vm4613_vm5, %v9836_v33  ;;  %v9894_v33 = vld [vmem:[%s12529_s7 + $0x528] sm:$0xff]  }
 0x41e   : > { %9165 = vmatmul.mubr.msk.bf16.gmra.mxu0 %vm4613_vm5, %v9833_v0  ;;  %9393 = vmatmul.mubr.msk.bf16.gmra.mxu1 %vm4613_vm5, %v9838_v18  ;;  %v9891_v0 = vld [vmem:[%s12529_s7 + $0x1a0] sm:$0xff]   ;;  %v9896_v18 = vld [vmem:[%s12529_s7 + $0x530] sm:$0xff]  }
 0x41f   : > { %9168 = vmatprep.mubr.msk.bf16.mxu0 %vm4613_vm5, %v9835_v8  ;;  %9396 = vmatprep.mubr.msk.bf16.mxu1 %vm4613_vm5, %v9840_v14 }
 0x426   : > { %9169 = vmatmul.mubr.msk.bf16.gmra.mxu0 %vm4613_vm5, %v9837_v54  ;;  %9397 = vmatmul.mubr.msk.bf16.gmra.mxu1 %vm4613_vm5, %v9842_v17 }
 0x427   : > { %9172 = vmatprep.mubr.msk.bf16.mxu0 %vm4613_vm5, %v9839_v16  ;;  %9400 = vmatprep.mubr.msk.bf16.mxu1 %vm4613_vm5, %v9844_v20 }
 0x42e   : > { %9173 = vmatmul.mubr.msk.bf16.gmra.mxu0 %vm4613_vm5, %v9841_v57  ;;  %9401 = vmatmul.mubr.msk.bf16.gmra.mxu1 %vm4613_vm5, %v9846_v25  ;;  %v9893_v25 = vld [vmem:[%s12529_s7 + $0x1a8] sm:$0xff]  }
 0x42f   : > { %9176 = vmatprep.mubr.msk.bf16.mxu0 %vm4613_vm5, %v9843_v58  ;;  %9404 = vmatprep.mubr.msk.bf16.mxu1 %vm4613_vm5, %v9848_v45  ;;  %v9898_v45 = vld [vmem:[%s12529_s7 + $0x538] sm:$0xff]  }
 0x436   : > { %9177 = vmatmul.mubr.msk.bf16.gmra.mxu0 %vm4613_vm5, %v9845_v55  ;;  %9405 = vmatmul.mubr.msk.bf16.gmra.mxu1 %vm4613_vm5, %v9850_v39  ;;  %v9895_v55 = vld [vmem:[%s12529_s7 + $0x1b0] sm:$0xff]   ;;  %v9900_v39 = vld [vmem:[%s12529_s7 + $0x540] sm:$0xff]  }
 0x437   : > { %9180 = vmatprep.mubr.msk.bf16.mxu0 %vm4613_vm5, %v9847_v47  ;;  %9408 = vmatprep.mubr.msk.bf16.mxu1 %vm4613_vm5, %v9852_v61 }
 0x43e   : > { %9181 = vmatmul.mubr.msk.bf16.gmra.mxu0 %vm4613_vm5, %v9849_v37  ;;  %9409 = vmatmul.mubr.msk.bf16.gmra.mxu1 %vm4613_vm5, %v9854_v52 }
 0x43f   : > { %9184 = vmatprep.mubr.msk.bf16.mxu0 %vm4613_vm5, %v9851_v42  ;;  %9412 = vmatprep.mubr.msk.bf16.mxu1 %vm4613_vm5, %v9856_v43 }
 0x446   : > { %9185 = vmatmul.mubr.msk.bf16.gmra.mxu0 %vm4613_vm5, %v9853_v6  ;;  %9413 = vmatmul.mubr.msk.bf16.gmra.mxu1 %vm4613_vm5, %v9858_v23  ;;  %v9897_v23 = vld [vmem:[%s12529_s7 + $0x1b8] sm:$0xff]  }
 0x447   : > { %9188 = vmatprep.mubr.msk.bf16.mxu0 %vm4613_vm5, %v9855_v50  ;;  %9416 = vmatprep.mubr.msk.bf16.mxu1 %vm4613_vm5, %v9860_v38  ;;  %v9902_v38 = vld [vmem:[%s12529_s7 + $0x548] sm:$0xff]  }
 0x44e   : > { %9189 = vmatmul.mubr.msk.bf16.gmra.mxu0 %vm4613_vm5, %v9857_v10  ;;  %9417 = vmatmul.mubr.msk.bf16.gmra.mxu1 %vm4613_vm5, %v9862_v60  ;;  %v9899_v10 = vld [vmem:[%s12529_s7 + $0x1c0] sm:$0xff]   ;;  %v9904_v60 = vld [vmem:[%s12529_s7 + $0x550] sm:$0xff]  }
 0x44f   : > { %9192 = vmatprep.mubr.msk.bf16.mxu0 %vm4613_vm5, %v9859_v15  ;;  %9420 = vmatprep.mubr.msk.bf16.mxu1 %vm4613_vm5, %v9864_v13 }
 0x456   : > { %9193 = vmatmul.mubr.msk.bf16.gmra.mxu0 %vm4613_vm5, %v9861_v28  ;;  %9421 = vmatmul.mubr.msk.bf16.gmra.mxu1 %vm4613_vm5, %v9866_v63 }
 0x457   : > { %9196 = vmatprep.mubr.msk.bf16.mxu0 %vm4613_vm5, %v9863_v2  ;;  %9424 = vmatprep.mubr.msk.bf16.mxu1 %vm4613_vm5, %v9868_v46 }
 0x45e   : > { %9197 = vmatmul.mubr.msk.bf16.gmra.mxu0 %vm4613_vm5, %v9865_v5  ;;  %9425 = vmatmul.mubr.msk.bf16.gmra.mxu1 %vm4613_vm5, %v9870_v49  ;;  %v9901_v49 = vld [vmem:[%s12529_s7 + $0x1c8] sm:$0xff]  }
 0x45f   : > { %9200 = vmatprep.mubr.msk.bf16.mxu0 %vm4613_vm5, %v9867_v31  ;;  %9428 = vmatprep.mubr.msk.bf16.mxu1 %vm4613_vm5, %v9872_v51  ;;  %v9906_v51 = vld [vmem:[%s12529_s7 + $0x558] sm:$0xff]  }
 0x466   : > { %9201 = vmatmul.mubr.msk.bf16.gmra.mxu0 %vm4613_vm5, %v9869_v35  ;;  %9429 = vmatmul.mubr.msk.bf16.gmra.mxu1 %vm4613_vm5, %v9874_v11  ;;  %v9903_v35 = vld [vmem:[%s12529_s7 + $0x1d0] sm:$0xff]   ;;  %v9908_v11 = vld [vmem:[%s12529_s7 + $0x560] sm:$0xff]  }
 0x467   : > { %9204 = vmatprep.mubr.msk.bf16.mxu0 %vm4613_vm5, %v9871_v1  ;;  %9432 = vmatprep.mubr.msk.bf16.mxu1 %vm4613_vm5, %v9876_v59 }
 0x46e   : > { %9205 = vmatmul.mubr.msk.bf16.gmra.mxu0 %vm4613_vm5, %v9873_v53  ;;  %9433 = vmatmul.mubr.msk.bf16.gmra.mxu1 %vm4613_vm5, %v9878_v19 }
 0x46f   : > { %9208 = vmatprep.mubr.msk.bf16.mxu0 %vm4613_vm5, %v9875_v62  ;;  %9436 = vmatprep.mubr.msk.bf16.mxu1 %vm4613_vm5, %v9880_v27 }
 0x476   : > { %9209 = vmatmul.mubr.msk.bf16.gmra.mxu0 %vm4613_vm5, %v9877_v22  ;;  %9437 = vmatmul.mubr.msk.bf16.gmra.mxu1 %vm4613_vm5, %v9882_v4  ;;  %v9905_v4 = vld [vmem:[%s12529_s7 + $0x1d8] sm:$0xff]  }
 0x477   : > { %9212 = vmatprep.mubr.msk.bf16.mxu0 %vm4613_vm5, %v9879_v24  ;;  %9440 = vmatprep.mubr.msk.bf16.mxu1 %vm4613_vm5, %v9884_v26  ;;  %v9910_v26 = vld [vmem:[%s12529_s7 + $0x568] sm:$0xff]  }
 0x47e   : > { %9213 = vmatmul.mubr.msk.bf16.gmra.mxu0 %vm4613_vm5, %v9881_v34  ;;  %9441 = vmatmul.mubr.msk.bf16.gmra.mxu1 %vm4613_vm5, %v9886_v32  ;;  %v9907_v34 = vld [vmem:[%s12529_s7 + $0x1e0] sm:$0xff]   ;;  %v9912_v32 = vld [vmem:[%s12529_s7 + $0x570] sm:$0xff]  }
 0x47f   : > { %9216 = vmatprep.mubr.msk.bf16.mxu0 %vm4613_vm5, %v9883_v12  ;;  %9444 = vmatprep.mubr.msk.bf16.mxu1 %vm4613_vm5, %v9888_v48 }
 0x486   : > { %v9122_v56 = vpop.f32.mrf.mxu0  ;;  %9217 = vmatmul.mubr.msk.bf16.gmra.mxu0 %vm4613_vm5, %v9885_v9  ;;  %v9350_v41 = vpop.f32.mrf.mxu1  ;;  %9445 = vmatmul.mubr.msk.bf16.gmra.mxu1 %vm4613_vm5, %v9890_v3 }
 0x487   : > { %7140 = vst [vmem:[%s11560_s23 + $0x10] sm:$0xff] %v9122_v56  ;;  %9220 = vmatprep.mubr.msk.bf16.mxu0 %vm4613_vm5, %v9887_v29  ;;  %7368 = vst [vmem:[%s11560_s23 + $0x730] sm:$0xff] %v9350_v41  ;;  %9448 = vmatprep.mubr.msk.bf16.mxu1 %vm4613_vm5, %v9892_v36  ;;  %v9909_v41 = vld [vmem:[%s12529_s7 + $0x1e8] sm:$0xff]  }
 0x488   : > { %v5332_v7 = vpop.f32.mrf.mxu0  ;;  %v6244_v21 = vpop.f32.mrf.mxu1 }
 0x489   : > { %7138 = vst [vmem:[%s11560_s23] sm:$0xff] %v5332_v7  ;;  %7366 = vst [vmem:[%s11560_s23 + $0x720] sm:$0xff] %v6244_v21  ;;  %v9914_v21 = vld [vmem:[%s12529_s7 + $0x578] sm:$0xff]  }
 0x48a   : > { %v9123_v44 = vpop.f32.mrf.mxu0  ;;  %v9351_v40 = vpop.f32.mrf.mxu1 }
 0x48b   : > { %7141 = vst [vmem:[%s11560_s23 + $0x18] sm:$0xff] %v9123_v44  ;;  %7369 = vst [vmem:[%s11560_s23 + $0x738] sm:$0xff] %v9351_v40  ;;  %v9911_v44 = vld [vmem:[%s12529_s7 + $0x1f0] sm:$0xff]  }
 0x48c   : > { %v5335_v8 = vpop.f32.mrf.mxu0  ;;  %v6247_v14 = vpop.f32.mrf.mxu1 }
 0x48d   : > { %7139 = vst [vmem:[%s11560_s23 + $0x8] sm:$0xff] %v5335_v8  ;;  %7367 = vst [vmem:[%s11560_s23 + $0x728] sm:$0xff] %v6247_v14 }
 0x48e   : > { %v9126_v54 = vpop.f32.mrf.mxu0  ;;  %9221 = vmatmul.mubr.msk.bf16.gmra.mxu0 %vm4613_vm5, %v9889_v30  ;;  %v9354_v17 = vpop.f32.mrf.mxu1  ;;  %9449 = vmatmul.mubr.msk.bf16.gmra.mxu1 %vm4613_vm5, %v9894_v33  ;;  %v9916_v30 = vld [vmem:[%s12529_s7 + $0x580] sm:$0xff]  }
 0x48f   : > { %7144 = vst [vmem:[%s11560_s23 + $0x30] sm:$0xff] %v9126_v54  ;;  %9224 = vmatprep.mubr.msk.bf16.mxu0 %vm4613_vm5, %v9891_v0  ;;  %7372 = vst [vmem:[%s11560_s23 + $0x750] sm:$0xff] %v9354_v17  ;;  %9452 = vmatprep.mubr.msk.bf16.mxu1 %vm4613_vm5, %v9896_v18  ;;  %v9913_v17 = vld [vmem:[%s12529_s7 + $0x1f8] sm:$0xff]  }
 0x490   : > { %v5348_v16 = vpop.f32.mrf.mxu0  ;;  %v6260_v20 = vpop.f32.mrf.mxu1 }
 0x491   : > { %7142 = vst [vmem:[%s11560_s23 + $0x20] sm:$0xff] %v5348_v16  ;;  %7370 = vst [vmem:[%s11560_s23 + $0x740] sm:$0xff] %v6260_v20  ;;  %v9918_v20 = vld [vmem:[%s12529_s7 + $0x588] sm:$0xff]  }
 0x492   : > { %v9127_v57 = vpop.f32.mrf.mxu0  ;;  %v9355_v58 = vpop.f32.mrf.mxu1 }
 0x493   : > { %7145 = vst [vmem:[%s11560_s23 + $0x38] sm:$0xff] %v9127_v57  ;;  %7373 = vst [vmem:[%s11560_s23 + $0x758] sm:$0xff] %v9355_v58  ;;  %v9915_v57 = vld [vmem:[%s12529_s7 + $0x200] sm:$0xff]  }
 0x494   : > { %v5351_v47 = vpop.f32.mrf.mxu0  ;;  %v6263_v61 = vpop.f32.mrf.mxu1 }
 0x495   : > { %7143 = vst [vmem:[%s11560_s23 + $0x28] sm:$0xff] %v5351_v47  ;;  %7371 = vst [vmem:[%s11560_s23 + $0x748] sm:$0xff] %v6263_v61 }
 0x496   : > { %v9130_v37 = vpop.f32.mrf.mxu0  ;;  %9225 = vmatmul.mubr.msk.bf16.gmra.mxu0 %vm4613_vm5, %v9893_v25  ;;  %v9358_v52 = vpop.f32.mrf.mxu1  ;;  %9453 = vmatmul.mubr.msk.bf16.gmra.mxu1 %vm4613_vm5, %v9898_v45  ;;  %v9920_v25 = vld [vmem:[%s12529_s7 + $0x590] sm:$0xff]  }
 0x497   : > { %7148 = vst [vmem:[%s11560_s23 + $0x50] sm:$0xff] %v9130_v37  ;;  %9228 = vmatprep.mubr.msk.bf16.mxu0 %vm4613_vm5, %v9895_v55  ;;  %7376 = vst [vmem:[%s11560_s23 + $0x770] sm:$0xff] %v9358_v52  ;;  %9456 = vmatprep.mubr.msk.bf16.mxu1 %vm4613_vm5, %v9900_v39  ;;  %v9917_v52 = vld [vmem:[%s12529_s7 + $0x208] sm:$0xff]  }
 0x498   : > { %v5364_v42 = vpop.f32.mrf.mxu0  ;;  %v6276_v43 = vpop.f32.mrf.mxu1 }
 0x499   : > { %7146 = vst [vmem:[%s11560_s23 + $0x40] sm:$0xff] %v5364_v42  ;;  %7374 = vst [vmem:[%s11560_s23 + $0x760] sm:$0xff] %v6276_v43  ;;  %v9922_v43 = vld [vmem:[%s12529_s7 + $0x598] sm:$0xff]  }
 0x49a   : > { %v9131_v6 = vpop.f32.mrf.mxu0  ;;  %v9359_v50 = vpop.f32.mrf.mxu1 }
 0x49b   : > { %7149 = vst [vmem:[%s11560_s23 + $0x58] sm:$0xff] %v9131_v6  ;;  %7377 = vst [vmem:[%s11560_s23 + $0x778] sm:$0xff] %v9359_v50  ;;  %v9919_v6 = vld [vmem:[%s12529_s7 + $0x210] sm:$0xff]  }
 0x49c   : > { %v5367_v15 = vpop.f32.mrf.mxu0  ;;  %v6279_v13 = vpop.f32.mrf.mxu1 }
 0x49d   : > { %7147 = vst [vmem:[%s11560_s23 + $0x48] sm:$0xff] %v5367_v15  ;;  %7375 = vst [vmem:[%s11560_s23 + $0x768] sm:$0xff] %v6279_v13 }
 0x49e   : > { %v9134_v28 = vpop.f32.mrf.mxu0  ;;  %9229 = vmatmul.mubr.msk.bf16.gmra.mxu0 %vm4613_vm5, %v9897_v23  ;;  %v9362_v63 = vpop.f32.mrf.mxu1  ;;  %9457 = vmatmul.mubr.msk.bf16.gmra.mxu1 %vm4613_vm5, %v9902_v38  ;;  %v9924_v23 = vld [vmem:[%s12529_s7 + $0x5a0] sm:$0xff]  }
 0x49f   : > { %7152 = vst [vmem:[%s11560_s23 + $0x70] sm:$0xff] %v9134_v28  ;;  %9232 = vmatprep.mubr.msk.bf16.mxu0 %vm4613_vm5, %v9899_v10  ;;  %7380 = vst [vmem:[%s11560_s23 + $0x790] sm:$0xff] %v9362_v63  ;;  %9460 = vmatprep.mubr.msk.bf16.mxu1 %vm4613_vm5, %v9904_v60  ;;  %v9921_v63 = vld [vmem:[%s12529_s7 + $0x218] sm:$0xff]  }
 0x4a0   : > { %v5380_v2 = vpop.f32.mrf.mxu0  ;;  %v6292_v46 = vpop.f32.mrf.mxu1 }
 0x4a1   : > { %7150 = vst [vmem:[%s11560_s23 + $0x60] sm:$0xff] %v5380_v2  ;;  %7378 = vst [vmem:[%s11560_s23 + $0x780] sm:$0xff] %v6292_v46  ;;  %v9926_v46 = vld [vmem:[%s12529_s7 + $0x5a8] sm:$0xff]  }
 0x4a2   : > { %v9135_v5 = vpop.f32.mrf.mxu0  ;;  %v9363_v31 = vpop.f32.mrf.mxu1 }
 0x4a3   : > { %7153 = vst [vmem:[%s11560_s23 + $0x78] sm:$0xff] %v9135_v5  ;;  %7381 = vst [vmem:[%s11560_s23 + $0x798] sm:$0xff] %v9363_v31  ;;  %v9923_v5 = vld [vmem:[%s12529_s7 + $0x220] sm:$0xff]  }
 0x4a4   : > { %v5383_v1 = vpop.f32.mrf.mxu0  ;;  %v6295_v59 = vpop.f32.mrf.mxu1 }
 0x4a5   : > { %7151 = vst [vmem:[%s11560_s23 + $0x68] sm:$0xff] %v5383_v1  ;;  %7379 = vst [vmem:[%s11560_s23 + $0x788] sm:$0xff] %v6295_v59 }
 0x4a6   : > { %v9138_v53 = vpop.f32.mrf.mxu0  ;;  %9233 = vmatmul.mubr.msk.bf16.gmra.mxu0 %vm4613_vm5, %v9901_v49  ;;  %v9366_v19 = vpop.f32.mrf.mxu1  ;;  %9461 = vmatmul.mubr.msk.bf16.gmra.mxu1 %vm4613_vm5, %v9906_v51  ;;  %v9928_v49 = vld [vmem:[%s12529_s7 + $0x5b0] sm:$0xff]  }
 0x4a7   : > { %7156 = vst [vmem:[%s11560_s23 + $0x90] sm:$0xff] %v9138_v53  ;;  %9236 = vmatprep.mubr.msk.bf16.mxu0 %vm4613_vm5, %v9903_v35  ;;  %7384 = vst [vmem:[%s11560_s23 + $0x7b0] sm:$0xff] %v9366_v19  ;;  %9464 = vmatprep.mubr.msk.bf16.mxu1 %vm4613_vm5, %v9908_v11  ;;  %v9925_v19 = vld [vmem:[%s12529_s7 + $0x228] sm:$0xff]  }
 0x4a8   : > { %v5396_v62 = vpop.f32.mrf.mxu0  ;;  %v6308_v27 = vpop.f32.mrf.mxu1 }
 0x4a9   : > { %7154 = vst [vmem:[%s11560_s23 + $0x80] sm:$0xff] %v5396_v62  ;;  %7382 = vst [vmem:[%s11560_s23 + $0x7a0] sm:$0xff] %v6308_v27  ;;  %v9930_v27 = vld [vmem:[%s12529_s7 + $0x5b8] sm:$0xff]  }
 0x4aa   : > { %v9139_v22 = vpop.f32.mrf.mxu0  ;;  %v9367_v24 = vpop.f32.mrf.mxu1 }
 0x4ab   : > { %7157 = vst [vmem:[%s11560_s23 + $0x98] sm:$0xff] %v9139_v22  ;;  %7385 = vst [vmem:[%s11560_s23 + $0x7b8] sm:$0xff] %v9367_v24  ;;  %v9927_v22 = vld [vmem:[%s12529_s7 + $0x230] sm:$0xff]  }
 0x4ac   : > { %v5399_v12 = vpop.f32.mrf.mxu0  ;;  %v6311_v48 = vpop.f32.mrf.mxu1 }
 0x4ad   : > { %7155 = vst [vmem:[%s11560_s23 + $0x88] sm:$0xff] %v5399_v12  ;;  %7383 = vst [vmem:[%s11560_s23 + $0x7a8] sm:$0xff] %v6311_v48 }
 0x4ae   : > { %v9142_v9 = vpop.f32.mrf.mxu0  ;;  %9237 = vmatmul.mubr.msk.bf16.gmra.mxu0 %vm4613_vm5, %v9905_v4  ;;  %v9370_v3 = vpop.f32.mrf.mxu1  ;;  %9465 = vmatmul.mubr.msk.bf16.gmra.mxu1 %vm4613_vm5, %v9910_v26  ;;  %v9932_v4 = vld [vmem:[%s12529_s7 + $0x5c0] sm:$0xff]  }
 0x4af   : > { %7160 = vst [vmem:[%s11560_s23 + $0xb0] sm:$0xff] %v9142_v9  ;;  %9240 = vmatprep.mubr.msk.bf16.mxu0 %vm4613_vm5, %v9907_v34  ;;  %7388 = vst [vmem:[%s11560_s23 + $0x7d0] sm:$0xff] %v9370_v3  ;;  %9468 = vmatprep.mubr.msk.bf16.mxu1 %vm4613_vm5, %v9912_v32  ;;  %v9929_v3 = vld [vmem:[%s12529_s7 + $0x238] sm:$0xff]  }
 0x4b0   : > { %v5412_v29 = vpop.f32.mrf.mxu0  ;;  %v6324_v36 = vpop.f32.mrf.mxu1 }
 0x4b1   : > { %7158 = vst [vmem:[%s11560_s23 + $0xa0] sm:$0xff] %v5412_v29  ;;  %7386 = vst [vmem:[%s11560_s23 + $0x7c0] sm:$0xff] %v6324_v36  ;;  %v9934_v36 = vld [vmem:[%s12529_s7 + $0x5c8] sm:$0xff]  }
 0x4b2   : > { %v9143_v56 = vpop.f32.mrf.mxu0  ;;  %v9371_v7 = vpop.f32.mrf.mxu1 }
 0x4b3   : > { %7161 = vst [vmem:[%s11560_s23 + $0xb8] sm:$0xff] %v9143_v56  ;;  %7389 = vst [vmem:[%s11560_s23 + $0x7d8] sm:$0xff] %v9371_v7  ;;  %v9931_v56 = vld [vmem:[%s12529_s7 + $0x240] sm:$0xff]  }
 0x4b4   : > { %v5415_v40 = vpop.f32.mrf.mxu0  ;;  %v6327_v33 = vpop.f32.mrf.mxu1 }
 0x4b5   : > { %7159 = vst [vmem:[%s11560_s23 + $0xa8] sm:$0xff] %v5415_v40  ;;  %7387 = vst [vmem:[%s11560_s23 + $0x7c8] sm:$0xff] %v6327_v33 }
 0x4b6   : > { %v9146_v0 = vpop.f32.mrf.mxu0  ;;  %9241 = vmatmul.mubr.msk.bf16.gmra.mxu0 %vm4613_vm5, %v9909_v41  ;;  %v9374_v18 = vpop.f32.mrf.mxu1  ;;  %9469 = vmatmul.mubr.msk.bf16.gmra.mxu1 %vm4613_vm5, %v9914_v21  ;;  %v9936_v41 = vld [vmem:[%s12529_s7 + $0x5d0] sm:$0xff]  }
 0x4b7   : > { %7164 = vst [vmem:[%s11560_s23 + $0xd0] sm:$0xff] %v9146_v0  ;;  %9244 = vmatprep.mubr.msk.bf16.mxu0 %vm4613_vm5, %v9911_v44  ;;  %7392 = vst [vmem:[%s11560_s23 + $0x7f0] sm:$0xff] %v9374_v18  ;;  %9472 = vmatprep.mubr.msk.bf16.mxu1 %vm4613_vm5, %v9916_v30  ;;  %v9933_v18 = vld [vmem:[%s12529_s7 + $0x248] sm:$0xff]  }
 0x4b8   : > { %v5428_v8 = vpop.f32.mrf.mxu0  ;;  %v6340_v14 = vpop.f32.mrf.mxu1 }
 0x4b9   : > { %7162 = vst [vmem:[%s11560_s23 + $0xc0] sm:$0xff] %v5428_v8  ;;  %7390 = vst [vmem:[%s11560_s23 + $0x7e0] sm:$0xff] %v6340_v14  ;;  %v9938_v14 = vld [vmem:[%s12529_s7 + $0x5d8] sm:$0xff]  }
 0x4ba   : > { %v9147_v54 = vpop.f32.mrf.mxu0  ;;  %v9375_v16 = vpop.f32.mrf.mxu1 }
 0x4bb   : > { %7165 = vst [vmem:[%s11560_s23 + $0xd8] sm:$0xff] %v9147_v54  ;;  %7393 = vst [vmem:[%s11560_s23 + $0x7f8] sm:$0xff] %v9375_v16  ;;  %v9935_v54 = vld [vmem:[%s12529_s7 + $0x250] sm:$0xff]  }
 0x4bc   : > { %v5431_v58 = vpop.f32.mrf.mxu0  ;;  %v6343_v45 = vpop.f32.mrf.mxu1 }
 0x4bd   : > { %7163 = vst [vmem:[%s11560_s23 + $0xc8] sm:$0xff] %v5431_v58  ;;  %7391 = vst [vmem:[%s11560_s23 + $0x7e8] sm:$0xff] %v6343_v45 }
 0x4be   : > { %v9150_v55 = vpop.f32.mrf.mxu0  ;;  %9245 = vmatmul.mubr.msk.bf16.gmra.mxu0 %vm4613_vm5, %v9913_v17  ;;  %v9378_v39 = vpop.f32.mrf.mxu1  ;;  %9473 = vmatmul.mubr.msk.bf16.gmra.mxu1 %vm4613_vm5, %v9918_v20  ;;  %v9940_v17 = vld [vmem:[%s12529_s7 + $0x5e0] sm:$0xff]  }
 0x4bf   : > { %7168 = vst [vmem:[%s11560_s23 + $0xf0] sm:$0xff] %v9150_v55  ;;  %9248 = vmatprep.mubr.msk.bf16.mxu0 %vm4613_vm5, %v9915_v57  ;;  %7396 = vst [vmem:[%s11560_s23 + $0x810] sm:$0xff] %v9378_v39  ;;  %9476 = vmatprep.mubr.msk.bf16.mxu1 %vm4613_vm5, %v9920_v25  ;;  %v9937_v39 = vld [vmem:[%s12529_s7 + $0x258] sm:$0xff]  }
 0x4c0   : > { %v5444_v47 = vpop.f32.mrf.mxu0  ;;  %v6356_v61 = vpop.f32.mrf.mxu1 }
 0x4c1   : > { %7166 = vst [vmem:[%s11560_s23 + $0xe0] sm:$0xff] %v5444_v47  ;;  %7394 = vst [vmem:[%s11560_s23 + $0x800] sm:$0xff] %v6356_v61  ;;  %v9942_v61 = vld [vmem:[%s12529_s7 + $0x5e8] sm:$0xff]  }
 0x4c2   : > { %v9151_v37 = vpop.f32.mrf.mxu0  ;;  %v9379_v42 = vpop.f32.mrf.mxu1 }
 0x4c3   : > { %7169 = vst [vmem:[%s11560_s23 + $0xf8] sm:$0xff] %v9151_v37  ;;  %7397 = vst [vmem:[%s11560_s23 + $0x818] sm:$0xff] %v9379_v42  ;;  %v9939_v37 = vld [vmem:[%s12529_s7 + $0x260] sm:$0xff]  }
 0x4c4   : > { %v5447_v50 = vpop.f32.mrf.mxu0  ;;  %v6359_v38 = vpop.f32.mrf.mxu1 }
 0x4c5   : > { %7167 = vst [vmem:[%s11560_s23 + $0xe8] sm:$0xff] %v5447_v50  ;;  %7395 = vst [vmem:[%s11560_s23 + $0x808] sm:$0xff] %v6359_v38 }
 0x4c6   : > { %v9154_v10 = vpop.f32.mrf.mxu0  ;;  %9249 = vmatmul.mubr.msk.bf16.gmra.mxu0 %vm4613_vm5, %v9917_v52  ;;  %v9382_v60 = vpop.f32.mrf.mxu1  ;;  %9477 = vmatmul.mubr.msk.bf16.gmra.mxu1 %vm4613_vm5, %v9922_v43  ;;  %v9944_v52 = vld [vmem:[%s12529_s7 + $0x5f0] sm:$0xff]  }
 0x4c7   : > { %7172 = vst [vmem:[%s11560_s23 + $0x110] sm:$0xff] %v9154_v10  ;;  %9252 = vmatprep.mubr.msk.bf16.mxu0 %vm4613_vm5, %v9919_v6  ;;  %7400 = vst [vmem:[%s11560_s23 + $0x830] sm:$0xff] %v9382_v60  ;;  %9480 = vmatprep.mubr.msk.bf16.mxu1 %vm4613_vm5, %v9924_v23  ;;  %v9941_v60 = vld [vmem:[%s12529_s7 + $0x268] sm:$0xff]  }
 0x4c8   : > { %v5460_v15 = vpop.f32.mrf.mxu0  ;;  %v6372_v13 = vpop.f32.mrf.mxu1 }
 0x4c9   : > { %7170 = vst [vmem:[%s11560_s23 + $0x100] sm:$0xff] %v5460_v15  ;;  %7398 = vst [vmem:[%s11560_s23 + $0x820] sm:$0xff] %v6372_v13  ;;  %v9946_v13 = vld [vmem:[%s12529_s7 + $0x5f8] sm:$0xff]  }
 0x4ca   : > { %v9155_v28 = vpop.f32.mrf.mxu0  ;;  %v9383_v2 = vpop.f32.mrf.mxu1 }
 0x4cb   : > { %7173 = vst [vmem:[%s11560_s23 + $0x118] sm:$0xff] %v9155_v28  ;;  %7401 = vst [vmem:[%s11560_s23 + $0x838] sm:$0xff] %v9383_v2  ;;  %v9943_v28 = vld [vmem:[%s12529_s7 + $0x270] sm:$0xff]  }
 0x4cc   : > { %v5463_v31 = vpop.f32.mrf.mxu0  ;;  %v6375_v51 = vpop.f32.mrf.mxu1 }
 0x4cd   : > { %7171 = vst [vmem:[%s11560_s23 + $0x108] sm:$0xff] %v5463_v31  ;;  %7399 = vst [vmem:[%s11560_s23 + $0x828] sm:$0xff] %v6375_v51 }
 0x4ce   : > { %v9158_v35 = vpop.f32.mrf.mxu0  ;;  %9253 = vmatmul.mubr.msk.bf16.gmra.mxu0 %vm4613_vm5, %v9921_v63  ;;  %v9386_v11 = vpop.f32.mrf.mxu1  ;;  %9481 = vmatmul.mubr.msk.bf16.gmra.mxu1 %vm4613_vm5, %v9926_v46  ;;  %v9948_v63 = vld [vmem:[%s12529_s7 + $0x600] sm:$0xff]  }
 0x4cf   : > { %7176 = vst [vmem:[%s11560_s23 + $0x130] sm:$0xff] %v9158_v35  ;;  %9256 = vmatprep.mubr.msk.bf16.mxu0 %vm4613_vm5, %v9923_v5  ;;  %7404 = vst [vmem:[%s11560_s23 + $0x850] sm:$0xff] %v9386_v11  ;;  %9484 = vmatprep.mubr.msk.bf16.mxu1 %vm4613_vm5, %v9928_v49  ;;  %v9945_v11 = vld [vmem:[%s12529_s7 + $0x278] sm:$0xff]  }
 0x4d0   : > { %v5476_v1 = vpop.f32.mrf.mxu0  ;;  %v6388_v59 = vpop.f32.mrf.mxu1 }
 0x4d1   : > { %7174 = vst [vmem:[%s11560_s23 + $0x120] sm:$0xff] %v5476_v1  ;;  %7402 = vst [vmem:[%s11560_s23 + $0x840] sm:$0xff] %v6388_v59  ;;  %v9950_v59 = vld [vmem:[%s12529_s7 + $0x608] sm:$0xff]  }
 0x4d2   : > { %v9159_v53 = vpop.f32.mrf.mxu0  ;;  %v9387_v62 = vpop.f32.mrf.mxu1 }
 0x4d3   : > { %7177 = vst [vmem:[%s11560_s23 + $0x138] sm:$0xff] %v9159_v53  ;;  %7405 = vst [vmem:[%s11560_s23 + $0x858] sm:$0xff] %v9387_v62  ;;  %v9947_v53 = vld [vmem:[%s12529_s7 + $0x280] sm:$0xff]  }
 0x4d4   : > { %v5479_v24 = vpop.f32.mrf.mxu0  ;;  %v6391_v26 = vpop.f32.mrf.mxu1 }
 0x4d5   : > { %7175 = vst [vmem:[%s11560_s23 + $0x128] sm:$0xff] %v5479_v24  ;;  %7403 = vst [vmem:[%s11560_s23 + $0x848] sm:$0xff] %v6391_v26 }
 0x4d6   : > { %v9162_v34 = vpop.f32.mrf.mxu0  ;;  %9257 = vmatmul.mubr.msk.bf16.gmra.mxu0 %vm4613_vm5, %v9925_v19  ;;  %v9390_v32 = vpop.f32.mrf.mxu1  ;;  %9485 = vmatmul.mubr.msk.bf16.gmra.mxu1 %vm4613_vm5, %v9930_v27  ;;  %v9952_v19 = vld [vmem:[%s12529_s7 + $0x610] sm:$0xff]  }
 0x4d7   : > { %7180 = vst [vmem:[%s11560_s23 + $0x150] sm:$0xff] %v9162_v34  ;;  %9260 = vmatprep.mubr.msk.bf16.mxu0 %vm4613_vm5, %v9927_v22  ;;  %7408 = vst [vmem:[%s11560_s23 + $0x870] sm:$0xff] %v9390_v32  ;;  %9488 = vmatprep.mubr.msk.bf16.mxu1 %vm4613_vm5, %v9932_v4  ;;  %v9949_v32 = vld [vmem:[%s12529_s7 + $0x288] sm:$0xff]  }
 0x4d8   : > { %v5492_v12 = vpop.f32.mrf.mxu0  ;;  %v6404_v48 = vpop.f32.mrf.mxu1 }
 0x4d9   : > { %7178 = vst [vmem:[%s11560_s23 + $0x140] sm:$0xff] %v5492_v12  ;;  %7406 = vst [vmem:[%s11560_s23 + $0x860] sm:$0xff] %v6404_v48  ;;  %v9954_v48 = vld [vmem:[%s12529_s7 + $0x618] sm:$0xff]  }
 0x4da   : > { %v9163_v9 = vpop.f32.mrf.mxu0  ;;  %v9391_v29 = vpop.f32.mrf.mxu1 }
 0x4db   : > { %7181 = vst [vmem:[%s11560_s23 + $0x158] sm:$0xff] %v9163_v9  ;;  %7409 = vst [vmem:[%s11560_s23 + $0x878] sm:$0xff] %v9391_v29  ;;  %v9951_v9 = vld [vmem:[%s12529_s7 + $0x290] sm:$0xff]  }
 0x4dc   : > { %v5495_v7 = vpop.f32.mrf.mxu0  ;;  %v6407_v21 = vpop.f32.mrf.mxu1 }
 0x4dd   : > { %7179 = vst [vmem:[%s11560_s23 + $0x148] sm:$0xff] %v5495_v7  ;;  %7407 = vst [vmem:[%s11560_s23 + $0x868] sm:$0xff] %v6407_v21 }
 0x4de   : > { %v9166_v44 = vpop.f32.mrf.mxu0  ;;  %9261 = vmatmul.mubr.msk.bf16.gmra.mxu0 %vm4613_vm5, %v9929_v3  ;;  %v9394_v30 = vpop.f32.mrf.mxu1  ;;  %9489 = vmatmul.mubr.msk.bf16.gmra.mxu1 %vm4613_vm5, %v9934_v36  ;;  %v9956_v3 = vld [vmem:[%s12529_s7 + $0x620] sm:$0xff]  }
 0x4df   : > { %7184 = vst [vmem:[%s11560_s23 + $0x170] sm:$0xff] %v9166_v44  ;;  %9264 = vmatprep.mubr.msk.bf16.mxu0 %vm4613_vm5, %v9931_v56  ;;  %7412 = vst [vmem:[%s11560_s23 + $0x890] sm:$0xff] %v9394_v30  ;;  %9492 = vmatprep.mubr.msk.bf16.mxu1 %vm4613_vm5, %v9936_v41  ;;  %v9953_v30 = vld [vmem:[%s12529_s7 + $0x298] sm:$0xff]  }
 0x4e0   : > { %v5508_v40 = vpop.f32.mrf.mxu0  ;;  %v6420_v33 = vpop.f32.mrf.mxu1 }
 0x4e1   : > { %7182 = vst [vmem:[%s11560_s23 + $0x160] sm:$0xff] %v5508_v40  ;;  %7410 = vst [vmem:[%s11560_s23 + $0x880] sm:$0xff] %v6420_v33  ;;  %v9958_v33 = vld [vmem:[%s12529_s7 + $0x628] sm:$0xff]  }
 0x4e2   : > { %v9167_v0 = vpop.f32.mrf.mxu0  ;;  %v9395_v8 = vpop.f32.mrf.mxu1 }
 0x4e3   : > { %7185 = vst [vmem:[%s11560_s23 + $0x178] sm:$0xff] %v9167_v0  ;;  %7413 = vst [vmem:[%s11560_s23 + $0x898] sm:$0xff] %v9395_v8  ;;  %v9955_v0 = vld [vmem:[%s12529_s7 + $0x2a0] sm:$0xff]  }
 0x4e4   : > { %v5511_v16 = vpop.f32.mrf.mxu0  ;;  %v6423_v20 = vpop.f32.mrf.mxu1 }
 0x4e5   : > { %7183 = vst [vmem:[%s11560_s23 + $0x168] sm:$0xff] %v5511_v16  ;;  %7411 = vst [vmem:[%s11560_s23 + $0x888] sm:$0xff] %v6423_v20 }
 0x4e6   : > { %v9170_v57 = vpop.f32.mrf.mxu0  ;;  %9265 = vmatmul.mubr.msk.bf16.gmra.mxu0 %vm4613_vm5, %v9933_v18  ;;  %v9398_v25 = vpop.f32.mrf.mxu1  ;;  %9493 = vmatmul.mubr.msk.bf16.gmra.mxu1 %vm4613_vm5, %v9938_v14  ;;  %v9960_v18 = vld [vmem:[%s12529_s7 + $0x630] sm:$0xff]  }
 0x4e7   : > { %7188 = vst [vmem:[%s11560_s23 + $0x190] sm:$0xff] %v9170_v57  ;;  %9268 = vmatprep.mubr.msk.bf16.mxu0 %vm4613_vm5, %v9935_v54  ;;  %7416 = vst [vmem:[%s11560_s23 + $0x8b0] sm:$0xff] %v9398_v25  ;;  %9496 = vmatprep.mubr.msk.bf16.mxu1 %vm4613_vm5, %v9940_v17  ;;  %v9957_v25 = vld [vmem:[%s12529_s7 + $0x2a8] sm:$0xff]  }
 0x4e8   : > { %v5524_v58 = vpop.f32.mrf.mxu0  ;;  %v6436_v45 = vpop.f32.mrf.mxu1 }
 0x4e9   : > { %7186 = vst [vmem:[%s11560_s23 + $0x180] sm:$0xff] %v5524_v58  ;;  %7414 = vst [vmem:[%s11560_s23 + $0x8a0] sm:$0xff] %v6436_v45  ;;  %v9962_v45 = vld [vmem:[%s12529_s7 + $0x638] sm:$0xff]  }
 0x4ea   : > { %v9171_v55 = vpop.f32.mrf.mxu0  ;;  %v9399_v47 = vpop.f32.mrf.mxu1 }
 0x4eb   : > { %7189 = vst [vmem:[%s11560_s23 + $0x198] sm:$0xff] %v9171_v55  ;;  %7417 = vst [vmem:[%s11560_s23 + $0x8b8] sm:$0xff] %v9399_v47  ;;  %v9959_v55 = vld [vmem:[%s12529_s7 + $0x2b0] sm:$0xff]  }
 0x4ec   : > { %v5527_v42 = vpop.f32.mrf.mxu0  ;;  %v6439_v43 = vpop.f32.mrf.mxu1 }
 0x4ed   : > { %7187 = vst [vmem:[%s11560_s23 + $0x188] sm:$0xff] %v5527_v42  ;;  %7415 = vst [vmem:[%s11560_s23 + $0x8a8] sm:$0xff] %v6439_v43 }
 0x4ee   : > { %v9174_v6 = vpop.f32.mrf.mxu0  ;;  %9269 = vmatmul.mubr.msk.bf16.gmra.mxu0 %vm4613_vm5, %v9937_v39  ;;  %v9402_v23 = vpop.f32.mrf.mxu1  ;;  %9497 = vmatmul.mubr.msk.bf16.gmra.mxu1 %vm4613_vm5, %v9942_v61  ;;  %v9964_v39 = vld [vmem:[%s12529_s7 + $0x640] sm:$0xff]  }
 0x4ef   : > { %7192 = vst [vmem:[%s11560_s23 + $0x1b0] sm:$0xff] %v9174_v6  ;;  %9272 = vmatprep.mubr.msk.bf16.mxu0 %vm4613_vm5, %v9939_v37  ;;  %7420 = vst [vmem:[%s11560_s23 + $0x8d0] sm:$0xff] %v9402_v23  ;;  %9500 = vmatprep.mubr.msk.bf16.mxu1 %vm4613_vm5, %v9944_v52  ;;  %v9961_v23 = vld [vmem:[%s12529_s7 + $0x2b8] sm:$0xff]  }
 0x4f0   : > { %v5540_v50 = vpop.f32.mrf.mxu0  ;;  %v6452_v38 = vpop.f32.mrf.mxu1 }
 0x4f1   : > { %7190 = vst [vmem:[%s11560_s23 + $0x1a0] sm:$0xff] %v5540_v50  ;;  %7418 = vst [vmem:[%s11560_s23 + $0x8c0] sm:$0xff] %v6452_v38  ;;  %v9966_v38 = vld [vmem:[%s12529_s7 + $0x648] sm:$0xff]  }
 0x4f2   : > { %v9175_v10 = vpop.f32.mrf.mxu0  ;;  %v9403_v15 = vpop.f32.mrf.mxu1 }
 0x4f3   : > { %7193 = vst [vmem:[%s11560_s23 + $0x1b8] sm:$0xff] %v9175_v10  ;;  %7421 = vst [vmem:[%s11560_s23 + $0x8d8] sm:$0xff] %v9403_v15  ;;  %v9963_v10 = vld [vmem:[%s12529_s7 + $0x2c0] sm:$0xff]  }
 0x4f4   : > { %v5543_v2 = vpop.f32.mrf.mxu0  ;;  %v6455_v46 = vpop.f32.mrf.mxu1 }
 0x4f5   : > { %7191 = vst [vmem:[%s11560_s23 + $0x1a8] sm:$0xff] %v5543_v2  ;;  %7419 = vst [vmem:[%s11560_s23 + $0x8c8] sm:$0xff] %v6455_v46 }
 0x4f6   : > { %v9178_v5 = vpop.f32.mrf.mxu0  ;;  %9273 = vmatmul.mubr.msk.bf16.gmra.mxu0 %vm4613_vm5, %v9941_v60  ;;  %v9406_v49 = vpop.f32.mrf.mxu1  ;;  %9501 = vmatmul.mubr.msk.bf16.gmra.mxu1 %vm4613_vm5, %v9946_v13  ;;  %v9968_v60 = vld [vmem:[%s12529_s7 + $0x650] sm:$0xff]  }
 0x4f7   : > { %7196 = vst [vmem:[%s11560_s23 + $0x1d0] sm:$0xff] %v9178_v5  ;;  %9276 = vmatprep.mubr.msk.bf16.mxu0 %vm4613_vm5, %v9943_v28  ;;  %7424 = vst [vmem:[%s11560_s23 + $0x8f0] sm:$0xff] %v9406_v49  ;;  %9504 = vmatprep.mubr.msk.bf16.mxu1 %vm4613_vm5, %v9948_v63  ;;  %v9965_v49 = vld [vmem:[%s12529_s7 + $0x2c8] sm:$0xff]  }
 0x4f8   : > { %v5556_v31 = vpop.f32.mrf.mxu0  ;;  %v6468_v51 = vpop.f32.mrf.mxu1 }
 0x4f9   : > { %7194 = vst [vmem:[%s11560_s23 + $0x1c0] sm:$0xff] %v5556_v31  ;;  %7422 = vst [vmem:[%s11560_s23 + $0x8e0] sm:$0xff] %v6468_v51  ;;  %v9970_v51 = vld [vmem:[%s12529_s7 + $0x658] sm:$0xff]  }
 0x4fa   : > { %v9179_v35 = vpop.f32.mrf.mxu0  ;;  %v9407_v1 = vpop.f32.mrf.mxu1 }
 0x4fb   : > { %7197 = vst [vmem:[%s11560_s23 + $0x1d8] sm:$0xff] %v9179_v35  ;;  %7425 = vst [vmem:[%s11560_s23 + $0x8f8] sm:$0xff] %v9407_v1  ;;  %v9967_v35 = vld [vmem:[%s12529_s7 + $0x2d0] sm:$0xff]  }
 0x4fc   : > { %v5559_v62 = vpop.f32.mrf.mxu0  ;;  %v6471_v27 = vpop.f32.mrf.mxu1 }
 0x4fd   : > { %7195 = vst [vmem:[%s11560_s23 + $0x1c8] sm:$0xff] %v5559_v62  ;;  %7423 = vst [vmem:[%s11560_s23 + $0x8e8] sm:$0xff] %v6471_v27 }
 0x4fe   : > { %v9182_v22 = vpop.f32.mrf.mxu0  ;;  %9277 = vmatmul.mubr.msk.bf16.gmra.mxu0 %vm4613_vm5, %v9945_v11  ;;  %v9410_v4 = vpop.f32.mrf.mxu1  ;;  %9505 = vmatmul.mubr.msk.bf16.gmra.mxu1 %vm4613_vm5, %v9950_v59  ;;  %v9972_v11 = vld [vmem:[%s12529_s7 + $0x660] sm:$0xff]  }
 0x4ff   : > { %7200 = vst [vmem:[%s11560_s23 + $0x1f0] sm:$0xff] %v9182_v22  ;;  %9280 = vmatprep.mubr.msk.bf16.mxu0 %vm4613_vm5, %v9947_v53  ;;  %7428 = vst [vmem:[%s11560_s23 + $0x910] sm:$0xff] %v9410_v4  ;;  %9508 = vmatprep.mubr.msk.bf16.mxu1 %vm4613_vm5, %v9952_v19  ;;  %v9969_v4 = vld [vmem:[%s12529_s7 + $0x2d8] sm:$0xff]  }
 0x500   : > { %v5572_v24 = vpop.f32.mrf.mxu0  ;;  %v6484_v26 = vpop.f32.mrf.mxu1 }
 0x501   : > { %7198 = vst [vmem:[%s11560_s23 + $0x1e0] sm:$0xff] %v5572_v24  ;;  %7426 = vst [vmem:[%s11560_s23 + $0x900] sm:$0xff] %v6484_v26  ;;  %v9974_v26 = vld [vmem:[%s12529_s7 + $0x668] sm:$0xff]  }
 0x502   : > { %v9183_v34 = vpop.f32.mrf.mxu0  ;;  %v9411_v12 = vpop.f32.mrf.mxu1 }
 0x503   : > { %7201 = vst [vmem:[%s11560_s23 + $0x1f8] sm:$0xff] %v9183_v34  ;;  %7429 = vst [vmem:[%s11560_s23 + $0x918] sm:$0xff] %v9411_v12  ;;  %v9971_v34 = vld [vmem:[%s12529_s7 + $0x2e0] sm:$0xff]  }
 0x504   : > { %v5575_v29 = vpop.f32.mrf.mxu0  ;;  %v6487_v36 = vpop.f32.mrf.mxu1 }
 0x505   : > { %7199 = vst [vmem:[%s11560_s23 + $0x1e8] sm:$0xff] %v5575_v29  ;;  %7427 = vst [vmem:[%s11560_s23 + $0x908] sm:$0xff] %v6487_v36 }
 0x506   : > { %v9186_v56 = vpop.f32.mrf.mxu0  ;;  %9281 = vmatmul.mubr.msk.bf16.gmra.mxu0 %vm4613_vm5, %v9949_v32  ;;  %v9414_v41 = vpop.f32.mrf.mxu1  ;;  %9509 = vmatmul.mubr.msk.bf16.gmra.mxu1 %vm4613_vm5, %v9954_v48  ;;  %v9976_v32 = vld [vmem:[%s12529_s7 + $0x670] sm:$0xff]  }
 0x507   : > { %7204 = vst [vmem:[%s11560_s23 + $0x210] sm:$0xff] %v9186_v56  ;;  %9284 = vmatprep.mubr.msk.bf16.mxu0 %vm4613_vm5, %v9951_v9  ;;  %7432 = vst [vmem:[%s11560_s23 + $0x930] sm:$0xff] %v9414_v41  ;;  %9512 = vmatprep.mubr.msk.bf16.mxu1 %vm4613_vm5, %v9956_v3  ;;  %v9973_v41 = vld [vmem:[%s12529_s7 + $0x2e8] sm:$0xff]  }
 0x508   : > { %v5588_v7 = vpop.f32.mrf.mxu0  ;;  %v6500_v21 = vpop.f32.mrf.mxu1 }
 0x509   : > { %7202 = vst [vmem:[%s11560_s23 + $0x200] sm:$0xff] %v5588_v7  ;;  %7430 = vst [vmem:[%s11560_s23 + $0x920] sm:$0xff] %v6500_v21  ;;  %v9978_v21 = vld [vmem:[%s12529_s7 + $0x678] sm:$0xff]  }
 0x50a   : > { %v9187_v44 = vpop.f32.mrf.mxu0  ;;  %v9415_v40 = vpop.f32.mrf.mxu1 }
 0x50b   : > { %7205 = vst [vmem:[%s11560_s23 + $0x218] sm:$0xff] %v9187_v44  ;;  %7433 = vst [vmem:[%s11560_s23 + $0x938] sm:$0xff] %v9415_v40  ;;  %v9975_v44 = vld [vmem:[%s12529_s7 + $0x2f0] sm:$0xff]  }
 0x50c   : > { %v5591_v8 = vpop.f32.mrf.mxu0  ;;  %v6503_v14 = vpop.f32.mrf.mxu1 }
 0x50d   : > { %7203 = vst [vmem:[%s11560_s23 + $0x208] sm:$0xff] %v5591_v8  ;;  %7431 = vst [vmem:[%s11560_s23 + $0x928] sm:$0xff] %v6503_v14 }
 0x50e   : > { %v9190_v54 = vpop.f32.mrf.mxu0  ;;  %9285 = vmatmul.mubr.msk.bf16.gmra.mxu0 %vm4613_vm5, %v9953_v30  ;;  %v9418_v17 = vpop.f32.mrf.mxu1  ;;  %9513 = vmatmul.mubr.msk.bf16.gmra.mxu1 %vm4613_vm5, %v9958_v33  ;;  %v9980_v30 = vld [vmem:[%s12529_s7 + $0x680] sm:$0xff]  }
 0x50f   : > { %7208 = vst [vmem:[%s11560_s23 + $0x230] sm:$0xff] %v9190_v54  ;;  %9288 = vmatprep.mubr.msk.bf16.mxu0 %vm4613_vm5, %v9955_v0  ;;  %7436 = vst [vmem:[%s11560_s23 + $0x950] sm:$0xff] %v9418_v17  ;;  %9516 = vmatprep.mubr.msk.bf16.mxu1 %vm4613_vm5, %v9960_v18  ;;  %v9977_v17 = vld [vmem:[%s12529_s7 + $0x2f8] sm:$0xff]  }
 0x510   : > { %v5604_v16 = vpop.f32.mrf.mxu0  ;;  %v6516_v20 = vpop.f32.mrf.mxu1 }
 0x511   : > { %7206 = vst [vmem:[%s11560_s23 + $0x220] sm:$0xff] %v5604_v16  ;;  %7434 = vst [vmem:[%s11560_s23 + $0x940] sm:$0xff] %v6516_v20  ;;  %v9982_v20 = vld [vmem:[%s12529_s7 + $0x688] sm:$0xff]  }
 0x512   : > { %v9191_v57 = vpop.f32.mrf.mxu0  ;;  %v9419_v58 = vpop.f32.mrf.mxu1 }
 0x513   : > { %7209 = vst [vmem:[%s11560_s23 + $0x238] sm:$0xff] %v9191_v57  ;;  %7437 = vst [vmem:[%s11560_s23 + $0x958] sm:$0xff] %v9419_v58  ;;  %v9979_v57 = vld [vmem:[%s12529_s7 + $0x300] sm:$0xff]  }
 0x514   : > { %v5607_v47 = vpop.f32.mrf.mxu0  ;;  %v6519_v61 = vpop.f32.mrf.mxu1 }
 0x515   : > { %7207 = vst [vmem:[%s11560_s23 + $0x228] sm:$0xff] %v5607_v47  ;;  %7435 = vst [vmem:[%s11560_s23 + $0x948] sm:$0xff] %v6519_v61 }
 0x516   : > { %v9194_v37 = vpop.f32.mrf.mxu0  ;;  %9289 = vmatmul.mubr.msk.bf16.gmra.mxu0 %vm4613_vm5, %v9957_v25  ;;  %v9422_v52 = vpop.f32.mrf.mxu1  ;;  %9517 = vmatmul.mubr.msk.bf16.gmra.mxu1 %vm4613_vm5, %v9962_v45  ;;  %v9984_v25 = vld [vmem:[%s12529_s7 + $0x690] sm:$0xff]  }
 0x517   : > { %7212 = vst [vmem:[%s11560_s23 + $0x250] sm:$0xff] %v9194_v37  ;;  %9292 = vmatprep.mubr.msk.bf16.mxu0 %vm4613_vm5, %v9959_v55  ;;  %7440 = vst [vmem:[%s11560_s23 + $0x970] sm:$0xff] %v9422_v52  ;;  %9520 = vmatprep.mubr.msk.bf16.mxu1 %vm4613_vm5, %v9964_v39  ;;  %v9981_v52 = vld [vmem:[%s12529_s7 + $0x308] sm:$0xff]  }
 0x518   : > { %v5620_v42 = vpop.f32.mrf.mxu0  ;;  %v6532_v43 = vpop.f32.mrf.mxu1 }
 0x519   : > { %7210 = vst [vmem:[%s11560_s23 + $0x240] sm:$0xff] %v5620_v42  ;;  %7438 = vst [vmem:[%s11560_s23 + $0x960] sm:$0xff] %v6532_v43  ;;  %v9986_v43 = vld [vmem:[%s12529_s7 + $0x698] sm:$0xff]  }
 0x51a   : > { %v9195_v6 = vpop.f32.mrf.mxu0  ;;  %v9423_v50 = vpop.f32.mrf.mxu1 }
 0x51b   : > { %7213 = vst [vmem:[%s11560_s23 + $0x258] sm:$0xff] %v9195_v6  ;;  %7441 = vst [vmem:[%s11560_s23 + $0x978] sm:$0xff] %v9423_v50  ;;  %v9983_v6 = vld [vmem:[%s12529_s7 + $0x310] sm:$0xff]  }
 0x51c   : > { %v5623_v15 = vpop.f32.mrf.mxu0  ;;  %v6535_v13 = vpop.f32.mrf.mxu1 }
 0x51d   : > { %7211 = vst [vmem:[%s11560_s23 + $0x248] sm:$0xff] %v5623_v15  ;;  %7439 = vst [vmem:[%s11560_s23 + $0x968] sm:$0xff] %v6535_v13 }
 0x51e   : > { %v9198_v28 = vpop.f32.mrf.mxu0  ;;  %9293 = vmatmul.mubr.msk.bf16.gmra.mxu0 %vm4613_vm5, %v9961_v23  ;;  %v9426_v63 = vpop.f32.mrf.mxu1  ;;  %9521 = vmatmul.mubr.msk.bf16.gmra.mxu1 %vm4613_vm5, %v9966_v38  ;;  %v9988_v23 = vld [vmem:[%s12529_s7 + $0x6a0] sm:$0xff]  }
 0x51f   : > { %7216 = vst [vmem:[%s11560_s23 + $0x270] sm:$0xff] %v9198_v28  ;;  %9296 = vmatprep.mubr.msk.bf16.mxu0 %vm4613_vm5, %v9963_v10  ;;  %7444 = vst [vmem:[%s11560_s23 + $0x990] sm:$0xff] %v9426_v63  ;;  %9524 = vmatprep.mubr.msk.bf16.mxu1 %vm4613_vm5, %v9968_v60  ;;  %v9985_v63 = vld [vmem:[%s12529_s7 + $0x318] sm:$0xff]  }
 0x520   : > { %v5636_v2 = vpop.f32.mrf.mxu0  ;;  %v6548_v46 = vpop.f32.mrf.mxu1 }
 0x521   : > { %7214 = vst [vmem:[%s11560_s23 + $0x260] sm:$0xff] %v5636_v2  ;;  %7442 = vst [vmem:[%s11560_s23 + $0x980] sm:$0xff] %v6548_v46  ;;  %v9990_v46 = vld [vmem:[%s12529_s7 + $0x6a8] sm:$0xff]  }
 0x522   : > { %v9199_v5 = vpop.f32.mrf.mxu0  ;;  %v9427_v31 = vpop.f32.mrf.mxu1 }
 0x523   : > { %7217 = vst [vmem:[%s11560_s23 + $0x278] sm:$0xff] %v9199_v5  ;;  %7445 = vst [vmem:[%s11560_s23 + $0x998] sm:$0xff] %v9427_v31  ;;  %v9987_v5 = vld [vmem:[%s12529_s7 + $0x320] sm:$0xff]  }
 0x524   : > { %v5639_v1 = vpop.f32.mrf.mxu0  ;;  %v6551_v59 = vpop.f32.mrf.mxu1 }
 0x525   : > { %7215 = vst [vmem:[%s11560_s23 + $0x268] sm:$0xff] %v5639_v1  ;;  %7443 = vst [vmem:[%s11560_s23 + $0x988] sm:$0xff] %v6551_v59 }
 0x526   : > { %v9202_v53 = vpop.f32.mrf.mxu0  ;;  %9297 = vmatmul.mubr.msk.bf16.gmra.mxu0 %vm4613_vm5, %v9965_v49  ;;  %v9430_v19 = vpop.f32.mrf.mxu1  ;;  %9525 = vmatmul.mubr.msk.bf16.gmra.mxu1 %vm4613_vm5, %v9970_v51  ;;  %v9992_v49 = vld [vmem:[%s12529_s7 + $0x6b0] sm:$0xff]  }
 0x527   : > { %7220 = vst [vmem:[%s11560_s23 + $0x290] sm:$0xff] %v9202_v53  ;;  %9300 = vmatprep.mubr.msk.bf16.mxu0 %vm4613_vm5, %v9967_v35  ;;  %7448 = vst [vmem:[%s11560_s23 + $0x9b0] sm:$0xff] %v9430_v19  ;;  %9528 = vmatprep.mubr.msk.bf16.mxu1 %vm4613_vm5, %v9972_v11  ;;  %v9989_v19 = vld [vmem:[%s12529_s7 + $0x328] sm:$0xff]  }
 0x528   : > { %v5652_v62 = vpop.f32.mrf.mxu0  ;;  %v6564_v27 = vpop.f32.mrf.mxu1 }
 0x529   : > { %7218 = vst [vmem:[%s11560_s23 + $0x280] sm:$0xff] %v5652_v62  ;;  %7446 = vst [vmem:[%s11560_s23 + $0x9a0] sm:$0xff] %v6564_v27  ;;  %v9994_v27 = vld [vmem:[%s12529_s7 + $0x6b8] sm:$0xff]  }
 0x52a   : > { %v9203_v22 = vpop.f32.mrf.mxu0  ;;  %v9431_v24 = vpop.f32.mrf.mxu1 }
 0x52b   : > { %7221 = vst [vmem:[%s11560_s23 + $0x298] sm:$0xff] %v9203_v22  ;;  %7449 = vst [vmem:[%s11560_s23 + $0x9b8] sm:$0xff] %v9431_v24  ;;  %v9991_v22 = vld [vmem:[%s12529_s7 + $0x330] sm:$0xff]  }
 0x52c   : > { %v5655_v12 = vpop.f32.mrf.mxu0  ;;  %v6567_v48 = vpop.f32.mrf.mxu1 }
 0x52d   : > { %7219 = vst [vmem:[%s11560_s23 + $0x288] sm:$0xff] %v5655_v12  ;;  %7447 = vst [vmem:[%s11560_s23 + $0x9a8] sm:$0xff] %v6567_v48 }
 0x52e   : > { %v9206_v9 = vpop.f32.mrf.mxu0  ;;  %9301 = vmatmul.mubr.msk.bf16.gmra.mxu0 %vm4613_vm5, %v9969_v4  ;;  %v9434_v3 = vpop.f32.mrf.mxu1  ;;  %9529 = vmatmul.mubr.msk.bf16.gmra.mxu1 %vm4613_vm5, %v9974_v26  ;;  %v9996_v4 = vld [vmem:[%s12529_s7 + $0x6c0] sm:$0xff]  }
 0x52f   : > { %7224 = vst [vmem:[%s11560_s23 + $0x2b0] sm:$0xff] %v9206_v9  ;;  %9304 = vmatprep.mubr.msk.bf16.mxu0 %vm4613_vm5, %v9971_v34  ;;  %7452 = vst [vmem:[%s11560_s23 + $0x9d0] sm:$0xff] %v9434_v3  ;;  %9532 = vmatprep.mubr.msk.bf16.mxu1 %vm4613_vm5, %v9976_v32  ;;  %v9993_v3 = vld [vmem:[%s12529_s7 + $0x338] sm:$0xff]  }
 0x530   : > { %v5668_v29 = vpop.f32.mrf.mxu0  ;;  %v6580_v36 = vpop.f32.mrf.mxu1 }
 0x531   : > { %7222 = vst [vmem:[%s11560_s23 + $0x2a0] sm:$0xff] %v5668_v29  ;;  %7450 = vst [vmem:[%s11560_s23 + $0x9c0] sm:$0xff] %v6580_v36  ;;  %v9998_v36 = vld [vmem:[%s12529_s7 + $0x6c8] sm:$0xff]  }
 0x532   : > { %v9207_v56 = vpop.f32.mrf.mxu0  ;;  %v9435_v7 = vpop.f32.mrf.mxu1 }
 0x533   : > { %7225 = vst [vmem:[%s11560_s23 + $0x2b8] sm:$0xff] %v9207_v56  ;;  %7453 = vst [vmem:[%s11560_s23 + $0x9d8] sm:$0xff] %v9435_v7  ;;  %v9995_v56 = vld [vmem:[%s12529_s7 + $0x340] sm:$0xff]  }
 0x534   : > { %v5671_v40 = vpop.f32.mrf.mxu0  ;;  %v6583_v33 = vpop.f32.mrf.mxu1 }
 0x535   : > { %7223 = vst [vmem:[%s11560_s23 + $0x2a8] sm:$0xff] %v5671_v40  ;;  %7451 = vst [vmem:[%s11560_s23 + $0x9c8] sm:$0xff] %v6583_v33 }
 0x536   : > { %v9210_v0 = vpop.f32.mrf.mxu0  ;;  %9305 = vmatmul.mubr.msk.bf16.gmra.mxu0 %vm4613_vm5, %v9973_v41  ;;  %v9438_v18 = vpop.f32.mrf.mxu1  ;;  %9533 = vmatmul.mubr.msk.bf16.gmra.mxu1 %vm4613_vm5, %v9978_v21  ;;  %v10000_v41 = vld [vmem:[%s12529_s7 + $0x6d0] sm:$0xff]  }
 0x537   : > { %7228 = vst [vmem:[%s11560_s23 + $0x2d0] sm:$0xff] %v9210_v0  ;;  %9308 = vmatprep.mubr.msk.bf16.mxu0 %vm4613_vm5, %v9975_v44  ;;  %7456 = vst [vmem:[%s11560_s23 + $0x9f0] sm:$0xff] %v9438_v18  ;;  %9536 = vmatprep.mubr.msk.bf16.mxu1 %vm4613_vm5, %v9980_v30  ;;  %v9997_v18 = vld [vmem:[%s12529_s7 + $0x348] sm:$0xff]  }
 0x538   : > { %v5684_v8 = vpop.f32.mrf.mxu0  ;;  %v6596_v14 = vpop.f32.mrf.mxu1 }
 0x539   : > { %7226 = vst [vmem:[%s11560_s23 + $0x2c0] sm:$0xff] %v5684_v8  ;;  %7454 = vst [vmem:[%s11560_s23 + $0x9e0] sm:$0xff] %v6596_v14  ;;  %v10002_v14 = vld [vmem:[%s12529_s7 + $0x6d8] sm:$0xff]  }
 0x53a   : > { %v9211_v54 = vpop.f32.mrf.mxu0  ;;  %v9439_v16 = vpop.f32.mrf.mxu1 }
 0x53b   : > { %7229 = vst [vmem:[%s11560_s23 + $0x2d8] sm:$0xff] %v9211_v54  ;;  %7457 = vst [vmem:[%s11560_s23 + $0x9f8] sm:$0xff] %v9439_v16  ;;  %v9999_v54 = vld [vmem:[%s12529_s7 + $0x350] sm:$0xff]  }
 0x53c   : > { %v5687_v58 = vpop.f32.mrf.mxu0  ;;  %v6599_v45 = vpop.f32.mrf.mxu1 }
 0x53d   : > { %7227 = vst [vmem:[%s11560_s23 + $0x2c8] sm:$0xff] %v5687_v58  ;;  %7455 = vst [vmem:[%s11560_s23 + $0x9e8] sm:$0xff] %v6599_v45 }
 0x53e   : > { %v9214_v55 = vpop.f32.mrf.mxu0  ;;  %9309 = vmatmul.mubr.msk.bf16.gmra.mxu0 %vm4613_vm5, %v9977_v17  ;;  %v9442_v39 = vpop.f32.mrf.mxu1  ;;  %9537 = vmatmul.mubr.msk.bf16.gmra.mxu1 %vm4613_vm5, %v9982_v20  ;;  %v10004_v17 = vld [vmem:[%s12529_s7 + $0x6e0] sm:$0xff]  }
 0x53f   : > { %7232 = vst [vmem:[%s11560_s23 + $0x2f0] sm:$0xff] %v9214_v55  ;;  %9312 = vmatprep.mubr.msk.bf16.mxu0 %vm4613_vm5, %v9979_v57  ;;  %7460 = vst [vmem:[%s11560_s23 + $0xa10] sm:$0xff] %v9442_v39  ;;  %9540 = vmatprep.mubr.msk.bf16.mxu1 %vm4613_vm5, %v9984_v25  ;;  %v10001_v39 = vld [vmem:[%s12529_s7 + $0x358] sm:$0xff]  }
 0x540   : > { %v5700_v47 = vpop.f32.mrf.mxu0  ;;  %v6612_v61 = vpop.f32.mrf.mxu1 }
 0x541   : > { %7230 = vst [vmem:[%s11560_s23 + $0x2e0] sm:$0xff] %v5700_v47  ;;  %7458 = vst [vmem:[%s11560_s23 + $0xa00] sm:$0xff] %v6612_v61  ;;  %v10006_v61 = vld [vmem:[%s12529_s7 + $0x6e8] sm:$0xff]  }
 0x542   : > { %v9215_v37 = vpop.f32.mrf.mxu0  ;;  %v9443_v42 = vpop.f32.mrf.mxu1 }
 0x543   : > { %7233 = vst [vmem:[%s11560_s23 + $0x2f8] sm:$0xff] %v9215_v37  ;;  %7461 = vst [vmem:[%s11560_s23 + $0xa18] sm:$0xff] %v9443_v42  ;;  %v10003_v37 = vld [vmem:[%s12529_s7 + $0x360] sm:$0xff]  }
 0x544   : > { %v5703_v50 = vpop.f32.mrf.mxu0  ;;  %v6615_v38 = vpop.f32.mrf.mxu1 }
 0x545   : > { %7231 = vst [vmem:[%s11560_s23 + $0x2e8] sm:$0xff] %v5703_v50  ;;  %7459 = vst [vmem:[%s11560_s23 + $0xa08] sm:$0xff] %v6615_v38 }
 0x546   : > { %v9218_v10 = vpop.f32.mrf.mxu0  ;;  %9313 = vmatmul.mubr.msk.bf16.gmra.mxu0 %vm4613_vm5, %v9981_v52  ;;  %v9446_v60 = vpop.f32.mrf.mxu1  ;;  %9541 = vmatmul.mubr.msk.bf16.gmra.mxu1 %vm4613_vm5, %v9986_v43  ;;  %v10008_v52 = vld [vmem:[%s12529_s7 + $0x6f0] sm:$0xff]  }
 0x547   : > { %7236 = vst [vmem:[%s11560_s23 + $0x310] sm:$0xff] %v9218_v10  ;;  %9316 = vmatprep.mubr.msk.bf16.mxu0 %vm4613_vm5, %v9983_v6  ;;  %7464 = vst [vmem:[%s11560_s23 + $0xa30] sm:$0xff] %v9446_v60  ;;  %9544 = vmatprep.mubr.msk.bf16.mxu1 %vm4613_vm5, %v9988_v23  ;;  %v10005_v60 = vld [vmem:[%s12529_s7 + $0x368] sm:$0xff]  }
 0x548   : > { %v5716_v15 = vpop.f32.mrf.mxu0  ;;  %v6628_v13 = vpop.f32.mrf.mxu1 }
 0x549   : > { %7234 = vst [vmem:[%s11560_s23 + $0x300] sm:$0xff] %v5716_v15  ;;  %7462 = vst [vmem:[%s11560_s23 + $0xa20] sm:$0xff] %v6628_v13  ;;  %v10010_v13 = vld [vmem:[%s12529_s7 + $0x6f8] sm:$0xff]  }
 0x54a   : > { %v9219_v28 = vpop.f32.mrf.mxu0  ;;  %v9447_v2 = vpop.f32.mrf.mxu1 }
 0x54b   : > { %7237 = vst [vmem:[%s11560_s23 + $0x318] sm:$0xff] %v9219_v28  ;;  %7465 = vst [vmem:[%s11560_s23 + $0xa38] sm:$0xff] %v9447_v2  ;;  %v10007_v28 = vld [vmem:[%s12529_s7 + $0x370] sm:$0xff]  }
 0x54c   : > { %v5719_v31 = vpop.f32.mrf.mxu0  ;;  %v6631_v51 = vpop.f32.mrf.mxu1 }
 0x54d   : > { %7235 = vst [vmem:[%s11560_s23 + $0x308] sm:$0xff] %v5719_v31  ;;  %7463 = vst [vmem:[%s11560_s23 + $0xa28] sm:$0xff] %v6631_v51 }
 0x54e   : > { %v9222_v35 = vpop.f32.mrf.mxu0  ;;  %9317 = vmatmul.mubr.msk.bf16.gmra.mxu0 %vm4613_vm5, %v9985_v63  ;;  %v9450_v11 = vpop.f32.mrf.mxu1  ;;  %9545 = vmatmul.mubr.msk.bf16.gmra.mxu1 %vm4613_vm5, %v9990_v46  ;;  %v10012_v63 = vld [vmem:[%s12529_s7 + $0x700] sm:$0xff]  }
 0x54f   : > { %7240 = vst [vmem:[%s11560_s23 + $0x330] sm:$0xff] %v9222_v35  ;;  %9320 = vmatprep.mubr.msk.bf16.mxu0 %vm4613_vm5, %v9987_v5  ;;  %7468 = vst [vmem:[%s11560_s23 + $0xa50] sm:$0xff] %v9450_v11  ;;  %9548 = vmatprep.mubr.msk.bf16.mxu1 %vm4613_vm5, %v9992_v49  ;;  %v10009_v11 = vld [vmem:[%s12529_s7 + $0x378] sm:$0xff]  }
 0x550   : > { %v5732_v1 = vpop.f32.mrf.mxu0  ;;  %v6644_v59 = vpop.f32.mrf.mxu1 }
 0x551   : > { %7238 = vst [vmem:[%s11560_s23 + $0x320] sm:$0xff] %v5732_v1  ;;  %7466 = vst [vmem:[%s11560_s23 + $0xa40] sm:$0xff] %v6644_v59  ;;  %v10014_v59 = vld [vmem:[%s12529_s7 + $0x708] ss:$0 sps:$4 sm:$0x77]  }
 0x552   : > { %v9223_v53 = vpop.f32.mrf.mxu0  ;;  %v9451_v62 = vpop.f32.mrf.mxu1 }
 0x553   : > { %7241 = vst [vmem:[%s11560_s23 + $0x338] sm:$0xff] %v9223_v53  ;;  %7469 = vst [vmem:[%s11560_s23 + $0xa58] sm:$0xff] %v9451_v62  ;;  %v10011_v53 = vld [vmem:[%s12529_s7 + $0x380] sm:$0xff]  }
 0x554   : > { %v5735_v24 = vpop.f32.mrf.mxu0  ;;  %v6647_v26 = vpop.f32.mrf.mxu1 }
 0x555   : > { %7239 = vst [vmem:[%s11560_s23 + $0x328] sm:$0xff] %v5735_v24  ;;  %7467 = vst [vmem:[%s11560_s23 + $0xa48] sm:$0xff] %v6647_v26 }
 0x556   : > { %v9226_v34 = vpop.f32.mrf.mxu0  ;;  %9321 = vmatmul.mubr.msk.bf16.gmra.mxu0 %vm4613_vm5, %v9989_v19  ;;  %v9454_v32 = vpop.f32.mrf.mxu1  ;;  %9549 = vmatmul.mubr.msk.bf16.gmra.mxu1 %vm4613_vm5, %v9994_v27 }
 0x557   : > { %7244 = vst [vmem:[%s11560_s23 + $0x350] sm:$0xff] %v9226_v34  ;;  %9324 = vmatprep.mubr.msk.bf16.mxu0 %vm4613_vm5, %v9991_v22  ;;  %7472 = vst [vmem:[%s11560_s23 + $0xa70] sm:$0xff] %v9454_v32  ;;  %9552 = vmatprep.mubr.msk.bf16.mxu1 %vm4613_vm5, %v9996_v4  ;;  %v10013_v34 = vld [vmem:[%s12529_s7 + $0x388] sm:$0xff]  }
 0x558   : > { %v5748_v12 = vpop.f32.mrf.mxu0  ;;  %v6660_v48 = vpop.f32.mrf.mxu1 }
 0x559   : > { %7242 = vst [vmem:[%s11560_s23 + $0x340] sm:$0xff] %v5748_v12  ;;  %7470 = vst [vmem:[%s11560_s23 + $0xa60] sm:$0xff] %v6660_v48 }
 0x55a   : > { %v9227_v9 = vpop.f32.mrf.mxu0  ;;  %v9455_v29 = vpop.f32.mrf.mxu1 }
 0x55b   : > { %7245 = vst [vmem:[%s11560_s23 + $0x358] sm:$0xff] %v9227_v9  ;;  %7473 = vst [vmem:[%s11560_s23 + $0xa78] sm:$0xff] %v9455_v29 }
 0x55c   : > { %v5751_v7 = vpop.f32.mrf.mxu0  ;;  %v6663_v21 = vpop.f32.mrf.mxu1 }
 0x55d   : > { %7243 = vst [vmem:[%s11560_s23 + $0x348] sm:$0xff] %v5751_v7  ;;  %7471 = vst [vmem:[%s11560_s23 + $0xa68] sm:$0xff] %v6663_v21 }
 0x55e   : > { %v9230_v44 = vpop.f32.mrf.mxu0  ;;  %9325 = vmatmul.mubr.msk.bf16.gmra.mxu0 %vm4613_vm5, %v9993_v3  ;;  %v9458_v30 = vpop.f32.mrf.mxu1  ;;  %9553 = vmatmul.mubr.msk.bf16.gmra.mxu1 %vm4613_vm5, %v9998_v36 }
 0x55f   : > { %7248 = vst [vmem:[%s11560_s23 + $0x370] sm:$0xff] %v9230_v44  ;;  %9328 = vmatprep.mubr.msk.bf16.mxu0 %vm4613_vm5, %v9995_v56  ;;  %7476 = vst [vmem:[%s11560_s23 + $0xa90] sm:$0xff] %v9458_v30  ;;  %9556 = vmatprep.mubr.msk.bf16.mxu1 %vm4613_vm5, %v10000_v41 }
 0x560   : > { %v5764_v40 = vpop.f32.mrf.mxu0  ;;  %v6676_v33 = vpop.f32.mrf.mxu1 }
 0x561   : > { %7246 = vst [vmem:[%s11560_s23 + $0x360] sm:$0xff] %v5764_v40  ;;  %7474 = vst [vmem:[%s11560_s23 + $0xa80] sm:$0xff] %v6676_v33 }
 0x562   : > { %v9231_v0 = vpop.f32.mrf.mxu0  ;;  %v9459_v8 = vpop.f32.mrf.mxu1 }
 0x563   : > { %7249 = vst [vmem:[%s11560_s23 + $0x378] sm:$0xff] %v9231_v0  ;;  %7477 = vst [vmem:[%s11560_s23 + $0xa98] sm:$0xff] %v9459_v8 }
 0x564   : > { %v5767_v16 = vpop.f32.mrf.mxu0  ;;  %v6679_v20 = vpop.f32.mrf.mxu1 }
 0x565   : > { %7247 = vst [vmem:[%s11560_s23 + $0x368] sm:$0xff] %v5767_v16  ;;  %7475 = vst [vmem:[%s11560_s23 + $0xa88] sm:$0xff] %v6679_v20 }
 0x566   : > { %v9234_v57 = vpop.f32.mrf.mxu0  ;;  %9329 = vmatmul.mubr.msk.bf16.gmra.mxu0 %vm4613_vm5, %v9997_v18  ;;  %v9462_v25 = vpop.f32.mrf.mxu1  ;;  %9557 = vmatmul.mubr.msk.bf16.gmra.mxu1 %vm4613_vm5, %v10002_v14 }
 0x567   : > { %7252 = vst [vmem:[%s11560_s23 + $0x390] sm:$0xff] %v9234_v57  ;;  %9332 = vmatprep.mubr.msk.bf16.mxu0 %vm4613_vm5, %v9999_v54  ;;  %7480 = vst [vmem:[%s11560_s23 + $0xab0] sm:$0xff] %v9462_v25  ;;  %9560 = vmatprep.mubr.msk.bf16.mxu1 %vm4613_vm5, %v10004_v17 }
 0x568   : > { %v5780_v58 = vpop.f32.mrf.mxu0  ;;  %v6692_v45 = vpop.f32.mrf.mxu1 }
 0x569   : > { %7250 = vst [vmem:[%s11560_s23 + $0x380] sm:$0xff] %v5780_v58  ;;  %7478 = vst [vmem:[%s11560_s23 + $0xaa0] sm:$0xff] %v6692_v45 }
 0x56a   : > { %v9235_v55 = vpop.f32.mrf.mxu0  ;;  %v9463_v47 = vpop.f32.mrf.mxu1 }
 0x56b   : > { %7253 = vst [vmem:[%s11560_s23 + $0x398] sm:$0xff] %v9235_v55  ;;  %7481 = vst [vmem:[%s11560_s23 + $0xab8] sm:$0xff] %v9463_v47 }
 0x56c   : > { %v5783_v42 = vpop.f32.mrf.mxu0  ;;  %v6695_v43 = vpop.f32.mrf.mxu1 }
 0x56d   : > { %7251 = vst [vmem:[%s11560_s23 + $0x388] sm:$0xff] %v5783_v42  ;;  %7479 = vst [vmem:[%s11560_s23 + $0xaa8] sm:$0xff] %v6695_v43 }
 0x56e   : > { %v9238_v6 = vpop.f32.mrf.mxu0  ;;  %9333 = vmatmul.mubr.msk.bf16.gmra.mxu0 %vm4613_vm5, %v10001_v39  ;;  %v9466_v23 = vpop.f32.mrf.mxu1  ;;  %9561 = vmatmul.mubr.msk.bf16.gmra.mxu1 %vm4613_vm5, %v10006_v61 }
 0x56f   : > { %7256 = vst [vmem:[%s11560_s23 + $0x3b0] sm:$0xff] %v9238_v6  ;;  %9336 = vmatprep.mubr.msk.bf16.mxu0 %vm4613_vm5, %v10003_v37  ;;  %7484 = vst [vmem:[%s11560_s23 + $0xad0] sm:$0xff] %v9466_v23  ;;  %9564 = vmatprep.mubr.msk.bf16.mxu1 %vm4613_vm5, %v10008_v52 }
 0x570   : > { %v5796_v50 = vpop.f32.mrf.mxu0  ;;  %v6708_v38 = vpop.f32.mrf.mxu1 }
 0x571   : > { %7254 = vst [vmem:[%s11560_s23 + $0x3a0] sm:$0xff] %v5796_v50  ;;  %7482 = vst [vmem:[%s11560_s23 + $0xac0] sm:$0xff] %v6708_v38 }
 0x572   : > { %v9239_v10 = vpop.f32.mrf.mxu0  ;;  %v9467_v15 = vpop.f32.mrf.mxu1 }
 0x573   : > { %7257 = vst [vmem:[%s11560_s23 + $0x3b8] sm:$0xff] %v9239_v10  ;;  %7485 = vst [vmem:[%s11560_s23 + $0xad8] sm:$0xff] %v9467_v15 }
 0x574   : > { %v5799_v2 = vpop.f32.mrf.mxu0  ;;  %v6711_v46 = vpop.f32.mrf.mxu1 }
 0x575   : > { %7255 = vst [vmem:[%s11560_s23 + $0x3a8] sm:$0xff] %v5799_v2  ;;  %7483 = vst [vmem:[%s11560_s23 + $0xac8] sm:$0xff] %v6711_v46 }
 0x576   : > { %v9242_v5 = vpop.f32.mrf.mxu0  ;;  %9337 = vmatmul.mubr.msk.bf16.gmra.mxu0 %vm4613_vm5, %v10005_v60  ;;  %v9470_v49 = vpop.f32.mrf.mxu1  ;;  %9565 = vmatmul.mubr.msk.bf16.gmra.mxu1 %vm4613_vm5, %v10010_v13 }
 0x577   : > { %7260 = vst [vmem:[%s11560_s23 + $0x3d0] sm:$0xff] %v9242_v5  ;;  %9340 = vmatprep.mubr.msk.bf16.mxu0 %vm4613_vm5, %v10007_v28  ;;  %7488 = vst [vmem:[%s11560_s23 + $0xaf0] sm:$0xff] %v9470_v49  ;;  %9568 = vmatprep.mubr.msk.bf16.mxu1 %vm4613_vm5, %v10012_v63 }
 0x578   : > { %v5812_v31 = vpop.f32.mrf.mxu0  ;;  %v6724_v51 = vpop.f32.mrf.mxu1 }
 0x579   : > { %7258 = vst [vmem:[%s11560_s23 + $0x3c0] sm:$0xff] %v5812_v31  ;;  %7486 = vst [vmem:[%s11560_s23 + $0xae0] sm:$0xff] %v6724_v51 }
 0x57a   : > { %v9243_v35 = vpop.f32.mrf.mxu0  ;;  %v9471_v1 = vpop.f32.mrf.mxu1 }
 0x57b   : > { %7261 = vst [vmem:[%s11560_s23 + $0x3d8] sm:$0xff] %v9243_v35  ;;  %7489 = vst [vmem:[%s11560_s23 + $0xaf8] sm:$0xff] %v9471_v1 }
 0x57c   : > { %v5815_v19 = vpop.f32.mrf.mxu0  ;;  %v6727_v62 = vpop.f32.mrf.mxu1 }
 0x57d   : > { %7259 = vst [vmem:[%s11560_s23 + $0x3c8] sm:$0xff] %v5815_v19  ;;  %7487 = vst [vmem:[%s11560_s23 + $0xae8] sm:$0xff] %v6727_v62 }
 0x57e   : > { %v9246_v27 = vpop.f32.mrf.mxu0  ;;  %9341 = vmatmul.mubr.msk.bf16.gmra.mxu0 %vm4613_vm5, %v10009_v11  ;;  %v9474_v22 = vpop.f32.mrf.mxu1  ;;  %9569 = vmatmul.mubr.msk.bf16.gmra.mxu1 %vm4613_vm5, %v10014_v59 }
 0x57f   : > { %7264 = vst [vmem:[%s11560_s23 + $0x3f0] sm:$0xff] %v9246_v27  ;;  %9344 = vmatprep.mubr.msk.bf16.mxu0 %vm4613_vm5, %v10011_v53  ;;  %7492 = vst [vmem:[%s11560_s23 + $0xb10] sm:$0xff] %v9474_v22 }
 0x580   : > { %v5828_v4 = vpop.f32.mrf.mxu0  ;;  %v6740_v24 = vpop.f32.mrf.mxu1 }
 0x581   : > { %7262 = vst [vmem:[%s11560_s23 + $0x3e0] sm:$0xff] %v5828_v4  ;;  %7490 = vst [vmem:[%s11560_s23 + $0xb00] sm:$0xff] %v6740_v24 }
 0x582   : > { %v9247_v26 = vpop.f32.mrf.mxu0  ;;  %v9475_v32 = vpop.f32.mrf.mxu1 }
 0x583   : > { %7265 = vst [vmem:[%s11560_s23 + $0x3f8] sm:$0xff] %v9247_v26  ;;  %7493 = vst [vmem:[%s11560_s23 + $0xb18] sm:$0xff] %v9475_v32 }
 0x584   : > { %v5831_v12 = vpop.f32.mrf.mxu0  ;;  %v6743_v48 = vpop.f32.mrf.mxu1 }
 0x585   : > { %7263 = vst [vmem:[%s11560_s23 + $0x3e8] sm:$0xff] %v5831_v12  ;;  %7491 = vst [vmem:[%s11560_s23 + $0xb08] sm:$0xff] %v6743_v48 }
 0x586   : > { %v9250_v9 = vpop.f32.mrf.mxu0  ;;  %9345 = vmatmul.mubr.msk.bf16.gmra.mxu0 %vm4613_vm5, %v10013_v34  ;;  %v9478_v3 = vpop.f32.mrf.mxu1 }
 0x587   : > { %7268 = vst [vmem:[%s11560_s23 + $0x410] sm:$0xff] %v9250_v9  ;;  %7496 = vst [vmem:[%s11560_s23 + $0xb30] sm:$0xff] %v9478_v3 }
 0x588   : > { %v5844_v29 = vpop.f32.mrf.mxu0  ;;  %v6756_v36 = vpop.f32.mrf.mxu1 }
 0x589   : > { %7266 = vst [vmem:[%s11560_s23 + $0x400] sm:$0xff] %v5844_v29  ;;  %7494 = vst [vmem:[%s11560_s23 + $0xb20] sm:$0xff] %v6756_v36 }
 0x58a   : > { %v9251_v56 = vpop.f32.mrf.mxu0  ;;  %v9479_v41 = vpop.f32.mrf.mxu1 }
 0x58b   : > { %7269 = vst [vmem:[%s11560_s23 + $0x418] sm:$0xff] %v9251_v56  ;;  %7497 = vst [vmem:[%s11560_s23 + $0xb38] sm:$0xff] %v9479_v41 }
 0x58c   : > { %v5847_v7 = vpop.f32.mrf.mxu0  ;;  %v6759_v21 = vpop.f32.mrf.mxu1 }
 0x58d   : > { %7267 = vst [vmem:[%s11560_s23 + $0x408] sm:$0xff] %v5847_v7  ;;  %7495 = vst [vmem:[%s11560_s23 + $0xb28] sm:$0xff] %v6759_v21 }
 0x58e   : > { %v9254_v44 = vpop.f32.mrf.mxu0  ;;  %v9482_v30 = vpop.f32.mrf.mxu1 }
 0x58f   : > { %7272 = vst [vmem:[%s11560_s23 + $0x430] sm:$0xff] %v9254_v44  ;;  %7500 = vst [vmem:[%s11560_s23 + $0xb50] sm:$0xff] %v9482_v30 }
 0x590   : > { %v5860_v40 = vpop.f32.mrf.mxu0  ;;  %v6772_v33 = vpop.f32.mrf.mxu1 }
 0x591   : > { %7270 = vst [vmem:[%s11560_s23 + $0x420] sm:$0xff] %v5860_v40  ;;  %7498 = vst [vmem:[%s11560_s23 + $0xb40] sm:$0xff] %v6772_v33 }
 0x592   : > { %v9255_v0 = vpop.f32.mrf.mxu0  ;;  %v9483_v18 = vpop.f32.mrf.mxu1 }
 0x593   : > { %7273 = vst [vmem:[%s11560_s23 + $0x438] sm:$0xff] %v9255_v0  ;;  %7501 = vst [vmem:[%s11560_s23 + $0xb58] sm:$0xff] %v9483_v18 }
 0x594   : > { %v5863_v8 = vpop.f32.mrf.mxu0  ;;  %v6775_v14 = vpop.f32.mrf.mxu1 }
 0x595   : > { %7271 = vst [vmem:[%s11560_s23 + $0x428] sm:$0xff] %v5863_v8  ;;  %7499 = vst [vmem:[%s11560_s23 + $0xb48] sm:$0xff] %v6775_v14 }
 0x596   : > { %v9258_v54 = vpop.f32.mrf.mxu0  ;;  %v9486_v17 = vpop.f32.mrf.mxu1 }
 0x597   : > { %7276 = vst [vmem:[%s11560_s23 + $0x450] sm:$0xff] %v9258_v54  ;;  %7504 = vst [vmem:[%s11560_s23 + $0xb70] sm:$0xff] %v9486_v17 }
 0x598   : > { %v5876_v16 = vpop.f32.mrf.mxu0  ;;  %v6788_v20 = vpop.f32.mrf.mxu1 }
 0x599   : > { %7274 = vst [vmem:[%s11560_s23 + $0x440] sm:$0xff] %v5876_v16  ;;  %7502 = vst [vmem:[%s11560_s23 + $0xb60] sm:$0xff] %v6788_v20 }
 0x59a   : > { %v9259_v57 = vpop.f32.mrf.mxu0  ;;  %v9487_v25 = vpop.f32.mrf.mxu1 }
 0x59b   : > { %7277 = vst [vmem:[%s11560_s23 + $0x458] sm:$0xff] %v9259_v57  ;;  %7505 = vst [vmem:[%s11560_s23 + $0xb78] sm:$0xff] %v9487_v25 }
 0x59c   : > { %v5879_v58 = vpop.f32.mrf.mxu0  ;;  %v6791_v45 = vpop.f32.mrf.mxu1 }
 0x59d   : > { %7275 = vst [vmem:[%s11560_s23 + $0x448] sm:$0xff] %v5879_v58  ;;  %7503 = vst [vmem:[%s11560_s23 + $0xb68] sm:$0xff] %v6791_v45 }
 0x59e   : > { %v9262_v55 = vpop.f32.mrf.mxu0  ;;  %v9490_v39 = vpop.f32.mrf.mxu1 }
 0x59f   : > { %7280 = vst [vmem:[%s11560_s23 + $0x470] sm:$0xff] %v9262_v55  ;;  %7508 = vst [vmem:[%s11560_s23 + $0xb90] sm:$0xff] %v9490_v39 }
 0x5a0   : > { %v5892_v47 = vpop.f32.mrf.mxu0  ;;  %v6804_v61 = vpop.f32.mrf.mxu1 }
 0x5a1   : > { %7278 = vst [vmem:[%s11560_s23 + $0x460] sm:$0xff] %v5892_v47  ;;  %7506 = vst [vmem:[%s11560_s23 + $0xb80] sm:$0xff] %v6804_v61 }
 0x5a2   : > { %v9263_v37 = vpop.f32.mrf.mxu0  ;;  %v9491_v52 = vpop.f32.mrf.mxu1 }
 0x5a3   : > { %7281 = vst [vmem:[%s11560_s23 + $0x478] sm:$0xff] %v9263_v37  ;;  %7509 = vst [vmem:[%s11560_s23 + $0xb98] sm:$0xff] %v9491_v52 }
 0x5a4   : > { %v5895_v42 = vpop.f32.mrf.mxu0  ;;  %v6807_v43 = vpop.f32.mrf.mxu1 }
 0x5a5   : > { %7279 = vst [vmem:[%s11560_s23 + $0x468] sm:$0xff] %v5895_v42  ;;  %7507 = vst [vmem:[%s11560_s23 + $0xb88] sm:$0xff] %v6807_v43 }
 0x5a6   : > { %v9266_v6 = vpop.f32.mrf.mxu0  ;;  %v9494_v23 = vpop.f32.mrf.mxu1 }
 0x5a7   : > { %7284 = vst [vmem:[%s11560_s23 + $0x490] sm:$0xff] %v9266_v6  ;;  %7512 = vst [vmem:[%s11560_s23 + $0xbb0] sm:$0xff] %v9494_v23 }
 0x5a8   : > { %v5908_v50 = vpop.f32.mrf.mxu0  ;;  %v6820_v38 = vpop.f32.mrf.mxu1 }
 0x5a9   : > { %7282 = vst [vmem:[%s11560_s23 + $0x480] sm:$0xff] %v5908_v50  ;;  %7510 = vst [vmem:[%s11560_s23 + $0xba0] sm:$0xff] %v6820_v38 }
 0x5aa   : > { %v9267_v10 = vpop.f32.mrf.mxu0  ;;  %v9495_v60 = vpop.f32.mrf.mxu1 }
 0x5ab   : > { %7285 = vst [vmem:[%s11560_s23 + $0x498] sm:$0xff] %v9267_v10  ;;  %7513 = vst [vmem:[%s11560_s23 + $0xbb8] sm:$0xff] %v9495_v60 }
 0x5ac   : > { %v5911_v15 = vpop.f32.mrf.mxu0  ;;  %v6823_v13 = vpop.f32.mrf.mxu1 }
 0x5ad   : > { %7283 = vst [vmem:[%s11560_s23 + $0x488] sm:$0xff] %v5911_v15  ;;  %7511 = vst [vmem:[%s11560_s23 + $0xba8] sm:$0xff] %v6823_v13 }
 0x5ae   : > { %v9270_v28 = vpop.f32.mrf.mxu0  ;;  %v9498_v63 = vpop.f32.mrf.mxu1 }
 0x5af   : > { %7288 = vst [vmem:[%s11560_s23 + $0x4b0] sm:$0xff] %v9270_v28  ;;  %7516 = vst [vmem:[%s11560_s23 + $0xbd0] sm:$0xff] %v9498_v63 }
 0x5b0   : > { %v5924_v2 = vpop.f32.mrf.mxu0  ;;  %v6836_v46 = vpop.f32.mrf.mxu1 }
 0x5b1   : > { %7286 = vst [vmem:[%s11560_s23 + $0x4a0] sm:$0xff] %v5924_v2  ;;  %7514 = vst [vmem:[%s11560_s23 + $0xbc0] sm:$0xff] %v6836_v46 }
 0x5b2   : > { %v9271_v5 = vpop.f32.mrf.mxu0  ;;  %v9499_v49 = vpop.f32.mrf.mxu1 }
 0x5b3   : > { %7289 = vst [vmem:[%s11560_s23 + $0x4b8] sm:$0xff] %v9271_v5  ;;  %7517 = vst [vmem:[%s11560_s23 + $0xbd8] sm:$0xff] %v9499_v49 }
 0x5b4   : > { %v5927_v31 = vpop.f32.mrf.mxu0  ;;  %v6839_v51 = vpop.f32.mrf.mxu1 }
 0x5b5   : > { %7287 = vst [vmem:[%s11560_s23 + $0x4a8] sm:$0xff] %v5927_v31  ;;  %7515 = vst [vmem:[%s11560_s23 + $0xbc8] sm:$0xff] %v6839_v51 }
 0x5b6   : > { %v9274_v35 = vpop.f32.mrf.mxu0  ;;  %v9502_v11 = vpop.f32.mrf.mxu1 }
 0x5b7   : > { %7292 = vst [vmem:[%s11560_s23 + $0x4d0] sm:$0xff] %v9274_v35  ;;  %7520 = vst [vmem:[%s11560_s23 + $0xbf0] sm:$0xff] %v9502_v11 }
 0x5b8   : > { %v5940_v1 = vpop.f32.mrf.mxu0  ;;  %v6852_v59 = vpop.f32.mrf.mxu1 }
 0x5b9   : > { %7290 = vst [vmem:[%s11560_s23 + $0x4c0] sm:$0xff] %v5940_v1  ;;  %7518 = vst [vmem:[%s11560_s23 + $0xbe0] sm:$0xff] %v6852_v59 }
 0x5ba   : > { %v9275_v53 = vpop.f32.mrf.mxu0  ;;  %v9503_v19 = vpop.f32.mrf.mxu1 }
 0x5bb   : > { %7293 = vst [vmem:[%s11560_s23 + $0x4d8] sm:$0xff] %v9275_v53  ;;  %7521 = vst [vmem:[%s11560_s23 + $0xbf8] sm:$0xff] %v9503_v19 }
 0x5bc   : > { %v5943_v62 = vpop.f32.mrf.mxu0  ;;  %v6855_v27 = vpop.f32.mrf.mxu1 }
 0x5bd   : > { %7291 = vst [vmem:[%s11560_s23 + $0x4c8] sm:$0xff] %v5943_v62  ;;  %7519 = vst [vmem:[%s11560_s23 + $0xbe8] sm:$0xff] %v6855_v27 }
 0x5be   : > { %v9278_v22 = vpop.f32.mrf.mxu0  ;;  %v9506_v4 = vpop.f32.mrf.mxu1 }
 0x5bf   : > { %7296 = vst [vmem:[%s11560_s23 + $0x4f0] sm:$0xff] %v9278_v22  ;;  %7524 = vst [vmem:[%s11560_s23 + $0xc10] sm:$0xff] %v9506_v4 }
 0x5c0   : > { %v5956_v24 = vpop.f32.mrf.mxu0  ;;  %v6868_v26 = vpop.f32.mrf.mxu1 }
 0x5c1   : > { %7294 = vst [vmem:[%s11560_s23 + $0x4e0] sm:$0xff] %v5956_v24  ;;  %7522 = vst [vmem:[%s11560_s23 + $0xc00] sm:$0xff] %v6868_v26 }
 0x5c2   : > { %v9279_v34 = vpop.f32.mrf.mxu0  ;;  %v9507_v32 = vpop.f32.mrf.mxu1 }
 0x5c3   : > { %7297 = vst [vmem:[%s11560_s23 + $0x4f8] sm:$0xff] %v9279_v34  ;;  %7525 = vst [vmem:[%s11560_s23 + $0xc18] sm:$0xff] %v9507_v32 }
 0x5c4   : > { %v5959_v12 = vpop.f32.mrf.mxu0  ;;  %v6871_v48 = vpop.f32.mrf.mxu1 }
 0x5c5   : > { %7295 = vst [vmem:[%s11560_s23 + $0x4e8] sm:$0xff] %v5959_v12  ;;  %7523 = vst [vmem:[%s11560_s23 + $0xc08] sm:$0xff] %v6871_v48 }
 0x5c6   : > { %v9282_v9 = vpop.f32.mrf.mxu0  ;;  %v9510_v3 = vpop.f32.mrf.mxu1 }
 0x5c7   : > { %7300 = vst [vmem:[%s11560_s23 + $0x510] sm:$0xff] %v9282_v9  ;;  %7528 = vst [vmem:[%s11560_s23 + $0xc30] sm:$0xff] %v9510_v3 }
 0x5c8   : > { %v5972_v29 = vpop.f32.mrf.mxu0  ;;  %v6884_v36 = vpop.f32.mrf.mxu1 }
 0x5c9   : > { %7298 = vst [vmem:[%s11560_s23 + $0x500] sm:$0xff] %v5972_v29  ;;  %7526 = vst [vmem:[%s11560_s23 + $0xc20] sm:$0xff] %v6884_v36 }
 0x5ca   : > { %v9283_v56 = vpop.f32.mrf.mxu0  ;;  %v9511_v41 = vpop.f32.mrf.mxu1 }
 0x5cb   : > { %7301 = vst [vmem:[%s11560_s23 + $0x518] sm:$0xff] %v9283_v56  ;;  %7529 = vst [vmem:[%s11560_s23 + $0xc38] sm:$0xff] %v9511_v41 }
 0x5cc   : > { %v5975_v7 = vpop.f32.mrf.mxu0  ;;  %v6887_v21 = vpop.f32.mrf.mxu1 }
 0x5cd   : > { %7299 = vst [vmem:[%s11560_s23 + $0x508] sm:$0xff] %v5975_v7  ;;  %7527 = vst [vmem:[%s11560_s23 + $0xc28] sm:$0xff] %v6887_v21 }
 0x5ce   : > { %v9286_v44 = vpop.f32.mrf.mxu0  ;;  %v9514_v30 = vpop.f32.mrf.mxu1 }
 0x5cf   : > { %7304 = vst [vmem:[%s11560_s23 + $0x530] sm:$0xff] %v9286_v44  ;;  %7532 = vst [vmem:[%s11560_s23 + $0xc50] sm:$0xff] %v9514_v30 }
 0x5d0   : > { %v5988_v40 = vpop.f32.mrf.mxu0  ;;  %v6900_v33 = vpop.f32.mrf.mxu1 }
 0x5d1   : > { %7302 = vst [vmem:[%s11560_s23 + $0x520] sm:$0xff] %v5988_v40  ;;  %7530 = vst [vmem:[%s11560_s23 + $0xc40] sm:$0xff] %v6900_v33 }
 0x5d2   : > { %v9287_v0 = vpop.f32.mrf.mxu0  ;;  %v9515_v18 = vpop.f32.mrf.mxu1 }
 0x5d3   : > { %7305 = vst [vmem:[%s11560_s23 + $0x538] sm:$0xff] %v9287_v0  ;;  %7533 = vst [vmem:[%s11560_s23 + $0xc58] sm:$0xff] %v9515_v18 }
 0x5d4   : > { %v5991_v8 = vpop.f32.mrf.mxu0  ;;  %v6903_v14 = vpop.f32.mrf.mxu1 }
 0x5d5   : > { %7303 = vst [vmem:[%s11560_s23 + $0x528] sm:$0xff] %v5991_v8  ;;  %7531 = vst [vmem:[%s11560_s23 + $0xc48] sm:$0xff] %v6903_v14 }
 0x5d6   : > { %v9290_v54 = vpop.f32.mrf.mxu0  ;;  %v9518_v17 = vpop.f32.mrf.mxu1 }
 0x5d7   : > { %7308 = vst [vmem:[%s11560_s23 + $0x550] sm:$0xff] %v9290_v54  ;;  %7536 = vst [vmem:[%s11560_s23 + $0xc70] sm:$0xff] %v9518_v17 }
 0x5d8   : > { %v6004_v16 = vpop.f32.mrf.mxu0  ;;  %v6916_v20 = vpop.f32.mrf.mxu1 }
 0x5d9   : > { %7306 = vst [vmem:[%s11560_s23 + $0x540] sm:$0xff] %v6004_v16  ;;  %7534 = vst [vmem:[%s11560_s23 + $0xc60] sm:$0xff] %v6916_v20 }
 0x5da   : > { %v9291_v57 = vpop.f32.mrf.mxu0  ;;  %v9519_v25 = vpop.f32.mrf.mxu1 }
 0x5db   : > { %7309 = vst [vmem:[%s11560_s23 + $0x558] sm:$0xff] %v9291_v57  ;;  %7537 = vst [vmem:[%s11560_s23 + $0xc78] sm:$0xff] %v9519_v25 }
 0x5dc   : > { %v6007_v58 = vpop.f32.mrf.mxu0  ;;  %v6919_v45 = vpop.f32.mrf.mxu1 }
 0x5dd   : > { %7307 = vst [vmem:[%s11560_s23 + $0x548] sm:$0xff] %v6007_v58  ;;  %7535 = vst [vmem:[%s11560_s23 + $0xc68] sm:$0xff] %v6919_v45 }
 0x5de   : > { %v9294_v55 = vpop.f32.mrf.mxu0  ;;  %v9522_v39 = vpop.f32.mrf.mxu1 }
 0x5df   : > { %7312 = vst [vmem:[%s11560_s23 + $0x570] sm:$0xff] %v9294_v55  ;;  %7540 = vst [vmem:[%s11560_s23 + $0xc90] sm:$0xff] %v9522_v39 }
 0x5e0   : > { %v6020_v47 = vpop.f32.mrf.mxu0  ;;  %v6932_v61 = vpop.f32.mrf.mxu1 }
 0x5e1   : > { %7310 = vst [vmem:[%s11560_s23 + $0x560] sm:$0xff] %v6020_v47  ;;  %7538 = vst [vmem:[%s11560_s23 + $0xc80] sm:$0xff] %v6932_v61 }
 0x5e2   : > { %v9295_v37 = vpop.f32.mrf.mxu0  ;;  %v9523_v52 = vpop.f32.mrf.mxu1 }
 0x5e3   : > { %7313 = vst [vmem:[%s11560_s23 + $0x578] sm:$0xff] %v9295_v37  ;;  %7541 = vst [vmem:[%s11560_s23 + $0xc98] sm:$0xff] %v9523_v52 }
 0x5e4   : > { %v6023_v42 = vpop.f32.mrf.mxu0  ;;  %v6935_v43 = vpop.f32.mrf.mxu1 }
 0x5e5   : > { %7311 = vst [vmem:[%s11560_s23 + $0x568] sm:$0xff] %v6023_v42  ;;  %7539 = vst [vmem:[%s11560_s23 + $0xc88] sm:$0xff] %v6935_v43 }
 0x5e6   : > { %v9298_v6 = vpop.f32.mrf.mxu0  ;;  %v9526_v23 = vpop.f32.mrf.mxu1 }
 0x5e7   : > { %7316 = vst [vmem:[%s11560_s23 + $0x590] sm:$0xff] %v9298_v6  ;;  %7544 = vst [vmem:[%s11560_s23 + $0xcb0] sm:$0xff] %v9526_v23 }
 0x5e8   : > { %v6036_v50 = vpop.f32.mrf.mxu0  ;;  %v6948_v38 = vpop.f32.mrf.mxu1 }
 0x5e9   : > { %7314 = vst [vmem:[%s11560_s23 + $0x580] sm:$0xff] %v6036_v50  ;;  %7542 = vst [vmem:[%s11560_s23 + $0xca0] sm:$0xff] %v6948_v38 }
 0x5ea   : > { %v9299_v10 = vpop.f32.mrf.mxu0  ;;  %v9527_v60 = vpop.f32.mrf.mxu1 }
 0x5eb   : > { %7317 = vst [vmem:[%s11560_s23 + $0x598] sm:$0xff] %v9299_v10  ;;  %7545 = vst [vmem:[%s11560_s23 + $0xcb8] sm:$0xff] %v9527_v60 }
 0x5ec   : > { %v6039_v15 = vpop.f32.mrf.mxu0  ;;  %v6951_v13 = vpop.f32.mrf.mxu1 }
 0x5ed   : > { %7315 = vst [vmem:[%s11560_s23 + $0x588] sm:$0xff] %v6039_v15  ;;  %7543 = vst [vmem:[%s11560_s23 + $0xca8] sm:$0xff] %v6951_v13 }
 0x5ee   : > { %v9302_v28 = vpop.f32.mrf.mxu0  ;;  %v9530_v63 = vpop.f32.mrf.mxu1 }
 0x5ef   : > { %7320 = vst [vmem:[%s11560_s23 + $0x5b0] sm:$0xff] %v9302_v28  ;;  %7548 = vst [vmem:[%s11560_s23 + $0xcd0] sm:$0xff] %v9530_v63 }
 0x5f0   : > { %v6052_v2 = vpop.f32.mrf.mxu0  ;;  %v6964_v46 = vpop.f32.mrf.mxu1 }
 0x5f1   : > { %7318 = vst [vmem:[%s11560_s23 + $0x5a0] sm:$0xff] %v6052_v2  ;;  %7546 = vst [vmem:[%s11560_s23 + $0xcc0] sm:$0xff] %v6964_v46 }
 0x5f2   : > { %v9303_v5 = vpop.f32.mrf.mxu0  ;;  %v9531_v49 = vpop.f32.mrf.mxu1 }
 0x5f3   : > { %7321 = vst [vmem:[%s11560_s23 + $0x5b8] sm:$0xff] %v9303_v5  ;;  %7549 = vst [vmem:[%s11560_s23 + $0xcd8] sm:$0xff] %v9531_v49 }
 0x5f4   : > { %v6055_v31 = vpop.f32.mrf.mxu0  ;;  %v6967_v51 = vpop.f32.mrf.mxu1 }
 0x5f5   : > { %7319 = vst [vmem:[%s11560_s23 + $0x5a8] sm:$0xff] %v6055_v31  ;;  %7547 = vst [vmem:[%s11560_s23 + $0xcc8] sm:$0xff] %v6967_v51 }
 0x5f6   : > { %v9306_v35 = vpop.f32.mrf.mxu0  ;;  %v9534_v11 = vpop.f32.mrf.mxu1 }
 0x5f7   : > { %7324 = vst [vmem:[%s11560_s23 + $0x5d0] sm:$0xff] %v9306_v35  ;;  %7552 = vst [vmem:[%s11560_s23 + $0xcf0] sm:$0xff] %v9534_v11 }
 0x5f8   : > { %v6068_v1 = vpop.f32.mrf.mxu0  ;;  %v6980_v59 = vpop.f32.mrf.mxu1 }
 0x5f9   : > { %7322 = vst [vmem:[%s11560_s23 + $0x5c0] sm:$0xff] %v6068_v1  ;;  %7550 = vst [vmem:[%s11560_s23 + $0xce0] sm:$0xff] %v6980_v59 }
 0x5fa   : > { %v9307_v53 = vpop.f32.mrf.mxu0  ;;  %v9535_v19 = vpop.f32.mrf.mxu1 }
 0x5fb   : > { %7325 = vst [vmem:[%s11560_s23 + $0x5d8] sm:$0xff] %v9307_v53  ;;  %7553 = vst [vmem:[%s11560_s23 + $0xcf8] sm:$0xff] %v9535_v19 }
 0x5fc   : > { %v6071_v62 = vpop.f32.mrf.mxu0  ;;  %v6983_v27 = vpop.f32.mrf.mxu1 }
 0x5fd   : > { %7323 = vst [vmem:[%s11560_s23 + $0x5c8] sm:$0xff] %v6071_v62  ;;  %7551 = vst [vmem:[%s11560_s23 + $0xce8] sm:$0xff] %v6983_v27 }
 0x5fe   : > { %v9310_v22 = vpop.f32.mrf.mxu0  ;;  %v9538_v4 = vpop.f32.mrf.mxu1 }
 0x5ff   : > { %7328 = vst [vmem:[%s11560_s23 + $0x5f0] sm:$0xff] %v9310_v22  ;;  %7556 = vst [vmem:[%s11560_s23 + $0xd10] sm:$0xff] %v9538_v4 }
 0x600   : > { %v6084_v24 = vpop.f32.mrf.mxu0  ;;  %v6996_v26 = vpop.f32.mrf.mxu1 }
 0x601   : > { %7326 = vst [vmem:[%s11560_s23 + $0x5e0] sm:$0xff] %v6084_v24  ;;  %7554 = vst [vmem:[%s11560_s23 + $0xd00] sm:$0xff] %v6996_v26 }
 0x602   : > { %v9311_v34 = vpop.f32.mrf.mxu0  ;;  %v9539_v32 = vpop.f32.mrf.mxu1 }
 0x603   : > { %7329 = vst [vmem:[%s11560_s23 + $0x5f8] sm:$0xff] %v9311_v34  ;;  %7557 = vst [vmem:[%s11560_s23 + $0xd18] sm:$0xff] %v9539_v32 }
 0x604   : > { %v6087_v12 = vpop.f32.mrf.mxu0  ;;  %v6999_v48 = vpop.f32.mrf.mxu1 }
 0x605   : > { %7327 = vst [vmem:[%s11560_s23 + $0x5e8] sm:$0xff] %v6087_v12  ;;  %7555 = vst [vmem:[%s11560_s23 + $0xd08] sm:$0xff] %v6999_v48 }
 0x606   : > { %v9314_v9 = vpop.f32.mrf.mxu0  ;;  %v9542_v3 = vpop.f32.mrf.mxu1 }
 0x607   : > { %7332 = vst [vmem:[%s11560_s23 + $0x610] sm:$0xff] %v9314_v9  ;;  %7560 = vst [vmem:[%s11560_s23 + $0xd30] sm:$0xff] %v9542_v3 }
 0x608   : > { %v6100_v29 = vpop.f32.mrf.mxu0  ;;  %v7012_v36 = vpop.f32.mrf.mxu1 }
 0x609   : > { %7330 = vst [vmem:[%s11560_s23 + $0x600] sm:$0xff] %v6100_v29  ;;  %7558 = vst [vmem:[%s11560_s23 + $0xd20] sm:$0xff] %v7012_v36 }
 0x60a   : > { %v9315_v56 = vpop.f32.mrf.mxu0  ;;  %v9543_v41 = vpop.f32.mrf.mxu1 }
 0x60b   : > { %7333 = vst [vmem:[%s11560_s23 + $0x618] sm:$0xff] %v9315_v56  ;;  %7561 = vst [vmem:[%s11560_s23 + $0xd38] sm:$0xff] %v9543_v41 }
 0x60c   : > { %v6103_v7 = vpop.f32.mrf.mxu0  ;;  %v7015_v21 = vpop.f32.mrf.mxu1 }
 0x60d   : > { %7331 = vst [vmem:[%s11560_s23 + $0x608] sm:$0xff] %v6103_v7  ;;  %7559 = vst [vmem:[%s11560_s23 + $0xd28] sm:$0xff] %v7015_v21 }
 0x60e   : > { %v9318_v44 = vpop.f32.mrf.mxu0  ;;  %v9546_v30 = vpop.f32.mrf.mxu1 }
 0x60f   : > { %7336 = vst [vmem:[%s11560_s23 + $0x630] sm:$0xff] %v9318_v44  ;;  %7564 = vst [vmem:[%s11560_s23 + $0xd50] sm:$0xff] %v9546_v30 }
 0x610   : > { %v6116_v40 = vpop.f32.mrf.mxu0  ;;  %v7028_v33 = vpop.f32.mrf.mxu1 }
 0x611   : > { %7334 = vst [vmem:[%s11560_s23 + $0x620] sm:$0xff] %v6116_v40  ;;  %7562 = vst [vmem:[%s11560_s23 + $0xd40] sm:$0xff] %v7028_v33 }
 0x612   : > { %v9319_v0 = vpop.f32.mrf.mxu0  ;;  %v9547_v18 = vpop.f32.mrf.mxu1 }
 0x613   : > { %7337 = vst [vmem:[%s11560_s23 + $0x638] sm:$0xff] %v9319_v0  ;;  %7565 = vst [vmem:[%s11560_s23 + $0xd58] sm:$0xff] %v9547_v18 }
 0x614   : > { %v6119_v8 = vpop.f32.mrf.mxu0  ;;  %v7031_v14 = vpop.f32.mrf.mxu1 }
 0x615   : > { %7335 = vst [vmem:[%s11560_s23 + $0x628] sm:$0xff] %v6119_v8  ;;  %7563 = vst [vmem:[%s11560_s23 + $0xd48] sm:$0xff] %v7031_v14 }
 0x616   : > { %v9322_v54 = vpop.f32.mrf.mxu0  ;;  %v9550_v17 = vpop.f32.mrf.mxu1 }
 0x617   : > { %7340 = vst [vmem:[%s11560_s23 + $0x650] sm:$0xff] %v9322_v54  ;;  %7568 = vst [vmem:[%s11560_s23 + $0xd70] sm:$0xff] %v9550_v17 }
 0x618   : > { %v6132_v16 = vpop.f32.mrf.mxu0  ;;  %v7044_v20 = vpop.f32.mrf.mxu1 }
 0x619   : > { %7338 = vst [vmem:[%s11560_s23 + $0x640] sm:$0xff] %v6132_v16  ;;  %7566 = vst [vmem:[%s11560_s23 + $0xd60] sm:$0xff] %v7044_v20 }
 0x61a   : > { %v9323_v57 = vpop.f32.mrf.mxu0  ;;  %v9551_v25 = vpop.f32.mrf.mxu1 }
 0x61b   : > { %7341 = vst [vmem:[%s11560_s23 + $0x658] sm:$0xff] %v9323_v57  ;;  %7569 = vst [vmem:[%s11560_s23 + $0xd78] sm:$0xff] %v9551_v25 }
 0x61c   : > { %v6135_v58 = vpop.f32.mrf.mxu0  ;;  %v7047_v45 = vpop.f32.mrf.mxu1 }
 0x61d   : > { %7339 = vst [vmem:[%s11560_s23 + $0x648] sm:$0xff] %v6135_v58  ;;  %7567 = vst [vmem:[%s11560_s23 + $0xd68] sm:$0xff] %v7047_v45 }
 0x61e   : > { %v9326_v55 = vpop.f32.mrf.mxu0  ;;  %v9554_v39 = vpop.f32.mrf.mxu1 }
 0x61f   : > { %7344 = vst [vmem:[%s11560_s23 + $0x670] sm:$0xff] %v9326_v55  ;;  %7572 = vst [vmem:[%s11560_s23 + $0xd90] sm:$0xff] %v9554_v39 }
 0x620   : > { %v6148_v47 = vpop.f32.mrf.mxu0  ;;  %v7060_v61 = vpop.f32.mrf.mxu1 }
 0x621   : > { %7342 = vst [vmem:[%s11560_s23 + $0x660] sm:$0xff] %v6148_v47  ;;  %7570 = vst [vmem:[%s11560_s23 + $0xd80] sm:$0xff] %v7060_v61 }
 0x622   : > { %v9327_v37 = vpop.f32.mrf.mxu0  ;;  %v9555_v52 = vpop.f32.mrf.mxu1 }
 0x623   : > { %7345 = vst [vmem:[%s11560_s23 + $0x678] sm:$0xff] %v9327_v37  ;;  %7573 = vst [vmem:[%s11560_s23 + $0xd98] sm:$0xff] %v9555_v52 }
 0x624   : > { %v6151_v42 = vpop.f32.mrf.mxu0  ;;  %v7063_v43 = vpop.f32.mrf.mxu1 }
 0x625   : > { %7343 = vst [vmem:[%s11560_s23 + $0x668] sm:$0xff] %v6151_v42  ;;  %7571 = vst [vmem:[%s11560_s23 + $0xd88] sm:$0xff] %v7063_v43 }
 0x626   : > { %v9330_v6 = vpop.f32.mrf.mxu0  ;;  %v9558_v23 = vpop.f32.mrf.mxu1 }
 0x627   : > { %7348 = vst [vmem:[%s11560_s23 + $0x690] sm:$0xff] %v9330_v6  ;;  %7576 = vst [vmem:[%s11560_s23 + $0xdb0] sm:$0xff] %v9558_v23 }
 0x628   : > { %v6164_v50 = vpop.f32.mrf.mxu0  ;;  %v7076_v38 = vpop.f32.mrf.mxu1 }
 0x629   : > { %7346 = vst [vmem:[%s11560_s23 + $0x680] sm:$0xff] %v6164_v50  ;;  %7574 = vst [vmem:[%s11560_s23 + $0xda0] sm:$0xff] %v7076_v38 }
 0x62a   : > { %v9331_v10 = vpop.f32.mrf.mxu0  ;;  %v9559_v60 = vpop.f32.mrf.mxu1 }
 0x62b   : > { %7349 = vst [vmem:[%s11560_s23 + $0x698] sm:$0xff] %v9331_v10  ;;  %7577 = vst [vmem:[%s11560_s23 + $0xdb8] sm:$0xff] %v9559_v60 }
 0x62c   : > { %v6167_v15 = vpop.f32.mrf.mxu0  ;;  %v7079_v13 = vpop.f32.mrf.mxu1 }
 0x62d   : > { %7347 = vst [vmem:[%s11560_s23 + $0x688] sm:$0xff] %v6167_v15  ;;  %7575 = vst [vmem:[%s11560_s23 + $0xda8] sm:$0xff] %v7079_v13 }
 0x62e   : > { %v9334_v28 = vpop.f32.mrf.mxu0  ;;  %v9562_v63 = vpop.f32.mrf.mxu1 }
 0x62f   : > { %7352 = vst [vmem:[%s11560_s23 + $0x6b0] sm:$0xff] %v9334_v28  ;;  %7580 = vst [vmem:[%s11560_s23 + $0xdd0] sm:$0xff] %v9562_v63 }
 0x630   : > { %v6180_v2 = vpop.f32.mrf.mxu0  ;;  %v7092_v46 = vpop.f32.mrf.mxu1 }
 0x631   : > { %7350 = vst [vmem:[%s11560_s23 + $0x6a0] sm:$0xff] %v6180_v2  ;;  %7578 = vst [vmem:[%s11560_s23 + $0xdc0] sm:$0xff] %v7092_v46 }
 0x632   : > { %v9335_v5 = vpop.f32.mrf.mxu0  ;;  %v9563_v49 = vpop.f32.mrf.mxu1 }
 0x633   : > { %7353 = vst [vmem:[%s11560_s23 + $0x6b8] sm:$0xff] %v9335_v5  ;;  %7581 = vst [vmem:[%s11560_s23 + $0xdd8] sm:$0xff] %v9563_v49 }
 0x634   : > { %v6183_v31 = vpop.f32.mrf.mxu0  ;;  %v7095_v51 = vpop.f32.mrf.mxu1 }
 0x635   : > { %7351 = vst [vmem:[%s11560_s23 + $0x6a8] sm:$0xff] %v6183_v31  ;;  %7579 = vst [vmem:[%s11560_s23 + $0xdc8] sm:$0xff] %v7095_v51 }
 0x636   : > { %v9338_v35 = vpop.f32.mrf.mxu0  ;;  %v9566_v11 = vpop.f32.mrf.mxu1 }
 0x637   : > { %7356 = vst [vmem:[%s11560_s23 + $0x6d0] sm:$0xff] %v9338_v35  ;;  %7584 = vst [vmem:[%s11560_s23 + $0xdf0] sm:$0xff] %v9566_v11 }
 0x638   : > { %v6196_v1 = vpop.f32.mrf.mxu0  ;;  %v7108_v59 = vpop.f32.mrf.mxu1 }
 0x639   : > { %7354 = vst [vmem:[%s11560_s23 + $0x6c0] sm:$0xff] %v6196_v1  ;;  %7582 = vst [vmem:[%s11560_s23 + $0xde0] sm:$0xff] %v7108_v59 }
 0x63a   : > { %v9339_v53 = vpop.f32.mrf.mxu0  ;;  %v9567_v19 = vpop.f32.mrf.mxu1 }
 0x63b   : > { %7357 = vst [vmem:[%s11560_s23 + $0x6d8] sm:$0xff] %v9339_v53  ;;  %7585 = vst [vmem:[%s11560_s23 + $0xdf8] sm:$0xff] %v9567_v19 }
 0x63c   : > { %v6199_v62 = vpop.f32.mrf.mxu0  ;;  %v7111_v27 = vpop.f32.mrf.mxu1 }
 0x63d   : > { %7355 = vst [vmem:[%s11560_s23 + $0x6c8] sm:$0xff] %v6199_v62  ;;  %7583 = vst [vmem:[%s11560_s23 + $0xde8] sm:$0xff] %v7111_v27 }
 0x63e   : > { %v9342_v22 = vpop.f32.mrf.mxu0  ;;  %v9570_v4 = vpop.f32.mrf.mxu1 }
 0x63f   : > { %7360 = vst [vmem:[%s11560_s23 + $0x6f0] sm:$0xff] %v9342_v22  ;;  %7588 = vst [vmem:[%s11560_s23 + $0xe10] sm:$0x3f] %v9570_v4 }
 0x640   : > { %v6212_v24 = vpop.f32.mrf.mxu0  ;;  %v7124_v26 = vpop.f32.mrf.mxu1 }
 0x641   : > { %7358 = vst [vmem:[%s11560_s23 + $0x6e0] sm:$0xff] %v6212_v24  ;;  %7586 = vst [vmem:[%s11560_s23 + $0xe00] sm:$0xff] %v7124_v26 }
 0x642   : > { %v9343_v34 = vpop.f32.mrf.mxu0  ;;  %v9571_v32 = vpop.f32.mrf.mxu1 }
 0x643   : > { %7361 = vst [vmem:[%s11560_s23 + $0x6f8] sm:$0xff] %v9343_v34 }
 0x644   : > { %v6215_v12 = vpop.f32.mrf.mxu0  ;;  %v7127_v48 = vpop.f32.mrf.mxu1 }
 0x645   : > { %7359 = vst [vmem:[%s11560_s23 + $0x6e8] sm:$0xff] %v6215_v12  ;;  %7587 = vst [vmem:[%s11560_s23 + $0xe08] sm:$0xff] %v7127_v48 }
 0x646   : > { %v9346_v9 = vpop.f32.mrf.mxu0 }
 0x647   : > { %7364 = vst [vmem:[%s11560_s23 + $0x710] sm:$0xff] %v9346_v9 }
 0x648   : > { %v6228_v3 = vpop.f32.mrf.mxu0 }
 0x649   : > { %7362 = vst [vmem:[%s11560_s23 + $0x700] sm:$0xff] %v6228_v3 }
 0x64a   : > { %v9347_v29 = vpop.f32.mrf.mxu0 }
 0x64b   : > { %7365 = vst [vmem:[%s11560_s23 + $0x718] sm:$0xff] %v9347_v29 }
 0x64c   : > { %v6231_v36 = vpop.f32.mrf.mxu0 }
 0x64d   : > { %7363 = vst [vmem:[%s11560_s23 + $0x708] sm:$0xff] %v6231_v36 }
 0x64e PF: > { %s18_s29 = sadd.s32 1, %s10061_s29   ;;  %s12551_s27 = smov %s10057_s28 }
 0x64f   : > { %p15_p5 = scmp.ge.s32.totalorder %s18_s29, 4   ;;  %s12552_s28 = smov %s12554_s30 }
 0x651   :  { %17 = sbr.rel (!%p15_p5) target bundleno = 2 (0x2), region = 82 }

</bundles_post_ra>
